<compile_context>
chip_gen: v6e
topology: v6e:2x2x1
jax: 0.10.0
libtpu: 0.0.40
codegen_flags: <defaults>
</compile_context>

<pallas_src>
import functools

import jax
import jax.numpy as jnp
from jax.experimental import pallas as pl
from jax.experimental.pallas import tpu as pltpu


def _round_up(n, m):
    return -(-n // m) * m


def _chip_kind():
    try:
        return jax.devices()[0].device_kind.lower()
    except Exception:
        return ""


def _cores_per_chip(kind):
    # v7x (and v4 megacore) expose 2 TensorCores per chip behind one device;
    # v5e / v6e are single-TC.
    return 2 if ("v7" in kind or "v4" in kind) else 1


def _act_dtype_for_chip(kind):
    # bf16-native VPU/EUP only on v6e / v7x; keep f32 elsewhere (v5e).
    return jnp.bfloat16 if ("v6" in kind or "v7" in kind) else jnp.float32


def _vmem_estimate_bytes(bm, d_in, h_dim):
    """Rough per-tile VMEM working-set estimate (conservative)."""
    x_tile = bm * d_in * 4 * 2                     # f32 x, double-buffered
    out_tile = bm * 128 * 4 * 2                    # out block, lane-padded
    weights = (d_in * h_dim + h_dim * h_dim + h_dim * d_in) * 2 * 2  # bf16 (+slack)
    biases = (2 * h_dim + d_in) * 4 * 8            # sublane-padded f32
    inter = bm * (2 * h_dim + 3 * d_in) * 4        # live f32 intermediates
    return x_tile + out_tile + weights + biases + inter


def energy_net_kernel(x_ref, w0_ref, b0_ref, w1_ref, b1_ref, wo_ref, bo_ref,
                      out_ref, *, inv_2sigma2, act_dtype):
    # One batch tile: [bm, input_dim] f32 (kept for the residual).
    x_f32 = x_ref[...]
    x_bf = x_f32.astype(jnp.bfloat16)

    # hidden layer 0: Linear(input_dim, h_dim) + swish  (bf16 MXU, f32 acc)
    h = jnp.dot(x_bf, w0_ref[...], preferred_element_type=jnp.float32) + b0_ref[...]
    h = h.astype(act_dtype)
    h = h * jax.nn.sigmoid(h)

    # hidden layer 1: Linear(h_dim, h_dim) + swish      (h_layer_num = 1)
    h = jnp.dot(h.astype(jnp.bfloat16), w1_ref[...],
                preferred_element_type=jnp.float32) + b1_ref[...]
    h = h.astype(act_dtype)
    h = h * jax.nn.sigmoid(h)

    # output layer: Linear(h_dim, input_dim)
    y = jnp.dot(h.astype(jnp.bfloat16), wo_ref[...],
                preferred_element_type=jnp.float32) + bo_ref[...]

    # energy = sum((y - x)^2, -1) * 1/(2*sigma^2)   (all f32)
    d = y - x_f32
    out_ref[...] = jnp.sum(d * d, axis=-1, keepdims=True) * inv_2sigma2


def energy_net_forward(x, params, *, sigma=0.1, bm=2048, act_dtype=None):
    """x: [B, input_dim] float32. Returns energies of shape [B] (float32)."""
    B, input_dim = x.shape
    w0, b0, w1, b1, wo, bo = params
    h_dim = w0.shape[1]

    kind = _chip_kind()
    cores = _cores_per_chip(kind)
    if act_dtype is None:
        act_dtype = _act_dtype_for_chip(kind)

    # bf16 matmul operands on the MXU (weights halved in VMEM/HBM traffic);
    # biases stay f32 for the f32 accumulation path.
    w0 = w0.astype(jnp.bfloat16)
    w1 = w1.astype(jnp.bfloat16)
    wo = wo.astype(jnp.bfloat16)
    b0 = b0.astype(jnp.float32)
    b1 = b1.astype(jnp.float32)
    bo = bo.astype(jnp.float32)

    # --- batch-tile selection -------------------------------------------------
    VMEM_LIMIT = 32 * 1024 * 1024   # explicit scoped-VMEM limit (safe on v5e)
    VMEM_BUDGET = 24 * 1024 * 1024  # headroom under the limit

    bm_eff = min(_round_up(max(bm, 16), 16), _round_up(B, 16))
    # Cap the tile so the per-tile working set stays within budget.
    while bm_eff > 16 and _vmem_estimate_bytes(bm_eff, input_dim, h_dim) > VMEM_BUDGET:
        bm_eff = max(16, _round_up(bm_eff // 2, 16))
    grid_n = -(-B // bm_eff)

    # Dual-TensorCore chips (v7x): ensure >= 2 steps per core so the per-core
    # BlockSpec double-buffer can hide the x-tile DMA. Single-TC chips skip
    # this (a forced split is pure serial overhead there).
    if cores > 1:
        min_steps = 2 * cores
        if grid_n < min_steps and B >= 16 * min_steps:
            bm_eff = _round_up(-(-B // min_steps), 16)
            grid_n = -(-B // bm_eff)

    B_pad = grid_n * bm_eff
    if B_pad != B:
        x = jnp.pad(x, ((0, B_pad - B), (0, 0)))

    inv_2sigma2 = 1.0 / (2.0 * float(sigma) * float(sigma))
    kernel = functools.partial(energy_net_kernel,
                               inv_2sigma2=inv_2sigma2, act_dtype=act_dtype)

    flops = 2 * B_pad * (input_dim * h_dim + h_dim * h_dim + h_dim * input_dim)
    transcendentals = 2 * B_pad * h_dim  # two sigmoids per hidden unit
    bytes_accessed = (
        B_pad * input_dim * 4                                           # x (f32)
        + (input_dim * h_dim + h_dim * h_dim + h_dim * input_dim) * 2   # bf16 W
        + (2 * h_dim + input_dim) * 4                                    # biases
        + B_pad * 4                                                      # energies
    )

    def _build_call(single_buffer_weights):
        # Weights/biases are grid-invariant (constant index_map); single-buffer
        # them to avoid a wasted second VMEM copy.
        const_kw = ({'pipeline_mode': pl.Buffered(1)}
                    if single_buffer_weights else {})
        in_specs = [
            pl.BlockSpec((bm_eff, input_dim), lambda i: (i, 0)),            # x tile
            pl.BlockSpec((input_dim, h_dim), lambda i: (0, 0), **const_kw),  # w0
            pl.BlockSpec((1, h_dim), lambda i: (0, 0), **const_kw),          # b0
            pl.BlockSpec((h_dim, h_dim), lambda i: (0, 0), **const_kw),      # w1
            pl.BlockSpec((1, h_dim), lambda i: (0, 0), **const_kw),          # b1
            pl.BlockSpec((h_dim, input_dim), lambda i: (0, 0), **const_kw),  # w_out
            pl.BlockSpec((1, input_dim), lambda i: (0, 0), **const_kw),      # b_out
        ]
        return pl.pallas_call(
            kernel,
            out_shape=jax.ShapeDtypeStruct((B_pad, 1), jnp.float32),
            grid_spec=pltpu.PrefetchScalarGridSpec(
                num_scalar_prefetch=0,
                grid=(grid_n,),
                in_specs=in_specs,
                out_specs=pl.BlockSpec((bm_eff, 1), lambda i: (i, 0)),
            ),
            compiler_params=pltpu.CompilerParams(
                dimension_semantics=("parallel",),
                vmem_limit_bytes=VMEM_LIMIT),
            cost_estimate=pl.CostEstimate(
                flops=flops,
                transcendentals=transcendentals,
                bytes_accessed=bytes_accessed),
        )

    args = (x, w0, b0, w1, b1, wo, bo)
    try:
        out = _build_call(True)(*args)
    except Exception:
        # Fallback: default (double-buffered) weight specs.
        out = _build_call(False)(*args)
    return out[:B, 0]


def init_params(key, input_dim, h_dim):
    """Deterministic init matching nn.Linear shapes (stored as [in, out], f32)."""
    def linear(key, fan_in, fan_out):
        kw, kb = jax.random.split(key)
        bound = 1.0 / jnp.sqrt(fan_in)
        w = jax.random.uniform(kw, (fan_in, fan_out), jnp.float32, -bound, bound)
        b = jax.random.uniform(kb, (1, fan_out), jnp.float32, -bound, bound)
        return w, b

    k0, k1, k2 = jax.random.split(key, 3)
    w0, b0 = linear(k0, input_dim, h_dim)   # fc_list[0]
    w1, b1 = linear(k1, h_dim, h_dim)       # fc_list[1]
    wo, bo = linear(k2, h_dim, input_dim)   # fc_out
    return (w0, b0, w1, b1, wo, bo)


def _swish(x):
    return x * jax.nn.sigmoid(x)


def reference_forward_f32(x, params, sigma):
    """Pure f32 reference (matches the torch module bit-for-bit semantics)."""
    w0, b0, w1, b1, wo, bo = params
    h = _swish(x @ w0 + b0)
    h = _swish(h @ w1 + b1)
    y = h @ wo + bo
    return jnp.sum((y - x) ** 2, axis=-1) / (2.0 * sigma ** 2)


def reference_forward_mixed(x, params, sigma, act_dtype):
    """Reference mirroring the kernel's bf16-operand matmuls + act dtype."""
    w0, b0, w1, b1, wo, bo = params
    w0b, w1b, wob = (w.astype(jnp.bfloat16) for w in (w0, w1, wo))
    h = jnp.dot(x.astype(jnp.bfloat16), w0b, preferred_element_type=jnp.float32) + b0
    h = h.astype(act_dtype)
    h = h * jax.nn.sigmoid(h)
    h = jnp.dot(h.astype(jnp.bfloat16), w1b, preferred_element_type=jnp.float32) + b1
    h = h.astype(act_dtype)
    h = h * jax.nn.sigmoid(h)
    y = jnp.dot(h.astype(jnp.bfloat16), wob, preferred_element_type=jnp.float32) + bo
    return jnp.sum((y - x.astype(jnp.float32)) ** 2, axis=-1) / (2.0 * sigma ** 2)


if __name__ == "__main__":
    # Shapes consistent with the module's forward (x.view(-1, input_dim)).
    B, INPUT_DIM, H_DIM = 512, 128, 256
    SIGMA = 0.1

    key = jax.random.PRNGKey(0)
    kx, kp = jax.random.split(key)
    x = jax.random.normal(kx, (B, INPUT_DIM), dtype=jnp.float32)
    params = init_params(kp, INPUT_DIM, H_DIM)

    act_dtype = _act_dtype_for_chip(_chip_kind())

    energies = jax.block_until_ready(
        energy_net_forward(x, params, sigma=SIGMA))
    assert energies.shape == (B,)

    # Tight check against a reference with identical mixed-precision ops.
    ref_mixed = reference_forward_mixed(x, params, SIGMA, act_dtype)
    assert jnp.allclose(energies, ref_mixed, rtol=5e-3, atol=1e-1), (
        float(jnp.max(jnp.abs(energies - ref_mixed))))
    # Loose check against the full-f32 torch-equivalent reference.
    ref_f32 = reference_forward_f32(x, params, SIGMA)
    assert jnp.allclose(energies, ref_f32, rtol=5e-2, atol=2.0), (
        float(jnp.max(jnp.abs(energies - ref_f32))))

    # Exercise the padding / tile-shrink path (B not a multiple of 16 rounding).
    x_small = x[:48]
    e_small = jax.block_until_ready(
        energy_net_forward(x_small, params, sigma=SIGMA))
    assert e_small.shape == (48,)
    assert jnp.allclose(e_small, ref_mixed[:48], rtol=5e-3, atol=1e-1)

    # Exercise a multi-step grid (pipelined x DMA) with a small forced tile.
    x_mid = x[:200]
    e_mid = jax.block_until_ready(
        energy_net_forward(x_mid, params, sigma=SIGMA, bm=64))
    assert e_mid.shape == (200,)
    assert jnp.allclose(e_mid, ref_mixed[:200], rtol=5e-3, atol=1e-1)

    print("KERNEL_OK")
</pallas_src>

<mosaic_0001>
module attributes {stable_mosaic.version = 11 : i64} {
  func.func @energy_net_kernel(%arg0: i32, %arg1: memref<512x128xf32, #tpu.memory_space<vmem>>, %arg2: memref<128x256xbf16, #tpu.memory_space<vmem>>, %arg3: memref<1x256xf32, #tpu.memory_space<vmem>>, %arg4: memref<256x256xbf16, #tpu.memory_space<vmem>>, %arg5: memref<1x256xf32, #tpu.memory_space<vmem>>, %arg6: memref<256x128xbf16, #tpu.memory_space<vmem>>, %arg7: memref<1x128xf32, #tpu.memory_space<vmem>>, %arg8: memref<512x1xf32, #tpu.memory_space<vmem>>) attributes {dimension_semantics = [#tpu.dimension_semantics<parallel>], iteration_bounds = array<i64: 1>, scalar_prefetch = 0 : i64, scratch_operands = 0 : i64, tpu.core_type = #tpu.core_type<tc>, window_params = [{transform_indices = @transform_0, window_bounds = array<i64: 512, 128>}, {pipeline_mode = #tpu.pipeline_mode<synchronous>, transform_indices = @transform_1, window_bounds = array<i64: 128, 256>}, {pipeline_mode = #tpu.pipeline_mode<synchronous>, transform_indices = @transform_2, window_bounds = array<i64: 1, 256>}, {pipeline_mode = #tpu.pipeline_mode<synchronous>, transform_indices = @transform_3, window_bounds = array<i64: 256, 256>}, {pipeline_mode = #tpu.pipeline_mode<synchronous>, transform_indices = @transform_4, window_bounds = array<i64: 1, 256>}, {pipeline_mode = #tpu.pipeline_mode<synchronous>, transform_indices = @transform_5, window_bounds = array<i64: 256, 128>}, {pipeline_mode = #tpu.pipeline_mode<synchronous>, transform_indices = @transform_6, window_bounds = array<i64: 1, 128>}, {transform_indices = @transform_7, window_bounds = array<i64: 512, 1>}]} {
    %c0 = arith.constant 0 : index
    %c0_0 = arith.constant 0 : index
    %0 = vector.load %arg1[%c0, %c0_0] : memref<512x128xf32, #tpu.memory_space<vmem>>, vector<512x128xf32>
    %1 = arith.truncf %0 : vector<512x128xf32> to vector<512x128xbf16>
    %c0_1 = arith.constant 0 : index
    %c0_2 = arith.constant 0 : index
    %2 = vector.load %arg2[%c0_1, %c0_2] : memref<128x256xbf16, #tpu.memory_space<vmem>>, vector<128x256xbf16>
    %cst = arith.constant dense<0.000000e+00> : vector<512x256xf32>
    %3 = tpu.matmul %1, %2, %cst {dimension_numbers = #tpu.dot_dimension_numbers<[1], [0], [0], [1], [0, 0, 1, 1], [], []>} : vector<512x128xbf16>, vector<128x256xbf16>, vector<512x256xf32> -> vector<512x256xf32>
    %c0_3 = arith.constant 0 : index
    %c0_4 = arith.constant 0 : index
    %4 = vector.load %arg3[%c0_3, %c0_4] : memref<1x256xf32, #tpu.memory_space<vmem>>, vector<1x256xf32>
    %5 = vector.broadcast %4 : vector<1x256xf32> to vector<512x256xf32>
    %6 = arith.addf %3, %5 : vector<512x256xf32>
    %7 = arith.negf %6 : vector<512x256xf32>
    %8 = math.exp %7 : vector<512x256xf32>
    %cst_5 = arith.constant 1.000000e+00 : f32
    %9 = vector.broadcast %cst_5 : f32 to vector<512x256xf32>
    %10 = arith.addf %9, %8 : vector<512x256xf32>
    %11 = arith.divf %9, %10 : vector<512x256xf32>
    %12 = arith.mulf %6, %11 : vector<512x256xf32>
    %13 = arith.truncf %12 : vector<512x256xf32> to vector<512x256xbf16>
    %c0_6 = arith.constant 0 : index
    %c0_7 = arith.constant 0 : index
    %14 = vector.load %arg4[%c0_6, %c0_7] : memref<256x256xbf16, #tpu.memory_space<vmem>>, vector<256x256xbf16>
    %cst_8 = arith.constant dense<0.000000e+00> : vector<512x256xf32>
    %15 = tpu.matmul %13, %14, %cst_8 {dimension_numbers = #tpu.dot_dimension_numbers<[1], [0], [0], [1], [0, 0, 1, 1], [], []>} : vector<512x256xbf16>, vector<256x256xbf16>, vector<512x256xf32> -> vector<512x256xf32>
    %c0_9 = arith.constant 0 : index
    %c0_10 = arith.constant 0 : index
    %16 = vector.load %arg5[%c0_9, %c0_10] : memref<1x256xf32, #tpu.memory_space<vmem>>, vector<1x256xf32>
    %17 = vector.broadcast %16 : vector<1x256xf32> to vector<512x256xf32>
    %18 = arith.addf %15, %17 : vector<512x256xf32>
    %19 = arith.negf %18 : vector<512x256xf32>
    %20 = math.exp %19 : vector<512x256xf32>
    %cst_11 = arith.constant 1.000000e+00 : f32
    %21 = vector.broadcast %cst_11 : f32 to vector<512x256xf32>
    %22 = arith.addf %21, %20 : vector<512x256xf32>
    %23 = arith.divf %21, %22 : vector<512x256xf32>
    %24 = arith.mulf %18, %23 : vector<512x256xf32>
    %25 = arith.truncf %24 : vector<512x256xf32> to vector<512x256xbf16>
    %c0_12 = arith.constant 0 : index
    %c0_13 = arith.constant 0 : index
    %26 = vector.load %arg6[%c0_12, %c0_13] : memref<256x128xbf16, #tpu.memory_space<vmem>>, vector<256x128xbf16>
    %cst_14 = arith.constant dense<0.000000e+00> : vector<512x128xf32>
    %27 = tpu.matmul %25, %26, %cst_14 {dimension_numbers = #tpu.dot_dimension_numbers<[1], [0], [0], [1], [0, 0, 1, 1], [], []>} : vector<512x256xbf16>, vector<256x128xbf16>, vector<512x128xf32> -> vector<512x128xf32>
    %c0_15 = arith.constant 0 : index
    %c0_16 = arith.constant 0 : index
    %28 = vector.load %arg7[%c0_15, %c0_16] : memref<1x128xf32, #tpu.memory_space<vmem>>, vector<1x128xf32>
    %29 = vector.broadcast %28 : vector<1x128xf32> to vector<512x128xf32>
    %30 = arith.addf %27, %29 : vector<512x128xf32>
    %31 = arith.subf %30, %0 : vector<512x128xf32>
    %32 = arith.mulf %31, %31 : vector<512x128xf32>
    %cst_17 = arith.constant dense<0.000000e+00> : vector<512xf32>
    %33 = vector.multi_reduction <add>, %32, %cst_17 [1] : vector<512x128xf32> to vector<512xf32>
    %34 = vector.shape_cast %33 : vector<512xf32> to vector<512x1xf32>
    %cst_18 = arith.constant 5.000000e+01 : f32
    %35 = vector.broadcast %cst_18 : f32 to vector<512x1xf32>
    %36 = arith.mulf %34, %35 : vector<512x1xf32>
    %c0_19 = arith.constant 0 : index
    %c0_20 = arith.constant 0 : index
    %37 = vector.load %arg8[%c0_19, %c0_20] : memref<512x1xf32, #tpu.memory_space<vmem>>, vector<512x1xf32>
    tpu.vector_store %arg8[%c0_19, %c0_20], %36 {strides = array<i32>} : memref<512x1xf32, #tpu.memory_space<vmem>>, vector<512x1xf32>,
    return
  }
  func.func @transform_0(%arg0: i32) -> (i32, i32) {
    %c0_i32 = arith.constant 0 : i32
    %c0_i32_0 = arith.constant 0 : i32
    return %arg0, %c0_i32 : i32, i32
  }
  func.func @transform_1(%arg0: i32) -> (i32, i32) {
    %c0_i32 = arith.constant 0 : i32
    %c0_i32_0 = arith.constant 0 : i32
    %c0_i32_1 = arith.constant 0 : i32
    return %c0_i32, %c0_i32_0 : i32, i32
  }
  func.func @transform_2(%arg0: i32) -> (i32, i32) {
    %c0_i32 = arith.constant 0 : i32
    %c0_i32_0 = arith.constant 0 : i32
    %c0_i32_1 = arith.constant 0 : i32
    return %c0_i32, %c0_i32_0 : i32, i32
  }
  func.func @transform_3(%arg0: i32) -> (i32, i32) {
    %c0_i32 = arith.constant 0 : i32
    %c0_i32_0 = arith.constant 0 : i32
    %c0_i32_1 = arith.constant 0 : i32
    return %c0_i32, %c0_i32_0 : i32, i32
  }
  func.func @transform_4(%arg0: i32) -> (i32, i32) {
    %c0_i32 = arith.constant 0 : i32
    %c0_i32_0 = arith.constant 0 : i32
    %c0_i32_1 = arith.constant 0 : i32
    return %c0_i32, %c0_i32_0 : i32, i32
  }
  func.func @transform_5(%arg0: i32) -> (i32, i32) {
    %c0_i32 = arith.constant 0 : i32
    %c0_i32_0 = arith.constant 0 : i32
    %c0_i32_1 = arith.constant 0 : i32
    return %c0_i32, %c0_i32_0 : i32, i32
  }
  func.func @transform_6(%arg0: i32) -> (i32, i32) {
    %c0_i32 = arith.constant 0 : i32
    %c0_i32_0 = arith.constant 0 : i32
    %c0_i32_1 = arith.constant 0 : i32
    return %c0_i32, %c0_i32_0 : i32, i32
  }
  func.func @transform_7(%arg0: i32) -> (i32, i32) {
    %c0_i32 = arith.constant 0 : i32
    %c0_i32_0 = arith.constant 0 : i32
    return %arg0, %c0_i32 : i32, i32
  }
}

module attributes {stable_mosaic.version = 11 : i64} {
  func.func @energy_net_kernel(%arg0: i32, %arg1: memref<512x128xf32, #tpu.memory_space<vmem>>, %arg2: memref<128x256xbf16, #tpu.memory_space<vmem>>, %arg3: memref<1x256xf32, #tpu.memory_space<vmem>>, %arg4: memref<256x256xbf16, #tpu.memory_space<vmem>>, %arg5: memref<1x256xf32, #tpu.memory_space<vmem>>, %arg6: memref<256x128xbf16, #tpu.memory_space<vmem>>, %arg7: memref<1x128xf32, #tpu.memory_space<vmem>>, %arg8: memref<512x1xf32, #tpu.memory_space<vmem>>) attributes {dimension_semantics = [#tpu.dimension_semantics<parallel>], iteration_bounds = array<i64: 1>, scalar_prefetch = 0 : i64, scratch_operands = 0 : i64, tpu.core_type = #tpu.core_type<tc>, window_params = [{transform_indices = @transform_0, window_bounds = array<i64: 512, 128>}, {pipeline_mode = #tpu.pipeline_mode<synchronous>, transform_indices = @transform_1, window_bounds = array<i64: 128, 256>}, {pipeline_mode = #tpu.pipeline_mode<synchronous>, transform_indices = @transform_2, window_bounds = array<i64: 1, 256>}, {pipeline_mode = #tpu.pipeline_mode<synchronous>, transform_indices = @transform_3, window_bounds = array<i64: 256, 256>}, {pipeline_mode = #tpu.pipeline_mode<synchronous>, transform_indices = @transform_4, window_bounds = array<i64: 1, 256>}, {pipeline_mode = #tpu.pipeline_mode<synchronous>, transform_indices = @transform_5, window_bounds = array<i64: 256, 128>}, {pipeline_mode = #tpu.pipeline_mode<synchronous>, transform_indices = @transform_6, window_bounds = array<i64: 1, 128>}, {transform_indices = @transform_7, window_bounds = array<i64: 512, 1>}]} {
    %c0 = arith.constant 0 : index
    %c0_0 = arith.constant 0 : index
    %0 = vector.load %arg1[%c0, %c0_0] : memref<512x128xf32, #tpu.memory_space<vmem>>, vector<512x128xf32>
    %1 = arith.truncf %0 : vector<512x128xf32> to vector<512x128xbf16>
    %c0_1 = arith.constant 0 : index
    %c0_2 = arith.constant 0 : index
    %2 = vector.load %arg2[%c0_1, %c0_2] : memref<128x256xbf16, #tpu.memory_space<vmem>>, vector<128x256xbf16>
    %cst = arith.constant dense<0.000000e+00> : vector<512x256xf32>
    %3 = tpu.matmul %1, %2, %cst {dimension_numbers = #tpu.dot_dimension_numbers<[1], [0], [0], [1], [0, 0, 1, 1], [], []>} : vector<512x128xbf16>, vector<128x256xbf16>, vector<512x256xf32> -> vector<512x256xf32>
    %c0_3 = arith.constant 0 : index
    %c0_4 = arith.constant 0 : index
    %4 = vector.load %arg3[%c0_3, %c0_4] : memref<1x256xf32, #tpu.memory_space<vmem>>, vector<1x256xf32>
    %5 = vector.broadcast %4 : vector<1x256xf32> to vector<512x256xf32>
    %6 = arith.addf %3, %5 : vector<512x256xf32>
    %7 = arith.negf %6 : vector<512x256xf32>
    %8 = math.exp %7 : vector<512x256xf32>
    %cst_5 = arith.constant 1.000000e+00 : f32
    %9 = vector.broadcast %cst_5 : f32 to vector<512x256xf32>
    %10 = arith.addf %9, %8 : vector<512x256xf32>
    %11 = arith.divf %9, %10 : vector<512x256xf32>
    %12 = arith.mulf %6, %11 : vector<512x256xf32>
    %13 = arith.truncf %12 : vector<512x256xf32> to vector<512x256xbf16>
    %c0_6 = arith.constant 0 : index
    %c0_7 = arith.constant 0 : index
    %14 = vector.load %arg4[%c0_6, %c0_7] : memref<256x256xbf16, #tpu.memory_space<vmem>>, vector<256x256xbf16>
    %cst_8 = arith.constant dense<0.000000e+00> : vector<512x256xf32>
    %15 = tpu.matmul %13, %14, %cst_8 {dimension_numbers = #tpu.dot_dimension_numbers<[1], [0], [0], [1], [0, 0, 1, 1], [], []>} : vector<512x256xbf16>, vector<256x256xbf16>, vector<512x256xf32> -> vector<512x256xf32>
    %c0_9 = arith.constant 0 : index
    %c0_10 = arith.constant 0 : index
    %16 = vector.load %arg5[%c0_9, %c0_10] : memref<1x256xf32, #tpu.memory_space<vmem>>, vector<1x256xf32>
    %17 = vector.broadcast %16 : vector<1x256xf32> to vector<512x256xf32>
    %18 = arith.addf %15, %17 : vector<512x256xf32>
    %19 = arith.negf %18 : vector<512x256xf32>
    %20 = math.exp %19 : vector<512x256xf32>
    %cst_11 = arith.constant 1.000000e+00 : f32
    %21 = vector.broadcast %cst_11 : f32 to vector<512x256xf32>
    %22 = arith.addf %21, %20 : vector<512x256xf32>
    %23 = arith.divf %21, %22 : vector<512x256xf32>
    %24 = arith.mulf %18, %23 : vector<512x256xf32>
    %25 = arith.truncf %24 : vector<512x256xf32> to vector<512x256xbf16>
    %c0_12 = arith.constant 0 : index
    %c0_13 = arith.constant 0 : index
    %26 = vector.load %arg6[%c0_12, %c0_13] : memref<256x128xbf16, #tpu.memory_space<vmem>>, vector<256x128xbf16>
    %cst_14 = arith.constant dense<0.000000e+00> : vector<512x128xf32>
    %27 = tpu.matmul %25, %26, %cst_14 {dimension_numbers = #tpu.dot_dimension_numbers<[1], [0], [0], [1], [0, 0, 1, 1], [], []>} : vector<512x256xbf16>, vector<256x128xbf16>, vector<512x128xf32> -> vector<512x128xf32>
    %c0_15 = arith.constant 0 : index
    %c0_16 = arith.constant 0 : index
    %28 = vector.load %arg7[%c0_15, %c0_16] : memref<1x128xf32, #tpu.memory_space<vmem>>, vector<1x128xf32>
    %29 = vector.broadcast %28 : vector<1x128xf32> to vector<512x128xf32>
    %30 = arith.addf %27, %29 : vector<512x128xf32>
    %31 = arith.subf %30, %0 : vector<512x128xf32>
    %32 = arith.mulf %31, %31 : vector<512x128xf32>
    %cst_17 = arith.constant dense<0.000000e+00> : vector<512xf32>
    %33 = vector.multi_reduction <add>, %32, %cst_17 [1] : vector<512x128xf32> to vector<512xf32>
    %34 = vector.shape_cast %33 : vector<512xf32> to vector<512x1xf32>
    %cst_18 = arith.constant 5.000000e+01 : f32
    %35 = vector.broadcast %cst_18 : f32 to vector<512x1xf32>
    %36 = arith.mulf %34, %35 : vector<512x1xf32>
    %c0_19 = arith.constant 0 : index
    %c0_20 = arith.constant 0 : index
    %37 = vector.load %arg8[%c0_19, %c0_20] : memref<512x1xf32, #tpu.memory_space<vmem>>, vector<512x1xf32>
    tpu.vector_store %arg8[%c0_19, %c0_20], %36 {strides = array<i32>} : memref<512x1xf32, #tpu.memory_space<vmem>>, vector<512x1xf32>,
    return
  }
  func.func @transform_0(%arg0: i32) -> (i32, i32) {
    %c0_i32 = arith.constant 0 : i32
    %c0_i32_0 = arith.constant 0 : i32
    return %arg0, %c0_i32 : i32, i32
  }
  func.func @transform_1(%arg0: i32) -> (i32, i32) {
    %c0_i32 = arith.constant 0 : i32
    %c0_i32_0 = arith.constant 0 : i32
    %c0_i32_1 = arith.constant 0 : i32
    return %c0_i32, %c0_i32_0 : i32, i32
  }
  func.func @transform_2(%arg0: i32) -> (i32, i32) {
    %c0_i32 = arith.constant 0 : i32
    %c0_i32_0 = arith.constant 0 : i32
    %c0_i32_1 = arith.constant 0 : i32
    return %c0_i32, %c0_i32_0 : i32, i32
  }
  func.func @transform_3(%arg0: i32) -> (i32, i32) {
    %c0_i32 = arith.constant 0 : i32
    %c0_i32_0 = arith.constant 0 : i32
    %c0_i32_1 = arith.constant 0 : i32
    return %c0_i32, %c0_i32_0 : i32, i32
  }
  func.func @transform_4(%arg0: i32) -> (i32, i32) {
    %c0_i32 = arith.constant 0 : i32
    %c0_i32_0 = arith.constant 0 : i32
    %c0_i32_1 = arith.constant 0 : i32
    return %c0_i32, %c0_i32_0 : i32, i32
  }
  func.func @transform_5(%arg0: i32) -> (i32, i32) {
    %c0_i32 = arith.constant 0 : i32
    %c0_i32_0 = arith.constant 0 : i32
    %c0_i32_1 = arith.constant 0 : i32
    return %c0_i32, %c0_i32_0 : i32, i32
  }
  func.func @transform_6(%arg0: i32) -> (i32, i32) {
    %c0_i32 = arith.constant 0 : i32
    %c0_i32_0 = arith.constant 0 : i32
    %c0_i32_1 = arith.constant 0 : i32
    return %c0_i32, %c0_i32_0 : i32, i32
  }
  func.func @transform_7(%arg0: i32) -> (i32, i32) {
    %c0_i32 = arith.constant 0 : i32
    %c0_i32_0 = arith.constant 0 : i32
    return %arg0, %c0_i32 : i32, i32
  }
}

</mosaic_0001>

<bundles_post_ra>
// kernel: tpu_custom_call.1
= control target key start
LH: loop header
LB: loop body
LE: loop exit
PB: predicated region body
PF: predicated region fallthrough
CT: control target
= control target key end

     0   :  { %12 = vsyncpa [#allocation3], 0  ;;  %s7715_s0 = inlined_call_operand.hbm [shape: f32[512,128], index: 0, kind: input, shape index: {}]   ;;  %s7716_s1 = inlined_call_operand.hbm [shape: bf16[128,256], index: 1, kind: input, shape index: {}]   ;;  %s7717_s2 = inlined_call_operand.vmem [shape: f32[1,256], index: 2, kind: input, shape index: {}]   ;;  %s7718_s3 = inlined_call_operand.hbm [shape: bf16[256,256], index: 3, kind: input, shape index: {}]   ;;  %s7719_s4 = inlined_call_operand.vmem [shape: f32[1,256], index: 4, kind: input, shape index: {}]   ;;  %s7720_s5 = inlined_call_operand.hbm [shape: bf16[256,128], index: 5, kind: input, shape index: {}]   ;;  %s7721_s6 = inlined_call_operand.vmem [shape: f32[1,128], index: 6, kind: input, shape index: {}]   ;;  %s7722_s7 = inlined_call_operand.vmem [shape: f32[512,1], index: 7, kind: output, shape index: {}]  }
   0x1   :  { %13 = vsyncpa [#allocation5], 0 }
   0x2   :  { %14 = vsyncpa [#allocation8], 0  ;;  %s5541_s24 = smov [#allocation4]   ;;  %s5542_s26 = smov [#allocation2]  }
   0x3   :  { %s32_s25 = sshll.u32 %s5541_s24, 4  ;;  %s20_s27 = sshll.u32 %s5542_s26, 4  ;;  %s33_s25 = int_to_ptr.vmem [resolvable:$true] %s32_s25  ;;  %s21_s27 = int_to_ptr.vmem [resolvable:$true] %s20_s27 }
   0x4   :  { %s5463_s28 = scalar_lea.vmem %s33_s25, 2048  ;;  %p5468_p1 = scmp.lt.s32.totalorder %s33_s25, %s33_s25 }
   0x5   :  { %p5464_p0 = scmp.ne.s32.totalorder %s33_s25, %s5463_s28  ;;  %p5469_p2 = scmp.lt.s32.totalorder %s5463_s28, %s5463_s28 }
   0x7   :  { %p5470_p3 = por %p5469_p2, %p5468_p1 }
   0x9   :  { %p5471_p4 = pnand %p5470_p3, %p5464_p0 }
   0xb   :  { %5474 = shalt.err (!%p5471_p4)
}
   0xc   :  { %s5543_s29 = smov 128   ;;  %s5544_s30 = smov 8  }
   0xd   :  { %38 = dma.hbm_to_vmem [thread:$0]  %s7716_s1, 2048, %s33_s25, [#allocation5], %s5543_s29, %s5543_s29, %s5544_s30  }
   0xe   :  { %s5483_s10 = scalar_lea.vmem %s21_s27, 8192  ;;  %p5488_p6 = scmp.lt.s32.totalorder %s21_s27, %s21_s27 }
   0xf   :  { %p5484_p5 = scmp.ne.s32.totalorder %s21_s27, %s5483_s10  ;;  %p5489_p7 = scmp.lt.s32.totalorder %s5483_s10, %s5483_s10 }
  0x11   :  { %p5490_p8 = por %p5489_p7, %p5488_p6 }
  0x13   :  { %p5491_p9 = pnand %p5490_p8, %p5484_p5 }
  0x15   :  { %5494 = shalt.err (!%p5491_p9)
}
  0x16   :  { %26 = dma.hbm_to_vmem [thread:$0]  %s7715_s0, 8192, %s21_s27, [#allocation3], %s5543_s29, %s5543_s29, %s5544_s30  }
  0x17   :  { %s5545_s13 = smov [#allocation6]   ;;  %s5546_s15 = smov [#allocation7]  }
  0x18   :  { %s46_s14 = sshll.u32 %s5545_s13, 4  ;;  %s60_s16 = sshll.u32 %s5546_s15, 4  ;;  %s47_s14 = int_to_ptr.vmem [resolvable:$true] %s46_s14  ;;  %s61_s16 = int_to_ptr.vmem [resolvable:$true] %s60_s16 }
  0x19   :  { %s5503_s17 = scalar_lea.vmem %s47_s14, 4096  ;;  %p5508_p11 = scmp.lt.s32.totalorder %s47_s14, %s47_s14 }
  0x1a   :  { %p5504_p10 = scmp.ne.s32.totalorder %s47_s14, %s5503_s17  ;;  %p5509_p12 = scmp.lt.s32.totalorder %s5503_s17, %s5503_s17 }
  0x1c   :  { %p5510_p13 = por %p5509_p12, %p5508_p11 }
  0x1e   :  { %p5511_p0 = pnand %p5510_p13, %p5504_p10 }
  0x20   :  { %5514 = shalt.err (!%p5511_p0)
}
  0x21   :  { %52 = dma.hbm_to_vmem [thread:$0]  %s7718_s3, 4096, %s47_s14, [#allocation5], %s5543_s29, %s5543_s29, %s5544_s30  }
  0x22   :  { %s5523_s19 = scalar_lea.vmem %s61_s16, 2048  ;;  %p5528_p2 = scmp.lt.s32.totalorder %s61_s16, %s61_s16 }
  0x23   :  { %p5524_p1 = scmp.ne.s32.totalorder %s61_s16, %s5523_s19  ;;  %p5529_p3 = scmp.lt.s32.totalorder %s5523_s19, %s5523_s19 }
  0x25   :  { %p5530_p4 = por %p5529_p3, %p5528_p2 }
  0x27   :  { %p5531_p5 = pnand %p5530_p4, %p5524_p1 }
  0x29   :  { %5534 = shalt.err (!%p5531_p5)
}
  0x2a   :  { %s5547_s0 = smov 64   ;;  %s5548_s20 = smov 4  }
  0x2b   :  { %66 = dma.hbm_to_vmem [thread:$0]  %s7720_s5, 2048, %s61_s16, [#allocation8], %s5547_s0, %s5547_s0, %s5548_s20  }
  0x2c   :  { %5535 = dma.done.wait [#allocation3], 8192  }
  0x2d   :  { %5536 = vsyncadd [#allocation3], 4294959104 }
  0x2e   :  { %5537 = dma.done.wait [#allocation5], 6144  }
  0x2f   :  { %5538 = vsyncadd [#allocation5], 4294961152 }
  0x30   :  { %5539 = dma.done.wait [#allocation8], 2048  }
  0x31   :  { %5540 = vsyncadd [#allocation8], 4294965248  ;;  %v7725_v0 = vmov 0   ;;  %v4278_v1 = vld [vmem:[#allocation4 + $0x74] ss:$8 sps:$4 sm:$0xff]   ;;  %v82_v17 = vld [vmem:[#allocation2] sm:$0xff] }
  0x32   :  { %318 = vmatprep.mubr.bf16.mxu0 %v7725_v0  ;;  %478 = vmatprep.mubr.bf16.mxu1 %v7725_v0  ;;  %v4280_v2 = vld [vmem:[#allocation4 + $0x70] ss:$8 sps:$4 sm:$0xff]   ;;  %v4281_v3 = vld [vmem:[#allocation4 + $0x64] ss:$8 sps:$4 sm:$0xff]   ;;  %v4283_v4 = vld [vmem:[#allocation4 + $0x60] ss:$8 sps:$4 sm:$0xff]  }
  0x33   :  { %286 = vmatprep.subr.bf16.mxu0 %v4278_v1  ;;  %4253 = vmatprep.subr.bf16.mxu1 %v4278_v1  ;;  %v4284_v5 = vld [vmem:[#allocation4 + $0x54] ss:$8 sps:$4 sm:$0xff]   ;;  %v4286_v6 = vld [vmem:[#allocation4 + $0x50] ss:$8 sps:$4 sm:$0xff]   ;;  %v4287_v7 = vld [vmem:[#allocation4 + $0x44] ss:$8 sps:$4 sm:$0xff]  }
  0x34   :  { %287 = vmatpush1.bf16.msra.mxu0 %v4280_v2  ;;  %4261 = vmatpush1.bf16.msra.mxu1 %v4280_v2  ;;  %v4289_v8 = vld [vmem:[#allocation4 + $0x40] ss:$8 sps:$4 sm:$0xff]   ;;  %v4290_v9 = vld [vmem:[#allocation4 + $0x34] ss:$8 sps:$4 sm:$0xff]   ;;  %v4292_v10 = vld [vmem:[#allocation4 + $0x30] ss:$8 sps:$4 sm:$0xff]  }
  0x35   :  { %288 = vmatprep.subr.bf16.mxu0 %v4281_v3  ;;  %4254 = vmatprep.subr.bf16.mxu1 %v4281_v3  ;;  %v4293_v11 = vld [vmem:[#allocation4 + $0x24] ss:$8 sps:$4 sm:$0xff]   ;;  %v4295_v12 = vld [vmem:[#allocation4 + $0x20] ss:$8 sps:$4 sm:$0xff]   ;;  %v4296_v13 = vld [vmem:[#allocation4 + $0x14] ss:$8 sps:$4 sm:$0xff]  }
  0x36   :  { %v4298_v14 = vld [vmem:[#allocation4 + $0x10] ss:$8 sps:$4 sm:$0xff]   ;;  %v4299_v15 = vld [vmem:[#allocation4 + $0x4] ss:$8 sps:$4 sm:$0xff]   ;;  %v4301_v16 = vld [vmem:[#allocation4] ss:$8 sps:$4 sm:$0xff]  }
  0x37   :  { %v83_v18 = vld [vmem:[#allocation2 + $0x8] sm:$0xff]  ;;  %v114_v19 = vld [vmem:[#allocation2 + $0x100] sm:$0xff]  ;;  %v4304_v21 = vld [vmem:[#allocation6 + $0x74] ss:$8 sps:$4 sm:$0xff]   ;;  %vm3860_vm0 = vcmask 7168  }
  0x38   :  { %289 = vmatpush1.bf16.msra.mxu0 %v4283_v4  ;;  %4262 = vmatpush1.bf16.msra.mxu1 %v4283_v4  ;;  %v115_v20 = vld [vmem:[#allocation2 + $0x108] sm:$0xff]  ;;  %v146_v22 = vpack.c.bf16 %v83_v18, %v82_v17  ;;  %v4302_v24 = vld [vmem:[#allocation6 + $0x70] ss:$8 sps:$4 sm:$0xff]   ;;  %v4310_v31 = vld [vmem:[#allocation6 + $0x54] ss:$8 sps:$4 sm:$0xff]  }
  0x39   :  { %290 = vmatprep.subr.bf16.mxu0 %v4284_v5  ;;  %4255 = vmatprep.subr.bf16.mxu1 %v4284_v5  ;;  %v162_v23 = vpack.c.bf16 %v115_v20, %v114_v19  ;;  %v4307_v25 = vld [vmem:[#allocation6 + $0x64] ss:$8 sps:$4 sm:$0xff]   ;;  %v84_v26 = vld [vmem:[#allocation2 + $0x10] sm:$0xff]  ;;  %v85_v27 = vld [vmem:[#allocation2 + $0x18] sm:$0xff] }
  0x3a   :  { %v116_v28 = vld [vmem:[#allocation2 + $0x110] sm:$0xff]  ;;  %v117_v29 = vld [vmem:[#allocation2 + $0x118] sm:$0xff]  ;;  %v4305_v30 = vld [vmem:[#allocation6 + $0x60] ss:$8 sps:$4 sm:$0xff]   ;;  %v147_v32 = vpack.c.bf16 %v85_v27, %v84_v26 }
  0x3b   :  { %v163_v33 = vpack.c.bf16 %v117_v29, %v116_v28  ;;  %v4308_v34 = vld [vmem:[#allocation6 + $0x50] ss:$8 sps:$4 sm:$0xff]   ;;  %v4313_v35 = vld [vmem:[#allocation6 + $0x44] ss:$8 sps:$4 sm:$0xff]   ;;  %v4311_v40 = vld [vmem:[#allocation6 + $0x40] ss:$8 sps:$4 sm:$0xff]  }
  0x3c   :  { %291 = vmatpush1.bf16.msra.mxu0 %v4286_v6  ;;  %4263 = vmatpush1.bf16.msra.mxu1 %v4286_v6  ;;  %v86_v36 = vld [vmem:[#allocation2 + $0x20] sm:$0xff]  ;;  %v87_v37 = vld [vmem:[#allocation2 + $0x28] sm:$0xff]  ;;  %v4316_v41 = vld [vmem:[#allocation6 + $0x34] ss:$8 sps:$4 sm:$0xff]  }
  0x3d   :  { %292 = vmatprep.subr.bf16.mxu0 %v4287_v7  ;;  %4256 = vmatprep.subr.bf16.mxu1 %v4287_v7  ;;  %v118_v38 = vld [vmem:[#allocation2 + $0x120] sm:$0xff]  ;;  %v119_v39 = vld [vmem:[#allocation2 + $0x128] sm:$0xff]  ;;  %v148_v42 = vpack.c.bf16 %v87_v37, %v86_v36  ;;  %v4314_v44 = vld [vmem:[#allocation6 + $0x30] ss:$8 sps:$4 sm:$0xff]  }
  0x3e   :  { %v164_v43 = vpack.c.bf16 %v119_v39, %v118_v38  ;;  %v4319_v45 = vld [vmem:[#allocation6 + $0x24] ss:$8 sps:$4 sm:$0xff]   ;;  %v88_v46 = vld [vmem:[#allocation2 + $0x30] sm:$0xff]  ;;  %v89_v47 = vld [vmem:[#allocation2 + $0x38] sm:$0xff] }
  0x3f   :  { %v120_v48 = vld [vmem:[#allocation2 + $0x130] sm:$0xff]  ;;  %v121_v49 = vld [vmem:[#allocation2 + $0x138] sm:$0xff]  ;;  %v4317_v50 = vld [vmem:[#allocation6 + $0x20] ss:$8 sps:$4 sm:$0xff]   ;;  %v149_v52 = vpack.c.bf16 %v89_v47, %v88_v46 }
  0x40   :  { %293 = vmatpush1.bf16.msra.mxu0 %v4289_v8  ;;  %4264 = vmatpush1.bf16.msra.mxu1 %v4289_v8  ;;  %v4322_v51 = vld [vmem:[#allocation6 + $0x14] ss:$8 sps:$4 sm:$0xff]   ;;  %v165_v53 = vpack.c.bf16 %v121_v49, %v120_v48  ;;  %v4320_v54 = vld [vmem:[#allocation6 + $0x10] ss:$8 sps:$4 sm:$0xff]   ;;  %v4325_v55 = vld [vmem:[#allocation6 + $0x4] ss:$8 sps:$4 sm:$0xff]  }
  0x41   :  { %294 = vmatprep.subr.bf16.mxu0 %v4290_v9  ;;  %4257 = vmatprep.subr.bf16.mxu1 %v4290_v9  ;;  %v90_v56 = vld [vmem:[#allocation2 + $0x40] sm:$0xff]  ;;  %v91_v57 = vld [vmem:[#allocation2 + $0x48] sm:$0xff]  ;;  %v4328_v61 = vld [vmem:[#allocation6 + $0xf4] ss:$8 sps:$4 sm:$0xff]  }
  0x42   :  { %v122_v58 = vld [vmem:[#allocation2 + $0x140] sm:$0xff]  ;;  %v123_v59 = vld [vmem:[#allocation2 + $0x148] sm:$0xff]  ;;  %v150_v62 = vpack.c.bf16 %v91_v57, %v90_v56  ;;  %v4326_v1 = vld [vmem:[#allocation6 + $0xf0] ss:$8 sps:$4 sm:$0xff]  }
  0x43   :  { %v4323_v60 = vld [vmem:[#allocation6] ss:$8 sps:$4 sm:$0xff]   ;;  %v166_v63 = vpack.c.bf16 %v123_v59, %v122_v58  ;;  %v4331_v2 = vld [vmem:[#allocation6 + $0xe4] ss:$8 sps:$4 sm:$0xff]   ;;  %v92_v3 = vld [vmem:[#allocation2 + $0x50] sm:$0xff] }
  0x44   :  { %295 = vmatpush1.bf16.msra.mxu0 %v4292_v10  ;;  %4265 = vmatpush1.bf16.msra.mxu1 %v4292_v10  ;;  %v93_v4 = vld [vmem:[#allocation2 + $0x58] sm:$0xff]  ;;  %v124_v5 = vld [vmem:[#allocation2 + $0x150] sm:$0xff]  ;;  %v4329_v7 = vld [vmem:[#allocation6 + $0xe0] ss:$8 sps:$4 sm:$0xff]  }
  0x45   :  { %296 = vmatprep.subr.bf16.mxu0 %v4293_v11  ;;  %4258 = vmatprep.subr.bf16.mxu1 %v4293_v11  ;;  %v125_v6 = vld [vmem:[#allocation2 + $0x158] sm:$0xff]  ;;  %v151_v9 = vpack.c.bf16 %v93_v4, %v92_v3  ;;  %v96_v18 = vld [vmem:[#allocation2 + $0x70] sm:$0xff]  ;;  %v130_v26 = vld [vmem:[#allocation2 + $0x180] sm:$0xff] }
  0x46   :  { %v4334_v8 = vld [vmem:[#allocation6 + $0xd4] ss:$8 sps:$4 sm:$0xff]   ;;  %v167_v10 = vpack.c.bf16 %v125_v6, %v124_v5  ;;  %v4332_v11 = vld [vmem:[#allocation6 + $0xd0] ss:$8 sps:$4 sm:$0xff]   ;;  %v131_v27 = vld [vmem:[#allocation2 + $0x188] sm:$0xff] }
  0x47   :  { %v97_v19 = vld [vmem:[#allocation2 + $0x78] sm:$0xff]  ;;  %v128_v20 = vld [vmem:[#allocation2 + $0x170] sm:$0xff]  ;;  %v170_v29 = vpack.c.bf16 %v131_v27, %v130_v26  ;;  %v102_v36 = vld [vmem:[#allocation2 + $0xa0] sm:$0xff] }
  0x48   :  { %297 = vmatpush1.bf16.msra.mxu0 %v4295_v12  ;;  %4266 = vmatpush1.bf16.msra.mxu1 %v4295_v12  ;;  %v94_v12 = vld [vmem:[#allocation2 + $0x60] sm:$0xff]  ;;  %v103_v37 = vld [vmem:[#allocation2 + $0xa8] sm:$0xff]  ;;  %v4340_v56 = vld [vmem:[#allocation6 + $0xb4] ss:$8 sps:$4 sm:$0xff]  }
  0x49   :  { %298 = vmatprep.subr.bf16.mxu0 %v4296_v13  ;;  %4259 = vmatprep.subr.bf16.mxu1 %v4296_v13  ;;  %v95_v13 = vld [vmem:[#allocation2 + $0x68] sm:$0xff]  ;;  %v134_v38 = vld [vmem:[#allocation2 + $0x1a0] sm:$0xff]  ;;  %v4338_v57 = vld [vmem:[#allocation6 + $0xb0] ss:$8 sps:$4 sm:$0xff]  }
  0x4a   :  { %v135_v39 = vld [vmem:[#allocation2 + $0x1a8] sm:$0xff]  ;;  %v106_v48 = vld [vmem:[#allocation2 + $0xc0] sm:$0xff]  ;;  %v108_v58 = vld [vmem:[#allocation2 + $0xd0] sm:$0xff] }
  0x4b   :  { %v107_v49 = vld [vmem:[#allocation2 + $0xc8] sm:$0xff]  ;;  %v109_v59 = vld [vmem:[#allocation2 + $0xd8] sm:$0xff]  ;;  %v110_v5 = vld [vmem:[#allocation2 + $0xe0] sm:$0xff] }
  0x4c   :  { %299 = vmatpush1.bf16.msra.mxu0 %v4298_v14  ;;  %4267 = vmatpush1.bf16.msra.mxu1 %v4298_v14  ;;  %v126_v14 = vld [vmem:[#allocation2 + $0x160] sm:$0xff]  ;;  %v4346_v3 = vld [vmem:[#allocation6 + $0x94] ss:$8 sps:$4 sm:$0xff]   ;;  %v4344_v4 = vld [vmem:[#allocation6 + $0x90] ss:$8 sps:$4 sm:$0xff]  }
  0x4d   :  { %300 = vmatprep.subr.bf16.mxu0 %v4299_v15  ;;  %4260 = vmatprep.subr.bf16.mxu1 %v4299_v15  ;;  %v127_v15 = vld [vmem:[#allocation2 + $0x168] sm:$0xff] }
  0x4e   :  { %v168_v17 = vpack.c.bf16 %v127_v15, %v126_v14  ;;  %v111_v6 = vld [vmem:[#allocation2 + $0xe8] sm:$0xff]  ;;  %v113_v14 = vld [vmem:[#allocation2 + $0xf8] sm:$0xff]  ;;  %v144_v15 = vld [vmem:[#allocation2 + $0x1f0] sm:$0xff] }
  0x50   :  { %301 = vmatpush1.bf16.msra.mxu0 %v4301_v16  ;;  %4268 = vmatpush1.bf16.msra.mxu1 %v4301_v16  ;;  %v152_v16 = vpack.c.bf16 %v95_v13, %v94_v12  ;;  %v112_v13 = vld [vmem:[#allocation2 + $0xf0] sm:$0xff] }
  0x51   :  { %1803 = vmatprep.subr.bf16.mxu1 %v4304_v21  ;;  %3251 = vmatprep.subr.bf16.mxu0 %v7725_v0  ;;  %v129_v21 = vld [vmem:[#allocation2 + $0x178] sm:$0xff] }
  0x53   :  { %319 = vmatmul.mubr.bf16.vlgmr.msra.gmra.mxu0 %v146_v22  ;;  %479 = vmatmul.mubr.bf16.vlgmr.msra.gmra.mxu1 %v162_v23  ;;  %v153_v22 = vpack.c.bf16 %v97_v19, %v96_v18  ;;  %v169_v23 = vpack.c.bf16 %v129_v21, %v128_v20  ;;  %v196_v19 = vlaneseq }
  0x54   :  { %328 = vmatprep.mubr.bf16.mxu0 %v7725_v0  ;;  %488 = vmatprep.mubr.bf16.mxu1 %v7725_v0 }
  0x55   :  { %1804 = vmatpush1.bf16.msra.mxu1 %v4302_v24  ;;  %v98_v24 = vld [vmem:[#allocation2 + $0x80] sm:$0xff]  ;;  %v5635_v20 = vshrl.u32 %v196_v19, 7 }
  0x56   :  { %1805 = vmatprep.subr.bf16.mxu1 %v4307_v25  ;;  %v99_v25 = vld [vmem:[#allocation2 + $0x88] sm:$0xff] }
  0x57   :  { %v154_v28 = vpack.c.bf16 %v99_v25, %v98_v24  ;;  %7781 = vst [vmem:[#allocation12_spill] sm:$0xff] %v5635_v20  ;;  %v7724_v21 = vsub.s32 0, %v5635_v20 }
  0x59   :  { %1806 = vmatpush1.bf16.msra.mxu1 %v4305_v30  ;;  %v100_v30 = vld [vmem:[#allocation2 + $0x90] sm:$0xff] }
  0x5a   :  { %1807 = vmatprep.subr.bf16.mxu1 %v4310_v31  ;;  %v101_v31 = vld [vmem:[#allocation2 + $0x98] sm:$0xff] }
  0x5b   :  { %329 = vmatmul.mubr.bf16.gmra.mxu0 %v147_v32  ;;  %489 = vmatmul.mubr.bf16.gmra.mxu1 %v163_v33  ;;  %v132_v32 = vld [vmem:[#allocation2 + $0x190] sm:$0xff]  ;;  %v133_v33 = vld [vmem:[#allocation2 + $0x198] sm:$0xff] }
  0x5c   :  { %338 = vmatprep.mubr.bf16.mxu0 %v7725_v0  ;;  %498 = vmatprep.mubr.bf16.mxu1 %v7725_v0 }
  0x5d   :  { %1808 = vmatpush1.bf16.msra.mxu1 %v4308_v34  ;;  %v155_v34 = vpack.c.bf16 %v101_v31, %v100_v30 }
  0x5e   :  { %1809 = vmatprep.subr.bf16.mxu1 %v4313_v35  ;;  %v171_v35 = vpack.c.bf16 %v133_v33, %v132_v32 }
  0x61   :  { %1810 = vmatpush1.bf16.msra.mxu1 %v4311_v40  ;;  %v156_v40 = vpack.c.bf16 %v103_v37, %v102_v36 }
  0x62   :  { %1811 = vmatprep.subr.bf16.mxu1 %v4316_v41  ;;  %v172_v41 = vpack.c.bf16 %v135_v39, %v134_v38 }
  0x63   :  { %339 = vmatmul.mubr.bf16.gmra.mxu0 %v148_v42  ;;  %499 = vmatmul.mubr.bf16.gmra.mxu1 %v164_v43  ;;  %v104_v42 = vld [vmem:[#allocation2 + $0xb0] sm:$0xff]  ;;  %v105_v43 = vld [vmem:[#allocation2 + $0xb8] sm:$0xff] }
  0x64   :  { %348 = vmatprep.mubr.bf16.mxu0 %v7725_v0  ;;  %508 = vmatprep.mubr.bf16.mxu1 %v7725_v0  ;;  %v157_v46 = vpack.c.bf16 %v105_v43, %v104_v42 }
  0x65   :  { %1812 = vmatpush1.bf16.msra.mxu1 %v4314_v44  ;;  %v136_v44 = vld [vmem:[#allocation2 + $0x1b0] sm:$0xff] }
  0x66   :  { %1813 = vmatprep.subr.bf16.mxu1 %v4319_v45  ;;  %v137_v45 = vld [vmem:[#allocation2 + $0x1b8] sm:$0xff] }
  0x67   :  { %v173_v47 = vpack.c.bf16 %v137_v45, %v136_v44 }
  0x69   :  { %1814 = vmatpush1.bf16.msra.mxu1 %v4317_v50  ;;  %v4337_v50 = vld [vmem:[#allocation6 + $0xc4] ss:$8 sps:$4 sm:$0xff]  }
  0x6a   :  { %1815 = vmatprep.subr.bf16.mxu1 %v4322_v51  ;;  %v138_v51 = vld [vmem:[#allocation2 + $0x1c0] sm:$0xff] }
  0x6b   :  { %349 = vmatmul.mubr.bf16.gmra.mxu0 %v149_v52  ;;  %509 = vmatmul.mubr.bf16.gmra.mxu1 %v165_v53  ;;  %v139_v52 = vld [vmem:[#allocation2 + $0x1c8] sm:$0xff] }
  0x6c   :  { %358 = vmatprep.mubr.bf16.mxu0 %v7725_v0  ;;  %518 = vmatprep.mubr.bf16.mxu1 %v7725_v0  ;;  %v4335_v53 = vld [vmem:[#allocation6 + $0xc0] ss:$8 sps:$4 sm:$0xff]  }
  0x6d   :  { %1816 = vmatpush1.bf16.msra.mxu1 %v4320_v54  ;;  %v158_v54 = vpack.c.bf16 %v107_v49, %v106_v48 }
  0x6e   :  { %1817 = vmatprep.subr.bf16.mxu1 %v4325_v55  ;;  %v174_v55 = vpack.c.bf16 %v139_v52, %v138_v51 }
  0x71   :  { %1818 = vmatpush1.bf16.msra.mxu1 %v4323_v60  ;;  %v140_v60 = vld [vmem:[#allocation2 + $0x1d0] sm:$0xff] }
  0x72   :  { %1819 = vmatprep.subr.bf16.mxu1 %v4328_v61  ;;  %v141_v61 = vld [vmem:[#allocation2 + $0x1d8] sm:$0xff] }
  0x73   :  { %359 = vmatmul.mubr.bf16.gmra.mxu0 %v150_v62  ;;  %519 = vmatmul.mubr.bf16.gmra.mxu1 %v166_v63  ;;  %v4343_v62 = vld [vmem:[#allocation6 + $0xa4] ss:$8 sps:$4 sm:$0xff]   ;;  %v4341_v63 = vld [vmem:[#allocation6 + $0xa0] ss:$8 sps:$4 sm:$0xff]  }
  0x74   :  { %368 = vmatprep.mubr.bf16.mxu0 %v7725_v0  ;;  %528 = vmatprep.mubr.bf16.mxu1 %v7725_v0 }
  0x75   :  { %1820 = vmatpush2.bf16.msra.mxu1 %v4326_v1  ;;  %v159_v1 = vpack.c.bf16 %v109_v59, %v108_v58 }
  0x76   :  { %1821 = vmatprep.subr.bf16.mxu1 %v4331_v2  ;;  %v175_v2 = vpack.c.bf16 %v141_v61, %v140_v60 }
  0x79   :  { %1822 = vmatpush2.bf16.msra.mxu1 %v4329_v7  ;;  %v142_v7 = vld [vmem:[#allocation2 + $0x1e0] sm:$0xff] }
  0x7a   :  { %1823 = vmatprep.subr.bf16.mxu1 %v4334_v8  ;;  %v143_v8 = vld [vmem:[#allocation2 + $0x1e8] sm:$0xff] }
  0x7b   :  { %369 = vmatmul.mubr.bf16.gmra.mxu0 %v151_v9  ;;  %529 = vmatmul.mubr.bf16.gmra.mxu1 %v167_v10  ;;  %v4349_v9 = vld [vmem:[#allocation6 + $0x84] ss:$8 sps:$4 sm:$0xff]   ;;  %v4347_v10 = vld [vmem:[#allocation6 + $0x80] ss:$8 sps:$4 sm:$0xff]   ;;  %v176_v12 = vpack.c.bf16 %v143_v8, %v142_v7 }
  0x7c   :  { %378 = vmatprep.mubr.bf16.mxu0 %v7725_v0  ;;  %538 = vmatprep.mubr.bf16.mxu1 %v7725_v0 }
  0x7d   :  { %1824 = vmatpush2.bf16.msra.mxu1 %v4332_v11  ;;  %v160_v11 = vpack.c.bf16 %v111_v6, %v110_v5 }
  0x7e   :  { %1825 = vmatprep.subr.bf16.mxu1 %v4337_v50 }
  0x81   :  { %1826 = vmatpush2.bf16.msra.mxu1 %v4335_v53 }
  0x82   :  { %1827 = vmatprep.subr.bf16.mxu1 %v4340_v56 }
  0x83   :  { %379 = vmatmul.mubr.bf16.gmra.mxu0 %v152_v16  ;;  %539 = vmatmul.mubr.bf16.gmra.mxu1 %v168_v17  ;;  %v145_v16 = vld [vmem:[#allocation2 + $0x1f8] sm:$0xff]  ;;  %v161_v17 = vpack.c.bf16 %v113_v14, %v112_v13 }
  0x84   :  { %388 = vmatprep.mubr.bf16.mxu0 %v7725_v0  ;;  %548 = vmatprep.mubr.bf16.mxu1 %v7725_v0  ;;  %v177_v18 = vpack.c.bf16 %v145_v16, %v144_v15 }
  0x85   :  { %1828 = vmatpush2.bf16.msra.mxu1 %v4338_v57 }
  0x86   :  { %1829 = vmatprep.subr.bf16.mxu1 %v4343_v62 }
  0x89   :  { %1830 = vmatpush2.bf16.msra.mxu1 %v4341_v63 }
  0x8a   :  { %1831 = vmatprep.subr.bf16.mxu1 %v4346_v3 }
  0x8b   :  { %389 = vmatmul.mubr.bf16.gmra.mxu0 %v153_v22  ;;  %549 = vmatmul.mubr.bf16.gmra.mxu1 %v169_v23  ;;  %v194_v22 = vld [vmem:[%s7717_s2] sm:$0x3]  ;;  %v7723_v23 = vsub.s32 1, %v5635_v20 }
  0x8c   :  { %398 = vmatprep.mubr.bf16.mxu0 %v7725_v0  ;;  %558 = vmatprep.mubr.bf16.mxu1 %v7725_v0  ;;  %v5644_v24 = vrot.slane %v194_v22, %v7724_v21 }
  0x8d   :  { %1832 = vmatpush2.bf16.msra.mxu1 %v4344_v4  ;;  %v5648_v25 = vrot.slane %v194_v22, %v7723_v23 }
  0x8e   :  { %1833 = vmatprep.subr.bf16.mxu1 %v4349_v9 }
  0x91   :  { %1834 = vmatpush2.bf16.msra.mxu1 %v4347_v10 }
  0x93   :  { %399 = vmatmul.mubr.bf16.gmra.mxu0 %v154_v28  ;;  %559 = vmatmul.mubr.bf16.gmra.mxu1 %v170_v29 }
  0x94   :  { %408 = vmatprep.mubr.bf16.mxu0 %v7725_v0  ;;  %568 = vmatprep.mubr.bf16.mxu1 %v7725_v0 }
  0x9b   :  { %409 = vmatmul.mubr.bf16.gmra.mxu0 %v155_v34  ;;  %569 = vmatmul.mubr.bf16.gmra.mxu1 %v171_v35 }
  0x9c   :  { %418 = vmatprep.mubr.bf16.mxu0 %v7725_v0  ;;  %578 = vmatprep.mubr.bf16.mxu1 %v7725_v0 }
  0xa3   :  { %419 = vmatmul.mubr.bf16.gmra.mxu0 %v156_v40  ;;  %579 = vmatmul.mubr.bf16.gmra.mxu1 %v172_v41 }
  0xa4   :  { %428 = vmatprep.mubr.bf16.mxu0 %v7725_v0  ;;  %588 = vmatprep.mubr.bf16.mxu1 %v7725_v0 }
  0xab   :  { %429 = vmatmul.mubr.bf16.gmra.mxu0 %v157_v46  ;;  %589 = vmatmul.mubr.bf16.gmra.mxu1 %v173_v47 }
  0xac   :  { %438 = vmatprep.mubr.bf16.mxu0 %v7725_v0  ;;  %598 = vmatprep.mubr.bf16.mxu1 %v7725_v0 }
  0xb3   :  { %439 = vmatmul.mubr.bf16.gmra.mxu0 %v158_v54  ;;  %599 = vmatmul.mubr.bf16.gmra.mxu1 %v174_v55 }
  0xb4   :  { %448 = vmatprep.mubr.bf16.mxu0 %v7725_v0  ;;  %608 = vmatprep.mubr.bf16.mxu1 %v7725_v0 }
  0xbb   :  { %449 = vmatmul.mubr.bf16.gmra.mxu0 %v159_v1  ;;  %609 = vmatmul.mubr.bf16.gmra.mxu1 %v175_v2 }
  0xbc   :  { %458 = vmatprep.mubr.bf16.mxu0 %v7725_v0  ;;  %618 = vmatprep.mubr.bf16.mxu1 %v7725_v0 }
  0xc3   :  { %459 = vmatmul.mubr.bf16.gmra.mxu0 %v160_v11  ;;  %619 = vmatmul.mubr.bf16.gmra.mxu1 %v176_v12 }
  0xc4   :  { %468 = vmatprep.mubr.bf16.mxu0 %v7725_v0  ;;  %628 = vmatprep.mubr.bf16.mxu1 %v7725_v0 }
  0xcb   :  { %469 = vmatmul.mubr.bf16.gmra.mxu0 %v161_v17  ;;  %629 = vmatmul.mubr.bf16.gmra.mxu1 %v177_v18 }
 0x113   :  { %v320_v26 = vpop.f32.mrf.mxu0  ;;  %v480_v27 = vpop.f32.mrf.mxu1 }
 0x114   :  { %v5651_v28 = vadd.f32 %v320_v26, %v5644_v24  ;;  %v5654_v29 = vadd.f32 %v480_v27, %v5644_v24 }
 0x115   :  { %v322_v30 = vpop.f32.mrf.mxu0  ;;  %v482_v31 = vpop.f32.mrf.mxu1 }
 0x116   :  { %7782 = vst [vmem:[#allocation13_spill] sm:$0xff] %v5654_v29  ;;  %v3948_v32 = vmul.f32 -1.442695, %v5651_v28  ;;  %v5658_v33 = vadd.f32 %v322_v30, %v5648_v25  ;;  %v4012_v34 = vmul.f32 -1.442695, %v5654_v29  ;;  %v5662_v35 = vadd.f32 %v482_v31, %v5648_v25 }
 0x117   :  { %v324_v36 = vpop.f32.mrf.mxu0  ;;  %v484_v37 = vpop.f32.mrf.mxu1 }
 0x118   :  { %7783 = vst [vmem:[#allocation14_spill] sm:$0xff] %v5662_v35  ;;  %4366 = vpow2.f32 %v3948_v32  ;;  %v3949_v38 = vmul.f32 -1.442695, %v5658_v33  ;;  %v5666_v39 = vadd.f32 %v324_v36, %v5644_v24  ;;  %v4013_v40 = vmul.f32 -1.442695, %v5662_v35 }
 0x119   :  { %v326_v41 = vpop.f32.mrf.mxu0  ;;  %4368 = vpow2.f32 %v4012_v34  ;;  %v5670_v42 = vadd.f32 %v484_v37, %v5644_v24  ;;  %v486_v43 = vpop.f32.mrf.mxu1 }
 0x11a   :  { %4370 = vpow2.f32 %v3949_v38  ;;  %v3950_v44 = vmul.f32 -1.442695, %v5666_v39  ;;  %v5674_v45 = vadd.f32 %v326_v41, %v5648_v25  ;;  %v5677_v46 = vadd.f32 %v486_v43, %v5648_v25 }
 0x11b   :  { %7784 = vst [vmem:[#allocation15_spill] sm:$0xff] %v5670_v42  ;;  %v330_v47 = vpop.f32.mrf.mxu0  ;;  %4372 = vpow2.f32 %v4013_v40  ;;  %v4014_v48 = vmul.f32 -1.442695, %v5670_v42  ;;  %v490_v49 = vpop.f32.mrf.mxu1 }
 0x11c   :  { %7785 = vst [vmem:[#allocation16_spill] sm:$0xff] %v5677_v46  ;;  %4374 = vpow2.f32 %v3950_v44  ;;  %v3951_v50 = vmul.f32 -1.442695, %v5674_v45  ;;  %v5682_v51 = vadd.f32 %v330_v47, %v5644_v24  ;;  %v4015_v52 = vmul.f32 -1.442695, %v5677_v46 }
 0x11d   :  { %v332_v53 = vpop.f32.mrf.mxu0  ;;  %4376 = vpow2.f32 %v4014_v48  ;;  %v5686_v54 = vadd.f32 %v490_v49, %v5644_v24  ;;  %v492_v55 = vpop.f32.mrf.mxu1 }
 0x11e   :  { %4378 = vpow2.f32 %v3951_v50  ;;  %v3952_v56 = vmul.f32 -1.442695, %v5682_v51  ;;  %v5690_v57 = vadd.f32 %v332_v53, %v5648_v25  ;;  %v5693_v58 = vadd.f32 %v492_v55, %v5648_v25 }
 0x11f   :  { %7786 = vst [vmem:[#allocation17_spill] sm:$0xff] %v5686_v54  ;;  %v334_v59 = vpop.f32.mrf.mxu0  ;;  %4380 = vpow2.f32 %v4015_v52  ;;  %v4016_v60 = vmul.f32 -1.442695, %v5686_v54  ;;  %v494_v61 = vpop.f32.mrf.mxu1 }
 0x120   :  { %7787 = vst [vmem:[#allocation18_spill] sm:$0xff] %v5693_v58  ;;  %4382 = vpow2.f32 %v3952_v56  ;;  %v3953_v62 = vmul.f32 -1.442695, %v5690_v57  ;;  %v5698_v63 = vadd.f32 %v334_v59, %v5644_v24  ;;  %v4017_v1 = vmul.f32 -1.442695, %v5693_v58 }
 0x121   :  { %v336_v2 = vpop.f32.mrf.mxu0  ;;  %4384 = vpow2.f32 %v4016_v60  ;;  %v5702_v3 = vadd.f32 %v494_v61, %v5644_v24  ;;  %v496_v4 = vpop.f32.mrf.mxu1 }
 0x122   :  { %4386 = vpow2.f32 %v3953_v62  ;;  %v3954_v5 = vmul.f32 -1.442695, %v5698_v63  ;;  %v5706_v6 = vadd.f32 %v336_v2, %v5648_v25  ;;  %v5709_v7 = vadd.f32 %v496_v4, %v5648_v25 }
 0x123   :  { %7788 = vst [vmem:[#allocation19_spill] sm:$0xff] %v5702_v3  ;;  %v340_v8 = vpop.f32.mrf.mxu0  ;;  %4388 = vpow2.f32 %v4017_v1  ;;  %v4018_v9 = vmul.f32 -1.442695, %v5702_v3  ;;  %v5712_v10 = vpop.f32.mrf.mxu1 }
 0x124   :  { %7789 = vst [vmem:[#allocation20_spill] sm:$0xff] %v5709_v7  ;;  %4390 = vpow2.f32 %v3954_v5  ;;  %v3955_v11 = vmul.f32 -1.442695, %v5706_v6  ;;  %v5716_v12 = vadd.f32 %v340_v8, %v5644_v24  ;;  %v4019_v13 = vmul.f32 -1.442695, %v5709_v7 }
 0x125   :  { %v4367_v14 = vpop.eup %4366  ;;  %v342_v15 = vpop.f32.mrf.mxu0  ;;  %4392 = vpow2.f32 %v4018_v9 }
 0x126   :  { %v5719_v16 = vpop.eup %4368  ;;  %v1023_v17 = vadd.f32 1.0, %v4367_v14  ;;  %4394 = vpow2.f32 %v3955_v11  ;;  %v3956_v18 = vmul.f32 -1.442695, %v5716_v12  ;;  %v5723_v19 = vadd.f32 %v342_v15, %v5648_v25  ;;  %v5725_v27 = vpop.f32.mrf.mxu1 }
 0x127   :  { %v4371_v22 = vpop.eup %4370  ;;  %v344_v26 = vpop.f32.mrf.mxu0  ;;  %4396 = vpow2.f32 %v4019_v13 }
 0x128   :  { %v5727_v30 = vpop.eup %4372  ;;  %4398 = vrcp.f32 %v1023_v17  ;;  %v1024_v31 = vadd.f32 1.0, %v4371_v22  ;;  %v3957_v32 = vmul.f32 -1.442695, %v5723_v19  ;;  %v5731_v34 = vadd.f32 %v344_v26, %v5644_v24  ;;  %v5739_v48 = vpop.f32.mrf.mxu1 }
 0x129   :  { %v4375_v36 = vpop.eup %4374  ;;  %4400 = vpow2.f32 %v3956_v18  ;;  %v346_v37 = vpop.f32.mrf.mxu0 }
 0x12a   :  { %v5733_v38 = vpop.eup %4376  ;;  %4402 = vrcp.f32 %v1024_v31  ;;  %v1025_v40 = vadd.f32 1.0, %v4375_v36  ;;  %v3958_v41 = vmul.f32 -1.442695, %v5731_v34  ;;  %v5737_v43 = vadd.f32 %v346_v37, %v5648_v25  ;;  %v5753_v4 = vpop.f32.mrf.mxu1 }
 0x12b   :  { %v4379_v44 = vpop.eup %4378  ;;  %4404 = vpow2.f32 %v3957_v32  ;;  %v350_v47 = vpop.f32.mrf.mxu0 }
 0x12c   :  { %v5741_v49 = vpop.eup %4380  ;;  %4406 = vrcp.f32 %v1025_v40  ;;  %v1026_v50 = vadd.f32 1.0, %v4379_v44  ;;  %v3959_v52 = vmul.f32 -1.442695, %v5737_v43  ;;  %v5745_v53 = vadd.f32 %v350_v47, %v5644_v24  ;;  %v5767_v32 = vpop.f32.mrf.mxu1 }
 0x12d   :  { %v4383_v55 = vpop.eup %4382  ;;  %4408 = vpow2.f32 %v3958_v41  ;;  %v352_v56 = vpop.f32.mrf.mxu0 }
 0x12e   :  { %v5747_v59 = vpop.eup %4384  ;;  %4410 = vrcp.f32 %v1026_v50  ;;  %v1027_v60 = vadd.f32 1.0, %v4383_v55  ;;  %v3960_v61 = vmul.f32 -1.442695, %v5745_v53  ;;  %v5751_v62 = vadd.f32 %v352_v56, %v5648_v25 }
 0x12f   :  { %v4387_v1 = vpop.eup %4386  ;;  %4412 = vpow2.f32 %v3959_v52  ;;  %v354_v2 = vpop.f32.mrf.mxu0 }
 0x130   :  { %v5755_v5 = vpop.eup %4388  ;;  %4414 = vrcp.f32 %v1027_v60  ;;  %v1028_v8 = vadd.f32 1.0, %v4387_v1  ;;  %v3961_v9 = vmul.f32 -1.442695, %v5751_v62  ;;  %v5759_v11 = vadd.f32 %v354_v2, %v5644_v24  ;;  %v5779_v1 = vpop.f32.mrf.mxu1 }
 0x131   :  { %v4391_v13 = vpop.eup %4390  ;;  %4416 = vpow2.f32 %v3960_v61  ;;  %v356_v14 = vpop.f32.mrf.mxu0 }
 0x132   :  { %v5761_v15 = vpop.eup %4392  ;;  %4418 = vrcp.f32 %v1028_v8  ;;  %v1029_v17 = vadd.f32 1.0, %v4391_v13  ;;  %v3962_v18 = vmul.f32 -1.442695, %v5759_v11  ;;  %v5765_v22 = vadd.f32 %v356_v14, %v5648_v25 }
 0x133   :  { %v4395_v26 = vpop.eup %4394  ;;  %4420 = vpow2.f32 %v3961_v9  ;;  %v360_v31 = vpop.f32.mrf.mxu0 }
 0x134   :  { %v5769_v36 = vpop.eup %4396  ;;  %4422 = vrcp.f32 %v1029_v17  ;;  %v1030_v37 = vadd.f32 1.0, %v4395_v26  ;;  %v3963_v40 = vmul.f32 -1.442695, %v5765_v22  ;;  %v5773_v41 = vadd.f32 %v360_v31, %v5644_v24 }
 0x135   :  { %v4399_v44 = vpop.eup %4398  ;;  %4424 = vpow2.f32 %v3962_v18  ;;  %v362_v47 = vpop.f32.mrf.mxu0 }
 0x136   :  { %v4401_v50 = vpop.eup %4400  ;;  %4426 = vrcp.f32 %v1030_v37  ;;  %v3964_v52 = vmul.f32 -1.442695, %v5773_v41  ;;  %v5777_v55 = vadd.f32 %v362_v47, %v5648_v25  ;;  %v1407_v21 = vmul.f32 %v4399_v44, %v5651_v28 }
 0x137   :  { %v4403_v56 = vpop.eup %4402  ;;  %v1031_v60 = vadd.f32 1.0, %v4401_v50  ;;  %4428 = vpow2.f32 %v3963_v40  ;;  %v364_v61 = vpop.f32.mrf.mxu0 }
 0x138   :  { %v4405_v2 = vpop.eup %4404  ;;  %4430 = vpow2.f32 %v3964_v52  ;;  %v3965_v8 = vmul.f32 -1.442695, %v5777_v55  ;;  %v5783_v9 = vadd.f32 %v364_v61, %v5644_v24  ;;  %v1087_v52 = vadd.f32 1.0, %v5719_v16  ;;  %v5791_v61 = vpop.f32.mrf.mxu1 }
 0x139   :  { %v4407_v13 = vpop.eup %4406  ;;  %4432 = vrcp.f32 %v1031_v60  ;;  %v1032_v14 = vadd.f32 1.0, %v4405_v2  ;;  %v366_v17 = vpop.f32.mrf.mxu0  ;;  %v1408_v2 = vmul.f32 %v4403_v56, %v5658_v33 }
 0x13a   :  { %v4409_v18 = vpop.eup %4408  ;;  %4434 = vpow2.f32 %v3965_v8  ;;  %v3966_v26 = vmul.f32 -1.442695, %v5783_v9  ;;  %v5787_v31 = vadd.f32 %v366_v17, %v5648_v25  ;;  %v1409_v40 = vmul.f32 %v4407_v13, %v5666_v39  ;;  %v5804_v28 = vpop.f32.mrf.mxu1 }
 0x13b   :  { %v4411_v37 = vpop.eup %4410  ;;  %4436 = vrcp.f32 %v1032_v14  ;;  %v1033_v47 = vadd.f32 1.0, %v4409_v18  ;;  %v370_v50 = vpop.f32.mrf.mxu0 }
 0x13c   :  { %v4413_v60 = vpop.eup %4412  ;;  %v1410_v8 = vmul.f32 %v4411_v37, %v5674_v45  ;;  %4438 = vpow2.f32 %v3966_v26  ;;  %v3967_v23 = vmul.f32 -1.442695, %v5787_v31  ;;  %v5798_v13 = vadd.f32 %v370_v50, %v5644_v24 }
 0x13d   :  { %v4415_v17 = vpop.eup %4414  ;;  %4440 = vrcp.f32 %v1033_v47  ;;  %v1034_v39 = vadd.f32 1.0, %v4413_v60  ;;  %v372_v14 = vpop.f32.mrf.mxu0  ;;  %v1535_v45 = vpack.c.bf16 %v1409_v40, %v1407_v21 }
 0x13e   :  { %v4417_v16 = vpop.eup %4416  ;;  %4442 = vpow2.f32 %v3967_v23  ;;  %v5801_v18 = vadd.f32 %v372_v14, %v5648_v25  ;;  %v1536_v33 = vpack.c.bf16 %v1410_v8, %v1408_v2  ;;  %v3968_v37 = vmul.f32 -1.442695, %v5798_v13 }
 0x13f   :  { %v4419_v56 = vpop.eup %4418  ;;  %4444 = vrcp.f32 %v1034_v39  ;;  %v1035_v26 = vadd.f32 1.0, %v4417_v16  ;;  %v374_v0 = vpop.f32.mrf.mxu0  ;;  %v1411_v3 = vmul.f32 %v4415_v17, %v5682_v51 }
 0x140   :  { %v4421_v44 = vpop.eup %4420  ;;  %v3969_v47 = vmul.f32 -1.442695, %v5801_v18  ;;  %v5808_v50 = vadd.f32 %v374_v0, %v5644_v24  ;;  %1835 = vmatprep.mubr.bf16.mxu1 %v1536_v33  ;;  %4446 = vrcp.f32 %v1087_v52  ;;  %v5814_v0 = vpop.f32.mrf.mxu1 }
 0x141   :  { %v4423_v23 = vpop.eup %4422  ;;  %4448 = vrcp.f32 %v1035_v26  ;;  %v1036_v60 = vadd.f32 1.0, %v4421_v44  ;;  %v376_v2 = vpop.f32.mrf.mxu0  ;;  %1836 = vmatmul.mubr.bf16.vlgmr.msra.gmra.mxu1 %v1535_v45  ;;  %v1412_v44 = vmul.f32 %v4419_v56, %v5690_v57 }
 0x142   :  { %v4425_v21 = vpop.eup %4424  ;;  %4450 = vpow2.f32 %v3968_v37  ;;  %v3970_v40 = vmul.f32 -1.442695, %v5808_v50  ;;  %v5812_v8 = vadd.f32 %v376_v2, %v5648_v25  ;;  %v1413_v52 = vmul.f32 %v4423_v23, %v5698_v63  ;;  %v5828_v57 = vpop.f32.mrf.mxu1 }
 0x143   :  { %v4427_v39 = vpop.eup %4426  ;;  %4452 = vrcp.f32 %v1036_v60  ;;  %v1037_v14 = vadd.f32 1.0, %v4425_v21  ;;  %v380_v16 = vpop.f32.mrf.mxu0 }
 0x144   :  { %v4429_v33 = vpop.eup %4428  ;;  %v1414_v26 = vmul.f32 %v4427_v39, %v5706_v6  ;;  %4454 = vpow2.f32 %v3969_v47  ;;  %v5819_v45 = vadd.f32 %v380_v16, %v5644_v24  ;;  %v3971_v60 = vmul.f32 -1.442695, %v5812_v8 }
 0x145   :  { %v4431_v37 = vpop.eup %4430  ;;  %4456 = vrcp.f32 %v1037_v14  ;;  %v1038_v2 = vadd.f32 1.0, %v4429_v33  ;;  %v382_v21 = vpop.f32.mrf.mxu0  ;;  %v1537_v51 = vpack.c.bf16 %v1413_v52, %v1411_v3 }
 0x146   :  { %v4433_v20 = vpop.eup %4432  ;;  %v1039_v54 = vadd.f32 1.0, %v4431_v37  ;;  %4458 = vpow2.f32 %v3970_v40  ;;  %v5825_v63 = vadd.f32 %v382_v21, %v5648_v25  ;;  %v3972_v47 = vmul.f32 -1.442695, %v5819_v45  ;;  %v5839_v52 = vpop.f32.mrf.mxu1 }
 0x147   :  { %v4435_v6 = vpop.eup %4434  ;;  %4460 = vrcp.f32 %v1038_v2  ;;  %v384_v23 = vpop.f32.mrf.mxu0  ;;  %v1538_v39 = vpack.c.bf16 %v1414_v26, %v1412_v44 }
 0x148   :  { %v4437_v56 = vpop.eup %4436  ;;  %4462 = vrcp.f32 %v1039_v54  ;;  %v1040_v14 = vadd.f32 1.0, %v4435_v6  ;;  %v5831_v16 = vadd.f32 %v384_v23, %v5644_v24  ;;  %v3973_v40 = vmul.f32 -1.442695, %v5825_v63  ;;  %v5854_v42 = vpop.f32.mrf.mxu1 }
 0x149   :  { %v4439_v17 = vpop.eup %4438  ;;  %4464 = vpow2.f32 %v3971_v60  ;;  %1845 = vmatprep.mubr.bf16.mxu1 %v1538_v39  ;;  %v386_v33 = vpop.f32.mrf.mxu0 }
 0x14a   :  { %v4441_v37 = vpop.eup %4440  ;;  %4466 = vrcp.f32 %v1040_v14  ;;  %v1041_v2 = vadd.f32 1.0, %v4439_v17  ;;  %v5835_v26 = vadd.f32 %v386_v33, %v5648_v25  ;;  %1846 = vmatmul.mubr.bf16.gmra.mxu1 %v1537_v51  ;;  %v3974_v21 = vmul.f32 -1.442695, %v5831_v16 }
 0x14b   :  { %v4443_v44 = vpop.eup %4442  ;;  %v1417_v54 = vmul.f32 %v4441_v37, %v5731_v34  ;;  %4468 = vpow2.f32 %v3972_v47  ;;  %v390_v3 = vpop.f32.mrf.mxu0  ;;  %v1415_v51 = vmul.f32 %v4433_v20, %v5716_v12  ;;  %v1416_v34 = vmul.f32 %v4437_v56, %v5723_v19 }
 0x14c   :  { %v4445_v60 = vpop.eup %4444  ;;  %4470 = vrcp.f32 %v1041_v2  ;;  %v1042_v6 = vadd.f32 1.0, %v4443_v44  ;;  %v3975_v23 = vmul.f32 -1.442695, %v5835_v26  ;;  %v5843_v39 = vadd.f32 %v390_v3, %v5644_v24 }
 0x14d   :  { %v5845_v14 = vpop.eup %4446  ;;  %v1418_v47 = vmul.f32 %v4445_v60, %v5737_v43  ;;  %4472 = vpow2.f32 %v3973_v40  ;;  %v392_v17 = vpop.f32.mrf.mxu0  ;;  %v1539_v58 = vpack.c.bf16 %v1417_v54, %v1415_v51 }
 0x14e   :  { %7790 = vst [vmem:[#allocation21_spill] sm:$0xff] %v5845_v14  ;;  %v4449_v33 = vpop.eup %4448  ;;  %4474 = vrcp.f32 %v1042_v6  ;;  %v3976_v37 = vmul.f32 -1.442695, %v5843_v39  ;;  %v5852_v2 = vadd.f32 %v392_v17, %v5648_v25 }
 0x14f   :  { %v4451_v44 = vpop.eup %4450  ;;  %4476 = vpow2.f32 %v3974_v21  ;;  %v394_v3 = vpop.f32.mrf.mxu0  ;;  %v1540_v7 = vpack.c.bf16 %v1418_v47, %v1416_v34 }
 0x150   :  { %v4453_v20 = vpop.eup %4452  ;;  %v1043_v12 = vadd.f32 1.0, %v4451_v44  ;;  %4478 = vpow2.f32 %v3975_v23  ;;  %v3977_v19 = vmul.f32 -1.442695, %v5852_v2  ;;  %v5858_v43 = vadd.f32 %v394_v3, %v5644_v24  ;;  %v5865_v47 = vpop.f32.mrf.mxu1 }
 0x151   :  { %v4455_v56 = vpop.eup %4454  ;;  %4480 = vpow2.f32 %v3976_v37  ;;  %1855 = vmatprep.mubr.bf16.mxu1 %v1540_v7  ;;  %v396_v40 = vpop.f32.mrf.mxu0 }
 0x152   :  { %v4457_v60 = vpop.eup %4456  ;;  %4482 = vrcp.f32 %v1043_v12  ;;  %v1044_v21 = vadd.f32 1.0, %v4455_v56  ;;  %v3978_v6 = vmul.f32 -1.442695, %v5858_v43  ;;  %v5862_v54 = vadd.f32 %v396_v40, %v5648_v25  ;;  %1856 = vmatmul.mubr.bf16.gmra.mxu1 %v1539_v58  ;;  %v5878_v29 = vpop.f32.mrf.mxu1 }
 0x153   :  { %v4459_v51 = vpop.eup %4458  ;;  %v1421_v23 = vmul.f32 %v4457_v60, %v5759_v11  ;;  %4484 = vpow2.f32 %v3977_v19  ;;  %v400_v34 = vpop.f32.mrf.mxu0  ;;  %v1420_v12 = vmul.f32 %v4453_v20, %v5751_v62  ;;  %v1419_v19 = vmul.f32 %v4449_v33, %v5745_v53 }
 0x154   :  { %v4461_v17 = vpop.eup %4460  ;;  %4486 = vrcp.f32 %v1044_v21  ;;  %v1045_v7 = vadd.f32 1.0, %v4459_v51  ;;  %v3979_v37 = vmul.f32 -1.442695, %v5862_v54  ;;  %v5869_v44 = vadd.f32 %v400_v34, %v5644_v24 }
 0x155   :  { %v4463_v3 = vpop.eup %4462  ;;  %v1422_v58 = vmul.f32 %v4461_v17, %v5765_v22  ;;  %4488 = vpow2.f32 %v3978_v6  ;;  %v402_v56 = vpop.f32.mrf.mxu0  ;;  %v1541_v53 = vpack.c.bf16 %v1421_v23, %v1419_v19 }
 0x156   :  { %v4465_v11 = vpop.eup %4464  ;;  %4490 = vrcp.f32 %v1045_v7  ;;  %v3980_v40 = vmul.f32 -1.442695, %v5869_v44  ;;  %v5876_v60 = vadd.f32 %v402_v56, %v5648_v25  ;;  %v5889_v23 = vpop.f32.mrf.mxu1 }
 0x157   :  { %v4467_v21 = vpop.eup %4466  ;;  %v1046_v51 = vadd.f32 1.0, %v4465_v11  ;;  %4492 = vpow2.f32 %v3979_v37  ;;  %v404_v34 = vpop.f32.mrf.mxu0  ;;  %v1542_v14 = vpack.c.bf16 %v1422_v58, %v1420_v12 }
 0x158   :  { %v4469_v62 = vpop.eup %4468  ;;  %4494 = vpow2.f32 %v3980_v40  ;;  %v3981_v22 = vmul.f32 -1.442695, %v5876_v60  ;;  %v5882_v20 = vadd.f32 %v404_v34, %v5644_v24  ;;  %v5902_v35 = vpop.f32.mrf.mxu1 }
 0x159   :  { %v4471_v33 = vpop.eup %4470  ;;  %4496 = vrcp.f32 %v1046_v51  ;;  %v1047_v6 = vadd.f32 1.0, %v4469_v62  ;;  %1865 = vmatprep.mubr.bf16.mxu1 %v1542_v14  ;;  %v406_v17 = vpop.f32.mrf.mxu0  ;;  %7791 = vst [vmem:[#allocation22_spill] sm:$0xff] %v5902_v35 }
 0x15a   :  { %v4473_v7 = vpop.eup %4472  ;;  %4498 = vpow2.f32 %v3981_v22  ;;  %v3982_v37 = vmul.f32 -1.442695, %v5882_v20  ;;  %v5886_v12 = vadd.f32 %v406_v17, %v5648_v25  ;;  %1866 = vmatmul.mubr.bf16.gmra.mxu1 %v1541_v53  ;;  %v1425_v56 = vmul.f32 %v4471_v33, %v5783_v9 }
 0x15b   :  { %v4475_v58 = vpop.eup %4474  ;;  %4500 = vrcp.f32 %v1047_v6  ;;  %v1048_v11 = vadd.f32 1.0, %v4473_v7  ;;  %v410_v40 = vpop.f32.mrf.mxu0  ;;  %v1423_v22 = vmul.f32 %v4463_v3, %v5773_v41  ;;  %v1424_v53 = vmul.f32 %v4467_v21, %v5777_v55 }
 0x15c   :  { %v4477_v19 = vpop.eup %4476  ;;  %v1426_v14 = vmul.f32 %v4475_v58, %v5787_v31  ;;  %4502 = vpow2.f32 %v3982_v37  ;;  %v3983_v51 = vmul.f32 -1.442695, %v5886_v12  ;;  %v5894_v34 = vadd.f32 %v410_v40, %v5644_v24 }
 0x15d   :  { %v4479_v62 = vpop.eup %4478  ;;  %4504 = vrcp.f32 %v1048_v11  ;;  %v1049_v9 = vadd.f32 1.0, %v4477_v19  ;;  %v412_v33 = vpop.f32.mrf.mxu0  ;;  %v1543_v3 = vpack.c.bf16 %v1425_v56, %v1423_v22 }
 0x15e   :  { %v4481_v6 = vpop.eup %4480  ;;  %v1050_v17 = vadd.f32 1.0, %v4479_v62  ;;  %4506 = vpow2.f32 %v3983_v51  ;;  %v3984_v7 = vmul.f32 -1.442695, %v5894_v34  ;;  %v5900_v31 = vadd.f32 %v412_v33, %v5648_v25 }
 0x15f   :  { %v4483_v37 = vpop.eup %4482  ;;  %4508 = vrcp.f32 %v1049_v9  ;;  %v1051_v58 = vadd.f32 1.0, %v4481_v6  ;;  %v414_v40 = vpop.f32.mrf.mxu0  ;;  %v1544_v46 = vpack.c.bf16 %v1426_v14, %v1424_v53  ;;  %v1088_v9 = vadd.f32 1.0, %v5727_v30 }
 0x160   :  { %v4485_v41 = vpop.eup %4484  ;;  %4510 = vrcp.f32 %v1050_v17  ;;  %v3985_v55 = vmul.f32 -1.442695, %v5900_v31  ;;  %v5906_v19 = vadd.f32 %v414_v40, %v5644_v24  ;;  %v5909_v6 = vpop.f32.mrf.mxu1 }
 0x161   :  { %v4487_v21 = vpop.eup %4486  ;;  %4512 = vrcp.f32 %v1051_v58  ;;  %v1052_v11 = vadd.f32 1.0, %v4485_v41  ;;  %1875 = vmatprep.mubr.bf16.mxu1 %v1544_v46  ;;  %v416_v51 = vpop.f32.mrf.mxu0  ;;  %7792 = vst [vmem:[#allocation23_spill] sm:$0xff] %v5909_v6 }
 0x162   :  { %v4489_v62 = vpop.eup %4488  ;;  %4514 = vpow2.f32 %v3984_v7  ;;  %1876 = vmatmul.mubr.bf16.gmra.mxu1 %v1543_v3  ;;  %v3986_v58 = vmul.f32 -1.442695, %v5906_v19  ;;  %v5913_v46 = vadd.f32 %v416_v51, %v5648_v25  ;;  %v1427_v51 = vmul.f32 %v4483_v37, %v5798_v13 }
 0x163   :  { %v4491_v14 = vpop.eup %4490  ;;  %4516 = vrcp.f32 %v1052_v11  ;;  %v1053_v53 = vadd.f32 1.0, %v4489_v62  ;;  %v420_v33 = vpop.f32.mrf.mxu0  ;;  %v1428_v11 = vmul.f32 %v4487_v21, %v5801_v18 }
 0x164   :  { %v4493_v56 = vpop.eup %4492  ;;  %4518 = vpow2.f32 %v3985_v55  ;;  %v1429_v30 = vmul.f32 %v4491_v14, %v5808_v50  ;;  %v1089_v55 = vadd.f32 1.0, %v5733_v38  ;;  %v5923_v50 = vadd.f32 %v420_v33, %v5644_v24 }
 0x165   :  { %v4495_v22 = vpop.eup %4494  ;;  %4520 = vrcp.f32 %v1053_v53  ;;  %v1054_v17 = vadd.f32 1.0, %v4493_v56  ;;  %v422_v7 = vpop.f32.mrf.mxu0  ;;  %v3987_v18 = vmul.f32 -1.442695, %v5913_v46 }
 0x166   :  { %v4497_v40 = vpop.eup %4496  ;;  %v1055_v41 = vadd.f32 1.0, %v4495_v22  ;;  %4522 = vrcp.f32 %v1088_v9  ;;  %v5919_v56 = vpop.f32.mrf.mxu1  ;;  %v1545_v22 = vpack.c.bf16 %v1429_v30, %v1427_v51  ;;  %v5928_v13 = vadd.f32 %v422_v7, %v5648_v25 }
 0x167   :  { %v4499_v3 = vpop.eup %4498  ;;  %v1430_v62 = vmul.f32 %v4497_v40, %v5812_v8  ;;  %4524 = vrcp.f32 %v1054_v17  ;;  %v424_v53 = vpop.f32.mrf.mxu0  ;;  %v1090_v40 = vadd.f32 1.0, %v5741_v49  ;;  %v1091_v30 = vadd.f32 1.0, %v5747_v59 }
 0x168   :  { %v4501_v6 = vpop.eup %4500  ;;  %4526 = vrcp.f32 %v1055_v41  ;;  %v1056_v35 = vadd.f32 1.0, %v4499_v3  ;;  %v5930_v33 = vpop.f32.mrf.mxu1  ;;  %v3988_v3 = vmul.f32 -1.442695, %v5923_v50 }
 0x169   :  { %v4503_v9 = vpop.eup %4502  ;;  %4528 = vpow2.f32 %v3986_v58  ;;  %v1546_v21 = vpack.c.bf16 %v1430_v62, %v1428_v11  ;;  %v426_v8 = vpop.f32.mrf.mxu0  ;;  %v5937_v62 = vadd.f32 %v424_v53, %v5644_v24  ;;  %v1431_v59 = vmul.f32 %v4501_v6, %v5819_v45 }
 0x16a   :  { %v4505_v14 = vpop.eup %4504  ;;  %4530 = vrcp.f32 %v1056_v35  ;;  %v1057_v38 = vadd.f32 1.0, %v4503_v9  ;;  %v3989_v9 = vmul.f32 -1.442695, %v5928_v13  ;;  %v1092_v53 = vadd.f32 1.0, %v5755_v5 }
 0x16b   :  { %v4507_v17 = vpop.eup %4506  ;;  %4532 = vrcp.f32 %v1089_v55  ;;  %1885 = vmatprep.mubr.bf16.mxu1 %v1546_v21  ;;  %v430_v37 = vpop.f32.mrf.mxu0  ;;  %v1432_v51 = vmul.f32 %v4505_v14, %v5825_v63  ;;  %v1093_v45 = vadd.f32 1.0, %v5761_v15 }
 0x16c   :  { %v4509_v58 = vpop.eup %4508  ;;  %4534 = vrcp.f32 %v1057_v38  ;;  %v1058_v41 = vadd.f32 1.0, %v4507_v17  ;;  %1886 = vmatmul.mubr.bf16.gmra.mxu1 %v1545_v22  ;;  %v5941_v38 = vpop.f32.mrf.mxu1  ;;  %v5953_v6 = vadd.f32 %v430_v37, %v5644_v24  ;;  %v5966_v37 = vadd.f32 %v5725_v27, %v5648_v25 }
 0x16d   :  { %v4511_v35 = vpop.eup %4510  ;;  %4536 = vpow2.f32 %v3987_v18  ;;  %v1433_v49 = vmul.f32 %v4509_v58, %v5831_v16  ;;  %v432_v21 = vpop.f32.mrf.mxu0  ;;  %v5945_v16 = vadd.f32 %v426_v8, %v5648_v25 }
 0x16e   :  { %v4513_v11 = vpop.eup %4512  ;;  %v1434_v7 = vmul.f32 %v4511_v35, %v5835_v26  ;;  %4538 = vrcp.f32 %v1058_v41 }
 0x16f   :  { %v4515_v55 = vpop.eup %4514  ;;  %4540 = vrcp.f32 %v1090_v40  ;;  %v3990_v40 = vmul.f32 -1.442695, %v5937_v62  ;;  %v1547_v58 = vpack.c.bf16 %v1433_v49, %v1431_v59  ;;  %v434_v8 = vpop.f32.mrf.mxu0  ;;  %v3991_v35 = vmul.f32 -1.442695, %v5945_v16 }
 0x170   :  { %v4517_v18 = vpop.eup %4516  ;;  %v1059_v22 = vadd.f32 1.0, %v4515_v55  ;;  %4542 = vpow2.f32 %v3988_v3  ;;  %v1548_v17 = vpack.c.bf16 %v1434_v7, %v1432_v51  ;;  %v5955_v3 = vpop.f32.mrf.mxu1 }
 0x171   :  { %v4519_v26 = vpop.eup %4518  ;;  %4544 = vrcp.f32 %v1091_v30  ;;  %v5960_v30 = vadd.f32 %v5712_v10, %v5644_v24  ;;  %v1436_v7 = vmul.f32 %v4517_v18, %v5852_v2  ;;  %v5971_v10 = vadd.f32 %v432_v21, %v5648_v25 }
 0x172   :  { %v4521_v63 = vpop.eup %4520  ;;  %4546 = vrcp.f32 %v1059_v22  ;;  %v1060_v14 = vadd.f32 1.0, %v4519_v26  ;;  %1895 = vmatprep.mubr.bf16.mxu1 %v1548_v17  ;;  %v3992_v2 = vmul.f32 -1.442695, %v5953_v6  ;;  %v5974_v26 = vpop.f32.mrf.mxu1  ;;  %v5981_v21 = vadd.f32 %v434_v8, %v5644_v24 }
 0x173   :  { %v5949_v41 = vpop.eup %4522  ;;  %4548 = vpow2.f32 %v3989_v9  ;;  %7793 = vst [vmem:[#allocation24_spill] sm:$0xff] %v5960_v30  ;;  %v1437_v51 = vmul.f32 %v4521_v63, %v5858_v43  ;;  %v1094_v9 = vadd.f32 1.0, %v5769_v36  ;;  %v4020_v43 = vmul.f32 -1.442695, %v5960_v30 }
 0x174   :  { %v4525_v5 = vpop.eup %4524  ;;  %4550 = vrcp.f32 %v1060_v14  ;;  %1896 = vmatmul.mubr.bf16.gmra.mxu1 %v1547_v58  ;;  %v3993_v63 = vmul.f32 -1.442695, %v5971_v10  ;;  %v5986_v14 = vadd.f32 %v5739_v48, %v5644_v24 }
 0x175   :  { %v4527_v49 = vpop.eup %4526  ;;  %v1438_v15 = vmul.f32 %v4525_v5, %v5862_v54  ;;  %4552 = vrcp.f32 %v1092_v53  ;;  %v436_v54 = vpop.f32.mrf.mxu0  ;;  %v1435_v53 = vmul.f32 %v4513_v11, %v5843_v39  ;;  %v4021_v11 = vmul.f32 -1.442695, %v5966_v37 }
 0x176   :  { %v4529_v55 = vpop.eup %4528  ;;  %4554 = vpow2.f32 %v3990_v40  ;;  %7794 = vst [vmem:[#allocation25_spill] sm:$0xff] %v5986_v14  ;;  %v5989_v5 = vpop.f32.mrf.mxu1 }
 0x177   :  { %v4531_v59 = vpop.eup %4530  ;;  %v1061_v22 = vadd.f32 1.0, %v4529_v55  ;;  %4556 = vrcp.f32 %v1093_v45  ;;  %v1550_v18 = vpack.c.bf16 %v1438_v15, %v1436_v7  ;;  %v1549_v40 = vpack.c.bf16 %v1437_v51, %v1435_v53  ;;  %v440_v45 = vpop.f32.mrf.mxu0 }
 0x178   :  { %v5976_v27 = vpop.eup %4532  ;;  %4558 = vpow2.f32 %v3991_v35  ;;  %v5995_v7 = vadd.f32 %v436_v54, %v5648_v25  ;;  %v1440_v15 = vmul.f32 %v4531_v59, %v5876_v60  ;;  %v3994_v55 = vmul.f32 -1.442695, %v5981_v21  ;;  %v6012_v53 = vpop.f32.mrf.mxu1 }
 0x179   :  { %v4535_v36 = vpop.eup %4534  ;;  %4560 = vrcp.f32 %v1061_v22  ;;  %1905 = vmatprep.mubr.bf16.mxu1 %v1550_v18  ;;  %v6001_v51 = vadd.f32 %v5753_v4, %v5648_v25  ;;  %v6010_v60 = vadd.f32 %v440_v45, %v5644_v24  ;;  %v442_v59 = vpop.f32.mrf.mxu0 }
 0x17a   :  { %v4537_v17 = vpop.eup %4536  ;;  %4562 = vrcp.f32 %v1094_v9  ;;  %v1441_v22 = vmul.f32 %v4535_v36, %v5882_v20  ;;  %v3995_v20 = vmul.f32 -1.442695, %v5995_v7 }
 0x17b   :  { %v4539_v58 = vpop.eup %4538  ;;  %v1062_v39 = vadd.f32 1.0, %v4537_v17  ;;  %4564 = vpow2.f32 %v3992_v2  ;;  %7795 = vst [vmem:[#allocation26_spill] sm:$0xff] %v6001_v51  ;;  %v4022_v2 = vmul.f32 -1.442695, %v5986_v14  ;;  %v444_v45 = vpop.f32.mrf.mxu0 }
 0x17c   :  { %v5991_v8 = vpop.eup %4540  ;;  %v1442_v35 = vmul.f32 %v4539_v58, %v5886_v12  ;;  %4566 = vpow2.f32 %v4020_v43  ;;  %1906 = vmatmul.mubr.bf16.gmra.mxu1 %v1549_v40  ;;  %v1439_v43 = vmul.f32 %v4527_v49, %v5869_v44  ;;  %v6019_v40 = vadd.f32 %v5767_v32, %v5644_v24  ;;  %v4350_v32 = vld [vmem:[#allocation7 + $0x38] sm:$0xff]  }
 0x17d   :  { %v4543_v48 = vpop.eup %4542  ;;  %4568 = vrcp.f32 %v1062_v39  ;;  %v6024_v39 = vadd.f32 %v442_v59, %v5648_v25  ;;  %3252 = vmatpush1.bf16.msra.mxu0 %v4350_v32 }
 0x17e   :  { %v6003_v9 = vpop.eup %4544  ;;  %v1063_v12 = vadd.f32 1.0, %v4543_v48  ;;  %4570 = vpow2.f32 %v3993_v63  ;;  %v1552_v18 = vpack.c.bf16 %v1442_v35, %v1440_v15  ;;  %v4023_v63 = vmul.f32 -1.442695, %v6001_v51  ;;  %7796 = vst [vmem:[#allocation27_spill] sm:$0xff] %v6019_v40  ;;  %v6027_v35 = vpop.f32.mrf.mxu1 }
 0x17f   :  { %v6007_v54 = vpop.eup %4546  ;;  %4572 = vpow2.f32 %v4021_v11  ;;  %v1551_v44 = vpack.c.bf16 %v1441_v22, %v1439_v43  ;;  %v3996_v11 = vmul.f32 -1.442695, %v6010_v60  ;;  %v6034_v22 = vadd.f32 %v5779_v1, %v5648_v25  ;;  %v446_v43 = vpop.f32.mrf.mxu0 }
 0x180   :  { %v4549_v4 = vpop.eup %4548  ;;  %4574 = vrcp.f32 %v1063_v12  ;;  %1915 = vmatprep.mubr.bf16.mxu1 %v1552_v18  ;;  %v4024_v12 = vmul.f32 -1.442695, %v6019_v40  ;;  %v3997_v18 = vmul.f32 -1.442695, %v6024_v39 }
 0x181   :  { %v4551_v36 = vpop.eup %4550  ;;  %v1064_v17 = vadd.f32 1.0, %v4549_v4  ;;  %4576 = vpow2.f32 %v3994_v55  ;;  %7797 = vst [vmem:[#allocation28_spill] sm:$0xff] %v6034_v22 }
 0x182   :  { %v6021_v58 = vpop.eup %4552  ;;  %4578 = vpow2.f32 %v4022_v2  ;;  %v1444_v30 = vmul.f32 %v4551_v36, %v5900_v31 }
 0x183   :  { %v4555_v49 = vpop.eup %4554  ;;  %4580 = vrcp.f32 %v1064_v17  ;;  %v7798_v17 = vmov 0  }
 0x184   :  { %v6029_v48 = vpop.eup %4556  ;;  %v1065_v15 = vadd.f32 1.0, %v4555_v49  ;;  %4582 = vpow2.f32 %v3995_v20  ;;  %1916 = vmatmul.mubr.bf16.gmra.mxu1 %v1551_v44  ;;  %v6039_v20 = vpop.f32.mrf.mxu1  ;;  %3253 = vmatprep.subr.bf16.mxu0 %v7798_v17  ;;  %v6043_v44 = vadd.f32 %v444_v45, %v5644_v24  ;;  %v6051_v45 = vadd.f32 %v5791_v61, %v5644_v24 }
 0x185   :  { %v4559_v55 = vpop.eup %4558  ;;  %4584 = vpow2.f32 %v4023_v63 }
 0x186   :  { %v4561_v2 = vpop.eup %4560  ;;  %4586 = vrcp.f32 %v1065_v15  ;;  %v1066_v59 = vadd.f32 1.0, %v4559_v55  ;;  %v4025_v15 = vmul.f32 -1.442695, %v6034_v22  ;;  %7799 = vst [vmem:[#allocation29_spill] sm:$0xff] %v6051_v45 }
 0x187   :  { %v6037_v4 = vpop.eup %4562  ;;  %4588 = vpow2.f32 %v3996_v11  ;;  %v1445_v32 = vmul.f32 %v4561_v2, %v5906_v19  ;;  %v4351_v11 = vld [vmem:[#allocation7 + $0x30] sm:$0xff]   ;;  %v1443_v19 = vmul.f32 %v6007_v54, %v5894_v34 }
 0x188   :  { %v4565_v63 = vpop.eup %4564  ;;  %4590 = vrcp.f32 %v1066_v59  ;;  %v450_v59 = vpop.f32.mrf.mxu0  ;;  %3254 = vmatpush1.bf16.msra.mxu0 %v4351_v11 }
 0x189   :  { %v4567_v1 = vpop.eup %4566  ;;  %v1067_v49 = vadd.f32 1.0, %v4565_v63  ;;  %4592 = vpow2.f32 %v4024_v12  ;;  %v6053_v12 = vpop.f32.mrf.mxu1  ;;  %3255 = vmatprep.subr.bf16.mxu0 %v7798_v17 }
 0x18a   :  { %v4569_v55 = vpop.eup %4568  ;;  %v1095_v40 = vadd.f32 1.0, %v4567_v1  ;;  %4594 = vpow2.f32 %v3997_v18  ;;  %v3998_v18 = vmul.f32 -1.442695, %v6043_v44  ;;  %v6060_v1 = vadd.f32 %v446_v43, %v5648_v25  ;;  %v452_v54 = vpop.f32.mrf.mxu0 }
 0x18b   :  { %v4571_v14 = vpop.eup %4570  ;;  %v1446_v51 = vmul.f32 %v4569_v55, %v5913_v46  ;;  %4596 = vrcp.f32 %v1067_v49  ;;  %v1553_v49 = vpack.c.bf16 %v1445_v32, %v1443_v19 }
 0x18c   :  { %v4573_v63 = vpop.eup %4572  ;;  %4598 = vrcp.f32 %v1095_v40  ;;  %v1068_v2 = vadd.f32 1.0, %v4571_v14  ;;  %v4026_v14 = vmul.f32 -1.442695, %v6051_v45  ;;  %v6063_v40 = vpop.f32.mrf.mxu1 }
 0x18d   :  { %v4575_v31 = vpop.eup %4574  ;;  %v1096_v36 = vadd.f32 1.0, %v4573_v63  ;;  %4600 = vpow2.f32 %v4025_v15  ;;  %v1554_v46 = vpack.c.bf16 %v1446_v51, %v1444_v30  ;;  %v6067_v30 = vadd.f32 %v5804_v28, %v5648_v25 }
 0x18e   :  { %v4577_v61 = vpop.eup %4576  ;;  %4602 = vrcp.f32 %v1068_v2  ;;  %v3999_v63 = vmul.f32 -1.442695, %v6060_v1 }
 0x18f   :  { %v4579_v55 = vpop.eup %4578  ;;  %4604 = vrcp.f32 %v1096_v36  ;;  %v1069_v34 = vadd.f32 1.0, %v4577_v61  ;;  %1925 = vmatprep.mubr.bf16.mxu1 %v1554_v46  ;;  %7800 = vst [vmem:[#allocation30_spill] sm:$0xff] %v6067_v30  ;;  %v6071_v36 = vadd.f32 %v450_v59, %v5644_v24  ;;  %v454_v46 = vpop.f32.mrf.mxu0  ;;  %v4027_v28 = vmul.f32 -1.442695, %v6067_v30 }
 0x190   :  { %v4581_v11 = vpop.eup %4580  ;;  %v1097_v15 = vadd.f32 1.0, %v4579_v55  ;;  %4606 = vpow2.f32 %v3998_v18  ;;  %1926 = vmatmul.mubr.bf16.gmra.mxu1 %v1553_v49  ;;  %v6073_v18 = vpop.f32.mrf.mxu1  ;;  %v6078_v49 = vadd.f32 %v5814_v0, %v5644_v24  ;;  %v6083_v59 = vadd.f32 %v5828_v57, %v5648_v25  ;;  %v4352_v0 = vld [vmem:[#allocation7 + $0x28] sm:$0xff]  }
 0x191   :  { %v4583_v51 = vpop.eup %4582  ;;  %4608 = vrcp.f32 %v1069_v34  ;;  %v1447_v30 = vmul.f32 %v4575_v31, %v5923_v50  ;;  %3256 = vmatpush1.bf16.msra.mxu0 %v4352_v0 }
 0x192   :  { %v4585_v43 = vpop.eup %4584  ;;  %4610 = vrcp.f32 %v1097_v15  ;;  %v1070_v32 = vadd.f32 1.0, %v4583_v51  ;;  %7801 = vst [vmem:[#allocation31_spill] sm:$0xff] %v6078_v49  ;;  %7802 = vst [vmem:[#allocation32_spill] sm:$0xff] %v6083_v59  ;;  %v1448_v51 = vmul.f32 %v4581_v11, %v5928_v13  ;;  %v6092_v57 = vpop.f32.mrf.mxu1  ;;  %v4028_v13 = vmul.f32 -1.442695, %v6078_v49  ;;  %3257 = vmatprep.subr.bf16.mxu0 %v7798_v17 }
 0x193   :  { %v4587_v19 = vpop.eup %4586  ;;  %v1098_v2 = vadd.f32 1.0, %v4585_v43  ;;  %4612 = vpow2.f32 %v4026_v14  ;;  %v6098_v11 = vadd.f32 %v454_v46, %v5644_v24 }
 0x194   :  { %v4589_v61 = vpop.eup %4588  ;;  %4614 = vrcp.f32 %v1070_v32  ;;  %v1449_v34 = vmul.f32 %v4587_v19, %v5937_v62  ;;  %v6088_v32 = vadd.f32 %v452_v54, %v5648_v25  ;;  %v4000_v19 = vmul.f32 -1.442695, %v6071_v36  ;;  %v6107_v46 = vpop.f32.mrf.mxu1 }
 0x195   :  { %v4591_v55 = vpop.eup %4590  ;;  %4616 = vrcp.f32 %v1098_v2  ;;  %v1071_v15 = vadd.f32 1.0, %v4589_v61  ;;  %v456_v2 = vpop.f32.mrf.mxu0 }
 0x196   :  { %v4593_v14 = vpop.eup %4592  ;;  %v1450_v43 = vmul.f32 %v4591_v55, %v5945_v16  ;;  %4618 = vpow2.f32 %v3999_v63  ;;  %v1555_v50 = vpack.c.bf16 %v1449_v34, %v1447_v30  ;;  %v4001_v63 = vmul.f32 -1.442695, %v6088_v32 }
 0x197   :  { %v4595_v45 = vpop.eup %4594  ;;  %4620 = vrcp.f32 %v1071_v15  ;;  %v1099_v62 = vadd.f32 1.0, %v4593_v14  ;;  %v4029_v15 = vmul.f32 -1.442695, %v6083_v59  ;;  %v460_v14 = vpop.f32.mrf.mxu0 }
 0x198   :  { %v4597_v61 = vpop.eup %4596  ;;  %v1072_v22 = vadd.f32 1.0, %v4595_v45  ;;  %4622 = vpow2.f32 %v4027_v28  ;;  %v1556_v16 = vpack.c.bf16 %v1450_v43, %v1448_v51  ;;  %v6104_v45 = vadd.f32 %v5839_v52, %v5644_v24 }
 0x199   :  { %v6095_v54 = vpop.eup %4598  ;;  %4624 = vrcp.f32 %v1099_v62  ;;  %v6116_v52 = vadd.f32 %v5854_v42, %v5648_v25  ;;  %v4002_v51 = vmul.f32 -1.442695, %v6098_v11 }
 0x19a   :  { %7803 = vst [vmem:[#allocation33_spill] sm:$0xff] %v6095_v54  ;;  %v4601_v31 = vpop.eup %4600  ;;  %4626 = vrcp.f32 %v1072_v22  ;;  %7804 = vst [vmem:[#allocation34_spill] sm:$0xff] %v6104_v45  ;;  %1935 = vmatprep.mubr.bf16.mxu1 %v1556_v16  ;;  %v6112_v22 = vadd.f32 %v456_v2, %v5648_v25  ;;  %v4030_v62 = vmul.f32 -1.442695, %v6104_v45  ;;  %v6123_v2 = vadd.f32 %v460_v14, %v5644_v24 }
 0x19b   :  { %v4603_v28 = vpop.eup %4602  ;;  %v1100_v55 = vadd.f32 1.0, %v4601_v31  ;;  %4628 = vpow2.f32 %v4000_v19  ;;  %1936 = vmatmul.mubr.bf16.gmra.mxu1 %v1555_v50  ;;  %7806 = vst [vmem:[#allocation36_spill] sm:$0xff] %v6116_v52  ;;  %v4353_v19 = vld [vmem:[#allocation7 + $0x20] sm:$0xff]   ;;  %v6125_v50 = vpop.f32.mrf.mxu1 }
 0x19c   :  { %v6109_v30 = vpop.eup %4604  ;;  %4630 = vpow2.f32 %v4028_v13  ;;  %v462_v13 = vpop.f32.mrf.mxu0  ;;  %v4003_v31 = vmul.f32 -1.442695, %v6112_v22  ;;  %3258 = vmatpush1.bf16.msra.mxu0 %v4353_v19 }
 0x19d   :  { %7805 = vst [vmem:[#allocation35_spill] sm:$0xff] %v6109_v30  ;;  %v4607_v34 = vpop.eup %4606  ;;  %4632 = vrcp.f32 %v1100_v55  ;;  %v4031_v55 = vmul.f32 -1.442695, %v6116_v52  ;;  %3259 = vmatprep.subr.bf16.mxu0 %v7798_v17  ;;  %v6140_v19 = vadd.f32 %v462_v13, %v5648_v25 }
 0x19e   :  { %v4609_v43 = vpop.eup %4608  ;;  %v1073_v0 = vadd.f32 1.0, %v4607_v34  ;;  %4634 = vpow2.f32 %v4001_v63 }
 0x19f   :  { %v6120_v16 = vpop.eup %4610  ;;  %4636 = vpow2.f32 %v4029_v15  ;;  %v1453_v34 = vmul.f32 %v4609_v43, %v5981_v21  ;;  %v6132_v15 = vadd.f32 %v5865_v47, %v5644_v24  ;;  %v1451_v21 = vmul.f32 %v4597_v61, %v5953_v6  ;;  %v6144_v47 = vpop.f32.mrf.mxu1 }
 0x1a0   :  { %7807 = vst [vmem:[#allocation37_spill] sm:$0xff] %v6120_v16  ;;  %v4613_v42 = vpop.eup %4612  ;;  %4638 = vrcp.f32 %v1073_v0  ;;  %v1452_v0 = vmul.f32 %v4603_v28, %v5971_v10  ;;  %v4354_v10 = vld [vmem:[#allocation7 + $0x18] sm:$0xff]   ;;  %v464_v6 = vpop.f32.mrf.mxu0 }
 0x1a1   :  { %v4615_v63 = vpop.eup %4614  ;;  %v1101_v45 = vadd.f32 1.0, %v4613_v42  ;;  %4640 = vpow2.f32 %v4002_v51  ;;  %7808 = vst [vmem:[#allocation38_spill] sm:$0xff] %v6132_v15  ;;  %v4004_v51 = vmul.f32 -1.442695, %v6123_v2  ;;  %v1557_v61 = vpack.c.bf16 %v1453_v34, %v1451_v21  ;;  %3260 = vmatpush1.bf16.msra.mxu0 %v4354_v10 }
 0x1a2   :  { %v6135_v14 = vpop.eup %4616  ;;  %v1454_v49 = vmul.f32 %v4615_v63, %v5995_v7  ;;  %4642 = vpow2.f32 %v4030_v62  ;;  %v4032_v7 = vmul.f32 -1.442695, %v6132_v15  ;;  %v6151_v62 = vadd.f32 %v5878_v29, %v5648_v25  ;;  %3261 = vmatprep.subr.bf16.mxu0 %v7798_v17  ;;  %v466_v21 = vpop.f32.mrf.mxu0 }
 0x1a3   :  { %7809 = vst [vmem:[#allocation39_spill] sm:$0xff] %v6135_v14  ;;  %v4619_v52 = vpop.eup %4618  ;;  %4644 = vrcp.f32 %v1101_v45  ;;  %v4005_v63 = vmul.f32 -1.442695, %v6140_v19  ;;  %v6160_v29 = vadd.f32 %v464_v6, %v5644_v24 }
 0x1a4   :  { %v6146_v43 = vpop.eup %4620  ;;  %v1074_v42 = vadd.f32 1.0, %v4619_v52  ;;  %4646 = vpow2.f32 %v4003_v31  ;;  %v1558_v59 = vpack.c.bf16 %v1454_v49, %v1452_v0  ;;  %7810 = vst [vmem:[#allocation40_spill] sm:$0xff] %v6151_v62  ;;  %v6156_v52 = vpop.f32.mrf.mxu1  ;;  %v4033_v0 = vmul.f32 -1.442695, %v6151_v62 }
 0x1a5   :  { %v4623_v28 = vpop.eup %4622  ;;  %4648 = vpow2.f32 %v4031_v55 }
 0x1a6   :  { %v6153_v45 = vpop.eup %4624  ;;  %4650 = vrcp.f32 %v1074_v42  ;;  %v1102_v13 = vadd.f32 1.0, %v4623_v28  ;;  %1945 = vmatprep.mubr.bf16.mxu1 %v1558_v59  ;;  %v6167_v28 = vadd.f32 %v5889_v23, %v5644_v24  ;;  %v6174_v23 = vadd.f32 %v466_v21, %v5648_v25 }
 0x1a7   :  { %7811 = vst [vmem:[#allocation41_spill] sm:$0xff] %v6153_v45  ;;  %v4627_v49 = vpop.eup %4626  ;;  %4652 = vpow2.f32 %v4004_v51  ;;  %1946 = vmatmul.mubr.bf16.gmra.mxu1 %v1557_v61  ;;  %v4355_v51 = vld [vmem:[#allocation7 + $0x10] sm:$0xff]   ;;  %v6169_v61 = vpop.f32.mrf.mxu1 }
 0x1a8   :  { %v4629_v31 = vpop.eup %4628  ;;  %4654 = vrcp.f32 %v1102_v13  ;;  %7813 = vst [vmem:[#allocation43_spill] sm:$0xff] %v6167_v28  ;;  %3262 = vmatpush1.bf16.msra.mxu0 %v4355_v51  ;;  %v4034_v51 = vmul.f32 -1.442695, %v6167_v28 }
 0x1a9   :  { %v4631_v55 = vpop.eup %4630  ;;  %v1075_v34 = vadd.f32 1.0, %v4629_v31  ;;  %4656 = vpow2.f32 %v4032_v7  ;;  %v4006_v7 = vmul.f32 -1.442695, %v6160_v29  ;;  %v4356_v31 = vld [vmem:[#allocation7 + $0x8] sm:$0xff]   ;;  %3263 = vmatprep.subr.bf16.mxu0 %v7798_v17 }
 0x1aa   :  { %v6163_v59 = vpop.eup %4632  ;;  %v1103_v42 = vadd.f32 1.0, %v4631_v55  ;;  %4658 = vpow2.f32 %v4005_v63  ;;  %v470_v63 = vpop.f32.mrf.mxu0 }
 0x1ab   :  { %7812 = vst [vmem:[#allocation42_spill] sm:$0xff] %v6163_v59  ;;  %v4635_v10 = vpop.eup %4634  ;;  %4660 = vrcp.f32 %v1075_v34  ;;  %v7814_v34 = vld [vmem:[#allocation22_spill] sm:$0xff]  ;;  %v6181_v59 = vpop.f32.mrf.mxu1 }
 0x1ac   :  { %v4637_v6 = vpop.eup %4636  ;;  %4662 = vrcp.f32 %v1103_v42  ;;  %v1076_v13 = vadd.f32 1.0, %v4635_v10  ;;  %v6178_v45 = vadd.f32 %v7814_v34, %v5648_v25  ;;  %3264 = vmatpush1.bf16.msra.mxu0 %v4356_v31  ;;  %v472_v21 = vpop.f32.mrf.mxu0 }
 0x1ad   :  { %v4639_v15 = vpop.eup %4638  ;;  %v1104_v62 = vadd.f32 1.0, %v4637_v6  ;;  %4664 = vpow2.f32 %v4033_v0  ;;  %3265 = vmatprep.subr.bf16.mxu0 %v7798_v17  ;;  %v6192_v31 = vpop.f32.mrf.mxu1 }
 0x1ae   :  { %v4641_v55 = vpop.eup %4640  ;;  %4666 = vrcp.f32 %v1076_v13  ;;  %7815 = vst [vmem:[#allocation22_spill] sm:$0xff] %v6178_v45  ;;  %v4357_v13 = vld [vmem:[#allocation7] sm:$0xff]   ;;  %v1457_v14 = vmul.f32 %v4639_v15, %v6043_v44  ;;  %v1455_v15 = vmul.f32 %v6146_v43, %v6010_v60 }
 0x1af   :  { %v4643_v42 = vpop.eup %4642  ;;  %4668 = vrcp.f32 %v1104_v62  ;;  %v1077_v10 = vadd.f32 1.0, %v4641_v55  ;;  %v4007_v62 = vmul.f32 -1.442695, %v6174_v23  ;;  %v4035_v55 = vmul.f32 -1.442695, %v6178_v45  ;;  %v4358_v45 = vld [vmem:[#allocation7 + $0x78] sm:$0xff]   ;;  %v6213_v43 = vpop.f32.mrf.mxu1 }
 0x1b0   :  { %v6183_v0 = vpop.eup %4644  ;;  %v1105_v6 = vadd.f32 1.0, %v4643_v42  ;;  %4670 = vpow2.f32 %v4006_v7  ;;  %v6190_v7 = vadd.f32 %v470_v63, %v5644_v24  ;;  %3266 = vmatpush1.bf16.msra.mxu0 %v4357_v13  ;;  %v1559_v13 = vpack.c.bf16 %v1457_v14, %v1455_v15 }
 0x1b1   :  { %7816 = vst [vmem:[#allocation44_spill] sm:$0xff] %v6183_v0  ;;  %v4647_v16 = vpop.eup %4646  ;;  %4672 = vrcp.f32 %v1077_v10  ;;  %v1456_v10 = vmul.f32 %v4627_v49, %v6024_v39  ;;  %3267 = vmatprep.subr.bf16.mxu0 %v7798_v17 }
 0x1b2   :  { %v4649_v34 = vpop.eup %4648  ;;  %4674 = vrcp.f32 %v1105_v6  ;;  %v1078_v54 = vadd.f32 1.0, %v4647_v16  ;;  %v7817_v16 = vld [vmem:[#allocation23_spill] sm:$0xff]  ;;  %v4008_v60 = vmul.f32 -1.442695, %v6190_v7 }
 0x1b3   :  { %v4651_v28 = vpop.eup %4650  ;;  %v1106_v0 = vadd.f32 1.0, %v4649_v34  ;;  %4676 = vpow2.f32 %v4034_v51  ;;  %v6198_v30 = vadd.f32 %v7817_v16, %v5644_v24  ;;  %v474_v51 = vpop.f32.mrf.mxu0 }
 0x1b4   :  { %v4653_v42 = vpop.eup %4652  ;;  %v1458_v6 = vmul.f32 %v4651_v28, %v6060_v1  ;;  %4678 = vrcp.f32 %v1078_v54  ;;  %v6206_v1 = vadd.f32 %v472_v21, %v5648_v25  ;;  %v6210_v54 = vadd.f32 %v5919_v56, %v5648_v25  ;;  %3268 = vmatpush2.bf16.msra.mxu0 %v4358_v45  ;;  %v4359_v21 = vld [vmem:[#allocation7 + $0x70] sm:$0xff]  }
 0x1b5   :  { %7818 = vst [vmem:[#allocation23_spill] sm:$0xff] %v6198_v30  ;;  %v6200_v44 = vpop.eup %4654  ;;  %4680 = vrcp.f32 %v1106_v0  ;;  %v1079_v63 = vadd.f32 1.0, %v4653_v42  ;;  %v6219_v56 = vadd.f32 %v474_v51, %v5644_v24  ;;  %v476_v14 = vpop.f32.mrf.mxu0  ;;  %3269 = vmatprep.subr.bf16.mxu0 %v7798_v17 }
 0x1b6   :  { %v4657_v39 = vpop.eup %4656  ;;  %4682 = vpow2.f32 %v4007_v62  ;;  %7819 = vst [vmem:[#allocation45_spill] sm:$0xff] %v6210_v54  ;;  %v1560_v49 = vpack.c.bf16 %v1458_v6, %v1456_v10  ;;  %v4036_v62 = vmul.f32 -1.442695, %v6198_v30  ;;  %v4009_v6 = vmul.f32 -1.442695, %v6206_v1 }
 0x1b7   :  { %v4659_v28 = vpop.eup %4658  ;;  %4684 = vrcp.f32 %v1079_v63  ;;  %v1107_v34 = vadd.f32 1.0, %v4657_v39  ;;  %v4037_v63 = vmul.f32 -1.442695, %v6210_v54  ;;  %v6228_v39 = vpop.f32.mrf.mxu1 }
 0x1b8   :  { %v4661_v0 = vpop.eup %4660  ;;  %v1080_v42 = vadd.f32 1.0, %v4659_v28  ;;  %4686 = vpow2.f32 %v4035_v55  ;;  %1955 = vmatprep.mubr.bf16.mxu1 %v1560_v49  ;;  %v6225_v55 = vadd.f32 %v5930_v33, %v5644_v24  ;;  %v6233_v49 = vadd.f32 %v476_v14, %v5648_v25  ;;  %3270 = vmatpush2.bf16.msra.mxu0 %v4359_v21  ;;  %v4360_v33 = vld [vmem:[#allocation7 + $0x68] sm:$0xff]  }
 0x1b9   :  { %v6216_v16 = vpop.eup %4662  ;;  %4688 = vrcp.f32 %v1107_v34  ;;  %1956 = vmatmul.mubr.bf16.gmra.mxu1 %v1559_v13  ;;  %v6237_v28 = vadd.f32 %v5941_v38, %v5648_v25  ;;  %v4010_v34 = vmul.f32 -1.442695, %v6219_v56  ;;  %3271 = vmatprep.subr.bf16.mxu0 %v7798_v17  ;;  %v6246_v38 = vadd.f32 %v5955_v3, %v5644_v24  ;;  %v6248_v21 = vpop.f32.mrf.mxu1 }
 0x1ba   :  { %v4665_v10 = vpop.eup %4664  ;;  %4690 = vrcp.f32 %v1080_v42  ;;  %7820 = vst [vmem:[#allocation46_spill] sm:$0xff] %v6225_v55 }
 0x1bb   :  { %v4667_v45 = vpop.eup %4666  ;;  %v1108_v15 = vadd.f32 1.0, %v4665_v10  ;;  %4692 = vpow2.f32 %v4008_v60  ;;  %7821 = vst [vmem:[#allocation47_spill] sm:$0xff] %v6237_v28  ;;  %v4039_v30 = vmul.f32 -1.442695, %v6237_v28 }
 0x1bc   :  { %v6230_v51 = vpop.eup %4668  ;;  %4694 = vpow2.f32 %v4036_v62  ;;  %v4038_v62 = vmul.f32 -1.442695, %v6225_v55  ;;  %3272 = vmatpush2.bf16.msra.mxu0 %v4360_v33  ;;  %v6264_v33 = vadd.f32 %v5989_v5, %v5644_v24 }
 0x1bd   :  { %v4671_v13 = vpop.eup %4670  ;;  %4696 = vrcp.f32 %v1108_v15  ;;  %v4011_v15 = vmul.f32 -1.442695, %v6233_v49  ;;  %3273 = vmatprep.subr.bf16.mxu0 %v7798_v17 }
 0x1be   :  { %v4673_v60 = vpop.eup %4672  ;;  %v1081_v42 = vadd.f32 1.0, %v4671_v13  ;;  %4698 = vpow2.f32 %v4009_v6  ;;  %v4361_v13 = vld [vmem:[#allocation7 + $0x60] sm:$0xff]   ;;  %7823 = vst [vmem:[#allocation49_spill] sm:$0xff] %v6264_v33 }
 0x1bf   :  { %v6242_v10 = vpop.eup %4674  ;;  %4700 = vpow2.f32 %v4037_v63  ;;  %v1461_v55 = vmul.f32 %v4673_v60, %v6098_v11  ;;  %v6255_v63 = vadd.f32 %v5974_v26, %v5648_v25  ;;  %v4040_v26 = vmul.f32 -1.442695, %v6246_v38  ;;  %v6268_v60 = vpop.f32.mrf.mxu1 }
 0x1c0   :  { %7822 = vst [vmem:[#allocation48_spill] sm:$0xff] %v6242_v10  ;;  %v4677_v14 = vpop.eup %4676  ;;  %4702 = vrcp.f32 %v1081_v42  ;;  %v1460_v42 = vmul.f32 %v4667_v45, %v6088_v32  ;;  %3274 = vmatpush2.bf16.msra.mxu0 %v4361_v13  ;;  %v4363_v13 = vld [vmem:[#allocation7 + $0x50] sm:$0xff]  }
 0x1c1   :  { %v4679_v6 = vpop.eup %4678  ;;  %v1109_v54 = vadd.f32 1.0, %v4677_v14  ;;  %4704 = vpow2.f32 %v4010_v34  ;;  %v1459_v34 = vmul.f32 %v4661_v0, %v6071_v36  ;;  %v4041_v5 = vmul.f32 -1.442695, %v6255_v63  ;;  %3275 = vmatprep.subr.bf16.mxu0 %v7798_v17 }
 0x1c2   :  { %v6258_v3 = vpop.eup %4680  ;;  %v1462_v10 = vmul.f32 %v4679_v6, %v6112_v22  ;;  %4706 = vpow2.f32 %v4038_v62  ;;  %v4362_v22 = vld [vmem:[#allocation7 + $0x58] sm:$0xff]   ;;  %v6275_v36 = vadd.f32 %v6012_v53, %v5648_v25  ;;  %v6285_v53 = vadd.f32 %v6027_v35, %v5644_v24 }
 0x1c3   :  { %v4683_v11 = vpop.eup %4682  ;;  %4708 = vrcp.f32 %v1109_v54  ;;  %v1561_v62 = vpack.c.bf16 %v1461_v55, %v1459_v34  ;;  %v6281_v55 = vpop.f32.mrf.mxu1 }
 0x1c4   :  { %v6270_v14 = vpop.eup %4684  ;;  %v1082_v28 = vadd.f32 1.0, %v4683_v11  ;;  %4710 = vpow2.f32 %v4011_v15  ;;  %v1562_v32 = vpack.c.bf16 %v1462_v10, %v1460_v42  ;;  %v4042_v15 = vmul.f32 -1.442695, %v6264_v33  ;;  %7824 = vst [vmem:[#allocation50_spill] sm:$0xff] %v6285_v53  ;;  %3276 = vmatpush2.bf16.msra.mxu0 %v4362_v22 }
 0x1c5   :  { %v4687_v45 = vpop.eup %4686  ;;  %4712 = vpow2.f32 %v4039_v30  ;;  %3277 = vmatprep.subr.bf16.mxu0 %v7798_v17  ;;  %v6295_v35 = vpop.f32.mrf.mxu1 }
 0x1c6   :  { %v6278_v54 = vpop.eup %4688  ;;  %4714 = vrcp.f32 %v1082_v28  ;;  %v1110_v0 = vadd.f32 1.0, %v4687_v45  ;;  %1965 = vmatprep.mubr.bf16.mxu1 %v1562_v32  ;;  %v4043_v28 = vmul.f32 -1.442695, %v6275_v36  ;;  %v6293_v32 = vadd.f32 %v6039_v20, %v5648_v25 }
 0x1c7   :  { %v4691_v10 = vpop.eup %4690  ;;  %4716 = vpow2.f32 %v4040_v26  ;;  %1966 = vmatmul.mubr.bf16.gmra.mxu1 %v1561_v62  ;;  %v4044_v62 = vmul.f32 -1.442695, %v6285_v53  ;;  %v6301_v20 = vadd.f32 %v6053_v12, %v5644_v24 }
 0x1c8   :  { %v4693_v30 = vpop.eup %4692  ;;  %4718 = vrcp.f32 %v1110_v0  ;;  %7825 = vst [vmem:[#allocation51_spill] sm:$0xff] %v6293_v32  ;;  %3278 = vmatpush2.bf16.msra.mxu0 %v4363_v13  ;;  %v6306_v13 = vadd.f32 %v6063_v40, %v5648_v25  ;;  %v6316_v40 = vadd.f32 %v6073_v18, %v5644_v24 }
 0x1c9   :  { %v4695_v6 = vpop.eup %4694  ;;  %v1083_v42 = vadd.f32 1.0, %v4693_v30  ;;  %4720 = vpow2.f32 %v4041_v5  ;;  %v4364_v5 = vld [vmem:[#allocation7 + $0x48] sm:$0xff]   ;;  %3279 = vmatprep.subr.bf16.mxu0 %v7798_v17 }
 0x1ca   :  { %v6289_v11 = vpop.eup %4696  ;;  %v1111_v34 = vadd.f32 1.0, %v4695_v6  ;;  %4722 = vpow2.f32 %v4042_v15 }
 0x1cb   :  { %v4699_v26 = vpop.eup %4698  ;;  %4724 = vrcp.f32 %v1083_v42 }
 0x1cc   :  { %v4701_v22 = vpop.eup %4700  ;;  %4726 = vrcp.f32 %v1111_v34  ;;  %v1084_v45 = vadd.f32 1.0, %v4699_v26  ;;  %v4045_v34 = vmul.f32 -1.442695, %v6293_v32  ;;  %v6308_v26 = vpop.f32.mrf.mxu1  ;;  %3280 = vmatpush2.bf16.msra.mxu0 %v4364_v5 }
 0x1cd   :  { %v4703_v0 = vpop.eup %4702  ;;  %v1112_v30 = vadd.f32 1.0, %v4701_v22  ;;  %4728 = vpow2.f32 %v4043_v28  ;;  %3281 = vmatprep.subr.bf16.mxu0 %v7798_v17  ;;  %v1464_v17 = vmul.f32 %v4691_v10, %v6140_v19  ;;  %v6335_v19 = vadd.f32 %v6107_v46, %v5644_v24  ;;  %v4365_v10 = vld [vmem:[#allocation7 + $0x40] sm:$0xff]  }
 0x1ce   :  { %v4705_v15 = vpop.eup %4704  ;;  %4730 = vrcp.f32 %v1084_v45  ;;  %v1465_v32 = vmul.f32 %v4703_v0, %v6160_v29  ;;  %v6320_v5 = vpop.f32.mrf.mxu1  ;;  %v1463_v29 = vmul.f32 %v6270_v14, %v6123_v2 }
 0x1cf   :  { %v4707_v6 = vpop.eup %4706  ;;  %4732 = vrcp.f32 %v1112_v30  ;;  %v1085_v42 = vadd.f32 1.0, %v4705_v15  ;;  %v4046_v15 = vmul.f32 -1.442695, %v6301_v20  ;;  %7826 = vst [vmem:[#allocation52_spill] sm:$0xff] %v6335_v19 }
 0x1d0   :  { %v6310_v28 = vpop.eup %4708  ;;  %v1113_v22 = vadd.f32 1.0, %v4707_v6  ;;  %4734 = vpow2.f32 %v4044_v62  ;;  %v4047_v62 = vmul.f32 -1.442695, %v6306_v13  ;;  %v6341_v2 = vpop.f32.mrf.mxu1  ;;  %3282 = vmatpush2.bf16.msra.mxu0 %v4365_v10 }
 0x1d1   :  { %v4711_v45 = vpop.eup %4710  ;;  %4736 = vrcp.f32 %v1085_v42 }
 0x1d2   :  { %v4713_v12 = vpop.eup %4712  ;;  %4738 = vrcp.f32 %v1113_v22  ;;  %v1086_v30 = vadd.f32 1.0, %v4711_v45  ;;  %v6326_v22 = vadd.f32 %v6092_v57, %v5648_v25  ;;  %v4048_v45 = vmul.f32 -1.442695, %v6316_v40 }
 0x1d3   :  { %v4715_v53 = vpop.eup %4714  ;;  %v1114_v33 = vadd.f32 1.0, %v4713_v12  ;;  %4740 = vpow2.f32 %v4045_v34  ;;  %v1563_v57 = vpack.c.bf16 %v1465_v32, %v1463_v29  ;;  %v6348_v32 = vadd.f32 %v6144_v47, %v5644_v24 }
 0x1d4   :  { %v4717_v6 = vpop.eup %4716  ;;  %v1466_v42 = vmul.f32 %v4715_v53, %v6174_v23  ;;  %4742 = vrcp.f32 %v1086_v30  ;;  %v6339_v30 = vadd.f32 %v6125_v50, %v5648_v25  ;;  %v4050_v50 = vmul.f32 -1.442695, %v6335_v19 }
 0x1d5   :  { %v6328_v18 = vpop.eup %4718  ;;  %4744 = vrcp.f32 %v1114_v33  ;;  %v1115_v0 = vadd.f32 1.0, %v4717_v6  ;;  %7827 = vst [vmem:[#allocation53_spill] sm:$0xff] %v6348_v32  ;;  %v6362_v47 = vadd.f32 %v6169_v61, %v5644_v24  ;;  %v4052_v10 = vmul.f32 -1.442695, %v6348_v32 }
 0x1d6   :  { %v4721_v34 = vpop.eup %4720  ;;  %4746 = vpow2.f32 %v4046_v15  ;;  %v1564_v23 = vpack.c.bf16 %v1466_v42, %v1464_v17  ;;  %v4049_v15 = vmul.f32 -1.442695, %v6326_v22  ;;  %v6353_v17 = vadd.f32 %v6156_v52, %v5648_v25 }
 0x1d7   :  { %v4723_v53 = vpop.eup %4722  ;;  %4748 = vrcp.f32 %v1115_v0  ;;  %v1116_v12 = vadd.f32 1.0, %v4721_v34  ;;  %v4051_v29 = vmul.f32 -1.442695, %v6339_v30  ;;  %v6356_v0 = vpop.f32.mrf.mxu1  ;;  %v6376_v61 = vadd.f32 %v6192_v31, %v5644_v24 }
 0x1d8   :  { %v4725_v33 = vpop.eup %4724  ;;  %v1117_v14 = vadd.f32 1.0, %v4723_v53  ;;  %4750 = vpow2.f32 %v4047_v62  ;;  %1975 = vmatprep.mubr.bf16.mxu1 %v1564_v23  ;;  %7828 = vst [vmem:[#allocation54_spill] sm:$0xff] %v6353_v17  ;;  %v6366_v23 = vadd.f32 %v6181_v59, %v5648_v25  ;;  %v6387_v31 = vadd.f32 %v6213_v43, %v5648_v25 }
 0x1d9   :  { %v6344_v46 = vpop.eup %4726  ;;  %4752 = vrcp.f32 %v1116_v12  ;;  %1976 = vmatmul.mubr.bf16.gmra.mxu1 %v1563_v57  ;;  %v4053_v57 = vmul.f32 -1.442695, %v6353_v17  ;;  %v6378_v59 = vpop.f32.mrf.mxu1 }
 0x1da   :  { %v4729_v6 = vpop.eup %4728  ;;  %4754 = vrcp.f32 %v1117_v14  ;;  %v7829_v14 = vld [vmem:[#allocation14_spill] sm:$0xff] }
 0x1db   :  { %v4731_v62 = vpop.eup %4730  ;;  %v1118_v42 = vadd.f32 1.0, %v4729_v6  ;;  %4756 = vpow2.f32 %v4048_v45  ;;  %7831 = vst [vmem:[#allocation14_spill] sm:$0xff] %v6387_v31 }
 0x1dc   :  { %v6358_v34 = vpop.eup %4732  ;;  %4758 = vpow2.f32 %v4049_v15  ;;  %v1472_v15 = vmul.f32 %v5949_v41, %v7829_v14  ;;  %v1468_v14 = vmul.f32 %v4731_v62, %v6206_v1 }
 0x1dd   :  { %v4735_v52 = vpop.eup %4734  ;;  %4760 = vrcp.f32 %v1118_v42  ;;  %v7830_v42 = vld [vmem:[#allocation16_spill] sm:$0xff] }
 0x1de   :  { %v4737_v45 = vpop.eup %4736  ;;  %v1119_v53 = vadd.f32 1.0, %v4735_v52  ;;  %4762 = vpow2.f32 %v4050_v50  ;;  %v1474_v32 = vmul.f32 %v5991_v8, %v7830_v42  ;;  %v4054_v50 = vmul.f32 -1.442695, %v6362_v47 }
 0x1df   :  { %v6370_v12 = vpop.eup %4738  ;;  %4764 = vpow2.f32 %v4051_v29  ;;  %v4055_v52 = vmul.f32 -1.442695, %v6366_v23  ;;  %v1469_v19 = vmul.f32 %v4737_v45, %v6219_v56  ;;  %v1467_v56 = vmul.f32 %v4725_v33, %v6190_v7  ;;  %v6399_v45 = vpop.f32.mrf.mxu1 }
 0x1e0   :  { %v4741_v6 = vpop.eup %4740  ;;  %4766 = vrcp.f32 %v1119_v53  ;;  %v6395_v53 = vadd.f32 %v6228_v39, %v5644_v24  ;;  %v6406_v39 = vadd.f32 %v6248_v21, %v5648_v25  ;;  %v6419_v21 = vadd.f32 %v6268_v60, %v5644_v24 }
 0x1e1   :  { %v4743_v17 = vpop.eup %4742  ;;  %v1120_v41 = vadd.f32 1.0, %v4741_v6  ;;  %4768 = vpow2.f32 %v4052_v10  ;;  %v4056_v10 = vmul.f32 -1.442695, %v6376_v61 }
 0x1e2   :  { %v6389_v29 = vpop.eup %4744  ;;  %v1470_v8 = vmul.f32 %v4743_v17, %v6233_v49  ;;  %4770 = vpow2.f32 %v4053_v57  ;;  %7832 = vst [vmem:[#allocation16_spill] sm:$0xff] %v6395_v53  ;;  %v1565_v49 = vpack.c.bf16 %v1469_v19, %v1467_v56  ;;  %v4057_v17 = vmul.f32 -1.442695, %v6387_v31  ;;  %7833 = vst [vmem:[#allocation55_spill] sm:$0xff] %v6406_v39  ;;  %v6413_v19 = vpop.f32.mrf.mxu1 }
 0x1e3   :  { %v4747_v42 = vpop.eup %4746  ;;  %4772 = vrcp.f32 %v1120_v41  ;;  %v4058_v57 = vmul.f32 -1.442695, %v6395_v53  ;;  %v1568_v41 = vpack.c.bf16 %v1474_v32, %v1472_v15 }
 0x1e4   :  { %v6401_v43 = vpop.eup %4748  ;;  %v1121_v6 = vadd.f32 1.0, %v4747_v42  ;;  %4774 = vpow2.f32 %v4054_v50  ;;  %v1566_v1 = vpack.c.bf16 %v1470_v8, %v1468_v14  ;;  %v7835_v14 = vld [vmem:[#allocation21_spill] sm:$0xff] }
 0x1e5   :  { %v4751_v62 = vpop.eup %4750  ;;  %4776 = vpow2.f32 %v4055_v52  ;;  %v7834_v52 = vld [vmem:[#allocation13_spill] sm:$0xff] }
 0x1e6   :  { %v6408_v7 = vpop.eup %4752  ;;  %4778 = vrcp.f32 %v1121_v6  ;;  %v1122_v33 = vadd.f32 1.0, %v4751_v62  ;;  %1985 = vmatprep.mubr.bf16.mxu1 %v1566_v1  ;;  %v1471_v8 = vmul.f32 %v7835_v14, %v7834_v52  ;;  %7836 = vst [vmem:[#allocation13_spill] sm:$0xff] %v6419_v21  ;;  %v7837_v6 = vld [vmem:[#allocation15_spill] sm:$0xff]  ;;  %v7838_v62 = vld [vmem:[#allocation18_spill] sm:$0xff]  ;;  %v7839_v52 = vld [vmem:[#allocation20_spill] sm:$0xff]  ;;  %v6432_v14 = vadd.f32 %v6281_v55, %v5648_v25 }
 0x1e7   :  { %v6411_v42 = vpop.eup %4754  ;;  %4780 = vpow2.f32 %v4056_v10  ;;  %1986 = vmatmul.mubr.bf16.gmra.mxu1 %v1565_v49  ;;  %v1473_v32 = vmul.f32 %v5976_v27, %v7837_v6  ;;  %v4059_v10 = vmul.f32 -1.442695, %v6406_v39  ;;  %v1476_v49 = vmul.f32 %v6021_v58, %v7838_v62  ;;  %v6434_v27 = vpop.f32.mrf.mxu1 }
 0x1e8   :  { %v4757_v50 = vpop.eup %4756  ;;  %4782 = vrcp.f32 %v1122_v33  ;;  %1995 = vmatprep.mubr.bf16.mxu1 %v1568_v41  ;;  %v1478_v33 = vmul.f32 %v6037_v4, %v7839_v52  ;;  %7840 = vst [vmem:[#allocation21_spill] sm:$0xff] %v6432_v14  ;;  %v4060_v6 = vmul.f32 -1.442695, %v6419_v21  ;;  %v6441_v4 = vadd.f32 %v6295_v35, %v5644_v24 }
 0x1e9   :  { %v4759_v56 = vpop.eup %4758  ;;  %v1123_v15 = vadd.f32 1.0, %v4757_v50  ;;  %4784 = vpow2.f32 %v4057_v17  ;;  %v1567_v58 = vpack.c.bf16 %v1473_v32, %v1471_v8  ;;  %v4061_v52 = vmul.f32 -1.442695, %v6432_v14 }
 0x1ea   :  { %v6424_v1 = vpop.eup %4760  ;;  %v1124_v41 = vadd.f32 1.0, %v4759_v56  ;;  %4786 = vpow2.f32 %v4058_v57  ;;  %7841 = vst [vmem:[#allocation15_spill] sm:$0xff] %v6441_v4  ;;  %v1570_v55 = vpack.c.bf16 %v1478_v33, %v1476_v49  ;;  %v6450_v32 = vadd.f32 %v6308_v26, %v5648_v25  ;;  %v7844_v33 = vld [vmem:[#allocation19_spill] sm:$0xff] }
 0x1eb   :  { %v4763_v60 = vpop.eup %4762  ;;  %4788 = vrcp.f32 %v1123_v15 }
 0x1ec   :  { %v4765_v17 = vpop.eup %4764  ;;  %4790 = vrcp.f32 %v1124_v41  ;;  %v1125_v50 = vadd.f32 1.0, %v4763_v60  ;;  %v6444_v41 = vpop.f32.mrf.mxu1  ;;  %7842 = vst [vmem:[#allocation18_spill] sm:$0xff] %v6450_v32 }
 0x1ed   :  { %v6437_v39 = vpop.eup %4766  ;;  %v1126_v62 = vadd.f32 1.0, %v4765_v17  ;;  %4792 = vpow2.f32 %v4059_v10  ;;  %v7843_v10 = vld [vmem:[#allocation17_spill] sm:$0xff]  ;;  %v1477_v17 = vmul.f32 %v6029_v48, %v7844_v33 }
 0x1ee   :  { %v4769_v57 = vpop.eup %4768  ;;  %4794 = vrcp.f32 %v1125_v50  ;;  %v1475_v49 = vmul.f32 %v6003_v9, %v7843_v10  ;;  %v4062_v50 = vmul.f32 -1.442695, %v6441_v4  ;;  %v6465_v9 = vadd.f32 %v6320_v5, %v5644_v24  ;;  %v630_v48 = vpop.f32.mrf.mxu1 }
 0x1ef   :  { %v4771_v56 = vpop.eup %4770  ;;  %4796 = vrcp.f32 %v1126_v62  ;;  %v1127_v15 = vadd.f32 1.0, %v4769_v57  ;;  %1996 = vmatmul.mubr.bf16.gmra.mxu1 %v1567_v58  ;;  %v7845_v62 = vld [vmem:[#allocation35_spill] sm:$0xff]  ;;  %v4063_v10 = vmul.f32 -1.442695, %v6450_v32 }
 0x1f0   :  { %v6446_v60 = vpop.eup %4772  ;;  %v1128_v8 = vadd.f32 1.0, %v4771_v56  ;;  %4798 = vpow2.f32 %v4060_v6  ;;  %2005 = vmatprep.mubr.bf16.mxu1 %v1570_v55  ;;  %v1480_v57 = vmul.f32 %v7845_v62, %v5966_v37  ;;  %v7846_v6 = vld [vmem:[#allocation26_spill] sm:$0xff]  ;;  %v7847_v56 = vld [vmem:[#allocation39_spill] sm:$0xff]  ;;  %7848 = vst [vmem:[#allocation20_spill] sm:$0xff] %v6465_v9  ;;  %v6470_v37 = vadd.f32 %v6341_v2, %v5648_v25 }
 0x1f1   :  { %v4775_v35 = vpop.eup %4774  ;;  %4800 = vrcp.f32 %v1127_v15  ;;  %v1482_v14 = vmul.f32 %v7847_v56, %v7846_v6  ;;  %v4064_v56 = vmul.f32 -1.442695, %v6465_v9  ;;  %v6481_v2 = vadd.f32 %v6378_v59, %v5648_v25  ;;  %v7859_v9 = vld [vmem:[#allocation30_spill] sm:$0xff] }
 0x1f2   :  { %v4777_v58 = vpop.eup %4776  ;;  %4802 = vrcp.f32 %v1128_v8  ;;  %v1129_v26 = vadd.f32 1.0, %v4775_v35  ;;  %7849 = vst [vmem:[#allocation17_spill] sm:$0xff] %v6470_v37  ;;  %v6474_v8 = vadd.f32 %v6356_v0, %v5644_v24  ;;  %v632_v0 = vpop.f32.mrf.mxu1 }
 0x1f3   :  { %v6461_v55 = vpop.eup %4778  ;;  %v1130_v21 = vadd.f32 1.0, %v4777_v58  ;;  %4804 = vpow2.f32 %v4061_v52  ;;  %v1569_v52 = vpack.c.bf16 %v1477_v17, %v1475_v49  ;;  %v1572_v58 = vpack.c.bf16 %v1482_v14, %v1480_v57  ;;  %7851 = vst [vmem:[#allocation35_spill] sm:$0xff] %v6481_v2  ;;  %v7852_v17 = vld [vmem:[#allocation24_spill] sm:$0xff] }
 0x1f4   :  { %v4781_v15 = vpop.eup %4780  ;;  %4806 = vrcp.f32 %v1129_v26  ;;  %7850 = vst [vmem:[#allocation19_spill] sm:$0xff] %v6474_v8  ;;  %v4066_v49 = vmul.f32 -1.442695, %v6474_v8  ;;  %v6503_v8 = vadd.f32 %v6413_v19, %v5648_v25 }
 0x1f5   :  { %v6476_v35 = vpop.eup %4782  ;;  %4808 = vrcp.f32 %v1130_v21  ;;  %v1131_v33 = vadd.f32 1.0, %v4781_v15  ;;  %v4065_v21 = vmul.f32 -1.442695, %v6470_v37  ;;  %v7854_v15 = vld [vmem:[#allocation25_spill] sm:$0xff] }
 0x1f6   :  { %v4785_v5 = vpop.eup %4784  ;;  %4810 = vpow2.f32 %v4062_v50  ;;  %v7853_v50 = vld [vmem:[#allocation33_spill] sm:$0xff]  ;;  %7860 = vst [vmem:[#allocation39_spill] sm:$0xff] %v6503_v8 }
 0x1f7   :  { %v4787_v62 = vpop.eup %4786  ;;  %4812 = vrcp.f32 %v1131_v33  ;;  %v1132_v6 = vadd.f32 1.0, %v4785_v5  ;;  %2006 = vmatmul.mubr.bf16.gmra.mxu1 %v1569_v52  ;;  %v1479_v57 = vmul.f32 %v7853_v50, %v7852_v17  ;;  %v7855_v33 = vld [vmem:[#allocation37_spill] sm:$0xff]  ;;  %v6495_v52 = vadd.f32 %v6399_v45, %v5644_v24  ;;  %v634_v45 = vpop.f32.mrf.mxu1 }
 0x1f8   :  { %v6483_v26 = vpop.eup %4788  ;;  %v1133_v4 = vadd.f32 1.0, %v4787_v62  ;;  %4814 = vpow2.f32 %v4063_v10  ;;  %2015 = vmatprep.mubr.bf16.mxu1 %v1572_v58  ;;  %v1481_v59 = vmul.f32 %v7855_v33, %v7854_v15  ;;  %v7857_v10 = vld [vmem:[#allocation28_spill] sm:$0xff]  ;;  %v7858_v62 = vld [vmem:[#allocation42_spill] sm:$0xff]  ;;  %v1486_v58 = vmul.f32 %v6200_v44, %v7859_v9 }
 0x1f9   :  { %v6487_v14 = vpop.eup %4790  ;;  %4816 = vrcp.f32 %v1132_v6  ;;  %7856 = vst [vmem:[#allocation26_spill] sm:$0xff] %v6495_v52  ;;  %v1484_v37 = vmul.f32 %v7858_v62, %v7857_v10  ;;  %v4067_v6 = vmul.f32 -1.442695, %v6481_v2  ;;  %v6512_v33 = vadd.f32 %v6434_v27, %v5644_v24 }
 0x1fa   :  { %v4793_v5 = vpop.eup %4792  ;;  %4818 = vrcp.f32 %v1133_v4  ;;  %v6516_v44 = vadd.f32 %v6444_v41, %v5648_v25  ;;  %v1571_v4 = vpack.c.bf16 %v1481_v59, %v1479_v57  ;;  %v4068_v9 = vmul.f32 -1.442695, %v6495_v52  ;;  %v636_v41 = vpop.f32.mrf.mxu1 }
 0x1fb   :  { %v6505_v17 = vpop.eup %4794  ;;  %v1134_v50 = vadd.f32 1.0, %v4793_v5  ;;  %4820 = vpow2.f32 %v4064_v56  ;;  %7861 = vst [vmem:[#allocation24_spill] sm:$0xff] %v6512_v33  ;;  %v4069_v10 = vmul.f32 -1.442695, %v6503_v8  ;;  %v6525_v27 = vadd.f32 %v630_v48, %v5644_v24  ;;  %v7870_v8 = vld [vmem:[#allocation36_spill] sm:$0xff] }
 0x1fc   :  { %v6508_v15 = vpop.eup %4796  ;;  %4822 = vpow2.f32 %v4065_v21  ;;  %7862 = vst [vmem:[#allocation33_spill] sm:$0xff] %v6516_v44  ;;  %v1574_v21 = vpack.c.bf16 %v1486_v58, %v1484_v37  ;;  %v4070_v57 = vmul.f32 -1.442695, %v6512_v33  ;;  %v4071_v59 = vmul.f32 -1.442695, %v6516_v44  ;;  %v7865_v37 = vld [vmem:[#allocation27_spill] sm:$0xff] }
 0x1fd   :  { %v4799_v19 = vpop.eup %4798  ;;  %4824 = vrcp.f32 %v1134_v50  ;;  %7863 = vst [vmem:[#allocation25_spill] sm:$0xff] %v6525_v27  ;;  %v7866_v58 = vld [vmem:[#allocation41_spill] sm:$0xff]  ;;  %v1490_v32 = vmul.f32 %v6258_v3, %v7870_v8  ;;  %v6554_v31 = vadd.f32 %v636_v41, %v5648_v25 }
 0x1fe   :  { %v6519_v56 = vpop.eup %4800  ;;  %v1135_v5 = vadd.f32 1.0, %v4799_v19  ;;  %4826 = vpow2.f32 %v4066_v49  ;;  %v6530_v49 = vadd.f32 %v632_v0, %v5648_v25  ;;  %v7867_v19 = vld [vmem:[#allocation29_spill] sm:$0xff] }
 0x1ff   :  { %v6522_v62 = vpop.eup %4802  ;;  %4828 = vpow2.f32 %v4067_v6  ;;  %2016 = vmatmul.mubr.bf16.gmra.mxu1 %v1571_v4  ;;  %v1483_v6 = vmul.f32 %v7866_v58, %v7865_v37  ;;  %v7868_v4 = vld [vmem:[#allocation44_spill] sm:$0xff]  ;;  %v6548_v37 = vadd.f32 %v634_v45, %v5644_v24  ;;  %7872 = vst [vmem:[#allocation42_spill] sm:$0xff] %v6554_v31 }
 0x200   :  { %v4805_v2 = vpop.eup %4804  ;;  %4830 = vrcp.f32 %v1135_v5  ;;  %2025 = vmatprep.mubr.bf16.mxu1 %v1574_v21  ;;  %7864 = vst [vmem:[#allocation37_spill] sm:$0xff] %v6530_v49  ;;  %v1485_v48 = vmul.f32 %v7868_v4, %v7867_v19  ;;  %v1631_v5 = vld [vmem:[%s7719_s4] sm:$0x3]  ;;  %v4073_v24 = vmul.f32 -1.442695, %v6530_v49 }
 0x201   :  { %v6532_v50 = vpop.eup %4806  ;;  %v1136_v52 = vadd.f32 1.0, %v4805_v2  ;;  %4832 = vpow2.f32 %v4068_v9  ;;  %v1837_v33 = vpop.f32.mrf.mxu1  ;;  %v7869_v21 = vld [vmem:[#allocation32_spill] sm:$0xff]  ;;  %7871 = vst [vmem:[#allocation28_spill] sm:$0xff] %v6548_v37  ;;  %v4072_v2 = vmul.f32 -1.442695, %v6525_v27 }
 0x202   :  { %v6541_v44 = vpop.eup %4808  ;;  %v1488_v0 = vmul.f32 %v6230_v51, %v7869_v21  ;;  %4834 = vpow2.f32 %v4069_v10  ;;  %v7873_v51 = vld [vmem:[#allocation12_spill] sm:$0xff]  ;;  %v1573_v8 = vpack.c.bf16 %v1485_v48, %v1483_v6  ;;  %v4075_v48 = vmul.f32 -1.442695, %v6554_v31 }
 0x203   :  { %v4811_v58 = vpop.eup %4810  ;;  %4836 = vrcp.f32 %v1136_v52  ;;  %v1839_v9 = vpop.f32.mrf.mxu1  ;;  %v7874_v21 = vsub.s32 0, %v7873_v51  ;;  %v7875_v25 = vsub.s32 1, %v7873_v51  ;;  %v7880_v51 = vld [vmem:[#allocation40_spill] sm:$0xff] }
 0x204   :  { %v6551_v19 = vpop.eup %4812  ;;  %v1137_v4 = vadd.f32 1.0, %v4811_v58  ;;  %4838 = vpow2.f32 %v4070_v57  ;;  %v4074_v58 = vmul.f32 -1.442695, %v6548_v37  ;;  %v1576_v57 = vpack.c.bf16 %v1490_v32, %v1488_v0  ;;  %v7877_v0 = vld [vmem:[#allocation34_spill] sm:$0xff] }
 0x205   :  { %v6558_v53 = vrot.slane %v1631_v5, %v7874_v21  ;;  %v4815_v3 = vpop.eup %4814  ;;  %4840 = vpow2.f32 %v4071_v59  ;;  %v1841_v52 = vpop.f32.mrf.mxu1  ;;  %v6568_v41 = vrot.slane %v1631_v5, %v7875_v25  ;;  %v7881_v25 = vld [vmem:[#allocation22_spill] sm:$0xff] }
 0x206   :  { %v6561_v45 = vpop.eup %4816  ;;  %4842 = vrcp.f32 %v1137_v4  ;;  %v1138_v10 = vadd.f32 1.0, %v4815_v3  ;;  %v7876_v3 = vld [vmem:[#allocation31_spill] sm:$0xff] }
 0x207   :  { %v6564_v27 = vpop.eup %4818  ;;  %4844 = vpow2.f32 %v4072_v2  ;;  %2026 = vmatmul.mubr.bf16.gmra.mxu1 %v1573_v8  ;;  %v1843_v6 = vpop.f32.mrf.mxu1  ;;  %v6572_v4 = vadd.f32 %v1837_v33, %v6558_v53  ;;  %v1487_v32 = vmul.f32 %v6216_v16, %v7876_v3  ;;  %v7878_v2 = vld [vmem:[#allocation48_spill] sm:$0xff]  ;;  %v6585_v16 = vadd.f32 %v1839_v9, %v6568_v41 }
 0x208   :  { %v4821_v59 = vpop.eup %4820  ;;  %4846 = vrcp.f32 %v1138_v10  ;;  %2035 = vmatprep.mubr.bf16.mxu1 %v1576_v57  ;;  %v1489_v8 = vmul.f32 %v7878_v2, %v7877_v0  ;;  %v1492_v10 = vmul.f32 %v6289_v11, %v7880_v51  ;;  %v1494_v57 = vmul.f32 %v6328_v18, %v7881_v25 }
 0x209   :  { %v4823_v21 = vpop.eup %4822  ;;  %v1139_v37 = vadd.f32 1.0, %v4821_v59  ;;  %4848 = vpow2.f32 %v4073_v24  ;;  %v4108_v24 = vmul.f32 -1.442695, %v6572_v4 }
 0x20a   :  { %v6578_v5 = vpop.eup %4824  ;;  %v1140_v31 = vadd.f32 1.0, %v4823_v21  ;;  %4850 = vpow2.f32 %v4074_v58  ;;  %v1847_v33 = vpop.f32.mrf.mxu1  ;;  %v1575_v11 = vpack.c.bf16 %v1489_v8, %v1487_v32  ;;  %v1578_v58 = vpack.c.bf16 %v1494_v57, %v1492_v10  ;;  %v7884_v10 = vld [vmem:[#allocation38_spill] sm:$0xff]  ;;  %v7885_v57 = vld [vmem:[#allocation43_spill] sm:$0xff] }
 0x20b   :  { %7879 = vst [vmem:[#allocation30_spill] sm:$0xff] %v6578_v5  ;;  %v4827_v49 = vpop.eup %4826  ;;  %4852 = vrcp.f32 %v1139_v37  ;;  %v6591_v21 = vadd.f32 %v1841_v52, %v6558_v53  ;;  %v1491_v52 = vmul.f32 %v6278_v54, %v7884_v10  ;;  %v6611_v54 = vadd.f32 %v1847_v33, %v6558_v53 }
 0x20c   :  { %v4829_v3 = vpop.eup %4828  ;;  %4854 = vrcp.f32 %v1140_v31  ;;  %v1141_v59 = vadd.f32 1.0, %v4827_v49  ;;  %v1849_v0 = vpop.f32.mrf.mxu1  ;;  %v4109_v31 = vmul.f32 -1.442695, %v6585_v16 }
 0x20d   :  { %v6588_v2 = vpop.eup %4830  ;;  %v1142_v51 = vadd.f32 1.0, %v4829_v3  ;;  %4856 = vpow2.f32 %v4075_v48  ;;  %v6597_v48 = vadd.f32 %v1843_v6, %v6568_v41  ;;  %v1493_v3 = vmul.f32 %v6310_v28, %v7885_v57 }
 0x20e   :  { %7882 = vst [vmem:[#allocation27_spill] sm:$0xff] %v6588_v2  ;;  %v4833_v18 = vpop.eup %4832  ;;  %4858 = vrcp.f32 %v1141_v59  ;;  %v1851_v37 = vpop.f32.mrf.mxu1  ;;  %v7886_v59 = vld [vmem:[#allocation45_spill] sm:$0xff]  ;;  %v4110_v6 = vmul.f32 -1.442695, %v6591_v21 }
 0x20f   :  { %v4835_v9 = vpop.eup %4834  ;;  %4860 = vrcp.f32 %v1142_v51  ;;  %v1143_v25 = vadd.f32 1.0, %v4833_v18  ;;  %2036 = vmatmul.mubr.bf16.gmra.mxu1 %v1575_v11  ;;  %v1496_v11 = vmul.f32 %v6358_v34, %v7886_v59  ;;  %v7887_v18 = vld [vmem:[#allocation47_spill] sm:$0xff]  ;;  %v4111_v34 = vmul.f32 -1.442695, %v6597_v48 }
 0x210   :  { %v6594_v49 = vpop.eup %4836  ;;  %v1144_v5 = vadd.f32 1.0, %v4835_v9  ;;  %2045 = vmatprep.mubr.bf16.mxu1 %v1578_v58  ;;  %4862 = vpow2.f32 %v4108_v24  ;;  %v1853_v32 = vpop.f32.mrf.mxu1  ;;  %v1498_v58 = vmul.f32 %v6389_v29, %v7887_v18 }
 0x211   :  { %7883 = vst [vmem:[#allocation41_spill] sm:$0xff] %v6594_v49  ;;  %v4839_v8 = vpop.eup %4838  ;;  %4864 = vrcp.f32 %v1143_v25  ;;  %v6615_v25 = vadd.f32 %v1849_v0, %v6568_v41  ;;  %v4112_v0 = vmul.f32 -1.442695, %v6611_v54 }
 0x212   :  { %v4841_v51 = vpop.eup %4840  ;;  %4866 = vrcp.f32 %v1144_v5  ;;  %v1145_v24 = vadd.f32 1.0, %v4839_v8  ;;  %v1857_v9 = vpop.f32.mrf.mxu1  ;;  %v1577_v8 = vpack.c.bf16 %v1493_v3, %v1491_v52  ;;  %v1580_v59 = vpack.c.bf16 %v1498_v58, %v1496_v11 }
 0x213   :  { %v6608_v49 = vpop.eup %4842  ;;  %v1146_v2 = vadd.f32 1.0, %v4841_v51  ;;  %4868 = vpow2.f32 %v4109_v31  ;;  %v6620_v31 = vadd.f32 %v1851_v37, %v6558_v53  ;;  %v4113_v37 = vmul.f32 -1.442695, %v6615_v25 }
 0x214   :  { %7888 = vst [vmem:[#allocation29_spill] sm:$0xff] %v6608_v49  ;;  %v4845_v28 = vpop.eup %4844  ;;  %4870 = vrcp.f32 %v1145_v24  ;;  %v1859_v29 = vpop.f32.mrf.mxu1  ;;  %v6624_v24 = vadd.f32 %v1853_v32, %v6568_v41  ;;  %v1500_v32 = vmul.f32 %v6408_v7, %v6255_v63 }
 0x215   :  { %v6617_v5 = vpop.eup %4846  ;;  %4872 = vrcp.f32 %v1146_v2  ;;  %v1147_v10 = vadd.f32 1.0, %v4845_v28  ;;  %v7889_v2 = vld [vmem:[#allocation23_spill] sm:$0xff] }
 0x216   :  { %v4849_v57 = vpop.eup %4848  ;;  %4874 = vpow2.f32 %v4110_v6  ;;  %v1861_v33 = vpop.f32.mrf.mxu1  ;;  %v1495_v52 = vmul.f32 %v6344_v46, %v7889_v2  ;;  %v7890_v6 = vld [vmem:[#allocation46_spill] sm:$0xff]  ;;  %v1502_v46 = vmul.f32 %v6424_v1, %v6275_v36  ;;  %v4115_v63 = vmul.f32 -1.442695, %v6624_v24 }
 0x217   :  { %v4851_v51 = vpop.eup %4850  ;;  %4876 = vrcp.f32 %v1147_v10  ;;  %v1148_v18 = vadd.f32 1.0, %v4849_v57  ;;  %2046 = vmatmul.mubr.bf16.gmra.mxu1 %v1577_v8  ;;  %v1497_v28 = vmul.f32 %v6370_v12, %v7890_v6  ;;  %v6638_v8 = vadd.f32 %v1857_v9, %v6558_v53 }
 0x218   :  { %v6626_v49 = vpop.eup %4852  ;;  %v1149_v3 = vadd.f32 1.0, %v4851_v51  ;;  %2055 = vmatprep.mubr.bf16.mxu1 %v1580_v59  ;;  %4878 = vpow2.f32 %v4111_v34  ;;  %v1863_v11 = vpop.f32.mrf.mxu1  ;;  %v4114_v34 = vmul.f32 -1.442695, %v6620_v31  ;;  %v6644_v57 = vadd.f32 %v1859_v29, %v6568_v41 }
 0x219   :  { %v6631_v58 = vpop.eup %4854  ;;  %4880 = vrcp.f32 %v1148_v18  ;;  %v6652_v9 = vadd.f32 %v1861_v33, %v6558_v53  ;;  %v1579_v18 = vpack.c.bf16 %v1497_v28, %v1495_v52  ;;  %v4116_v29 = vmul.f32 -1.442695, %v6638_v8  ;;  %v7893_v28 = vld [vmem:[#allocation49_spill] sm:$0xff] }
 0x21a   :  { %v4857_v10 = vpop.eup %4856  ;;  %4882 = vrcp.f32 %v1149_v3  ;;  %v1867_v59 = vpop.f32.mrf.mxu1  ;;  %v6656_v2 = vadd.f32 %v1863_v11, %v6568_v41  ;;  %v1499_v11 = vmul.f32 %v6401_v43, %v6246_v38  ;;  %v7896_v38 = vld [vmem:[#allocation51_spill] sm:$0xff] }
 0x21b   :  { %v6646_v51 = vpop.eup %4858  ;;  %v1150_v12 = vadd.f32 1.0, %v4857_v10  ;;  %4884 = vpow2.f32 %v4112_v0  ;;  %v1582_v0 = vpack.c.bf16 %v1502_v46, %v1500_v32  ;;  %v4117_v10 = vmul.f32 -1.442695, %v6644_v57 }
 0x21c   :  { %7891 = vst [vmem:[#allocation44_spill] sm:$0xff] %v6646_v51  ;;  %v6649_v7 = vpop.eup %4860  ;;  %4886 = vpow2.f32 %v4113_v37  ;;  %v1869_v36 = vpop.f32.mrf.mxu1  ;;  %v6664_v33 = vadd.f32 %v1867_v59, %v6558_v53  ;;  %v4118_v32 = vmul.f32 -1.442695, %v6652_v9  ;;  %v1504_v43 = vmul.f32 %v6446_v60, %v7896_v38 }
 0x21d   :  { %v4863_v1 = vpop.eup %4862  ;;  %4888 = vrcp.f32 %v1150_v12  ;;  %v1501_v12 = vmul.f32 %v6411_v42, %v7893_v28  ;;  %v6675_v59 = vadd.f32 %v1869_v36, %v6568_v41  ;;  %v1506_v42 = vmul.f32 %v6476_v35, %v6306_v13 }
 0x21e   :  { %v6658_v3 = vpop.eup %4864  ;;  %v2540_v6 = vadd.f32 1.0, %v4863_v1  ;;  %4890 = vpow2.f32 %v4114_v34  ;;  %v1871_v37 = vpop.f32.mrf.mxu1 }
 0x21f   :  { %7892 = vst [vmem:[#allocation32_spill] sm:$0xff] %v6658_v3  ;;  %v6661_v51 = vpop.eup %4866  ;;  %2056 = vmatmul.mubr.bf16.gmra.mxu1 %v1579_v18  ;;  %4892 = vpow2.f32 %v4115_v63  ;;  %v4119_v63 = vmul.f32 -1.442695, %v6656_v2  ;;  %v4121_v60 = vmul.f32 -1.442695, %v6675_v59 }
 0x220   :  { %v4869_v52 = vpop.eup %4868  ;;  %2065 = vmatprep.mubr.bf16.mxu1 %v1582_v0  ;;  %4894 = vrcp.f32 %v2540_v6  ;;  %v1873_v46 = vpop.f32.mrf.mxu1  ;;  %v6684_v0 = vadd.f32 %v1871_v37, %v6558_v53 }
 0x221   :  { %v6671_v34 = vpop.eup %4870  ;;  %v2541_v1 = vadd.f32 1.0, %v4869_v52  ;;  %4896 = vpow2.f32 %v4116_v29  ;;  %v4120_v29 = vmul.f32 -1.442695, %v6664_v33  ;;  %v6691_v13 = vadd.f32 %v1873_v46, %v6568_v41 }
 0x222   :  { %7894 = vst [vmem:[#allocation36_spill] sm:$0xff] %v6671_v34  ;;  %v6677_v18 = vpop.eup %4872  ;;  %4898 = vpow2.f32 %v4117_v10  ;;  %v1877_v6 = vpop.f32.mrf.mxu1  ;;  %v1584_v10 = vpack.c.bf16 %v1506_v42, %v1504_v43 }
 0x223   :  { %7895 = vst [vmem:[#allocation12_spill] sm:$0xff] %v6677_v18  ;;  %v4875_v52 = vpop.eup %4874  ;;  %4900 = vrcp.f32 %v2541_v1  ;;  %v1581_v18 = vpack.c.bf16 %v1501_v12, %v1499_v11  ;;  %v4122_v1 = vmul.f32 -1.442695, %v6684_v0  ;;  %v7898_v11 = vld [vmem:[#allocation50_spill] sm:$0xff]  ;;  %v6701_v46 = vadd.f32 %v1877_v6, %v6558_v53 }
 0x224   :  { %v6687_v28 = vpop.eup %4876  ;;  %v2542_v36 = vadd.f32 1.0, %v4875_v52  ;;  %4902 = vpow2.f32 %v4118_v32  ;;  %v1879_v34 = vpop.f32.mrf.mxu1  ;;  %v1503_v12 = vmul.f32 %v6437_v39, %v7898_v11  ;;  %v4123_v52 = vmul.f32 -1.442695, %v6691_v13 }
 0x225   :  { %7897 = vst [vmem:[#allocation31_spill] sm:$0xff] %v6687_v28  ;;  %v4879_v3 = vpop.eup %4878  ;;  %4904 = vpow2.f32 %v4119_v63  ;;  %v1510_v39 = vmul.f32 %v6508_v15, %v6339_v30 }
 0x226   :  { %v6693_v35 = vpop.eup %4880  ;;  %4906 = vrcp.f32 %v2542_v36  ;;  %v2543_v37 = vadd.f32 1.0, %v4879_v3  ;;  %v1881_v38 = vpop.f32.mrf.mxu1  ;;  %v1505_v3 = vmul.f32 %v6461_v55, %v6301_v20  ;;  %v6717_v20 = vadd.f32 %v1879_v34, %v6568_v41 }
 0x227   :  { %v6696_v28 = vpop.eup %4882  ;;  %2066 = vmatmul.mubr.bf16.gmra.mxu1 %v1581_v18  ;;  %4908 = vpow2.f32 %v4120_v29  ;;  %v1508_v29 = vmul.f32 %v6487_v14, %v6326_v22  ;;  %v4124_v14 = vmul.f32 -1.442695, %v6701_v46  ;;  %v6725_v34 = vadd.f32 %v1881_v38, %v6558_v53 }
 0x228   :  { %v4885_v32 = vpop.eup %4884  ;;  %2075 = vmatprep.mubr.bf16.mxu1 %v1584_v10  ;;  %4910 = vrcp.f32 %v2543_v37  ;;  %v1883_v63 = vpop.f32.mrf.mxu1  ;;  %v6714_v10 = vmul.f32 %v6483_v26, %v6316_v40  ;;  %v7900_v40 = vld [vmem:[#allocation54_spill] sm:$0xff] }
 0x229   :  { %v4887_v43 = vpop.eup %4886  ;;  %v2544_v42 = vadd.f32 1.0, %v4885_v32  ;;  %4912 = vpow2.f32 %v4121_v60  ;;  %v7899_v60 = vld [vmem:[#allocation52_spill] sm:$0xff]  ;;  %v1512_v26 = vmul.f32 %v6522_v62, %v7900_v40 }
 0x22a   :  { %v6706_v18 = vpop.eup %4888  ;;  %v2545_v36 = vadd.f32 1.0, %v4887_v43  ;;  %4914 = vpow2.f32 %v4122_v1  ;;  %v1509_v37 = vmul.f32 %v6505_v17, %v7899_v60  ;;  %v1583_v1 = vpack.c.bf16 %v1505_v3, %v1503_v12 }
 0x22b   :  { %v4891_v6 = vpop.eup %4890  ;;  %4916 = vrcp.f32 %v2544_v42  ;;  %v1586_v43 = vpack.c.bf16 %v1510_v39, %v1508_v29  ;;  %v4125_v12 = vmul.f32 -1.442695, %v6717_v20  ;;  %v6732_v29 = vadd.f32 %v1883_v63, %v6568_v41 }
 0x22c   :  { %v4893_v55 = vpop.eup %4892  ;;  %4918 = vrcp.f32 %v2545_v36  ;;  %v2546_v22 = vadd.f32 1.0, %v4891_v6  ;;  %v1887_v30 = vpop.f32.mrf.mxu1  ;;  %v1514_v36 = vmul.f32 %v6541_v44, %v6366_v23  ;;  %v6740_v23 = vmul.f32 %v6532_v50, %v6362_v47 }
 0x22d   :  { %v4895_v15 = vpop.eup %4894  ;;  %v2547_v32 = vadd.f32 1.0, %v4893_v55  ;;  %4920 = vpow2.f32 %v4123_v52  ;;  %v1585_v52 = vpack.c.bf16 %v1509_v37, %v6714_v10  ;;  %v7901_v55 = vld [vmem:[#allocation53_spill] sm:$0xff]  ;;  %v6743_v44 = vadd.f32 %v1887_v30, %v6558_v53  ;;  %v7902_v30 = vld [vmem:[#allocation16_spill] sm:$0xff] }
 0x22e   :  { %v4897_v11 = vpop.eup %4896  ;;  %4922 = vrcp.f32 %v2546_v22  ;;  %v1889_v42 = vpop.f32.mrf.mxu1  ;;  %v6736_v60 = vmul.f32 %v6519_v56, %v7901_v55  ;;  %v6747_v37 = vmul.f32 %v6551_v19, %v6376_v61  ;;  %v4126_v22 = vmul.f32 -1.442695, %v6725_v34 }
 0x22f   :  { %v4899_v17 = vpop.eup %4898  ;;  %2076 = vmatmul.mubr.bf16.gmra.mxu1 %v1583_v1  ;;  %4924 = vrcp.f32 %v2547_v32  ;;  %v2548_v6 = vadd.f32 1.0, %v4897_v11  ;;  %v1588_v1 = vpack.c.bf16 %v1514_v36, %v1512_v26  ;;  %v6751_v47 = vadd.f32 %v1889_v42, %v6568_v41 }
 0x230   :  { %v4901_v3 = vpop.eup %4900  ;;  %2085 = vmatprep.mubr.bf16.mxu1 %v1586_v43  ;;  %v2549_v62 = vadd.f32 1.0, %v4899_v17  ;;  %4926 = vpow2.f32 %v4124_v14  ;;  %v1891_v38 = vpop.f32.mrf.mxu1  ;;  %v6755_v11 = vmul.f32 %v6564_v27, %v7902_v30  ;;  %v2924_v61 = vmul.f32 %v4895_v15, %v6572_v4 }
 0x231   :  { %v4903_v39 = vpop.eup %4902  ;;  %4928 = vrcp.f32 %v2548_v6  ;;  %v4127_v19 = vmul.f32 -1.442695, %v6732_v29  ;;  %v4128_v36 = vmul.f32 -1.442695, %v6743_v44  ;;  %v2925_v6 = vmul.f32 %v4901_v3, %v6585_v16 }
 0x232   :  { %v4905_v10 = vpop.eup %4904  ;;  %4930 = vrcp.f32 %v2549_v62  ;;  %v2550_v63 = vadd.f32 1.0, %v4903_v39  ;;  %v1893_v14 = vpop.f32.mrf.mxu1  ;;  %v6764_v27 = vadd.f32 %v1891_v38, %v6558_v53 }
 0x233   :  { %v4907_v56 = vpop.eup %4906  ;;  %v2551_v32 = vadd.f32 1.0, %v4905_v10  ;;  %4932 = vpow2.f32 %v4125_v12  ;;  %v6768_v39 = vadd.f32 %v1893_v14, %v6568_v41 }
 0x234   :  { %v4909_v50 = vpop.eup %4908  ;;  %4934 = vrcp.f32 %v2550_v63  ;;  %v1897_v40 = vpop.f32.mrf.mxu1  ;;  %v2926_v17 = vmul.f32 %v4907_v56, %v6591_v21  ;;  %v4129_v21 = vmul.f32 -1.442695, %v6751_v47  ;;  %v7903_v63 = vld [vmem:[#allocation14_spill] sm:$0xff]  ;;  %v4130_v30 = vmul.f32 -1.442695, %v6764_v27 }
 0x235   :  { %v4911_v43 = vpop.eup %4910  ;;  %4936 = vrcp.f32 %v2551_v32  ;;  %v2552_v26 = vadd.f32 1.0, %v4909_v50  ;;  %v7904_v32 = vld [vmem:[#allocation55_spill] sm:$0xff]  ;;  %v7905_v50 = vld [vmem:[#allocation30_spill] sm:$0xff] }
 0x236   :  { %v4913_v42 = vpop.eup %4912  ;;  %v2927_v12 = vmul.f32 %v4911_v43, %v6597_v48  ;;  %4938 = vpow2.f32 %v4126_v22  ;;  %v1899_v4 = vpop.f32.mrf.mxu1  ;;  %v6771_v48 = vadd.f32 %v1897_v40, %v6558_v53  ;;  %v1516_v22 = vmul.f32 %v6561_v45, %v7903_v63 }
 0x237   :  { %v4915_v15 = vpop.eup %4914  ;;  %2086 = vmatmul.mubr.bf16.gmra.mxu1 %v1585_v52  ;;  %4940 = vrcp.f32 %v2552_v26  ;;  %v2553_v62 = vadd.f32 1.0, %v4913_v42  ;;  %v1587_v52 = vpack.c.bf16 %v6740_v23, %v6736_v60  ;;  %v3052_v56 = vpack.c.bf16 %v2926_v17, %v2924_v61 }
 0x238   :  { %v4917_v55 = vpop.eup %4916  ;;  %2095 = vmatprep.mubr.bf16.mxu1 %v1588_v1  ;;  %v2554_v10 = vadd.f32 1.0, %v4915_v15  ;;  %4942 = vpow2.f32 %v4127_v19  ;;  %v3053_v16 = vpack.c.bf16 %v2927_v12, %v2925_v6  ;;  %v1901_v3 = vpop.f32.mrf.mxu1  ;;  %v1518_v1 = vmul.f32 %v7905_v50, %v7904_v32 }
 0x239   :  { %v4919_v38 = vpop.eup %4918  ;;  %4944 = vrcp.f32 %v2553_v62  ;;  %v6781_v19 = vadd.f32 %v1899_v4, %v6568_v41  ;;  %v1589_v60 = vpack.c.bf16 %v6755_v11, %v6747_v37  ;;  %v4131_v45 = vmul.f32 -1.442695, %v6768_v39 }
 0x23a   :  { %v4921_v14 = vpop.eup %4920  ;;  %4946 = vrcp.f32 %v2554_v10  ;;  %3283 = vmatprep.mubr.bf16.mxu0 %v3053_v16  ;;  %v1903_v40 = vpop.f32.mrf.mxu1  ;;  %v4132_v17 = vmul.f32 -1.442695, %v6771_v48  ;;  %v6788_v26 = vadd.f32 %v1901_v3, %v6558_v53  ;;  %v2929_v4 = vmul.f32 %v4919_v38, %v6615_v25  ;;  %v7906_v38 = vld [vmem:[#allocation13_spill] sm:$0xff] }
 0x23b   :  { %v4923_v43 = vpop.eup %4922  ;;  %v2555_v23 = vadd.f32 1.0, %v4921_v14  ;;  %4948 = vpow2.f32 %v4128_v36  ;;  %3284 = vmatmul.mubr.bf16.vlgmr.msra.gmra.mxu0 %v3052_v56  ;;  %v6791_v42 = vadd.f32 %v1903_v40, %v6568_v41  ;;  %v1590_v10 = vpack.c.bf16 %v1518_v1, %v1516_v22 }
 0x23c   :  { %v4925_v61 = vpop.eup %4924  ;;  %4950 = vpow2.f32 %v4129_v21  ;;  %v1907_v6 = vpop.f32.mrf.mxu1  ;;  %v2930_v15 = vmul.f32 %v4923_v43, %v6620_v31  ;;  %v4133_v16 = vmul.f32 -1.442695, %v6781_v19  ;;  %v2928_v56 = vmul.f32 %v4917_v55, %v6611_v54  ;;  %v7908_v43 = vld [vmem:[#allocation21_spill] sm:$0xff] }
 0x23d   :  { %v4927_v12 = vpop.eup %4926  ;;  %v2931_v36 = vmul.f32 %v4925_v61, %v6624_v24  ;;  %4952 = vrcp.f32 %v2555_v23  ;;  %v6799_v25 = vadd.f32 %v1907_v6, %v6558_v53  ;;  %v7907_v24 = vld [vmem:[#allocation27_spill] sm:$0xff]  ;;  %v4134_v22 = vmul.f32 -1.442695, %v6788_v26  ;;  %v7909_v23 = vld [vmem:[#allocation41_spill] sm:$0xff]  ;;  %v7910_v61 = vld [vmem:[#allocation18_spill] sm:$0xff] }
 0x23e   :  { %v4929_v62 = vpop.eup %4928  ;;  %v2556_v21 = vadd.f32 1.0, %v4927_v12  ;;  %4954 = vpow2.f32 %v4130_v30  ;;  %v1909_v3 = vpop.f32.mrf.mxu1  ;;  %v6803_v32 = vmul.f32 %v7907_v24, %v7906_v38  ;;  %v4135_v50 = vmul.f32 -1.442695, %v6791_v42 }
 0x23f   :  { %v4931_v63 = vpop.eup %4930  ;;  %2096 = vmatmul.mubr.bf16.gmra.mxu1 %v1587_v52  ;;  %4956 = vpow2.f32 %v4131_v45  ;;  %v3055_v14 = vpack.c.bf16 %v2931_v36, %v2929_v4  ;;  %v3054_v55 = vpack.c.bf16 %v2930_v15, %v2928_v56  ;;  %v6808_v52 = vadd.f32 %v1909_v3, %v6568_v41  ;;  %v7911_v3 = vld [vmem:[#allocation15_spill] sm:$0xff]  ;;  %v7912_v56 = vld [vmem:[#allocation29_spill] sm:$0xff] }
 0x240   :  { %v4933_v31 = vpop.eup %4932  ;;  %2105 = vmatprep.mubr.bf16.mxu1 %v1590_v10  ;;  %4958 = vrcp.f32 %v2556_v21  ;;  %v1911_v1 = vpop.f32.mrf.mxu1  ;;  %v1520_v45 = vmul.f32 %v7909_v23, %v7908_v43  ;;  %v1522_v6 = vmul.f32 %v6617_v5, %v7910_v61  ;;  %v4136_v10 = vmul.f32 -1.442695, %v6799_v25 }
 0x241   :  { %v4935_v30 = vpop.eup %4934  ;;  %v2557_v54 = vadd.f32 1.0, %v4933_v31  ;;  %4960 = vpow2.f32 %v4132_v17  ;;  %3291 = vmatprep.mubr.bf16.mxu0 %v3055_v14  ;;  %v6815_v12 = vadd.f32 %v1911_v1, %v6558_v53  ;;  %v2933_v17 = vmul.f32 %v4931_v63, %v6644_v57 }
 0x242   :  { %v4937_v40 = vpop.eup %4936  ;;  %4962 = vpow2.f32 %v4133_v16  ;;  %v1913_v4 = vpop.f32.mrf.mxu1  ;;  %v1521_v14 = vmul.f32 %v7912_v56, %v7911_v3  ;;  %v2934_v5 = vmul.f32 %v4935_v30, %v6652_v9  ;;  %v4137_v24 = vmul.f32 -1.442695, %v6808_v52  ;;  %v7913_v30 = vld [vmem:[#allocation20_spill] sm:$0xff] }
 0x243   :  { %v4939_v36 = vpop.eup %4938  ;;  %v2935_v15 = vmul.f32 %v4937_v40, %v6656_v2  ;;  %4964 = vrcp.f32 %v2557_v54  ;;  %3292 = vmatmul.mubr.bf16.gmra.mxu0 %v3054_v55  ;;  %v6825_v2 = vadd.f32 %v1913_v4, %v6568_v41  ;;  %v1592_v1 = vpack.c.bf16 %v1522_v6, %v1520_v45  ;;  %v7914_v6 = vld [vmem:[#allocation17_spill] sm:$0xff]  ;;  %v7915_v4 = vld [vmem:[#allocation35_spill] sm:$0xff] }
 0x244   :  { %v4941_v21 = vpop.eup %4940  ;;  %v2558_v16 = vadd.f32 1.0, %v4939_v36  ;;  %4966 = vpow2.f32 %v4134_v22  ;;  %v1917_v31 = vpop.f32.mrf.mxu1  ;;  %v4138_v55 = vmul.f32 -1.442695, %v6815_v12  ;;  %v2932_v9 = vmul.f32 %v4929_v62, %v6638_v8 }
 0x245   :  { %v4943_v38 = vpop.eup %4942  ;;  %4968 = vpow2.f32 %v4135_v50  ;;  %v3057_v57 = vpack.c.bf16 %v2935_v15, %v2933_v17  ;;  %v1591_v50 = vpack.c.bf16 %v1521_v14, %v6803_v32  ;;  %v6835_v23 = vmul.f32 %v6626_v49, %v7913_v30  ;;  %v7916_v14 = vld [vmem:[#allocation19_spill] sm:$0xff]  ;;  %v7919_v30 = vld [vmem:[#allocation33_spill] sm:$0xff] }
 0x246   :  { %v4945_v63 = vpop.eup %4944  ;;  %4970 = vrcp.f32 %v2558_v16  ;;  %v2559_v54 = vadd.f32 1.0, %v4943_v38  ;;  %v1919_v40 = vpop.f32.mrf.mxu1  ;;  %v6838_v45 = vadd.f32 %v1917_v31, %v6558_v53  ;;  %v4139_v37 = vmul.f32 -1.442695, %v6825_v2 }
 0x247   :  { %v4947_v43 = vpop.eup %4946  ;;  %2106 = vmatmul.mubr.bf16.gmra.mxu1 %v1589_v60  ;;  %4972 = vpow2.f32 %v4136_v10  ;;  %3299 = vmatprep.mubr.bf16.mxu0 %v3057_v57  ;;  %v3056_v11 = vpack.c.bf16 %v2934_v5, %v2932_v9  ;;  %v1524_v32 = vmul.f32 %v6631_v58, %v7914_v6  ;;  %v1526_v49 = vmul.f32 %v6649_v7, %v7915_v4  ;;  %v7917_v5 = vld [vmem:[#allocation44_spill] sm:$0xff] }
 0x248   :  { %v4949_v22 = vpop.eup %4948  ;;  %2115 = vmatprep.mubr.bf16.mxu1 %v1592_v1  ;;  %4974 = vrcp.f32 %v2559_v54  ;;  %v1921_v61 = vpop.f32.mrf.mxu1  ;;  %v2937_v15 = vmul.f32 %v4945_v63, %v6675_v59  ;;  %v6848_v3 = vadd.f32 %v1919_v40, %v6568_v41  ;;  %v6852_v16 = vmul.f32 %v7917_v5, %v7916_v14  ;;  %v7918_v63 = vld [vmem:[#allocation39_spill] sm:$0xff]  ;;  %v7922_v6 = vld [vmem:[#allocation32_spill] sm:$0xff] }
 0x249   :  { %v4951_v8 = vpop.eup %4950  ;;  %v2560_v62 = vadd.f32 1.0, %v4949_v22  ;;  %4976 = vpow2.f32 %v4137_v24  ;;  %v4140_v7 = vmul.f32 -1.442695, %v6838_v45  ;;  %v2938_v59 = vmul.f32 %v4947_v43, %v6684_v0 }
 0x24a   :  { %v4953_v60 = vpop.eup %4952  ;;  %v2561_v36 = vadd.f32 1.0, %v4951_v8  ;;  %4978 = vpow2.f32 %v4138_v55  ;;  %v1923_v31 = vpop.f32.mrf.mxu1  ;;  %v1528_v1 = vmul.f32 %v6661_v51, %v7918_v63  ;;  %v1594_v54 = vpack.c.bf16 %v1526_v49, %v1524_v32  ;;  %v7920_v8 = vld [vmem:[#allocation12_spill] sm:$0xff] }
 0x24b   :  { %v4955_v17 = vpop.eup %4954  ;;  %v2939_v10 = vmul.f32 %v4953_v60, %v6691_v13  ;;  %4980 = vrcp.f32 %v2560_v62  ;;  %3300 = vmatmul.mubr.bf16.gmra.mxu0 %v3056_v11  ;;  %v6859_v55 = vadd.f32 %v1921_v61, %v6558_v53  ;;  %v2936_v9 = vmul.f32 %v4941_v21, %v6664_v33  ;;  %v7921_v60 = vld [vmem:[#allocation26_spill] sm:$0xff] }
 0x24c   :  { %v4957_v56 = vpop.eup %4956  ;;  %4982 = vrcp.f32 %v2561_v36  ;;  %v2562_v58 = vadd.f32 1.0, %v4955_v17  ;;  %v4141_v0 = vmul.f32 -1.442695, %v6848_v3  ;;  %v1530_v62 = vmul.f32 %v7920_v8, %v7919_v30 }
 0x24d   :  { %v4959_v38 = vpop.eup %4958  ;;  %v2563_v24 = vadd.f32 1.0, %v4957_v56  ;;  %4984 = vpow2.f32 %v4139_v37  ;;  %v3059_v13 = vpack.c.bf16 %v2939_v10, %v2937_v15  ;;  %v6866_v37 = vadd.f32 %v1923_v31, %v6568_v41  ;;  %v7923_v15 = vld [vmem:[#allocation24_spill] sm:$0xff] }
 0x24e   :  { %v4961_v57 = vpop.eup %4960  ;;  %4986 = vrcp.f32 %v2562_v58  ;;  %v1593_v33 = vpack.c.bf16 %v6852_v16, %v6835_v23  ;;  %v3058_v21 = vpack.c.bf16 %v2938_v59, %v2936_v9  ;;  %v6872_v32 = vmul.f32 %v7922_v6, %v7921_v60  ;;  %v7924_v10 = vld [vmem:[#allocation36_spill] sm:$0xff] }
 0x24f   :  { %v4963_v40 = vpop.eup %4962  ;;  %2116 = vmatmul.mubr.bf16.gmra.mxu1 %v1591_v50  ;;  %4988 = vrcp.f32 %v2563_v24  ;;  %v2564_v22 = vadd.f32 1.0, %v4961_v57  ;;  %3307 = vmatprep.mubr.bf16.mxu0 %v3059_v13  ;;  %v4142_v49 = vmul.f32 -1.442695, %v6859_v55  ;;  %v6877_v56 = vmul.f32 %v7924_v10, %v7923_v15 }
 0x250   :  { %v4965_v43 = vpop.eup %4964  ;;  %2125 = vmatprep.mubr.bf16.mxu1 %v1594_v54  ;;  %v2565_v51 = vadd.f32 1.0, %v4963_v40  ;;  %4990 = vpow2.f32 %v4140_v7  ;;  %v1927_v61 = vpop.f32.mrf.mxu1  ;;  %v1596_v16 = vpack.c.bf16 %v1530_v62, %v1528_v1  ;;  %v4143_v58 = vmul.f32 -1.442695, %v6866_v37 }
 0x251   :  { %v4967_v11 = vpop.eup %4966  ;;  %4992 = vrcp.f32 %v2564_v22  ;;  %v6880_v23 = vadd.f32 %v1927_v61, %v6558_v53  ;;  %v2940_v24 = vmul.f32 %v4959_v38, %v6701_v46  ;;  %v2941_v54 = vmul.f32 %v4965_v43, %v6717_v20 }
 0x252   :  { %v4969_v50 = vpop.eup %4968  ;;  %4994 = vrcp.f32 %v2565_v51  ;;  %v2566_v4 = vadd.f32 1.0, %v4967_v11  ;;  %v1929_v36 = vpop.f32.mrf.mxu1  ;;  %v7925_v51 = vld [vmem:[#allocation37_spill] sm:$0xff]  ;;  %v7926_v11 = vld [vmem:[#allocation42_spill] sm:$0xff] }
 0x253   :  { %v4971_v17 = vpop.eup %4970  ;;  %v2567_v14 = vadd.f32 1.0, %v4969_v50  ;;  %4996 = vpow2.f32 %v4141_v0  ;;  %3308 = vmatmul.mubr.bf16.gmra.mxu0 %v3058_v21  ;;  %v6884_v7 = vadd.f32 %v1929_v36, %v6568_v41  ;;  %v4144_v46 = vmul.f32 -1.442695, %v6880_v23 }
 0x254   :  { %v4973_v5 = vpop.eup %4972  ;;  %4998 = vrcp.f32 %v2566_v4  ;;  %v1931_v31 = vpop.f32.mrf.mxu1  ;;  %v2942_v13 = vmul.f32 %v4971_v17, %v6725_v34  ;;  %v1532_v61 = vmul.f32 %v6693_v35, %v7925_v51  ;;  %v1595_v36 = vpack.c.bf16 %v6877_v56, %v6872_v32 }
 0x255   :  { %v4975_v59 = vpop.eup %4974  ;;  %5000 = vrcp.f32 %v2567_v14  ;;  %v2568_v57 = vadd.f32 1.0, %v4973_v5  ;;  %v6891_v1 = vadd.f32 %v1931_v31, %v6558_v53  ;;  %v4145_v20 = vmul.f32 -1.442695, %v6884_v7 }
 0x256   :  { %v4977_v63 = vpop.eup %4976  ;;  %v2943_v40 = vmul.f32 %v4975_v59, %v6732_v29  ;;  %5002 = vpow2.f32 %v4142_v49  ;;  %v1933_v9 = vpop.f32.mrf.mxu1  ;;  %v3060_v8 = vpack.c.bf16 %v2942_v13, %v2940_v24  ;;  %v7928_v13 = vld [vmem:[#allocation31_spill] sm:$0xff] }
 0x257   :  { %v4979_v22 = vpop.eup %4978  ;;  %2126 = vmatmul.mubr.bf16.gmra.mxu1 %v1593_v33  ;;  %5004 = vrcp.f32 %v2568_v57  ;;  %v2569_v0 = vadd.f32 1.0, %v4977_v63  ;;  %v6895_v34 = vadd.f32 %v1933_v9, %v6568_v41  ;;  %v1534_v33 = vmul.f32 %v6706_v18, %v7926_v11  ;;  %v7929_v9 = vld [vmem:[#allocation28_spill] sm:$0xff] }
 0x258   :  { %v4981_v38 = vpop.eup %4980  ;;  %2135 = vmatprep.mubr.bf16.mxu1 %v1596_v16  ;;  %v2570_v30 = vadd.f32 1.0, %v4979_v22  ;;  %5006 = vpow2.f32 %v4143_v58  ;;  %v3061_v29 = vpack.c.bf16 %v2943_v40, %v2941_v54  ;;  %v4146_v21 = vmul.f32 -1.442695, %v6891_v1 }
 0x259   :  { %v4983_v43 = vpop.eup %4982  ;;  %5008 = vrcp.f32 %v2569_v0  ;;  %v4147_v6 = vmul.f32 -1.442695, %v6895_v34  ;;  %v1598_v16 = vpack.c.bf16 %v1534_v33, %v1532_v61  ;;  %v2944_v31 = vmul.f32 %v4981_v38, %v6743_v44 }
 0x25a   :  { %v4985_v62 = vpop.eup %4984  ;;  %5010 = vrcp.f32 %v2570_v30  ;;  %3315 = vmatprep.mubr.bf16.mxu0 %v3061_v29  ;;  %v2945_v17 = vmul.f32 %v4983_v43, %v6751_v47  ;;  %v1533_v22 = vmul.f32 %v6696_v28, %v7929_v9 }
 0x25b   :  { %v4987_v50 = vpop.eup %4986  ;;  %v2571_v60 = vadd.f32 1.0, %v4985_v62  ;;  %5012 = vpow2.f32 %v4144_v46  ;;  %3316 = vmatmul.mubr.bf16.gmra.mxu0 %v3060_v8  ;;  %v1937_v4 = vpop.f32.mrf.mxu1 }
 0x25c   :  { %v4989_v49 = vpop.eup %4988  ;;  %5014 = vpow2.f32 %v4145_v20  ;;  %v6907_v35 = vadd.f32 %v1937_v4, %v6558_v53  ;;  %v2946_v15 = vmul.f32 %v4987_v50, %v6764_v27 }
 0x25d   :  { %v4991_v18 = vpop.eup %4990  ;;  %v2947_v10 = vmul.f32 %v4989_v49, %v6768_v39  ;;  %5016 = vrcp.f32 %v2571_v60  ;;  %v1939_v14 = vpop.f32.mrf.mxu1  ;;  %v7927_v39 = vld [vmem:[#allocation25_spill] sm:$0xff] }
 0x25e   :  { %v4993_v5 = vpop.eup %4992  ;;  %5018 = vpow2.f32 %v4146_v21  ;;  %v4148_v58 = vmul.f32 -1.442695, %v6907_v35  ;;  %v6914_v32 = vadd.f32 %v1939_v14, %v6568_v41  ;;  %v2572_v59 = vadd.f32 1.0, %v4991_v18 }
 0x25f   :  { %v4995_v56 = vpop.eup %4994  ;;  %2136 = vmatmul.mubr.bf16.gmra.mxu1 %v1595_v36  ;;  %5020 = vpow2.f32 %v4147_v6  ;;  %v1941_v47 = vpop.f32.mrf.mxu1  ;;  %v3063_v27 = vpack.c.bf16 %v2947_v10, %v2945_v17  ;;  %v1531_v57 = vmul.f32 %v7928_v13, %v7927_v39  ;;  %v3062_v46 = vpack.c.bf16 %v2946_v15, %v2944_v31 }
 0x260   :  { %v4997_v24 = vpop.eup %4996  ;;  %2145 = vmatprep.mubr.bf16.mxu1 %v1598_v16  ;;  %v4149_v63 = vmul.f32 -1.442695, %v6914_v32  ;;  %v6921_v54 = vadd.f32 %v1941_v47, %v6558_v53  ;;  %5022 = vpow2.f32 %v4148_v58  ;;  %v2949_v43 = vmul.f32 %v4995_v56, %v6781_v19 }
 0x261   :  { %v4999_v40 = vpop.eup %4998  ;;  %v2573_v44 = vadd.f32 1.0, %v4997_v24  ;;  %3323 = vmatprep.mubr.bf16.mxu0 %v3063_v27  ;;  %v1943_v0 = vpop.f32.mrf.mxu1  ;;  %v1597_v11 = vpack.c.bf16 %v1533_v22, %v1531_v57  ;;  %v2948_v19 = vmul.f32 %v4993_v5, %v6771_v48 }
 0x262   :  { %v5001_v38 = vpop.eup %5000  ;;  %5024 = vpow2.f32 %v4149_v63  ;;  %v4150_v30 = vmul.f32 -1.442695, %v6921_v54  ;;  %v6927_v20 = vadd.f32 %v1943_v0, %v6568_v41  ;;  %v2950_v33 = vmul.f32 %v4999_v40, %v6788_v26 }
 0x263   :  { %v5003_v29 = vpop.eup %5002  ;;  %v2951_v8 = vmul.f32 %v5001_v38, %v6791_v42  ;;  %5026 = vrcp.f32 %v2572_v59  ;;  %3324 = vmatmul.mubr.bf16.gmra.mxu0 %v3062_v46 }
 0x264   :  { %v5005_v28 = vpop.eup %5004  ;;  %v2574_v62 = vadd.f32 1.0, %v5003_v29  ;;  %5028 = vpow2.f32 %v4150_v30  ;;  %v4151_v51 = vmul.f32 -1.442695, %v6927_v20  ;;  %v3064_v17 = vpack.c.bf16 %v2950_v33, %v2948_v19 }
 0x265   :  { %v5007_v61 = vpop.eup %5006  ;;  %5030 = vrcp.f32 %v2573_v44  ;;  %v3065_v21 = vpack.c.bf16 %v2951_v8, %v2949_v43  ;;  %v2952_v40 = vmul.f32 %v5005_v28, %v6799_v25 }
 0x266   :  { %v5009_v50 = vpop.eup %5008  ;;  %5032 = vrcp.f32 %v2574_v62  ;;  %v2575_v60 = vadd.f32 1.0, %v5007_v61 }
 0x267   :  { %v5011_v6 = vpop.eup %5010  ;;  %2146 = vmatmul.mubr.bf16.gmra.mxu1 %v1597_v11  ;;  %5034 = vpow2.f32 %v4151_v51  ;;  %v1947_v42 = vpop.f32.mrf.mxu1  ;;  %3331 = vmatprep.mubr.bf16.mxu0 %v3065_v21  ;;  %v2953_v5 = vmul.f32 %v5009_v50, %v6808_v52 }
 0x268   :  { %v5013_v4 = vpop.eup %5012  ;;  %5036 = vrcp.f32 %v2575_v60  ;;  %v6935_v49 = vadd.f32 %v1947_v42, %v6558_v53  ;;  %v2954_v24 = vmul.f32 %v5011_v6, %v6815_v12 }
 0x269   :  { %v5015_v36 = vpop.eup %5014  ;;  %v2576_v18 = vadd.f32 1.0, %v5013_v4  ;;  %v1949_v26 = vpop.f32.mrf.mxu1 }
 0x26a   :  { %v5017_v15 = vpop.eup %5016  ;;  %v2577_v10 = vadd.f32 1.0, %v5015_v36  ;;  %v4152_v14 = vmul.f32 -1.442695, %v6935_v49  ;;  %v6939_v16 = vadd.f32 %v1949_v26, %v6568_v41  ;;  %v3066_v46 = vpack.c.bf16 %v2954_v24, %v2952_v40 }
 0x26b   :  { %v5019_v48 = vpop.eup %5018  ;;  %v2955_v58 = vmul.f32 %v5017_v15, %v6825_v2  ;;  %5038 = vrcp.f32 %v2576_v18  ;;  %v1951_v56 = vpop.f32.mrf.mxu1  ;;  %3332 = vmatmul.mubr.bf16.gmra.mxu0 %v3064_v17 }
 0x26c   :  { %v5021_v31 = vpop.eup %5020  ;;  %5040 = vrcp.f32 %v2577_v10  ;;  %v2578_v59 = vadd.f32 1.0, %v5019_v48  ;;  %v4153_v47 = vmul.f32 -1.442695, %v6939_v16  ;;  %v6945_v27 = vadd.f32 %v1951_v56, %v6558_v53 }
 0x26d   :  { %v2579_v39 = vadd.f32 1.0, %v5021_v31  ;;  %5042 = vpow2.f32 %v4152_v14  ;;  %v1953_v13 = vpop.f32.mrf.mxu1  ;;  %v3067_v57 = vpack.c.bf16 %v2955_v58, %v2953_v5  ;;  %v5023_v52 = vpop.eup %5022 }
 0x26e   :  { %5044 = vrcp.f32 %v2578_v59  ;;  %v6949_v2 = vadd.f32 %v1953_v13, %v6568_v41  ;;  %v4154_v9 = vmul.f32 -1.442695, %v6945_v27  ;;  %v2580_v30 = vadd.f32 1.0, %v5023_v52 }
 0x26f   :  { %v5025_v63 = vpop.eup %5024  ;;  %5046 = vrcp.f32 %v2579_v39  ;;  %3339 = vmatprep.mubr.bf16.mxu0 %v3067_v57 }
 0x270   :  { %v5027_v22 = vpop.eup %5026  ;;  %v2581_v44 = vadd.f32 1.0, %v5025_v63  ;;  %5048 = vpow2.f32 %v4153_v47  ;;  %v4155_v0 = vmul.f32 -1.442695, %v6949_v2 }
 0x271   :  { %v5029_v12 = vpop.eup %5028  ;;  %v2956_v11 = vmul.f32 %v5027_v22, %v6838_v45 }
 0x272   :  { %v5031_v38 = vpop.eup %5030  ;;  %5050 = vrcp.f32 %v2581_v44  ;;  %v2582_v29 = vadd.f32 1.0, %v5029_v12 }
 0x273   :  { %v5033_v43 = vpop.eup %5032  ;;  %5052 = vpow2.f32 %v4154_v9  ;;  %3340 = vmatmul.mubr.bf16.gmra.mxu0 %v3066_v46  ;;  %v2957_v51 = vmul.f32 %v5031_v38, %v6848_v3 }
 0x274   :  { %v5035_v8 = vpop.eup %5034  ;;  %5054 = vrcp.f32 %v2582_v29  ;;  %v2958_v28 = vmul.f32 %v5033_v43, %v6859_v55 }
 0x275   :  { %v5037_v25 = vpop.eup %5036  ;;  %v2583_v62 = vadd.f32 1.0, %v5035_v8  ;;  %5056 = vpow2.f32 %v4155_v0 }
 0x276   :  { %v2959_v61 = vmul.f32 %v5037_v25, %v6866_v37  ;;  %5058 = vrcp.f32 %v2580_v30  ;;  %v3068_v6 = vpack.c.bf16 %v2958_v28, %v2956_v11 }
 0x277   :  { %5060 = vrcp.f32 %v2583_v62 }
 0x278   :  { %v5039_v33 = vpop.eup %5038  ;;  %v3069_v21 = vpack.c.bf16 %v2959_v61, %v2957_v51 }
 0x279   :  { %v5041_v50 = vpop.eup %5040  ;;  %v1957_v60 = vpop.f32.mrf.mxu1  ;;  %v2960_v56 = vmul.f32 %v5039_v33, %v6880_v23 }
 0x27a   :  { %v5043_v19 = vpop.eup %5042  ;;  %v6959_v42 = vadd.f32 %v1957_v60, %v6558_v53  ;;  %3347 = vmatprep.mubr.bf16.mxu0 %v3069_v21  ;;  %v2961_v26 = vmul.f32 %v5041_v50, %v6884_v7 }
 0x27b   :  { %v5045_v55 = vpop.eup %5044  ;;  %v2584_v4 = vadd.f32 1.0, %v5043_v19  ;;  %v1959_v36 = vpop.f32.mrf.mxu1  ;;  %3348 = vmatmul.mubr.bf16.gmra.mxu0 %v3068_v6 }
 0x27c   :  { %v5047_v3 = vpop.eup %5046  ;;  %v4156_v37 = vmul.f32 -1.442695, %v6959_v42  ;;  %v6963_v45 = vadd.f32 %v1959_v36, %v6568_v41  ;;  %v2962_v17 = vmul.f32 %v5045_v55, %v6891_v1 }
 0x27d   :  { %v5049_v18 = vpop.eup %5048  ;;  %v2963_v15 = vmul.f32 %v5047_v3, %v6895_v34  ;;  %v1961_v10 = vpop.f32.mrf.mxu1 }
 0x27e   :  { %v2585_v14 = vadd.f32 1.0, %v5049_v18  ;;  %5062 = vpow2.f32 %v4156_v37  ;;  %v4157_v48 = vmul.f32 -1.442695, %v6963_v45  ;;  %v6970_v5 = vadd.f32 %v1961_v10, %v6558_v53 }
 0x27f   :  { %v5051_v58 = vpop.eup %5050  ;;  %5064 = vrcp.f32 %v2584_v4  ;;  %v1963_v31 = vpop.f32.mrf.mxu1  ;;  %v3071_v59 = vpack.c.bf16 %v2963_v15, %v2961_v26  ;;  %v3070_v39 = vpack.c.bf16 %v2962_v17, %v2960_v56 }
 0x280   :  { %v5053_v47 = vpop.eup %5052  ;;  %5066 = vrcp.f32 %v2585_v14  ;;  %v4158_v7 = vmul.f32 -1.442695, %v6970_v5  ;;  %v6975_v1 = vadd.f32 %v1963_v31, %v6568_v41  ;;  %v2965_v40 = vmul.f32 %v5051_v58, %v6914_v32 }
 0x281   :  { %v5055_v34 = vpop.eup %5054  ;;  %v2586_v24 = vadd.f32 1.0, %v5053_v47  ;;  %5068 = vpow2.f32 %v4157_v48  ;;  %3355 = vmatprep.mubr.bf16.mxu0 %v3071_v59 }
 0x282   :  { %v5057_v13 = vpop.eup %5056  ;;  %5070 = vpow2.f32 %v4158_v7  ;;  %v4159_v57 = vmul.f32 -1.442695, %v6975_v1  ;;  %v2966_v9 = vmul.f32 %v5055_v34, %v6921_v54 }
 0x283   :  { %v5059_v23 = vpop.eup %5058  ;;  %5072 = vrcp.f32 %v2586_v24  ;;  %v2587_v52 = vadd.f32 1.0, %v5057_v13  ;;  %3356 = vmatmul.mubr.bf16.gmra.mxu0 %v3070_v39 }
 0x284   :  { %v5061_v63 = vpop.eup %5060  ;;  %5074 = vpow2.f32 %v4159_v57  ;;  %v2964_v44 = vmul.f32 %v5059_v23, %v6907_v35 }
 0x285   :  { %v2967_v22 = vmul.f32 %v5061_v63, %v6927_v20  ;;  %5076 = vrcp.f32 %v2587_v52 }
 0x286   :  { %v3072_v30 = vpack.c.bf16 %v2966_v9, %v2964_v44 }
 0x287   :  { %v1967_v12 = vpop.f32.mrf.mxu1  ;;  %v3073_v0 = vpack.c.bf16 %v2967_v22, %v2965_v40 }
 0x288   :  { %v6983_v46 = vadd.f32 %v1967_v12, %v6558_v53 }
 0x289   :  { %v1969_v38 = vpop.f32.mrf.mxu1  ;;  %3363 = vmatprep.mubr.bf16.mxu0 %v3073_v0 }
 0x28a   :  { %v4160_v29 = vmul.f32 -1.442695, %v6983_v46  ;;  %v6987_v43 = vadd.f32 %v1969_v38, %v6568_v41 }
 0x28b   :  { %v5063_v32 = vpop.eup %5062  ;;  %v1971_v54 = vpop.f32.mrf.mxu1  ;;  %3364 = vmatmul.mubr.bf16.gmra.mxu0 %v3072_v30 }
 0x28c   :  { %v5065_v20 = vpop.eup %5064  ;;  %v2588_v8 = vadd.f32 1.0, %v5063_v32  ;;  %5078 = vpow2.f32 %v4160_v29  ;;  %v4161_v35 = vmul.f32 -1.442695, %v6987_v43  ;;  %v6991_v25 = vadd.f32 %v1971_v54, %v6558_v53 }
 0x28d   :  { %v5067_v28 = vpop.eup %5066  ;;  %v1973_v62 = vpop.f32.mrf.mxu1  ;;  %v2968_v18 = vmul.f32 %v5065_v20, %v6935_v49 }
 0x28e   :  { %v5069_v51 = vpop.eup %5068  ;;  %5080 = vrcp.f32 %v2588_v8  ;;  %v4162_v61 = vmul.f32 -1.442695, %v6991_v25  ;;  %v6995_v11 = vadd.f32 %v1973_v62, %v6568_v41  ;;  %v2969_v3 = vmul.f32 %v5067_v28, %v6939_v16 }
 0x28f   :  { %v5071_v33 = vpop.eup %5070  ;;  %v2589_v21 = vadd.f32 1.0, %v5069_v51  ;;  %5082 = vpow2.f32 %v4161_v35 }
 0x290   :  { %v5073_v50 = vpop.eup %5072  ;;  %v2590_v60 = vadd.f32 1.0, %v5071_v33  ;;  %5084 = vpow2.f32 %v4162_v61  ;;  %v4163_v6 = vmul.f32 -1.442695, %v6995_v11 }
 0x291   :  { %v5075_v19 = vpop.eup %5074  ;;  %5086 = vrcp.f32 %v2589_v21  ;;  %v2970_v4 = vmul.f32 %v5073_v50, %v6945_v27 }
 0x292   :  { %v5077_v55 = vpop.eup %5076  ;;  %5088 = vrcp.f32 %v2590_v60  ;;  %v2591_v36 = vadd.f32 1.0, %v5075_v19 }
 0x293   :  { %v2971_v37 = vmul.f32 %v5077_v55, %v6949_v2  ;;  %5090 = vpow2.f32 %v4163_v6  ;;  %v3074_v17 = vpack.c.bf16 %v2970_v4, %v2968_v18 }
 0x294   :  { %5092 = vrcp.f32 %v2591_v36 }
 0x295   :  { %v3075_v26 = vpack.c.bf16 %v2971_v37, %v2969_v3 }
 0x297   :  { %3371 = vmatprep.mubr.bf16.mxu0 %v3075_v26 }
 0x298   :  { %3372 = vmatmul.mubr.bf16.gmra.mxu0 %v3074_v17 }
 0x299   :  { %v5079_v15 = vpop.eup %5078  ;;  %v1977_v10 = vpop.f32.mrf.mxu1 }
 0x29a   :  { %v2592_v14 = vadd.f32 1.0, %v5079_v15  ;;  %v7003_v48 = vadd.f32 %v1977_v10, %v6558_v53 }
 0x29b   :  { %v5081_v27 = vpop.eup %5080  ;;  %v1979_v58 = vpop.f32.mrf.mxu1 }
 0x29c   :  { %v5083_v56 = vpop.eup %5082  ;;  %v4164_v16 = vmul.f32 -1.442695, %v7003_v48  ;;  %v7007_v2 = vadd.f32 %v1979_v58, %v6568_v41  ;;  %5094 = vrcp.f32 %v2592_v14  ;;  %v2972_v0 = vmul.f32 %v5081_v27, %v6959_v42 }
 0x29d   :  { %v5085_v49 = vpop.eup %5084  ;;  %v2593_v31 = vadd.f32 1.0, %v5083_v56  ;;  %v1981_v59 = vpop.f32.mrf.mxu1 }
 0x29e   :  { %v5087_v47 = vpop.eup %5086  ;;  %v2594_v7 = vadd.f32 1.0, %v5085_v49  ;;  %5096 = vpow2.f32 %v4164_v16  ;;  %v4165_v34 = vmul.f32 -1.442695, %v7007_v2  ;;  %v7011_v24 = vadd.f32 %v1981_v59, %v6558_v53 }
 0x29f   :  { %v5089_v39 = vpop.eup %5088  ;;  %5098 = vrcp.f32 %v2593_v31  ;;  %v1983_v13 = vpop.f32.mrf.mxu1  ;;  %v2973_v22 = vmul.f32 %v5087_v47, %v6963_v45 }
 0x2a0   :  { %v5091_v57 = vpop.eup %5090  ;;  %5100 = vrcp.f32 %v2594_v7  ;;  %v4166_v23 = vmul.f32 -1.442695, %v7011_v24  ;;  %v7015_v52 = vadd.f32 %v1983_v13, %v6568_v41  ;;  %v2974_v40 = vmul.f32 %v5089_v39, %v6970_v5 }
 0x2a1   :  { %v5093_v63 = vpop.eup %5092  ;;  %v2595_v9 = vadd.f32 1.0, %v5091_v57  ;;  %5102 = vpow2.f32 %v4165_v34 }
 0x2a2   :  { %v2975_v44 = vmul.f32 %v5093_v63, %v6975_v1  ;;  %5104 = vpow2.f32 %v4166_v23  ;;  %v4167_v12 = vmul.f32 -1.442695, %v7015_v52  ;;  %v3076_v30 = vpack.c.bf16 %v2974_v40, %v2972_v0 }
 0x2a3   :  { %5106 = vrcp.f32 %v2595_v9 }
 0x2a4   :  { %5108 = vpow2.f32 %v4167_v12  ;;  %v3077_v38 = vpack.c.bf16 %v2975_v44, %v2973_v22 }
 0x2a6   :  { %3379 = vmatprep.mubr.bf16.mxu0 %v3077_v38 }
 0x2a7   :  { %v1987_v29 = vpop.f32.mrf.mxu1  ;;  %3380 = vmatmul.mubr.bf16.gmra.mxu0 %v3076_v30 }
 0x2a8   :  { %v7023_v5 = vadd.f32 %v1987_v29, %v6558_v53 }
 0x2a9   :  { %v1989_v32 = vpop.f32.mrf.mxu1  ;;  %v5095_v54 = vpop.eup %5094 }
 0x2aa   :  { %v4168_v45 = vmul.f32 -1.442695, %v7023_v5  ;;  %v7027_v1 = vadd.f32 %v1989_v32, %v6568_v41  ;;  %v2976_v10 = vmul.f32 %v5095_v54, %v6983_v46 }
 0x2ab   :  { %v5097_v20 = vpop.eup %5096  ;;  %v1991_v8 = vpop.f32.mrf.mxu1 }
 0x2ac   :  { %v5099_v42 = vpop.eup %5098  ;;  %v2596_v35 = vadd.f32 1.0, %v5097_v20  ;;  %5110 = vpow2.f32 %v4168_v45  ;;  %v4169_v28 = vmul.f32 -1.442695, %v7027_v1  ;;  %v7031_v62 = vadd.f32 %v1991_v8, %v6558_v53 }
 0x2ad   :  { %v5101_v51 = vpop.eup %5100  ;;  %v1993_v61 = vpop.f32.mrf.mxu1  ;;  %v2977_v18 = vmul.f32 %v5099_v42, %v6987_v43 }
 0x2ae   :  { %v5103_v33 = vpop.eup %5102  ;;  %5112 = vrcp.f32 %v2596_v35  ;;  %v4170_v21 = vmul.f32 -1.442695, %v7031_v62  ;;  %v7035_v50 = vadd.f32 %v1993_v61, %v6568_v41  ;;  %v2978_v4 = vmul.f32 %v5101_v51, %v6991_v25 }
 0x2af   :  { %v5105_v60 = vpop.eup %5104  ;;  %v2597_v6 = vadd.f32 1.0, %v5103_v33  ;;  %5114 = vpow2.f32 %v4169_v28  ;;  %v1997_v19 = vpop.f32.mrf.mxu1 }
 0x2b0   :  { %v5107_v55 = vpop.eup %5106  ;;  %v2598_v36 = vadd.f32 1.0, %v5105_v60  ;;  %5116 = vpow2.f32 %v4170_v21  ;;  %v4171_v3 = vmul.f32 -1.442695, %v7035_v50  ;;  %v7042_v17 = vadd.f32 %v1997_v19, %v6558_v53 }
 0x2b1   :  { %v5109_v37 = vpop.eup %5108  ;;  %v2979_v26 = vmul.f32 %v5107_v55, %v6995_v11  ;;  %5118 = vrcp.f32 %v2597_v6  ;;  %v1999_v15 = vpop.f32.mrf.mxu1  ;;  %v3078_v43 = vpack.c.bf16 %v2978_v4, %v2976_v10 }
 0x2b2   :  { %5120 = vrcp.f32 %v2598_v36  ;;  %v2599_v14 = vadd.f32 1.0, %v5109_v37  ;;  %v7046_v25 = vadd.f32 %v1999_v15, %v6568_v41  ;;  %v4172_v27 = vmul.f32 -1.442695, %v7042_v17 }
 0x2b3   :  { %5122 = vpow2.f32 %v4171_v3  ;;  %v2001_v58 = vpop.f32.mrf.mxu1  ;;  %v3079_v56 = vpack.c.bf16 %v2979_v26, %v2977_v18 }
 0x2b4   :  { %5124 = vrcp.f32 %v2599_v14  ;;  %v4173_v11 = vmul.f32 -1.442695, %v7046_v25  ;;  %v7051_v16 = vadd.f32 %v2001_v58, %v6558_v53 }
 0x2b5   :  { %5126 = vpow2.f32 %v4172_v27  ;;  %v2003_v49 = vpop.f32.mrf.mxu1  ;;  %3387 = vmatprep.mubr.bf16.mxu0 %v3079_v56 }
 0x2b6   :  { %5128 = vpow2.f32 %v4173_v11  ;;  %v4174_v46 = vmul.f32 -1.442695, %v7051_v16  ;;  %v7055_v31 = vadd.f32 %v2003_v49, %v6568_v41  ;;  %3388 = vmatmul.mubr.bf16.gmra.mxu0 %v3078_v43 }
 0x2b7   :  { %v2007_v59 = vpop.f32.mrf.mxu1 }
 0x2b8   :  { %5130 = vpow2.f32 %v4174_v46  ;;  %v4175_v47 = vmul.f32 -1.442695, %v7055_v31  ;;  %v7059_v7 = vadd.f32 %v2007_v59, %v6558_v53 }
 0x2b9   :  { %v5111_v34 = vpop.eup %5110  ;;  %v2009_v39 = vpop.f32.mrf.mxu1 }
 0x2ba   :  { %v2600_v13 = vadd.f32 1.0, %v5111_v34  ;;  %5132 = vpow2.f32 %v4175_v47  ;;  %v4176_v57 = vmul.f32 -1.442695, %v7059_v7  ;;  %v7063_v23 = vadd.f32 %v2009_v39, %v6568_v41 }
 0x2bb   :  { %v5113_v63 = vpop.eup %5112  ;;  %v2011_v40 = vpop.f32.mrf.mxu1 }
 0x2bc   :  { %v5115_v9 = vpop.eup %5114  ;;  %5134 = vrcp.f32 %v2600_v13  ;;  %v4177_v22 = vmul.f32 -1.442695, %v7063_v23  ;;  %v7067_v44 = vadd.f32 %v2011_v40, %v6558_v53  ;;  %v2980_v4 = vmul.f32 %v5113_v63, %v7003_v48 }
 0x2bd   :  { %v5117_v12 = vpop.eup %5116  ;;  %v2601_v0 = vadd.f32 1.0, %v5115_v9  ;;  %5136 = vpow2.f32 %v4176_v57  ;;  %v2013_v38 = vpop.f32.mrf.mxu1 }
 0x2be   :  { %v5119_v30 = vpop.eup %5118  ;;  %v2602_v29 = vadd.f32 1.0, %v5117_v12  ;;  %5138 = vpow2.f32 %v4177_v22  ;;  %v4178_v32 = vmul.f32 -1.442695, %v7067_v44  ;;  %v7071_v54 = vadd.f32 %v2013_v38, %v6568_v41 }
 0x2bf   :  { %v5121_v45 = vpop.eup %5120  ;;  %5140 = vrcp.f32 %v2601_v0  ;;  %v2017_v20 = vpop.f32.mrf.mxu1  ;;  %v2981_v60 = vmul.f32 %v5119_v30, %v7007_v2 }
 0x2c0   :  { %v5123_v8 = vpop.eup %5122  ;;  %5142 = vrcp.f32 %v2602_v29  ;;  %v4179_v42 = vmul.f32 -1.442695, %v7071_v54  ;;  %v7075_v35 = vadd.f32 %v2017_v20, %v6558_v53  ;;  %v2982_v51 = vmul.f32 %v5121_v45, %v7011_v24 }
 0x2c1   :  { %v5125_v28 = vpop.eup %5124  ;;  %v2603_v61 = vadd.f32 1.0, %v5123_v8  ;;  %5144 = vpow2.f32 %v4178_v32  ;;  %v2019_v33 = vpop.f32.mrf.mxu1 }
 0x2c2   :  { %v5127_v21 = vpop.eup %5126  ;;  %v2983_v6 = vmul.f32 %v5125_v28, %v7015_v52  ;;  %5146 = vpow2.f32 %v4179_v42  ;;  %v4180_v19 = vmul.f32 -1.442695, %v7075_v35  ;;  %v7083_v3 = vadd.f32 %v2019_v33, %v6568_v41 }
 0x2c3   :  { %v5129_v55 = vpop.eup %5128  ;;  %5148 = vrcp.f32 %v2603_v61  ;;  %v2604_v36 = vadd.f32 1.0, %v5127_v21  ;;  %v2021_v24 = vpop.f32.mrf.mxu1  ;;  %v3080_v52 = vpack.c.bf16 %v2982_v51, %v2980_v4 }
 0x2c4   :  { %v2605_v37 = vadd.f32 1.0, %v5129_v55  ;;  %5150 = vpow2.f32 %v4180_v19  ;;  %v7086_v18 = vadd.f32 %v2021_v24, %v6558_v53  ;;  %v3081_v2 = vpack.c.bf16 %v2983_v6, %v2981_v60 }
 0x2c5   :  { %v5131_v26 = vpop.eup %5130  ;;  %5152 = vrcp.f32 %v2604_v36  ;;  %v4181_v15 = vmul.f32 -1.442695, %v7083_v3  ;;  %v2023_v10 = vpop.f32.mrf.mxu1 }
 0x2c6   :  { %5154 = vrcp.f32 %v2605_v37  ;;  %v2606_v48 = vadd.f32 1.0, %v5131_v26  ;;  %v4182_v14 = vmul.f32 -1.442695, %v7086_v18  ;;  %v7091_v27 = vadd.f32 %v2023_v10, %v6568_v41  ;;  %3395 = vmatprep.mubr.bf16.mxu0 %v3081_v2 }
 0x2c7   :  { %v5133_v58 = vpop.eup %5132  ;;  %5156 = vpow2.f32 %v4181_v15  ;;  %v2027_v56 = vpop.f32.mrf.mxu1  ;;  %3396 = vmatmul.mubr.bf16.gmra.mxu0 %v3080_v52 }
 0x2c8   :  { %5158 = vrcp.f32 %v2606_v48  ;;  %v2607_v43 = vadd.f32 1.0, %v5133_v58  ;;  %v4183_v11 = vmul.f32 -1.442695, %v7091_v27  ;;  %v7095_v49 = vadd.f32 %v2027_v56, %v6558_v53 }
 0x2c9   :  { %v5135_v46 = vpop.eup %5134  ;;  %5160 = vpow2.f32 %v4182_v14  ;;  %v2029_v59 = vpop.f32.mrf.mxu1 }
 0x2ca   :  { %v5137_v47 = vpop.eup %5136  ;;  %5162 = vrcp.f32 %v2607_v43  ;;  %v4184_v34 = vmul.f32 -1.442695, %v7095_v49  ;;  %v7099_v39 = vadd.f32 %v2029_v59, %v6568_v41  ;;  %v2984_v4 = vmul.f32 %v5135_v46, %v7023_v5 }
 0x2cb   :  { %v5139_v13 = vpop.eup %5138  ;;  %v2608_v57 = vadd.f32 1.0, %v5137_v47  ;;  %5164 = vpow2.f32 %v4183_v11  ;;  %v2031_v63 = vpop.f32.mrf.mxu1 }
 0x2cc   :  { %v5141_v40 = vpop.eup %5140  ;;  %v2609_v9 = vadd.f32 1.0, %v5139_v13  ;;  %5166 = vpow2.f32 %v4184_v34  ;;  %v4185_v22 = vmul.f32 -1.442695, %v7099_v39  ;;  %v7103_v12 = vadd.f32 %v2031_v63, %v6558_v53 }
 0x2cd   :  { %v5143_v0 = vpop.eup %5142  ;;  %5168 = vrcp.f32 %v2608_v57  ;;  %v2033_v38 = vpop.f32.mrf.mxu1  ;;  %v2985_v21 = vmul.f32 %v5141_v40, %v7027_v1 }
 0x2ce   :  { %v5145_v30 = vpop.eup %5144  ;;  %5170 = vrcp.f32 %v2609_v9  ;;  %v4186_v29 = vmul.f32 -1.442695, %v7103_v12  ;;  %v7107_v32 = vadd.f32 %v2033_v38, %v6568_v41  ;;  %v2986_v28 = vmul.f32 %v5143_v0, %v7031_v62 }
 0x2cf   :  { %v5147_v45 = vpop.eup %5146  ;;  %v2610_v20 = vadd.f32 1.0, %v5145_v30  ;;  %5172 = vpow2.f32 %v4185_v22  ;;  %v2037_v8 = vpop.f32.mrf.mxu1 }
 0x2d0   :  { %v5149_v42 = vpop.eup %5148  ;;  %v2611_v51 = vadd.f32 1.0, %v5147_v45  ;;  %5174 = vpow2.f32 %v4186_v29  ;;  %v4187_v61 = vmul.f32 -1.442695, %v7107_v32  ;;  %v7114_v6 = vadd.f32 %v2037_v8, %v6558_v53 }
 0x2d1   :  { %v5151_v33 = vpop.eup %5150  ;;  %v2987_v60 = vmul.f32 %v5149_v42, %v7035_v50  ;;  %5176 = vrcp.f32 %v2610_v20  ;;  %v2039_v19 = vpop.f32.mrf.mxu1  ;;  %v3082_v26 = vpack.c.bf16 %v2986_v28, %v2984_v4 }
 0x2d2   :  { %v5153_v55 = vpop.eup %5152  ;;  %5178 = vrcp.f32 %v2611_v51  ;;  %v2612_v36 = vadd.f32 1.0, %v5151_v33  ;;  %v7118_v62 = vadd.f32 %v2039_v19, %v6568_v41  ;;  %v4188_v37 = vmul.f32 -1.442695, %v7114_v6 }
 0x2d3   :  { %v5155_v24 = vpop.eup %5154  ;;  %5180 = vpow2.f32 %v4187_v61  ;;  %v2041_v1 = vpop.f32.mrf.mxu1  ;;  %v3083_v2 = vpack.c.bf16 %v2987_v60, %v2985_v21  ;;  %v2988_v40 = vmul.f32 %v5153_v55, %v7042_v17 }
 0x2d4   :  { %v5157_v50 = vpop.eup %5156  ;;  %5182 = vrcp.f32 %v2612_v36  ;;  %v4189_v52 = vmul.f32 -1.442695, %v7118_v62  ;;  %v7123_v15 = vadd.f32 %v2041_v1, %v6558_v53  ;;  %v2989_v11 = vmul.f32 %v5155_v24, %v7046_v25 }
 0x2d5   :  { %v5159_v5 = vpop.eup %5158  ;;  %v2613_v10 = vadd.f32 1.0, %v5157_v50  ;;  %5184 = vpow2.f32 %v4188_v37  ;;  %3403 = vmatprep.mubr.bf16.mxu0 %v3083_v2  ;;  %v2043_v48 = vpop.f32.mrf.mxu1 }
 0x2d6   :  { %v5161_v14 = vpop.eup %5160  ;;  %5186 = vpow2.f32 %v4189_v52  ;;  %v4190_v58 = vmul.f32 -1.442695, %v7123_v15  ;;  %v7127_v56 = vadd.f32 %v2043_v48, %v6568_v41  ;;  %3404 = vmatmul.mubr.bf16.gmra.mxu0 %v3082_v26  ;;  %v2990_v34 = vmul.f32 %v5159_v5, %v7051_v16 }
 0x2d7   :  { %v5163_v43 = vpop.eup %5162  ;;  %5188 = vrcp.f32 %v2613_v10  ;;  %v2614_v46 = vadd.f32 1.0, %v5161_v14  ;;  %v2047_v59 = vpop.f32.mrf.mxu1 }
 0x2d8   :  { %v5165_v47 = vpop.eup %5164  ;;  %v2991_v13 = vmul.f32 %v5163_v43, %v7055_v31  ;;  %5190 = vpow2.f32 %v4190_v58  ;;  %v4191_v57 = vmul.f32 -1.442695, %v7127_v56  ;;  %v7135_v22 = vadd.f32 %v2047_v59, %v6558_v53 }
 0x2d9   :  { %v5167_v63 = vpop.eup %5166  ;;  %5192 = vrcp.f32 %v2614_v46  ;;  %v2615_v9 = vadd.f32 1.0, %v5165_v47  ;;  %v2049_v25 = vpop.f32.mrf.mxu1  ;;  %v3084_v17 = vpack.c.bf16 %v2990_v34, %v2988_v40 }
 0x2da   :  { %v5169_v0 = vpop.eup %5168  ;;  %v2616_v38 = vadd.f32 1.0, %v5167_v63  ;;  %5194 = vpow2.f32 %v4191_v57  ;;  %v7138_v30 = vadd.f32 %v2049_v25, %v6568_v41  ;;  %v3085_v16 = vpack.c.bf16 %v2991_v13, %v2989_v11 }
 0x2db   :  { %v5171_v31 = vpop.eup %5170  ;;  %5196 = vrcp.f32 %v2615_v9  ;;  %v4192_v29 = vmul.f32 -1.442695, %v7135_v22  ;;  %v2051_v45 = vpop.f32.mrf.mxu1  ;;  %v2992_v26 = vmul.f32 %v5169_v0, %v7059_v7 }
 0x2dc   :  { %v5173_v20 = vpop.eup %5172  ;;  %5198 = vrcp.f32 %v2616_v38  ;;  %v4193_v8 = vmul.f32 -1.442695, %v7138_v30  ;;  %v7143_v42 = vadd.f32 %v2051_v45, %v6558_v53  ;;  %3411 = vmatprep.mubr.bf16.mxu0 %v3085_v16  ;;  %v2993_v52 = vmul.f32 %v5171_v31, %v7063_v23 }
 0x2dd   :  { %v5175_v28 = vpop.eup %5174  ;;  %v2617_v51 = vadd.f32 1.0, %v5173_v20  ;;  %5200 = vpow2.f32 %v4192_v29  ;;  %v2053_v61 = vpop.f32.mrf.mxu1 }
 0x2de   :  { %v5177_v33 = vpop.eup %5176  ;;  %v2618_v21 = vadd.f32 1.0, %v5175_v28  ;;  %5202 = vpow2.f32 %v4193_v8  ;;  %v4194_v60 = vmul.f32 -1.442695, %v7143_v42  ;;  %v7147_v19 = vadd.f32 %v2053_v61, %v6568_v41  ;;  %3412 = vmatmul.mubr.bf16.gmra.mxu0 %v3084_v17 }
 0x2df   :  { %v5179_v55 = vpop.eup %5178  ;;  %v2994_v4 = vmul.f32 %v5177_v33, %v7067_v44  ;;  %5204 = vrcp.f32 %v2617_v51  ;;  %v2057_v36 = vpop.f32.mrf.mxu1 }
 0x2e0   :  { %v5181_v24 = vpop.eup %5180  ;;  %v2995_v37 = vmul.f32 %v5179_v55, %v7071_v54  ;;  %5206 = vrcp.f32 %v2618_v21  ;;  %v4195_v1 = vmul.f32 -1.442695, %v7147_v19  ;;  %v7153_v2 = vadd.f32 %v2057_v36, %v6558_v53 }
 0x2e1   :  { %v5183_v50 = vpop.eup %5182  ;;  %v2619_v5 = vadd.f32 1.0, %v5181_v24  ;;  %5208 = vpow2.f32 %v4194_v60  ;;  %v2059_v10 = vpop.f32.mrf.mxu1  ;;  %v3086_v58 = vpack.c.bf16 %v2994_v4, %v2992_v26 }
 0x2e2   :  { %v5185_v44 = vpop.eup %5184  ;;  %5210 = vpow2.f32 %v4195_v1  ;;  %v4196_v48 = vmul.f32 -1.442695, %v7153_v2  ;;  %v7159_v54 = vadd.f32 %v2059_v10, %v6568_v41  ;;  %v3087_v46 = vpack.c.bf16 %v2995_v37, %v2993_v52 }
 0x2e3   :  { %v5187_v14 = vpop.eup %5186  ;;  %5212 = vrcp.f32 %v2619_v5  ;;  %v2620_v43 = vadd.f32 1.0, %v5185_v44  ;;  %v2061_v11 = vpop.f32.mrf.mxu1  ;;  %v2996_v17 = vmul.f32 %v5183_v50, %v7075_v35 }
 0x2e4   :  { %v5189_v59 = vpop.eup %5188  ;;  %v2621_v7 = vadd.f32 1.0, %v5187_v14  ;;  %5214 = vpow2.f32 %v4196_v48  ;;  %v4197_v23 = vmul.f32 -1.442695, %v7159_v54  ;;  %v7163_v47 = vadd.f32 %v2061_v11, %v6558_v53  ;;  %3419 = vmatprep.mubr.bf16.mxu0 %v3087_v46 }
 0x2e5   :  { %v5191_v34 = vpop.eup %5190  ;;  %5216 = vrcp.f32 %v2620_v43  ;;  %v2063_v13 = vpop.f32.mrf.mxu1  ;;  %v2997_v8 = vmul.f32 %v5189_v59, %v7083_v3 }
 0x2e6   :  { %v5193_v57 = vpop.eup %5192  ;;  %5218 = vrcp.f32 %v2621_v7  ;;  %v2622_v63 = vadd.f32 1.0, %v5191_v34  ;;  %v4198_v40 = vmul.f32 -1.442695, %v7163_v47  ;;  %v7167_v9 = vadd.f32 %v2063_v13, %v6568_v41  ;;  %3420 = vmatmul.mubr.bf16.gmra.mxu0 %v3086_v58 }
 0x2e7   :  { %v5195_v25 = vpop.eup %5194  ;;  %v2998_v0 = vmul.f32 %v5193_v57, %v7086_v18  ;;  %5220 = vpow2.f32 %v4197_v23  ;;  %v2067_v38 = vpop.f32.mrf.mxu1 }
 0x2e8   :  { %v5197_v16 = vpop.eup %5196  ;;  %5222 = vrcp.f32 %v2622_v63  ;;  %v2623_v31 = vadd.f32 1.0, %v5195_v25  ;;  %v4199_v29 = vmul.f32 -1.442695, %v7167_v9  ;;  %v7172_v45 = vadd.f32 %v2067_v38, %v6558_v53 }
 0x2e9   :  { %v5199_v20 = vpop.eup %5198  ;;  %v2999_v28 = vmul.f32 %v5197_v16, %v7091_v27  ;;  %5224 = vpow2.f32 %v4198_v40  ;;  %v2069_v51 = vpop.f32.mrf.mxu1  ;;  %v3088_v60 = vpack.c.bf16 %v2998_v0, %v2996_v17 }
 0x2ea   :  { %v5201_v18 = vpop.eup %5200  ;;  %5226 = vrcp.f32 %v2623_v31  ;;  %v4200_v61 = vmul.f32 -1.442695, %v7172_v45  ;;  %v7179_v33 = vadd.f32 %v2069_v51, %v6568_v41  ;;  %v3000_v13 = vmul.f32 %v5199_v20, %v7095_v49 }
 0x2eb   :  { %v5203_v21 = vpop.eup %5202  ;;  %v2624_v55 = vadd.f32 1.0, %v5201_v18  ;;  %5228 = vpow2.f32 %v4199_v29  ;;  %v2071_v4 = vpop.f32.mrf.mxu1  ;;  %v3089_v36 = vpack.c.bf16 %v2999_v28, %v2997_v8 }
 0x2ec   :  { %v5205_v35 = vpop.eup %5204  ;;  %v2625_v24 = vadd.f32 1.0, %v5203_v21  ;;  %5230 = vpow2.f32 %v4200_v61  ;;  %v4201_v3 = vmul.f32 -1.442695, %v7179_v33  ;;  %v7183_v27 = vadd.f32 %v2071_v4, %v6558_v53 }
 0x2ed   :  { %v5207_v37 = vpop.eup %5206  ;;  %5232 = vrcp.f32 %v2624_v55  ;;  %3427 = vmatprep.mubr.bf16.mxu0 %v3089_v36  ;;  %v2073_v1 = vpop.f32.mrf.mxu1  ;;  %v3001_v46 = vmul.f32 %v5205_v35, %v7099_v39 }
 0x2ee   :  { %v5209_v50 = vpop.eup %5208  ;;  %5234 = vrcp.f32 %v2625_v24  ;;  %v4202_v26 = vmul.f32 -1.442695, %v7183_v27  ;;  %v7187_v52 = vadd.f32 %v2073_v1, %v6568_v41  ;;  %3428 = vmatmul.mubr.bf16.gmra.mxu0 %v3088_v60  ;;  %v3002_v14 = vmul.f32 %v5207_v37, %v7103_v12 }
 0x2ef   :  { %v5211_v5 = vpop.eup %5210  ;;  %v2626_v10 = vadd.f32 1.0, %v5209_v50  ;;  %5236 = vpow2.f32 %v4201_v3  ;;  %v2077_v44 = vpop.f32.mrf.mxu1 }
 0x2f0   :  { %v5213_v48 = vpop.eup %5212  ;;  %v2627_v58 = vadd.f32 1.0, %v5211_v5  ;;  %5238 = vpow2.f32 %v4202_v26  ;;  %v4203_v43 = vmul.f32 -1.442695, %v7187_v52  ;;  %v7194_v7 = vadd.f32 %v2077_v44, %v6558_v53 }
 0x2f1   :  { %v5215_v11 = vpop.eup %5214  ;;  %v3003_v59 = vmul.f32 %v5213_v48, %v7107_v32  ;;  %5240 = vrcp.f32 %v2626_v10  ;;  %v2079_v23 = vpop.f32.mrf.mxu1  ;;  %v3090_v0 = vpack.c.bf16 %v3002_v14, %v3000_v13 }
 0x2f2   :  { %v5217_v34 = vpop.eup %5216  ;;  %5242 = vrcp.f32 %v2627_v58  ;;  %v2628_v57 = vadd.f32 1.0, %v5215_v11  ;;  %v7198_v12 = vadd.f32 %v2079_v23, %v6568_v41  ;;  %v4204_v40 = vmul.f32 -1.442695, %v7194_v7 }
 0x2f3   :  { %v5219_v63 = vpop.eup %5218  ;;  %5244 = vpow2.f32 %v4203_v43  ;;  %v2081_v39 = vpop.f32.mrf.mxu1  ;;  %v3091_v25 = vpack.c.bf16 %v3003_v59, %v3001_v46  ;;  %v3004_v35 = vmul.f32 %v5217_v34, %v7114_v6 }
 0x2f4   :  { %v5221_v32 = vpop.eup %5220  ;;  %5246 = vrcp.f32 %v2628_v57  ;;  %v4205_v38 = vmul.f32 -1.442695, %v7198_v12  ;;  %v7203_v16 = vadd.f32 %v2081_v39, %v6558_v53  ;;  %v3005_v51 = vmul.f32 %v5219_v63, %v7118_v62 }
 0x2f5   :  { %v5223_v49 = vpop.eup %5222  ;;  %v2629_v31 = vadd.f32 1.0, %v5221_v32  ;;  %5248 = vpow2.f32 %v4204_v40  ;;  %3435 = vmatprep.mubr.bf16.mxu0 %v3091_v25  ;;  %v2083_v29 = vpop.f32.mrf.mxu1 }
 0x2f6   :  { %v5225_v20 = vpop.eup %5224  ;;  %5250 = vpow2.f32 %v4205_v38  ;;  %v4206_v17 = vmul.f32 -1.442695, %v7203_v16  ;;  %v7207_v8 = vadd.f32 %v2083_v29, %v6568_v41  ;;  %3436 = vmatmul.mubr.bf16.gmra.mxu0 %v3090_v0  ;;  %v3006_v60 = vmul.f32 %v5223_v49, %v7123_v15  ;;  %v5390_v38 = vld [vmem:[#allocation2] sm:$0xff] }
 0x2f7   :  { %v5227_v28 = vpop.eup %5226  ;;  %5252 = vrcp.f32 %v2629_v31  ;;  %v2630_v18 = vadd.f32 1.0, %v5225_v20  ;;  %v2087_v61 = vpop.f32.mrf.mxu1 }
 0x2f8   :  { %v5229_v21 = vpop.eup %5228  ;;  %v3007_v55 = vmul.f32 %v5227_v28, %v7127_v56  ;;  %5254 = vpow2.f32 %v4206_v17  ;;  %v4207_v4 = vmul.f32 -1.442695, %v7207_v8  ;;  %v7215_v3 = vadd.f32 %v2087_v61, %v6558_v53  ;;  %v7223_v56 = vld [vmem:[%s7721_s6] ss:$0 sm:$0xff] }
 0x2f9   :  { %v5231_v36 = vpop.eup %5230  ;;  %5256 = vrcp.f32 %v2630_v18  ;;  %v2631_v24 = vadd.f32 1.0, %v5229_v21  ;;  %v2089_v62 = vpop.f32.mrf.mxu1  ;;  %v3092_v48 = vpack.c.bf16 %v3006_v60, %v3004_v35 }
 0x2fa   :  { %v5233_v37 = vpop.eup %5232  ;;  %v2632_v1 = vadd.f32 1.0, %v5231_v36  ;;  %5258 = vpow2.f32 %v4207_v4  ;;  %v7218_v50 = vadd.f32 %v2089_v62, %v6568_v41  ;;  %v3093_v15 = vpack.c.bf16 %v3007_v55, %v3005_v51 }
 0x2fb   :  { %v5235_v26 = vpop.eup %5234  ;;  %5260 = vrcp.f32 %v2631_v24  ;;  %v4208_v6 = vmul.f32 -1.442695, %v7215_v3  ;;  %v2091_v5 = vpop.f32.mrf.mxu1  ;;  %v3008_v39 = vmul.f32 %v5233_v37, %v7135_v22 }
 0x2fc   :  { %v3285_v10 = vpop.f32.mrf.mxu0  ;;  %v5237_v44 = vpop.eup %5236  ;;  %5262 = vrcp.f32 %v2632_v1  ;;  %v4209_v14 = vmul.f32 -1.442695, %v7218_v50  ;;  %v7228_v58 = vadd.f32 %v2091_v5, %v6558_v53  ;;  %3443 = vmatprep.mubr.bf16.mxu0 %v3093_v15  ;;  %v3009_v51 = vmul.f32 %v5235_v26, %v7138_v30 }
 0x2fd   :  { %v5239_v43 = vpop.eup %5238  ;;  %v2633_v11 = vadd.f32 1.0, %v5237_v44  ;;  %5264 = vpow2.f32 %v4208_v6  ;;  %v2093_v46 = vpop.f32.mrf.mxu1  ;;  %v3286_v59 = vadd.f32 %v7223_v56, %v3285_v10 }
 0x2fe   :  { %v3287_v23 = vpop.f32.mrf.mxu0  ;;  %v5241_v34 = vpop.eup %5240  ;;  %v2634_v13 = vadd.f32 1.0, %v5239_v43  ;;  %5266 = vpow2.f32 %v4209_v14  ;;  %v4210_v57 = vmul.f32 -1.442695, %v7228_v58  ;;  %v7233_v63 = vadd.f32 %v2093_v46, %v6568_v41  ;;  %3444 = vmatmul.mubr.bf16.gmra.mxu0 %v3092_v48  ;;  %v5391_v14 = vld [vmem:[#allocation2 + $0x8] sm:$0xff] }
 0x2ff   :  { %v5243_v40 = vpop.eup %5242  ;;  %v3010_v25 = vmul.f32 %v5241_v34, %v7143_v42  ;;  %5268 = vrcp.f32 %v2633_v11  ;;  %v2097_v32 = vpop.f32.mrf.mxu1  ;;  %v3540_v49 = vsub.f32 %v3286_v59, %v5390_v38 }
 0x300   :  { %v3288_v0 = vpop.f32.mrf.mxu0  ;;  %v5245_v31 = vpop.eup %5244  ;;  %v3011_v29 = vmul.f32 %v5243_v40, %v7147_v19  ;;  %5270 = vrcp.f32 %v2634_v13  ;;  %v4211_v20 = vmul.f32 -1.442695, %v7233_v63  ;;  %v7240_v17 = vadd.f32 %v2097_v32, %v6558_v53 }
 0x301   :  { %v5247_v28 = vpop.eup %5246  ;;  %v2635_v22 = vadd.f32 1.0, %v5245_v31  ;;  %5272 = vpow2.f32 %v4210_v57  ;;  %v2099_v42 = vpop.f32.mrf.mxu1  ;;  %v3289_v18 = vadd.f32 %v7223_v56, %v3288_v0  ;;  %v3094_v60 = vpack.c.bf16 %v3010_v25, %v3008_v39  ;;  %v5392_v39 = vld [vmem:[#allocation2 + $0x10] sm:$0xff] }
 0x302   :  { %v3290_v61 = vpop.f32.mrf.mxu0  ;;  %v5249_v21 = vpop.eup %5248  ;;  %5274 = vpow2.f32 %v4211_v20  ;;  %v4212_v19 = vmul.f32 -1.442695, %v7240_v17  ;;  %v7246_v55 = vadd.f32 %v2099_v42, %v6568_v41  ;;  %v3095_v24 = vpack.c.bf16 %v3011_v29, %v3009_v51 }
 0x303   :  { %v5251_v4 = vpop.eup %5250  ;;  %5276 = vrcp.f32 %v2635_v22  ;;  %v2636_v36 = vadd.f32 1.0, %v5249_v21  ;;  %v2101_v35 = vpop.f32.mrf.mxu1  ;;  %v3604_v30 = vmul.f32 %v3540_v49, %v3540_v49  ;;  %v7253_v5 = vmul.f32 %v5247_v28, %v7153_v2 }
 0x304   :  { %v3293_v62 = vpop.f32.mrf.mxu0  ;;  %v5253_v37 = vpop.eup %5252  ;;  %v2637_v1 = vadd.f32 1.0, %v5251_v4  ;;  %5278 = vpow2.f32 %v4212_v19  ;;  %v4213_v15 = vmul.f32 -1.442695, %v7246_v55  ;;  %v7250_v26 = vadd.f32 %v2101_v35, %v6558_v53  ;;  %3451 = vmatprep.mubr.bf16.mxu0 %v3095_v24 }
 0x305   :  { %v5255_v6 = vpop.eup %5254  ;;  %5280 = vrcp.f32 %v2636_v36  ;;  %v2103_v10 = vpop.f32.mrf.mxu1  ;;  %3668 = vadd.xlane.f32.xlu0 %v3604_v30  ;;  %v3294_v44 = vadd.f32 %v7223_v56, %v3293_v62  ;;  %v3541_v43 = vsub.f32 %v3289_v18, %v5391_v14  ;;  %v3013_v29 = vmul.f32 %v5253_v37, %v7159_v54 }
 0x306   :  { %v3295_v48 = vpop.f32.mrf.mxu0  ;;  %v5257_v11 = vpop.eup %5256  ;;  %5282 = vrcp.f32 %v2637_v1  ;;  %v2638_v46 = vadd.f32 1.0, %v5255_v6  ;;  %v4214_v59 = vmul.f32 -1.442695, %v7250_v26  ;;  %v7258_v23 = vadd.f32 %v2103_v10, %v6568_v41  ;;  %3452 = vmatmul.mubr.bf16.gmra.mxu0 %v3094_v60 }
 0x307   :  { %v5259_v2 = vpop.eup %5258  ;;  %v3014_v34 = vmul.f32 %v5257_v11, %v7163_v47  ;;  %5284 = vpow2.f32 %v4213_v15  ;;  %v2107_v13 = vpop.f32.mrf.mxu1  ;;  %v3605_v57 = vmul.f32 %v3541_v43, %v3541_v43  ;;  %v3542_v25 = vsub.f32 %v3294_v44, %v5392_v39 }
 0x308   :  { %v3296_v40 = vpop.f32.mrf.mxu0  ;;  %v5261_v32 = vpop.eup %5260  ;;  %5286 = vrcp.f32 %v2638_v46  ;;  %v2639_v0 = vadd.f32 1.0, %v5259_v2  ;;  %v4215_v38 = vmul.f32 -1.442695, %v7258_v23  ;;  %v7263_v49 = vadd.f32 %v2107_v13, %v6558_v53 }
 0x309   :  { %v5263_v31 = vpop.eup %5262  ;;  %v3015_v20 = vmul.f32 %v5261_v32, %v7167_v9  ;;  %5288 = vpow2.f32 %v4214_v59  ;;  %v2109_v47 = vpop.f32.mrf.mxu1  ;;  %3670 = vadd.xlane.f32.xlu0 %v3605_v57  ;;  %v3297_v28 = vadd.f32 %v7223_v56, %v3296_v40  ;;  %v3096_v42 = vpack.c.bf16 %v3014_v34, %v7253_v5  ;;  %v5393_v5 = vld [vmem:[#allocation2 + $0x18] sm:$0xff]  ;;  %v5394_v34 = vld [vmem:[#allocation2 + $0x20] sm:$0xff] }
 0x30a   :  { %v3298_v51 = vpop.f32.mrf.mxu0  ;;  %v5265_v22 = vpop.eup %5264  ;;  %5290 = vrcp.f32 %v2639_v0  ;;  %v4216_v18 = vmul.f32 -1.442695, %v7263_v49  ;;  %v7271_v61 = vadd.f32 %v2109_v47, %v6568_v41  ;;  %v3606_v19 = vmul.f32 %v3542_v25, %v3542_v25 }
 0x30b   :  { %v5267_v21 = vpop.eup %5266  ;;  %v2640_v60 = vadd.f32 1.0, %v5265_v22  ;;  %5292 = vpow2.f32 %v4215_v38  ;;  %v2111_v54 = vpop.f32.mrf.mxu1  ;;  %v3097_v9 = vpack.c.bf16 %v3015_v20, %v3013_v29  ;;  %v7278_v37 = vmul.f32 %v5263_v31, %v7172_v45 }
 0x30c   :  { %v3301_v4 = vpop.f32.mrf.mxu0  ;;  %v5269_v36 = vpop.eup %5268  ;;  %v2641_v35 = vadd.f32 1.0, %v5267_v21  ;;  %5294 = vpow2.f32 %v4216_v18  ;;  %v4217_v24 = vmul.f32 -1.442695, %v7271_v61  ;;  %v7275_v30 = vadd.f32 %v2111_v54, %v6558_v53  ;;  %3672 = vadd.xlane.f32.xlu1 %v3606_v19 }
 0x30d   :  { %v5271_v62 = vpop.eup %5270  ;;  %5296 = vrcp.f32 %v2640_v60  ;;  %3459 = vmatprep.mubr.bf16.mxu0 %v3097_v9  ;;  %v2113_v1 = vpop.f32.mrf.mxu1  ;;  %v3302_v15 = vadd.f32 %v7223_v56, %v3301_v4  ;;  %v3543_v10 = vsub.f32 %v3297_v28, %v5393_v5  ;;  %v3017_v40 = vmul.f32 %v5269_v36, %v7179_v33 }
 0x30e   :  { %v3303_v6 = vpop.f32.mrf.mxu0  ;;  %v5273_v44 = vpop.eup %5272  ;;  %v3018_v48 = vmul.f32 %v5271_v62, %v7183_v27  ;;  %5298 = vrcp.f32 %v2641_v35  ;;  %v4218_v14 = vmul.f32 -1.442695, %v7275_v30  ;;  %v7284_v43 = vadd.f32 %v2113_v1, %v6568_v41  ;;  %3460 = vmatmul.mubr.bf16.gmra.mxu0 %v3096_v42 }
 0x30f   :  { %v5275_v45 = vpop.eup %5274  ;;  %v2642_v11 = vadd.f32 1.0, %v5273_v44  ;;  %5300 = vpow2.f32 %v4217_v24  ;;  %v2117_v46 = vpop.f32.mrf.mxu1  ;;  %v3607_v59 = vmul.f32 %v3543_v10, %v3543_v10  ;;  %v3544_v13 = vsub.f32 %v3302_v15, %v5394_v34 }
 0x310   :  { %v3304_v2 = vpop.f32.mrf.mxu0  ;;  %v5277_v57 = vpop.eup %5276  ;;  %v2643_v39 = vadd.f32 1.0, %v5275_v45  ;;  %5302 = vpow2.f32 %v4218_v14  ;;  %v4219_v27 = vmul.f32 -1.442695, %v7284_v43  ;;  %v7290_v0 = vadd.f32 %v2117_v46, %v6558_v53 }
 0x311   :  { %v5279_v25 = vpop.eup %5278  ;;  %v3019_v32 = vmul.f32 %v5277_v57, %v7187_v52  ;;  %5304 = vrcp.f32 %v2642_v11  ;;  %v2119_v38 = vpop.f32.mrf.mxu1  ;;  %3674 = vadd.xlane.f32.xlu1 %v3607_v59  ;;  %v3305_v31 = vadd.f32 %v7223_v56, %v3304_v2  ;;  %v3608_v28 = vmul.f32 %v3544_v13, %v3544_v13  ;;  %v5396_v11 = vld [vmem:[#allocation2 + $0x30] sm:$0xff] }
 0x312   :  { %v3306_v29 = vpop.f32.mrf.mxu0  ;;  %v5281_v20 = vpop.eup %5280  ;;  %5306 = vrcp.f32 %v2643_v39  ;;  %v2644_v47 = vadd.f32 1.0, %v5279_v25  ;;  %v7294_v33 = vadd.f32 %v2119_v38, %v6568_v41  ;;  %v3098_v22 = vpack.c.bf16 %v3018_v48, %v7278_v37  ;;  %v5395_v37 = vld [vmem:[#allocation2 + $0x28] sm:$0xff] }
 0x313   :  { %v5283_v51 = vpop.eup %5282  ;;  %5308 = vpow2.f32 %v4219_v27  ;;  %v4220_v52 = vmul.f32 -1.442695, %v7290_v0  ;;  %v2121_v42 = vpop.f32.mrf.mxu1  ;;  %v3099_v18 = vpack.c.bf16 %v3019_v32, %v3017_v40  ;;  %v7299_v54 = vmul.f32 %v5281_v20, %v7194_v7  ;;  %3676 = vadd.xlane.f32.xlu0 %v3608_v28 }
 0x314   :  { %v3309_v21 = vpop.f32.mrf.mxu0  ;;  %v5285_v60 = vpop.eup %5284  ;;  %5310 = vrcp.f32 %v2644_v47  ;;  %v4221_v9 = vmul.f32 -1.442695, %v7294_v33  ;;  %v7303_v19 = vadd.f32 %v2121_v42, %v6558_v53  ;;  %v3545_v1 = vsub.f32 %v3305_v31, %v5395_v37 }
 0x315   :  { %v5287_v4 = vpop.eup %5286  ;;  %v2645_v36 = vadd.f32 1.0, %v5285_v60  ;;  %5312 = vpow2.f32 %v4220_v52  ;;  %3467 = vmatprep.mubr.bf16.mxu0 %v3099_v18  ;;  %v2123_v35 = vpop.f32.mrf.mxu1  ;;  %v3310_v24 = vadd.f32 %v7223_v56, %v3309_v21  ;;  %v3021_v2 = vmul.f32 %v5283_v51, %v7198_v12 }
 0x316   :  { %v3311_v62 = vpop.f32.mrf.mxu0  ;;  %v5289_v15 = vpop.eup %5288  ;;  %v3022_v7 = vmul.f32 %v5287_v4, %v7203_v16  ;;  %5314 = vpow2.f32 %v4221_v9  ;;  %v4222_v6 = vmul.f32 -1.442695, %v7303_v19  ;;  %v7309_v5 = vadd.f32 %v2123_v35, %v6568_v41  ;;  %3468 = vmatmul.mubr.bf16.gmra.mxu0 %v3098_v22 }
 0x317   :  { %v5291_v10 = vpop.eup %5290  ;;  %5316 = vrcp.f32 %v2645_v36  ;;  %v2646_v44 = vadd.f32 1.0, %v5289_v15  ;;  %v2127_v48 = vpop.f32.mrf.mxu1  ;;  %v3609_v14 = vmul.f32 %v3545_v1, %v3545_v1  ;;  %v3546_v46 = vsub.f32 %v3310_v24, %v5396_v11  ;;  %v5397_v36 = vld [vmem:[#allocation2 + $0x38] sm:$0xff] }
 0x318   :  { %v3312_v45 = vpop.f32.mrf.mxu0  ;;  %v5293_v59 = vpop.eup %5292  ;;  %v3023_v16 = vmul.f32 %v5291_v10, %v7207_v8  ;;  %5318 = vpow2.f32 %v4222_v6  ;;  %v4223_v34 = vmul.f32 -1.442695, %v7309_v5  ;;  %v7315_v40 = vadd.f32 %v2127_v48, %v6558_v53 }
 0x319   :  { %v5295_v13 = vpop.eup %5294  ;;  %5320 = vrcp.f32 %v2646_v44  ;;  %v2647_v57 = vadd.f32 1.0, %v5293_v59  ;;  %v2129_v39 = vpop.f32.mrf.mxu1  ;;  %3678 = vadd.xlane.f32.xlu1 %v3609_v14  ;;  %v3313_v27 = vadd.f32 %v7223_v56, %v3312_v45  ;;  %v3100_v29 = vpack.c.bf16 %v3022_v7, %v7299_v54  ;;  %v5398_v44 = vld [vmem:[#allocation2 + $0x40] sm:$0xff] }
 0x31a   :  { %v3314_v25 = vpop.f32.mrf.mxu0  ;;  %v5297_v32 = vpop.eup %5296  ;;  %v2648_v38 = vadd.f32 1.0, %v5295_v13  ;;  %5322 = vpow2.f32 %v4223_v34  ;;  %v7319_v12 = vadd.f32 %v2129_v39, %v6568_v41  ;;  %v3101_v8 = vpack.c.bf16 %v3023_v16, %v3021_v2 }
 0x31b   :  { %v5299_v31 = vpop.eup %5298  ;;  %5324 = vrcp.f32 %v2647_v57  ;;  %v4224_v20 = vmul.f32 -1.442695, %v7315_v40  ;;  %v2131_v47 = vpop.f32.mrf.mxu1  ;;  %v3610_v28 = vmul.f32 %v3546_v46, %v3546_v46  ;;  %v7324_v52 = vmul.f32 %v5297_v32, %v7215_v3 }
 0x31c   :  { %v3317_v51 = vpop.f32.mrf.mxu0  ;;  %v5301_v22 = vpop.eup %5300  ;;  %5326 = vrcp.f32 %v2648_v38  ;;  %v4225_v42 = vmul.f32 -1.442695, %v7319_v12  ;;  %v7328_v18 = vadd.f32 %v2131_v47, %v6558_v53  ;;  %3475 = vmatprep.mubr.bf16.mxu0 %v3101_v8  ;;  %v3547_v35 = vsub.f32 %v3313_v27, %v5397_v36 }
 0x31d   :  { %v5303_v21 = vpop.eup %5302  ;;  %v2649_v60 = vadd.f32 1.0, %v5301_v22  ;;  %5328 = vpow2.f32 %v4224_v20  ;;  %v2133_v54 = vpop.f32.mrf.mxu1  ;;  %3680 = vadd.xlane.f32.xlu0 %v3610_v28  ;;  %v3318_v9 = vadd.f32 %v7223_v56, %v3317_v51  ;;  %v3025_v2 = vmul.f32 %v5299_v31, %v7218_v50 }
 0x31e   :  { %v3319_v4 = vpop.f32.mrf.mxu0  ;;  %v5305_v24 = vpop.eup %5304  ;;  %v2650_v3 = vadd.f32 1.0, %v5303_v21  ;;  %5330 = vpow2.f32 %v4225_v42  ;;  %v4226_v62 = vmul.f32 -1.442695, %v7328_v18  ;;  %v7333_v37 = vadd.f32 %v2133_v54, %v6568_v41  ;;  %3476 = vmatmul.mubr.bf16.gmra.mxu0 %v3100_v29 }
 0x31f   :  { %v5307_v1 = vpop.eup %5306  ;;  %v3026_v15 = vmul.f32 %v5305_v24, %v7228_v58  ;;  %5332 = vrcp.f32 %v2649_v60  ;;  %v2137_v7 = vpop.f32.mrf.mxu1  ;;  %v3611_v6 = vmul.f32 %v3547_v35, %v3547_v35  ;;  %v3548_v48 = vsub.f32 %v3318_v9, %v5398_v44  ;;  %v5399_v60 = vld [vmem:[#allocation2 + $0x48] sm:$0xff] }
 0x320   :  { %v3320_v10 = vpop.f32.mrf.mxu0  ;;  %v5309_v14 = vpop.eup %5308  ;;  %v3027_v45 = vmul.f32 %v5307_v1, %v7233_v63  ;;  %5334 = vrcp.f32 %v2650_v3  ;;  %v4227_v11 = vmul.f32 -1.442695, %v7333_v37  ;;  %v7339_v46 = vadd.f32 %v2137_v7, %v6558_v53 }
 0x321   :  { %v5311_v59 = vpop.eup %5310  ;;  %v2651_v16 = vadd.f32 1.0, %v5309_v14  ;;  %5336 = vpow2.f32 %v4226_v62  ;;  %v2139_v58 = vpop.f32.mrf.mxu1  ;;  %3682 = vadd.xlane.f32.xlu1 %v3611_v6  ;;  %v3321_v34 = vadd.f32 %v7223_v56, %v3320_v10  ;;  %v3102_v39 = vpack.c.bf16 %v3026_v15, %v7324_v52  ;;  %v5400_v15 = vld [vmem:[#allocation2 + $0x50] sm:$0xff] }
 0x322   :  { %v3322_v13 = vpop.f32.mrf.mxu0  ;;  %v5313_v57 = vpop.eup %5312  ;;  %5338 = vpow2.f32 %v4227_v11  ;;  %v4228_v63 = vmul.f32 -1.442695, %v7339_v46  ;;  %v7346_v27 = vadd.f32 %v2139_v58, %v6568_v41  ;;  %v3103_v38 = vpack.c.bf16 %v3027_v45, %v3025_v2 }
 0x323   :  { %v5315_v25 = vpop.eup %5314  ;;  %5340 = vrcp.f32 %v2651_v16  ;;  %v2652_v32 = vadd.f32 1.0, %v5313_v57  ;;  %v2141_v50 = vpop.f32.mrf.mxu1  ;;  %v3612_v8 = vmul.f32 %v3548_v48, %v3548_v48  ;;  %v7353_v22 = vmul.f32 %v5311_v59, %v7240_v17 }
 0x324   :  { %v3325_v31 = vpop.f32.mrf.mxu0  ;;  %v5317_v29 = vpop.eup %5316  ;;  %v2653_v20 = vadd.f32 1.0, %v5315_v25  ;;  %5342 = vpow2.f32 %v4228_v63  ;;  %v4229_v47 = vmul.f32 -1.442695, %v7346_v27  ;;  %v7350_v28 = vadd.f32 %v2141_v50, %v6558_v53  ;;  %3483 = vmatprep.mubr.bf16.mxu0 %v3103_v38 }
 0x325   :  { %v5319_v51 = vpop.eup %5318  ;;  %5344 = vrcp.f32 %v2652_v32  ;;  %v2143_v52 = vpop.f32.mrf.mxu1  ;;  %3684 = vadd.xlane.f32.xlu0 %v3612_v8  ;;  %v3326_v42 = vadd.f32 %v7223_v56, %v3325_v31  ;;  %v3549_v54 = vsub.f32 %v3321_v34, %v5399_v60  ;;  %v3029_v45 = vmul.f32 %v5317_v29, %v7246_v55 }
 0x326   :  { %v3327_v21 = vpop.f32.mrf.mxu0  ;;  %v5321_v9 = vpop.eup %5320  ;;  %5346 = vrcp.f32 %v2653_v20  ;;  %v2654_v4 = vadd.f32 1.0, %v5319_v51  ;;  %v4230_v36 = vmul.f32 -1.442695, %v7350_v28  ;;  %v7358_v35 = vadd.f32 %v2143_v52, %v6568_v41  ;;  %3484 = vmatmul.mubr.bf16.gmra.mxu0 %v3102_v39  ;;  %v5401_v51 = vld [vmem:[#allocation2 + $0x58] sm:$0xff] }
 0x327   :  { %v5323_v17 = vpop.eup %5322  ;;  %v3030_v24 = vmul.f32 %v5321_v9, %v7250_v26  ;;  %5348 = vpow2.f32 %v4229_v47  ;;  %v2147_v3 = vpop.f32.mrf.mxu1  ;;  %v3613_v62 = vmul.f32 %v3549_v54, %v3549_v54  ;;  %v3550_v7 = vsub.f32 %v3326_v42, %v5400_v15 }
 0x328   :  { %v3328_v1 = vpop.f32.mrf.mxu0  ;;  %v5325_v6 = vpop.eup %5324  ;;  %5350 = vrcp.f32 %v2654_v4  ;;  %v2655_v10 = vadd.f32 1.0, %v5323_v17  ;;  %v4231_v44 = vmul.f32 -1.442695, %v7358_v35  ;;  %v7363_v48 = vadd.f32 %v2147_v3, %v6558_v53 }
 0x329   :  { %v5327_v14 = vpop.eup %5326  ;;  %v3031_v11 = vmul.f32 %v5325_v6, %v7258_v23  ;;  %5352 = vpow2.f32 %v4230_v36  ;;  %v2149_v26 = vpop.f32.mrf.mxu1  ;;  %3686 = vadd.xlane.f32.xlu1 %v3613_v62  ;;  %v3329_v59 = vadd.f32 %v7223_v56, %v3328_v1  ;;  %v3104_v58 = vpack.c.bf16 %v3030_v24, %v7353_v22  ;;  %v5402_v36 = vld [vmem:[#allocation2 + $0x60] sm:$0xff] }
 0x32a   :  { %v3330_v2 = vpop.f32.mrf.mxu0  ;;  %v5329_v16 = vpop.eup %5328  ;;  %5354 = vrcp.f32 %v2655_v10  ;;  %v4232_v34 = vmul.f32 -1.442695, %v7363_v48  ;;  %v7371_v13 = vadd.f32 %v2149_v26, %v6568_v41  ;;  %v3614_v63 = vmul.f32 %v3550_v7, %v3550_v7  ;;  %v5403_v26 = vld [vmem:[#allocation2 + $0x68] sm:$0xff] }
 0x32b   :  { %v5331_v57 = vpop.eup %5330  ;;  %v2656_v39 = vadd.f32 1.0, %v5329_v16  ;;  %5356 = vpow2.f32 %v4231_v44  ;;  %v2151_v55 = vpop.f32.mrf.mxu1  ;;  %v3105_v23 = vpack.c.bf16 %v3031_v11, %v3029_v45  ;;  %v3551_v22 = vsub.f32 %v3329_v59, %v5401_v51 }
 0x32c   :  { %v3333_v25 = vpop.f32.mrf.mxu0  ;;  %v5333_v32 = vpop.eup %5332  ;;  %v2657_v50 = vadd.f32 1.0, %v5331_v57  ;;  %5358 = vpow2.f32 %v4232_v34  ;;  %v4233_v38 = vmul.f32 -1.442695, %v7371_v13  ;;  %v7375_v8 = vadd.f32 %v2151_v55, %v6558_v53  ;;  %3688 = vadd.xlane.f32.xlu0 %v3614_v63 }
 0x32d   :  { %v5335_v31 = vpop.eup %5334  ;;  %5360 = vrcp.f32 %v2656_v39  ;;  %3491 = vmatprep.mubr.bf16.mxu0 %v3105_v23  ;;  %v2153_v29 = vpop.f32.mrf.mxu1  ;;  %v3334_v20 = vadd.f32 %v7223_v56, %v3333_v25  ;;  %v3033_v42 = vmul.f32 %v5333_v32, %v7271_v61  ;;  %v3615_v9 = vmul.f32 %v3551_v22, %v3551_v22 }
 0x32e   :  { %v3335_v47 = vpop.f32.mrf.mxu0  ;;  %v5337_v52 = vpop.eup %5336  ;;  %5362 = vrcp.f32 %v2657_v50  ;;  %v4234_v21 = vmul.f32 -1.442695, %v7375_v8  ;;  %v7381_v60 = vadd.f32 %v2153_v29, %v6568_v41  ;;  %3492 = vmatmul.mubr.bf16.gmra.mxu0 %v3104_v58  ;;  %v3034_v3 = vmul.f32 %v5335_v31, %v7275_v30 }
 0x32f   :  { %v5339_v53 = vpop.eup %5338  ;;  %v2658_v54 = vadd.f32 1.0, %v5337_v52  ;;  %5364 = vpow2.f32 %v4233_v38  ;;  %v3552_v17 = vsub.f32 %v3334_v20, %v5402_v36  ;;  %3690 = vadd.xlane.f32.xlu1 %v3615_v9  ;;  %v3032_v44 = vmul.f32 %v5327_v14, %v7263_v49  ;;  %v5404_v49 = vld [vmem:[#allocation2 + $0x70] sm:$0xff] }
 0x330   :  { %v3336_v4 = vpop.f32.mrf.mxu0  ;;  %v5341_v24 = vpop.eup %5340  ;;  %v2659_v62 = vadd.f32 1.0, %v5339_v53  ;;  %5366 = vpow2.f32 %v4234_v21  ;;  %v4235_v61 = vmul.f32 -1.442695, %v7381_v60 }
 0x331   :  { %v5343_v1 = vpop.eup %5342  ;;  %v3035_v15 = vmul.f32 %v5341_v24, %v7284_v43  ;;  %5368 = vrcp.f32 %v2658_v54  ;;  %v3337_v41 = vadd.f32 %v7223_v56, %v3336_v4  ;;  %v3616_v6 = vmul.f32 %v3552_v17, %v3552_v17 }
 0x332   :  { %v3338_v7 = vpop.f32.mrf.mxu0  ;;  %v5345_v10 = vpop.eup %5344  ;;  %5370 = vrcp.f32 %v2659_v62  ;;  %v3106_v16 = vpack.c.bf16 %v3034_v3, %v3032_v44  ;;  %v2660_v23 = vadd.f32 1.0, %v5343_v1 }
 0x333   :  { %v5347_v45 = vpop.eup %5346  ;;  %5372 = vpow2.f32 %v4235_v61  ;;  %v3107_v30 = vpack.c.bf16 %v3035_v15, %v3033_v42  ;;  %3692 = vadd.xlane.f32.xlu0 %v3616_v6  ;;  %v3553_v59 = vsub.f32 %v3337_v41, %v5403_v26  ;;  %v3036_v21 = vmul.f32 %v5345_v10, %v7290_v0  ;;  %v5406_v15 = vld [vmem:[#allocation2 + $0x80] sm:$0xff] }
 0x334   :  { %v3341_v11 = vpop.f32.mrf.mxu0  ;;  %v5349_v2 = vpop.eup %5348  ;;  %v3037_v25 = vmul.f32 %v5347_v45, %v7294_v33 }
 0x335   :  { %v3342_v43 = vadd.f32 %v7223_v56, %v3341_v11  ;;  %v5351_v58 = vpop.eup %5350  ;;  %v2661_v34 = vadd.f32 1.0, %v5349_v2  ;;  %3499 = vmatprep.mubr.bf16.mxu0 %v3107_v30  ;;  %v3617_v39 = vmul.f32 %v3553_v59, %v3553_v59 }
 0x336   :  { %v3343_v57 = vpop.f32.mrf.mxu0  ;;  %v5353_v55 = vpop.eup %5352  ;;  %3500 = vmatmul.mubr.bf16.gmra.mxu0 %v3106_v16  ;;  %v3038_v32 = vmul.f32 %v5351_v58, %v7303_v19  ;;  %v5405_v19 = vld [vmem:[#allocation2 + $0x78] sm:$0xff]  ;;  %v5407_v58 = vld [vmem:[#allocation2 + $0x88] sm:$0xff] }
 0x337   :  { %v3554_v14 = vsub.f32 %v3342_v43, %v5404_v49  ;;  %v5355_v63 = vpop.eup %5354  ;;  %v2662_v50 = vadd.f32 1.0, %v5353_v55  ;;  %3694 = vadd.xlane.f32.xlu1 %v3617_v39  ;;  %5374 = vrcp.f32 %v2661_v34  ;;  %v5408_v49 = vld [vmem:[#allocation2 + $0x90] sm:$0xff] }
 0x338   :  { %v3344_v38 = vpop.f32.mrf.mxu0  ;;  %v5357_v31 = vpop.eup %5356  ;;  %v3039_v29 = vmul.f32 %v5355_v63, %v7309_v5  ;;  %v3108_v4 = vpack.c.bf16 %v3038_v32, %v3036_v21 }
 0x339   :  { %v3345_v20 = vadd.f32 %v7223_v56, %v3344_v38  ;;  %v3618_v47 = vmul.f32 %v3554_v14, %v3554_v14  ;;  %v5359_v51 = vpop.eup %5358  ;;  %5376 = vrcp.f32 %v2662_v50  ;;  %v2663_v22 = vadd.f32 1.0, %v5357_v31 }
 0x33a   :  { %v3346_v52 = vpop.f32.mrf.mxu0  ;;  %v5361_v42 = vpop.eup %5360  ;;  %5378 = vrcp.f32 %v2660_v23  ;;  %v3109_v33 = vpack.c.bf16 %v3039_v29, %v3037_v25  ;;  %v2664_v1 = vadd.f32 1.0, %v5359_v51  ;;  %v5409_v51 = vld [vmem:[#allocation2 + $0x98] sm:$0xff] }
 0x33b   :  { %3696 = vadd.xlane.f32.xlu0 %v3618_v47  ;;  %v3555_v53 = vsub.f32 %v3345_v20, %v5405_v19  ;;  %v5363_v54 = vpop.eup %5362  ;;  %5380 = vrcp.f32 %v2663_v22  ;;  %v3040_v16 = vmul.f32 %v5361_v42, %v7315_v40 }
 0x33c   :  { %v3349_v9 = vpop.f32.mrf.mxu0  ;;  %v5365_v5 = vpop.eup %5364  ;;  %3507 = vmatprep.mubr.bf16.mxu0 %v3109_v33  ;;  %v3041_v6 = vmul.f32 %v5363_v54, %v7319_v12 }
 0x33d   :  { %v3350_v36 = vadd.f32 %v7223_v56, %v3349_v9  ;;  %v3619_v17 = vmul.f32 %v3555_v53, %v3555_v53  ;;  %v5367_v24 = vpop.eup %5366  ;;  %v2665_v3 = vadd.f32 1.0, %v5365_v5 }
 0x33e   :  { %v3351_v62 = vpop.f32.mrf.mxu0  ;;  %v5369_v61 = vpop.eup %5368  ;;  %v2666_v0 = vadd.f32 1.0, %v5367_v24  ;;  %3508 = vmatmul.mubr.bf16.gmra.mxu0 %v3108_v4 }
 0x33f   :  { %3698 = vadd.xlane.f32.xlu1 %v3619_v17  ;;  %v3556_v41 = vsub.f32 %v3350_v36, %v5406_v15  ;;  %v5371_v7 = vpop.eup %5370  ;;  %v3042_v10 = vmul.f32 %v5369_v61, %v7328_v18 }
 0x340   :  { %v3352_v44 = vpop.f32.mrf.mxu0  ;;  %v5373_v45 = vpop.eup %5372  ;;  %v3043_v30 = vmul.f32 %v5371_v7, %v7333_v37  ;;  %5382 = vrcp.f32 %v2666_v0 }
 0x341   :  { %v3353_v11 = vadd.f32 %v7223_v56, %v3352_v44  ;;  %v3620_v26 = vmul.f32 %v3556_v41, %v3556_v41  ;;  %5384 = vrcp.f32 %v2665_v3  ;;  %v2667_v59 = vadd.f32 1.0, %v5373_v45  ;;  %v5412_v44 = vld [vmem:[#allocation2 + $0xb0] sm:$0xff] }
 0x342   :  { %v3354_v2 = vpop.f32.mrf.mxu0  ;;  %5386 = vrcp.f32 %v2664_v1  ;;  %v3111_v43 = vpack.c.bf16 %v3043_v30, %v3041_v6  ;;  %v3110_v34 = vpack.c.bf16 %v3042_v10, %v3040_v16  ;;  %v5411_v1 = vld [vmem:[#allocation2 + $0xa8] sm:$0xff] }
 0x343   :  { %3700 = vadd.xlane.f32.xlu0 %v3620_v26  ;;  %v3557_v12 = vsub.f32 %v3353_v11, %v5407_v58  ;;  %5388 = vrcp.f32 %v2667_v59  ;;  %v5413_v11 = vld [vmem:[#allocation2 + $0xb8] sm:$0xff]  ;;  %v5414_v58 = vld [vmem:[#allocation2 + $0xc0] sm:$0xff] }
 0x344   :  { %v3357_v18 = vpop.f32.mrf.mxu0  ;;  %3515 = vmatprep.mubr.bf16.mxu0 %v3111_v43  ;;  %v5375_v39 = vpop.eup %5374 }
 0x345   :  { %v3358_v37 = vadd.f32 %v7223_v56, %v3357_v18  ;;  %v3621_v57 = vmul.f32 %v3557_v12, %v3557_v12  ;;  %v3045_v31 = vmul.f32 %v5375_v39, %v7346_v27  ;;  %v5410_v27 = vld [vmem:[#allocation2 + $0xa0] sm:$0xff]  ;;  %v5415_v39 = vld [vmem:[#allocation2 + $0xc8] sm:$0xff] }
 0x346   :  { %v3359_v55 = vpop.f32.mrf.mxu0  ;;  %v5377_v23 = vpop.eup %5376  ;;  %3516 = vmatmul.mubr.bf16.gmra.mxu0 %v3110_v34 }
 0x347   :  { %3702 = vadd.xlane.f32.xlu1 %v3621_v57  ;;  %v3558_v14 = vsub.f32 %v3358_v37, %v5408_v49  ;;  %v5379_v40 = vpop.eup %5378  ;;  %v3046_v32 = vmul.f32 %v5377_v23, %v7350_v28 }
 0x348   :  { %v3360_v63 = vpop.f32.mrf.mxu0  ;;  %v5381_v25 = vpop.eup %5380  ;;  %v3044_v47 = vmul.f32 %v5379_v40, %v7339_v46 }
 0x349   :  { %v3361_v50 = vadd.f32 %v7223_v56, %v3360_v63  ;;  %v3622_v38 = vmul.f32 %v3558_v14, %v3558_v14  ;;  %v3047_v29 = vmul.f32 %v5381_v25, %v7358_v35  ;;  %v5416_v63 = vld [vmem:[#allocation2 + $0xd0] sm:$0xff] }
 0x34a   :  { %v3362_v20 = vpop.f32.mrf.mxu0  ;;  %v3112_v21 = vpack.c.bf16 %v3046_v32, %v3044_v47 }
 0x34b   :  { %3704 = vadd.xlane.f32.xlu0 %v3622_v38  ;;  %v3559_v22 = vsub.f32 %v3361_v50, %v5409_v51  ;;  %v3113_v52 = vpack.c.bf16 %v3047_v29, %v3045_v31  ;;  %v5417_v29 = vld [vmem:[#allocation2 + $0xd8] sm:$0xff] }
 0x34c   :  { %v3365_v42 = vpop.f32.mrf.mxu0 }
 0x34d   :  { %v3366_v33 = vadd.f32 %v7223_v56, %v3365_v42  ;;  %v3623_v19 = vmul.f32 %v3559_v22, %v3559_v22  ;;  %v5383_v28 = vpop.eup %5382  ;;  %3523 = vmatprep.mubr.bf16.mxu0 %v3113_v52  ;;  %v7421_v22 = vld [vmem:[%s7721_s6] ss:$0 sm:$0xff] }
 0x34e   :  { %v3367_v53 = vpop.f32.mrf.mxu0  ;;  %v5385_v54 = vpop.eup %5384  ;;  %3524 = vmatmul.mubr.bf16.gmra.mxu0 %v3112_v21  ;;  %v3050_v4 = vmul.f32 %v5383_v28, %v7375_v8  ;;  %v5419_v21 = vld [vmem:[#allocation2 + $0xe0] sm:$0xff] }
 0x34f   :  { %3706 = vadd.xlane.f32.xlu1 %v3623_v19  ;;  %v3560_v35 = vsub.f32 %v3366_v33, %v5410_v27  ;;  %v5387_v9 = vpop.eup %5386  ;;  %v3049_v24 = vmul.f32 %v5385_v54, %v7371_v13  ;;  %v5420_v54 = vld [vmem:[#allocation2 + $0xe8] sm:$0xff] }
 0x350   :  { %v3368_v5 = vpop.f32.mrf.mxu0  ;;  %v5389_v46 = vpop.eup %5388  ;;  %v3048_v61 = vmul.f32 %v5387_v9, %v7363_v48 }
 0x351   :  { %v3369_v36 = vadd.f32 %v7223_v56, %v3368_v5  ;;  %v3624_v17 = vmul.f32 %v3560_v35, %v3560_v35  ;;  %v3051_v3 = vmul.f32 %v5389_v46, %v7381_v60 }
 0x352   :  { %v3370_v62 = vpop.f32.mrf.mxu0  ;;  %v3114_v41 = vpack.c.bf16 %v3050_v4, %v3048_v61  ;;  %v5421_v61 = vld [vmem:[#allocation2 + $0xf0] sm:$0xff] }
 0x353   :  { %3708 = vadd.xlane.f32.xlu0 %v3624_v17  ;;  %v3561_v0 = vsub.f32 %v3369_v36, %v5411_v1  ;;  %v3115_v15 = vpack.c.bf16 %v3051_v3, %v3049_v24 }
 0x355   :  { %v3625_v7 = vmul.f32 %v3561_v0, %v3561_v0  ;;  %3531 = vmatprep.mubr.bf16.mxu0 %v3115_v15 }
 0x356   :  { %3532 = vmatmul.mubr.bf16.gmra.mxu0 %v3114_v41 }
 0x357   :  { %3710 = vadd.xlane.f32.xlu1 %v3625_v7 }
 0x358   :  { %v3373_v8 = vpop.f32.mrf.mxu0 }
 0x359   :  { %v3374_v6 = vadd.f32 %v7223_v56, %v3373_v8 }
 0x35a   :  { %v3375_v10 = vpop.f32.mrf.mxu0 }
 0x35b   :  { %v3562_v13 = vsub.f32 %v3374_v6, %v5412_v44  ;;  %v5422_v10 = vld [vmem:[#allocation2 + $0xf8] sm:$0xff] }
 0x35c   :  { %v3376_v45 = vpop.f32.mrf.mxu0 }
 0x35d   :  { %v3377_v60 = vadd.f32 %v7223_v56, %v3376_v45  ;;  %v3626_v30 = vmul.f32 %v3562_v13, %v3562_v13 }
 0x35e   :  { %v3378_v48 = vpop.f32.mrf.mxu0 }
 0x35f   :  { %3712 = vadd.xlane.f32.xlu0 %v3626_v30  ;;  %v3563_v26 = vsub.f32 %v3377_v60, %v5413_v11 }
 0x361   :  { %v3627_v59 = vmul.f32 %v3563_v26, %v3563_v26  ;;  %v5423_v26 = vld [vmem:[#allocation2 + $0x100] sm:$0xff] }
 0x363   :  { %3714 = vadd.xlane.f32.xlu1 %v3627_v59 }
 0x367   :  { %v3381_v2 = vpop.f32.mrf.mxu0 }
 0x368   :  { %v3382_v16 = vadd.f32 %v7223_v56, %v3381_v2 }
 0x369   :  { %v3383_v43 = vpop.f32.mrf.mxu0 }
 0x36a   :  { %v3564_v12 = vsub.f32 %v3382_v16, %v5414_v58 }
 0x36b   :  { %v3384_v18 = vpop.f32.mrf.mxu0 }
 0x36c   :  { %v3385_v34 = vadd.f32 %v7223_v56, %v3384_v18  ;;  %v3628_v37 = vmul.f32 %v3564_v12, %v3564_v12 }
 0x36d   :  { %v3386_v57 = vpop.f32.mrf.mxu0 }
 0x36e   :  { %3716 = vadd.xlane.f32.xlu0 %v3628_v37  ;;  %v3565_v55 = vsub.f32 %v3385_v34, %v5415_v39  ;;  %v5424_v34 = vld [vmem:[#allocation2 + $0x108] sm:$0xff] }
 0x370   :  { %v3629_v23 = vmul.f32 %v3565_v55, %v3565_v55 }
 0x372   :  { %3718 = vadd.xlane.f32.xlu1 %v3629_v23 }
 0x376   :  { %v3389_v49 = vpop.f32.mrf.mxu0 }
 0x377   :  { %v3390_v14 = vadd.f32 %v7223_v56, %v3389_v49 }
 0x378   :  { %v3391_v40 = vpop.f32.mrf.mxu0 }
 0x379   :  { %v3566_v25 = vsub.f32 %v3390_v14, %v5416_v63  ;;  %v5425_v40 = vld [vmem:[#allocation2 + $0x110] sm:$0xff] }
 0x37a   :  { %v3392_v32 = vpop.f32.mrf.mxu0 }
 0x37b   :  { %v3393_v50 = vadd.f32 %v7223_v56, %v3392_v32  ;;  %v3630_v38 = vmul.f32 %v3566_v25, %v3566_v25 }
 0x37c   :  { %v3394_v31 = vpop.f32.mrf.mxu0 }
 0x37d   :  { %3720 = vadd.xlane.f32.xlu0 %v3630_v38  ;;  %v3567_v20 = vsub.f32 %v3393_v50, %v5417_v29 }
 0x37f   :  { %v3631_v47 = vmul.f32 %v3567_v20, %v3567_v20  ;;  %v5426_v20 = vld [vmem:[#allocation2 + $0x118] sm:$0xff] }
 0x381   :  { %3722 = vadd.xlane.f32.xlu1 %v3631_v47 }
 0x387   :  { %v3397_v51 = vpop.f32.mrf.mxu0 }
 0x388   :  { %v3398_v52 = vadd.f32 %v7421_v22, %v3397_v51 }
 0x389   :  { %v3399_v42 = vpop.f32.mrf.mxu0 }
 0x38a   :  { %v3568_v33 = vsub.f32 %v3398_v52, %v5419_v21 }
 0x38b   :  { %v3400_v19 = vpop.f32.mrf.mxu0 }
 0x38c   :  { %v3401_v56 = vadd.f32 %v7421_v22, %v3400_v19  ;;  %v3632_v28 = vmul.f32 %v3568_v33, %v3568_v33 }
 0x38d   :  { %v3402_v53 = vpop.f32.mrf.mxu0 }
 0x38e   :  { %3724 = vadd.xlane.f32.xlu0 %v3632_v28  ;;  %v3569_v27 = vsub.f32 %v3401_v56, %v5420_v54  ;;  %v3669_v35 = vpop.xlane.xlu0 %3668  ;;  %v5427_v56 = vld [vmem:[#allocation2 + $0x120] sm:$0xff] }
 0x38f   :  { %v3796_v9 = vmul.f32 50.0, %v3669_v35 }
 0x390   :  { %v3633_v5 = vmul.f32 %v3569_v27, %v3569_v27 }
 0x391   :  { %3861 = vst.msk [vmem:[%s7722_s7] sm:$0xff] %vm3860_vm0, %v3796_v9 }
 0x392   :  { %3726 = vadd.xlane.f32.xlu1 %v3633_v5  ;;  %v3671_v46 = vpop.xlane.xlu0 %3670 }
 0x393   :  { %v3797_v4 = vmul.f32 50.0, %v3671_v46  ;;  %v5428_v46 = vld [vmem:[#allocation2 + $0x128] sm:$0xff] }
 0x395   :  { %3862 = vst.msk [vmem:[%s7722_s7 + $0x8] sm:$0xff] %vm3860_vm0, %v3797_v4  ;;  %v3673_v17 = vpop.xlane.xlu1 %3672 }
 0x396   :  { %v3405_v36 = vpop.f32.mrf.mxu0  ;;  %v3798_v3 = vmul.f32 50.0, %v3673_v17 }
 0x397   :  { %v3406_v24 = vadd.f32 %v7421_v22, %v3405_v36 }
 0x398   :  { %v3407_v62 = vpop.f32.mrf.mxu0  ;;  %3863 = vst.msk [vmem:[%s7722_s7 + $0x10] sm:$0xff] %vm3860_vm0, %v3798_v3 }
 0x399   :  { %v3570_v1 = vsub.f32 %v3406_v24, %v5421_v61 }
 0x39a   :  { %v3408_v0 = vpop.f32.mrf.mxu0  ;;  %v3675_v15 = vpop.xlane.xlu1 %3674 }
 0x39b   :  { %v3409_v41 = vadd.f32 %v7421_v22, %v3408_v0  ;;  %v3634_v7 = vmul.f32 %v3570_v1, %v3570_v1  ;;  %v3799_v8 = vmul.f32 50.0, %v3675_v15  ;;  %v5429_v1 = vld [vmem:[#allocation2 + $0x130] sm:$0xff] }
 0x39c   :  { %v3410_v6 = vpop.f32.mrf.mxu0  ;;  %v3677_v13 = vpop.xlane.xlu0 %3676 }
 0x39d   :  { %3728 = vadd.xlane.f32.xlu0 %v3634_v7  ;;  %v3571_v44 = vsub.f32 %v3409_v41, %v5422_v10  ;;  %3864 = vst.msk [vmem:[%s7722_s7 + $0x18] sm:$0xff] %vm3860_vm0, %v3799_v8  ;;  %v3800_v60 = vmul.f32 50.0, %v3677_v13  ;;  %v5430_v13 = vld [vmem:[#allocation2 + $0x138] sm:$0xff] }
 0x39e   :  { %v3413_v45 = vpop.f32.mrf.mxu0 }
 0x39f   :  { %v3414_v30 = vadd.f32 %v7421_v22, %v3413_v45  ;;  %v3635_v48 = vmul.f32 %v3571_v44, %v3571_v44  ;;  %3865 = vst.msk [vmem:[%s7722_s7 + $0x20] sm:$0xff] %vm3860_vm0, %v3800_v60 }
 0x3a0   :  { %v3415_v11 = vpop.f32.mrf.mxu0 }
 0x3a1   :  { %3730 = vadd.xlane.f32.xlu1 %v3635_v48  ;;  %v3572_v59 = vsub.f32 %v3414_v30, %v5423_v26 }
 0x3a2   :  { %v3416_v2 = vpop.f32.mrf.mxu0  ;;  %v3679_v16 = vpop.xlane.xlu1 %3678 }
 0x3a3   :  { %v3417_v43 = vadd.f32 %v7421_v22, %v3416_v2  ;;  %v3636_v58 = vmul.f32 %v3572_v59, %v3572_v59  ;;  %v3801_v12 = vmul.f32 50.0, %v3679_v16  ;;  %v5431_v2 = vld [vmem:[#allocation2 + $0x140] sm:$0xff] }
 0x3a4   :  { %v3418_v18 = vpop.f32.mrf.mxu0 }
 0x3a5   :  { %3732 = vadd.xlane.f32.xlu0 %v3636_v58  ;;  %v3573_v37 = vsub.f32 %v3417_v43, %v5424_v34  ;;  %3866 = vst.msk [vmem:[%s7722_s7 + $0x28] sm:$0xff] %vm3860_vm0, %v3801_v12 }
 0x3a6   :  { %v3421_v57 = vpop.f32.mrf.mxu0  ;;  %v3681_v39 = vpop.xlane.xlu0 %3680 }
 0x3a7   :  { %v3422_v55 = vadd.f32 %v7421_v22, %v3421_v57  ;;  %v3637_v23 = vmul.f32 %v3573_v37, %v3573_v37  ;;  %v3802_v49 = vmul.f32 50.0, %v3681_v39  ;;  %v5432_v39 = vld [vmem:[#allocation2 + $0x148] sm:$0xff] }
 0x3a8   :  { %v3423_v14 = vpop.f32.mrf.mxu0 }
 0x3a9   :  { %3734 = vadd.xlane.f32.xlu1 %v3637_v23  ;;  %v3574_v63 = vsub.f32 %v3422_v55, %v5425_v40  ;;  %3867 = vst.msk [vmem:[%s7722_s7 + $0x30] sm:$0xff] %vm3860_vm0, %v3802_v49 }
 0x3aa   :  { %v3424_v25 = vpop.f32.mrf.mxu0  ;;  %v3683_v32 = vpop.xlane.xlu1 %3682 }
 0x3ab   :  { %v3425_v50 = vadd.f32 %v7421_v22, %v3424_v25  ;;  %v3638_v38 = vmul.f32 %v3574_v63, %v3574_v63  ;;  %v3803_v31 = vmul.f32 50.0, %v3683_v32  ;;  %v5433_v32 = vld [vmem:[#allocation2 + $0x150] sm:$0xff] }
 0x3ac   :  { %v3426_v29 = vpop.f32.mrf.mxu0 }
 0x3ad   :  { %3736 = vadd.xlane.f32.xlu0 %v3638_v38  ;;  %v3575_v47 = vsub.f32 %v3425_v50, %v5426_v20  ;;  %3868 = vst.msk [vmem:[%s7722_s7 + $0x38] sm:$0xff] %vm3860_vm0, %v3803_v31 }
 0x3ae   :  { %v3429_v51 = vpop.f32.mrf.mxu0  ;;  %v3685_v52 = vpop.xlane.xlu0 %3684 }
 0x3af   :  { %v3430_v42 = vadd.f32 %v7421_v22, %v3429_v51  ;;  %v3639_v21 = vmul.f32 %v3575_v47, %v3575_v47  ;;  %v3804_v33 = vmul.f32 50.0, %v3685_v52  ;;  %v5434_v52 = vld [vmem:[#allocation2 + $0x158] sm:$0xff] }
 0x3b0   :  { %v3431_v19 = vpop.f32.mrf.mxu0 }
 0x3b1   :  { %3738 = vadd.xlane.f32.xlu1 %v3639_v21  ;;  %v3576_v28 = vsub.f32 %v3430_v42, %v5427_v56  ;;  %3869 = vst.msk [vmem:[%s7722_s7 + $0x40] sm:$0xff] %vm3860_vm0, %v3804_v33 }
 0x3b2   :  { %v3432_v53 = vpop.f32.mrf.mxu0  ;;  %v3687_v54 = vpop.xlane.xlu1 %3686 }
 0x3b3   :  { %v3433_v27 = vadd.f32 %v7421_v22, %v3432_v53  ;;  %v3640_v35 = vmul.f32 %v3576_v28, %v3576_v28  ;;  %v3805_v9 = vmul.f32 50.0, %v3687_v54  ;;  %v5435_v54 = vld [vmem:[#allocation2 + $0x160] sm:$0xff] }
 0x3b4   :  { %v3434_v5 = vpop.f32.mrf.mxu0 }
 0x3b5   :  { %3740 = vadd.xlane.f32.xlu0 %v3640_v35  ;;  %v3577_v4 = vsub.f32 %v3433_v27, %v5428_v46  ;;  %3870 = vst.msk [vmem:[%s7722_s7 + $0x48] sm:$0xff] %vm3860_vm0, %v3805_v9  ;;  %v3689_v17 = vpop.xlane.xlu0 %3688 }
 0x3b6   :  { %v3437_v36 = vpop.f32.mrf.mxu0  ;;  %v3806_v62 = vmul.f32 50.0, %v3689_v17  ;;  %v5436_v17 = vld [vmem:[#allocation2 + $0x168] sm:$0xff] }
 0x3b7   :  { %v3438_v24 = vadd.f32 %v7421_v22, %v3437_v36  ;;  %v3641_v3 = vmul.f32 %v3577_v4, %v3577_v4 }
 0x3b8   :  { %v3439_v61 = vpop.f32.mrf.mxu0  ;;  %3871 = vst.msk [vmem:[%s7722_s7 + $0x50] sm:$0xff] %vm3860_vm0, %v3806_v62  ;;  %v3691_v41 = vpop.xlane.xlu1 %3690 }
 0x3b9   :  { %3742 = vadd.xlane.f32.xlu1 %v3641_v3  ;;  %v3578_v0 = vsub.f32 %v3438_v24, %v5429_v1  ;;  %v3807_v6 = vmul.f32 50.0, %v3691_v41  ;;  %v5437_v41 = vld [vmem:[#allocation2 + $0x170] sm:$0xff] }
 0x3ba   :  { %v3440_v15 = vpop.f32.mrf.mxu0 }
 0x3bb   :  { %v3441_v7 = vadd.f32 %v7421_v22, %v3440_v15  ;;  %v3642_v8 = vmul.f32 %v3578_v0, %v3578_v0  ;;  %3872 = vst.msk [vmem:[%s7722_s7 + $0x58] sm:$0xff] %vm3860_vm0, %v3807_v6 }
 0x3bc   :  { %v3442_v10 = vpop.f32.mrf.mxu0  ;;  %v3693_v44 = vpop.xlane.xlu0 %3692 }
 0x3bd   :  { %3744 = vadd.xlane.f32.xlu0 %v3642_v8  ;;  %v3579_v45 = vsub.f32 %v3441_v7, %v5430_v13  ;;  %v3808_v60 = vmul.f32 50.0, %v3693_v44 }
 0x3be   :  { %v3445_v30 = vpop.f32.mrf.mxu0 }
 0x3bf   :  { %v3446_v48 = vadd.f32 %v7421_v22, %v3445_v30  ;;  %v3643_v11 = vmul.f32 %v3579_v45, %v3579_v45  ;;  %3873 = vst.msk [vmem:[%s7722_s7 + $0x60] sm:$0xff] %vm3860_vm0, %v3808_v60  ;;  %v5438_v60 = vld [vmem:[#allocation2 + $0x178] sm:$0xff] }
 0x3c0   :  { %v3447_v26 = vpop.f32.mrf.mxu0  ;;  %v3695_v59 = vpop.xlane.xlu1 %3694 }
 0x3c1   :  { %3746 = vadd.xlane.f32.xlu1 %v3643_v11  ;;  %v3580_v16 = vsub.f32 %v3446_v48, %v5431_v2  ;;  %v3809_v43 = vmul.f32 50.0, %v3695_v59 }
 0x3c2   :  { %v3448_v58 = vpop.f32.mrf.mxu0 }
 0x3c3   :  { %v3449_v12 = vadd.f32 %v7421_v22, %v3448_v58  ;;  %v3644_v18 = vmul.f32 %v3580_v16, %v3580_v16  ;;  %3874 = vst.msk [vmem:[%s7722_s7 + $0x68] sm:$0xff] %vm3860_vm0, %v3809_v43  ;;  %v5439_v43 = vld [vmem:[#allocation2 + $0x180] sm:$0xff] }
 0x3c4   :  { %v3697_v34 = vpop.xlane.xlu0 %3696  ;;  %v3450_v37 = vpop.f32.mrf.mxu0 }
 0x3c5   :  { %v3810_v57 = vmul.f32 50.0, %v3697_v34  ;;  %3748 = vadd.xlane.f32.xlu0 %v3644_v18  ;;  %v3581_v55 = vsub.f32 %v3449_v12, %v5432_v39 }
 0x3c6   :  { %v3453_v23 = vpop.f32.mrf.mxu0 }
 0x3c7   :  { %3875 = vst.msk [vmem:[%s7722_s7 + $0x70] sm:$0xff] %vm3860_vm0, %v3810_v57  ;;  %v3454_v49 = vadd.f32 %v7421_v22, %v3453_v23  ;;  %v3645_v14 = vmul.f32 %v3581_v55, %v3581_v55  ;;  %v5440_v57 = vld [vmem:[#allocation2 + $0x188] sm:$0xff] }
 0x3c8   :  { %v3699_v40 = vpop.xlane.xlu1 %3698  ;;  %v3455_v63 = vpop.f32.mrf.mxu0 }
 0x3c9   :  { %v3811_v25 = vmul.f32 50.0, %v3699_v40  ;;  %3750 = vadd.xlane.f32.xlu1 %v3645_v14  ;;  %v3582_v50 = vsub.f32 %v3454_v49, %v5433_v32  ;;  %v5441_v63 = vld [vmem:[#allocation2 + $0x190] sm:$0xff] }
 0x3ca   :  { %v3456_v38 = vpop.f32.mrf.mxu0 }
 0x3cb   :  { %3876 = vst.msk [vmem:[%s7722_s7 + $0x78] sm:$0xff] %vm3860_vm0, %v3811_v25  ;;  %v3457_v31 = vadd.f32 %v7421_v22, %v3456_v38  ;;  %v3646_v29 = vmul.f32 %v3582_v50, %v3582_v50 }
 0x3cc   :  { %v3701_v20 = vpop.xlane.xlu0 %3700  ;;  %v3458_v47 = vpop.f32.mrf.mxu0 }
 0x3cd   :  { %v3812_v51 = vmul.f32 50.0, %v3701_v20  ;;  %3752 = vadd.xlane.f32.xlu0 %v3646_v29  ;;  %v3583_v42 = vsub.f32 %v3457_v31, %v5434_v52  ;;  %v5442_v47 = vld [vmem:[#allocation2 + $0x198] sm:$0xff] }
 0x3ce   :  { %v3461_v21 = vpop.f32.mrf.mxu0 }
 0x3cf   :  { %3877 = vst.msk [vmem:[%s7722_s7 + $0x80] sm:$0xff] %vm3860_vm0, %v3812_v51  ;;  %v3462_v33 = vadd.f32 %v7421_v22, %v3461_v21  ;;  %v3647_v19 = vmul.f32 %v3583_v42, %v3583_v42 }
 0x3d0   :  { %v3703_v56 = vpop.xlane.xlu1 %3702  ;;  %v3463_v28 = vpop.f32.mrf.mxu0 }
 0x3d1   :  { %v3813_v53 = vmul.f32 50.0, %v3703_v56  ;;  %3754 = vadd.xlane.f32.xlu1 %v3647_v19  ;;  %v3584_v27 = vsub.f32 %v3462_v33, %v5435_v54  ;;  %v5443_v56 = vld [vmem:[#allocation2 + $0x1a0] sm:$0xff] }
 0x3d2   :  { %v3464_v35 = vpop.f32.mrf.mxu0 }
 0x3d3   :  { %3878 = vst.msk [vmem:[%s7722_s7 + $0x88] sm:$0xff] %vm3860_vm0, %v3813_v53  ;;  %v3465_v9 = vadd.f32 %v7421_v22, %v3464_v35  ;;  %v3648_v5 = vmul.f32 %v3584_v27, %v3584_v27 }
 0x3d4   :  { %v3705_v46 = vpop.xlane.xlu0 %3704  ;;  %v3466_v4 = vpop.f32.mrf.mxu0 }
 0x3d5   :  { %v3814_v36 = vmul.f32 50.0, %v3705_v46  ;;  %3756 = vadd.xlane.f32.xlu0 %v3648_v5  ;;  %v3585_v24 = vsub.f32 %v3465_v9, %v5436_v17  ;;  %v5444_v9 = vld [vmem:[#allocation2 + $0x1a8] sm:$0xff] }
 0x3d6   :  { %v3469_v3 = vpop.f32.mrf.mxu0 }
 0x3d7   :  { %3879 = vst.msk [vmem:[%s7722_s7 + $0x90] sm:$0xff] %vm3860_vm0, %v3814_v36  ;;  %v3470_v62 = vadd.f32 %v7421_v22, %v3469_v3  ;;  %v3649_v61 = vmul.f32 %v3585_v24, %v3585_v24 }
 0x3d8   :  { %v3707_v1 = vpop.xlane.xlu1 %3706  ;;  %v3471_v0 = vpop.f32.mrf.mxu0 }
 0x3d9   :  { %v3815_v15 = vmul.f32 50.0, %v3707_v1  ;;  %3758 = vadd.xlane.f32.xlu1 %v3649_v61  ;;  %v3586_v7 = vsub.f32 %v3470_v62, %v5437_v41  ;;  %v5445_v62 = vld [vmem:[#allocation2 + $0x1b0] sm:$0xff] }
 0x3da   :  { %v3472_v8 = vpop.f32.mrf.mxu0 }
 0x3db   :  { %3880 = vst.msk [vmem:[%s7722_s7 + $0x98] sm:$0xff] %vm3860_vm0, %v3815_v15  ;;  %v3473_v6 = vadd.f32 %v7421_v22, %v3472_v8  ;;  %v3650_v10 = vmul.f32 %v3586_v7, %v3586_v7 }
 0x3dc   :  { %v3709_v44 = vpop.xlane.xlu0 %3708  ;;  %v3474_v13 = vpop.f32.mrf.mxu0 }
 0x3dd   :  { %v3816_v45 = vmul.f32 50.0, %v3709_v44  ;;  %3760 = vadd.xlane.f32.xlu0 %v3650_v10  ;;  %v3587_v30 = vsub.f32 %v3473_v6, %v5438_v60  ;;  %v5446_v6 = vld [vmem:[#allocation2 + $0x1b8] sm:$0xff] }
 0x3de   :  { %v3477_v48 = vpop.f32.mrf.mxu0 }
 0x3df   :  { %3881 = vst.msk [vmem:[%s7722_s7 + $0xa0] sm:$0xff] %vm3860_vm0, %v3816_v45  ;;  %v3478_v11 = vadd.f32 %v7421_v22, %v3477_v48  ;;  %v3651_v26 = vmul.f32 %v3587_v30, %v3587_v30  ;;  %v5447_v30 = vld [vmem:[#allocation2 + $0x1c0] sm:$0xff] }
 0x3e0   :  { %v3711_v59 = vpop.xlane.xlu1 %3710  ;;  %v3479_v2 = vpop.f32.mrf.mxu0 }
 0x3e1   :  { %v3817_v16 = vmul.f32 50.0, %v3711_v59  ;;  %3762 = vadd.xlane.f32.xlu1 %v3651_v26  ;;  %v3588_v58 = vsub.f32 %v3478_v11, %v5439_v43 }
 0x3e2   :  { %v3480_v12 = vpop.f32.mrf.mxu0 }
 0x3e3   :  { %3882 = vst.msk [vmem:[%s7722_s7 + $0xa8] sm:$0xff] %vm3860_vm0, %v3817_v16  ;;  %v3481_v18 = vadd.f32 %v7421_v22, %v3480_v12  ;;  %v3652_v34 = vmul.f32 %v3588_v58, %v3588_v58  ;;  %v5448_v16 = vld [vmem:[#allocation2 + $0x1c8] sm:$0xff] }
 0x3e4   :  { %v3482_v37 = vpop.f32.mrf.mxu0 }
 0x3e5   :  { %3764 = vadd.xlane.f32.xlu0 %v3652_v34  ;;  %v3589_v39 = vsub.f32 %v3481_v18, %v5440_v57 }
 0x3e6   :  { %v3485_v55 = vpop.f32.mrf.mxu0 }
 0x3e7   :  { %v3486_v23 = vadd.f32 %v7421_v22, %v3485_v55  ;;  %v3653_v49 = vmul.f32 %v3589_v39, %v3589_v39  ;;  %v5449_v39 = vld [vmem:[#allocation2 + $0x1d0] sm:$0xff] }
 0x3e8   :  { %v3487_v14 = vpop.f32.mrf.mxu0  ;;  %v3713_v40 = vpop.xlane.xlu0 %3712 }
 0x3e9   :  { %3766 = vadd.xlane.f32.xlu1 %v3653_v49  ;;  %v3590_v25 = vsub.f32 %v3486_v23, %v5441_v63  ;;  %v3818_v32 = vmul.f32 50.0, %v3713_v40 }
 0x3ea   :  { %v3488_v50 = vpop.f32.mrf.mxu0 }
 0x3eb   :  { %v3489_v38 = vadd.f32 %v7421_v22, %v3488_v50  ;;  %v3654_v31 = vmul.f32 %v3590_v25, %v3590_v25  ;;  %3883 = vst.msk [vmem:[%s7722_s7 + $0xb0] sm:$0xff] %vm3860_vm0, %v3818_v32  ;;  %v5450_v32 = vld [vmem:[#allocation2 + $0x1d8] sm:$0xff] }
 0x3ec   :  { %v3490_v29 = vpop.f32.mrf.mxu0  ;;  %v3715_v20 = vpop.xlane.xlu1 %3714 }
 0x3ed   :  { %3768 = vadd.xlane.f32.xlu0 %v3654_v31  ;;  %v3591_v51 = vsub.f32 %v3489_v38, %v5442_v47  ;;  %v3819_v52 = vmul.f32 50.0, %v3715_v20  ;;  %v5451_v47 = vld [vmem:[#allocation2 + $0x1e0] sm:$0xff] }
 0x3ee   :  { %v3493_v42 = vpop.f32.mrf.mxu0 }
 0x3ef   :  { %v3494_v21 = vadd.f32 %v7421_v22, %v3493_v42  ;;  %v3655_v33 = vmul.f32 %v3591_v51, %v3591_v51  ;;  %3884 = vst.msk [vmem:[%s7722_s7 + $0xb8] sm:$0xff] %vm3860_vm0, %v3819_v52 }
 0x3f0   :  { %v3495_v19 = vpop.f32.mrf.mxu0 }
 0x3f1   :  { %3770 = vadd.xlane.f32.xlu1 %v3655_v33  ;;  %v3592_v28 = vsub.f32 %v3494_v21, %v5443_v56  ;;  %v5452_v19 = vld [vmem:[#allocation2 + $0x1e8] sm:$0xff] }
 0x3f2   :  { %v3496_v53 = vpop.f32.mrf.mxu0 }
 0x3f3   :  { %v3497_v54 = vadd.f32 %v7421_v22, %v3496_v53  ;;  %v3656_v27 = vmul.f32 %v3592_v28, %v3592_v28 }
 0x3f4   :  { %v3498_v35 = vpop.f32.mrf.mxu0 }
 0x3f5   :  { %3772 = vadd.xlane.f32.xlu0 %v3656_v27  ;;  %v3593_v5 = vsub.f32 %v3497_v54, %v5444_v9 }
 0x3f6   :  { %v3501_v46 = vpop.f32.mrf.mxu0 }
 0x3f7   :  { %v3502_v4 = vadd.f32 %v7421_v22, %v3501_v46  ;;  %v3657_v36 = vmul.f32 %v3593_v5, %v3593_v5  ;;  %v3717_v17 = vpop.xlane.xlu0 %3716  ;;  %v5453_v5 = vld [vmem:[#allocation2 + $0x1f0] sm:$0xff] }
 0x3f8   :  { %v3503_v24 = vpop.f32.mrf.mxu0  ;;  %v3820_v3 = vmul.f32 50.0, %v3717_v17 }
 0x3f9   :  { %3774 = vadd.xlane.f32.xlu1 %v3657_v36  ;;  %v3594_v61 = vsub.f32 %v3502_v4, %v5445_v62 }
 0x3fa   :  { %v3504_v1 = vpop.f32.mrf.mxu0  ;;  %3885 = vst.msk [vmem:[%s7722_s7 + $0xc0] sm:$0xff] %vm3860_vm0, %v3820_v3 }
 0x3fb   :  { %v3505_v0 = vadd.f32 %v7421_v22, %v3504_v1  ;;  %v3658_v15 = vmul.f32 %v3594_v61, %v3594_v61  ;;  %v3719_v41 = vpop.xlane.xlu1 %3718  ;;  %v5454_v61 = vld [vmem:[#allocation2 + $0x1f8] sm:$0xff] }
 0x3fc   :  { %v3506_v7 = vpop.f32.mrf.mxu0  ;;  %v3821_v8 = vmul.f32 50.0, %v3719_v41 }
 0x3fd   :  { %3776 = vadd.xlane.f32.xlu0 %v3658_v15  ;;  %v3595_v10 = vsub.f32 %v3505_v0, %v5446_v6 }
 0x3fe   :  { %v3509_v44 = vpop.f32.mrf.mxu0  ;;  %3886 = vst.msk [vmem:[%s7722_s7 + $0xc8] sm:$0xff] %vm3860_vm0, %v3821_v8 }
 0x3ff   :  { %v3510_v13 = vadd.f32 %v7421_v22, %v3509_v44  ;;  %v3659_v45 = vmul.f32 %v3595_v10, %v3595_v10 }
 0x400   :  { %v3511_v60 = vpop.f32.mrf.mxu0 }
 0x401   :  { %3778 = vadd.xlane.f32.xlu1 %v3659_v45  ;;  %v3596_v48 = vsub.f32 %v3510_v13, %v5447_v30 }
 0x402   :  { %v3512_v11 = vpop.f32.mrf.mxu0 }
 0x403   :  { %v3513_v26 = vadd.f32 %v7421_v22, %v3512_v11  ;;  %v3660_v59 = vmul.f32 %v3596_v48, %v3596_v48 }
 0x404   :  { %v3514_v2 = vpop.f32.mrf.mxu0 }
 0x405   :  { %3780 = vadd.xlane.f32.xlu0 %v3660_v59  ;;  %v3597_v43 = vsub.f32 %v3513_v26, %v5448_v16 }
 0x406   :  { %v3517_v58 = vpop.f32.mrf.mxu0  ;;  %v3721_v12 = vpop.xlane.xlu0 %3720 }
 0x407   :  { %v3518_v18 = vadd.f32 %v7421_v22, %v3517_v58  ;;  %v3661_v34 = vmul.f32 %v3597_v43, %v3597_v43  ;;  %v3822_v37 = vmul.f32 50.0, %v3721_v12 }
 0x408   :  { %v3519_v57 = vpop.f32.mrf.mxu0 }
 0x409   :  { %3782 = vadd.xlane.f32.xlu1 %v3661_v34  ;;  %v3598_v55 = vsub.f32 %v3518_v18, %v5449_v39  ;;  %3887 = vst.msk [vmem:[%s7722_s7 + $0xd0] sm:$0xff] %vm3860_vm0, %v3822_v37 }
 0x40a   :  { %v3520_v23 = vpop.f32.mrf.mxu0  ;;  %v3723_v49 = vpop.xlane.xlu1 %3722 }
 0x40b   :  { %v3521_v14 = vadd.f32 %v7421_v22, %v3520_v23  ;;  %v3662_v40 = vmul.f32 %v3598_v55, %v3598_v55  ;;  %v3823_v63 = vmul.f32 50.0, %v3723_v49 }
 0x40c   :  { %v3522_v25 = vpop.f32.mrf.mxu0 }
 0x40d   :  { %3784 = vadd.xlane.f32.xlu0 %v3662_v40  ;;  %v3599_v50 = vsub.f32 %v3521_v14, %v5450_v32  ;;  %3888 = vst.msk [vmem:[%s7722_s7 + $0xd8] sm:$0xff] %vm3860_vm0, %v3823_v63 }
 0x40e   :  { %v3525_v38 = vpop.f32.mrf.mxu0 }
 0x40f   :  { %v3526_v31 = vadd.f32 %v7421_v22, %v3525_v38  ;;  %v3663_v29 = vmul.f32 %v3599_v50, %v3599_v50 }
 0x410   :  { %v3527_v20 = vpop.f32.mrf.mxu0 }
 0x411   :  { %3786 = vadd.xlane.f32.xlu1 %v3663_v29  ;;  %v3600_v51 = vsub.f32 %v3526_v31, %v5451_v47 }
 0x412   :  { %v3528_v52 = vpop.f32.mrf.mxu0 }
 0x413   :  { %v3529_v42 = vadd.f32 %v7421_v22, %v3528_v52  ;;  %v3664_v21 = vmul.f32 %v3600_v51, %v3600_v51 }
 0x414   :  { %v3530_v33 = vpop.f32.mrf.mxu0 }
 0x415   :  { %3788 = vadd.xlane.f32.xlu0 %v3664_v21  ;;  %v3601_v56 = vsub.f32 %v3529_v42, %v5452_v19 }
 0x416   :  { %v3533_v28 = vpop.f32.mrf.mxu0 }
 0x417   :  { %v3534_v53 = vadd.f32 %v7421_v22, %v3533_v28  ;;  %v3665_v54 = vmul.f32 %v3601_v56, %v3601_v56  ;;  %v3725_v27 = vpop.xlane.xlu0 %3724 }
 0x418   :  { %v3535_v35 = vpop.f32.mrf.mxu0  ;;  %v3824_v9 = vmul.f32 50.0, %v3725_v27 }
 0x419   :  { %3790 = vadd.xlane.f32.xlu1 %v3665_v54  ;;  %v3602_v46 = vsub.f32 %v3534_v53, %v5453_v5 }
 0x41a   :  { %v3536_v4 = vpop.f32.mrf.mxu0  ;;  %3889 = vst.msk [vmem:[%s7722_s7 + $0xe0] sm:$0xff] %vm3860_vm0, %v3824_v9 }
 0x41b   :  { %v3537_v36 = vadd.f32 %v7421_v22, %v3536_v4  ;;  %v3666_v17 = vmul.f32 %v3602_v46, %v3602_v46  ;;  %v3727_v24 = vpop.xlane.xlu1 %3726 }
 0x41c   :  { %v3538_v3 = vpop.f32.mrf.mxu0  ;;  %v3825_v62 = vmul.f32 50.0, %v3727_v24 }
 0x41d   :  { %3792 = vadd.xlane.f32.xlu0 %v3666_v17  ;;  %v3603_v1 = vsub.f32 %v3537_v36, %v5454_v61 }
 0x41e   :  { %3890 = vst.msk [vmem:[%s7722_s7 + $0xe8] sm:$0xff] %vm3860_vm0, %v3825_v62 }
 0x41f   :  { %v3667_v0 = vmul.f32 %v3603_v1, %v3603_v1 }
 0x421   :  { %3794 = vadd.xlane.f32.xlu1 %v3667_v0 }
 0x426   :  { %v3729_v15 = vpop.xlane.xlu0 %3728 }
 0x427   :  { %v3826_v41 = vmul.f32 50.0, %v3729_v15 }
 0x429   :  { %3891 = vst.msk [vmem:[%s7722_s7 + $0xf0] sm:$0xff] %vm3860_vm0, %v3826_v41 }
 0x42a   :  { %v3731_v22 = vpop.xlane.xlu1 %3730 }
 0x42b   :  { %v3827_v7 = vmul.f32 50.0, %v3731_v22 }
 0x42d   :  { %3892 = vst.msk [vmem:[%s7722_s7 + $0xf8] sm:$0xff] %vm3860_vm0, %v3827_v7 }
 0x42e   :  { %v3733_v8 = vpop.xlane.xlu0 %3732 }
 0x42f   :  { %v3828_v6 = vmul.f32 50.0, %v3733_v8 }
 0x431   :  { %3893 = vst.msk [vmem:[%s7722_s7 + $0x100] sm:$0xff] %vm3860_vm0, %v3828_v6 }
 0x432   :  { %v3735_v10 = vpop.xlane.xlu1 %3734 }
 0x433   :  { %v3829_v44 = vmul.f32 50.0, %v3735_v10 }
 0x435   :  { %3894 = vst.msk [vmem:[%s7722_s7 + $0x108] sm:$0xff] %vm3860_vm0, %v3829_v44 }
 0x436   :  { %v3737_v13 = vpop.xlane.xlu0 %3736 }
 0x437   :  { %v3830_v45 = vmul.f32 50.0, %v3737_v13 }
 0x439   :  { %3895 = vst.msk [vmem:[%s7722_s7 + $0x110] sm:$0xff] %vm3860_vm0, %v3830_v45 }
 0x43a   :  { %v3739_v60 = vpop.xlane.xlu1 %3738 }
 0x43b   :  { %v3831_v30 = vmul.f32 50.0, %v3739_v60 }
 0x43d   :  { %3896 = vst.msk [vmem:[%s7722_s7 + $0x118] sm:$0xff] %vm3860_vm0, %v3831_v30 }
 0x43e   :  { %v3741_v48 = vpop.xlane.xlu0 %3740 }
 0x43f   :  { %v3832_v11 = vmul.f32 50.0, %v3741_v48 }
 0x441   :  { %3897 = vst.msk [vmem:[%s7722_s7 + $0x120] sm:$0xff] %vm3860_vm0, %v3832_v11 }
 0x442   :  { %v3743_v26 = vpop.xlane.xlu1 %3742 }
 0x443   :  { %v3833_v59 = vmul.f32 50.0, %v3743_v26 }
 0x445   :  { %3898 = vst.msk [vmem:[%s7722_s7 + $0x128] sm:$0xff] %vm3860_vm0, %v3833_v59 }
 0x446   :  { %v3745_v2 = vpop.xlane.xlu0 %3744 }
 0x447   :  { %v3834_v16 = vmul.f32 50.0, %v3745_v2 }
 0x449   :  { %3899 = vst.msk [vmem:[%s7722_s7 + $0x130] sm:$0xff] %vm3860_vm0, %v3834_v16 }
 0x44a   :  { %v3747_v43 = vpop.xlane.xlu1 %3746 }
 0x44b   :  { %v3835_v58 = vmul.f32 50.0, %v3747_v43 }
 0x44d   :  { %3900 = vst.msk [vmem:[%s7722_s7 + $0x138] sm:$0xff] %vm3860_vm0, %v3835_v58 }
 0x44e   :  { %v3749_v12 = vpop.xlane.xlu0 %3748 }
 0x44f   :  { %v3836_v18 = vmul.f32 50.0, %v3749_v12 }
 0x451   :  { %3901 = vst.msk [vmem:[%s7722_s7 + $0x140] sm:$0xff] %vm3860_vm0, %v3836_v18 }
 0x452   :  { %v3751_v34 = vpop.xlane.xlu1 %3750 }
 0x453   :  { %v3837_v37 = vmul.f32 50.0, %v3751_v34 }
 0x455   :  { %3902 = vst.msk [vmem:[%s7722_s7 + $0x148] sm:$0xff] %vm3860_vm0, %v3837_v37 }
 0x456   :  { %v3753_v57 = vpop.xlane.xlu0 %3752 }
 0x457   :  { %v3838_v39 = vmul.f32 50.0, %v3753_v57 }
 0x459   :  { %3903 = vst.msk [vmem:[%s7722_s7 + $0x150] sm:$0xff] %vm3860_vm0, %v3838_v39 }
 0x45a   :  { %v3755_v55 = vpop.xlane.xlu1 %3754 }
 0x45b   :  { %v3839_v23 = vmul.f32 50.0, %v3755_v55 }
 0x45d   :  { %3904 = vst.msk [vmem:[%s7722_s7 + $0x158] sm:$0xff] %vm3860_vm0, %v3839_v23 }
 0x45e   :  { %v3757_v49 = vpop.xlane.xlu0 %3756 }
 0x45f   :  { %v3840_v14 = vmul.f32 50.0, %v3757_v49 }
 0x461   :  { %3905 = vst.msk [vmem:[%s7722_s7 + $0x160] sm:$0xff] %vm3860_vm0, %v3840_v14 }
 0x462   :  { %v3759_v40 = vpop.xlane.xlu1 %3758 }
 0x463   :  { %v3841_v63 = vmul.f32 50.0, %v3759_v40 }
 0x465   :  { %3906 = vst.msk [vmem:[%s7722_s7 + $0x168] sm:$0xff] %vm3860_vm0, %v3841_v63 }
 0x466   :  { %v3761_v25 = vpop.xlane.xlu0 %3760 }
 0x467   :  { %v3842_v32 = vmul.f32 50.0, %v3761_v25 }
 0x469   :  { %3907 = vst.msk [vmem:[%s7722_s7 + $0x170] sm:$0xff] %vm3860_vm0, %v3842_v32 }
 0x46a   :  { %v3763_v50 = vpop.xlane.xlu1 %3762 }
 0x46b   :  { %v3843_v38 = vmul.f32 50.0, %v3763_v50 }
 0x46d   :  { %3908 = vst.msk [vmem:[%s7722_s7 + $0x178] sm:$0xff] %vm3860_vm0, %v3843_v38 }
 0x46e   :  { %v3765_v31 = vpop.xlane.xlu0 %3764 }
 0x46f   :  { %v3844_v29 = vmul.f32 50.0, %v3765_v31 }
 0x471   :  { %3909 = vst.msk [vmem:[%s7722_s7 + $0x180] sm:$0xff] %vm3860_vm0, %v3844_v29 }
 0x472   :  { %v3767_v20 = vpop.xlane.xlu1 %3766 }
 0x473   :  { %v3845_v47 = vmul.f32 50.0, %v3767_v20 }
 0x475   :  { %3910 = vst.msk [vmem:[%s7722_s7 + $0x188] sm:$0xff] %vm3860_vm0, %v3845_v47 }
 0x476   :  { %v3769_v51 = vpop.xlane.xlu0 %3768 }
 0x477   :  { %v3846_v52 = vmul.f32 50.0, %v3769_v51 }
 0x479   :  { %3911 = vst.msk [vmem:[%s7722_s7 + $0x190] sm:$0xff] %vm3860_vm0, %v3846_v52 }
 0x47a   :  { %v3771_v42 = vpop.xlane.xlu1 %3770 }
 0x47b   :  { %v3847_v21 = vmul.f32 50.0, %v3771_v42 }
 0x47d   :  { %3912 = vst.msk [vmem:[%s7722_s7 + $0x198] sm:$0xff] %vm3860_vm0, %v3847_v21 }
 0x47e   :  { %v3773_v33 = vpop.xlane.xlu0 %3772 }
 0x47f   :  { %v3848_v19 = vmul.f32 50.0, %v3773_v33 }
 0x481   :  { %3913 = vst.msk [vmem:[%s7722_s7 + $0x1a0] sm:$0xff] %vm3860_vm0, %v3848_v19 }
 0x482   :  { %v3775_v56 = vpop.xlane.xlu1 %3774 }
 0x483   :  { %v3849_v28 = vmul.f32 50.0, %v3775_v56 }
 0x485   :  { %3914 = vst.msk [vmem:[%s7722_s7 + $0x1a8] sm:$0xff] %vm3860_vm0, %v3849_v28 }
 0x486   :  { %v3777_v53 = vpop.xlane.xlu0 %3776 }
 0x487   :  { %v3850_v54 = vmul.f32 50.0, %v3777_v53 }
 0x489   :  { %3915 = vst.msk [vmem:[%s7722_s7 + $0x1b0] sm:$0xff] %vm3860_vm0, %v3850_v54 }
 0x48a   :  { %v3779_v27 = vpop.xlane.xlu1 %3778 }
 0x48b   :  { %v3851_v35 = vmul.f32 50.0, %v3779_v27 }
 0x48d   :  { %3916 = vst.msk [vmem:[%s7722_s7 + $0x1b8] sm:$0xff] %vm3860_vm0, %v3851_v35 }
 0x48e   :  { %v3781_v9 = vpop.xlane.xlu0 %3780 }
 0x48f   :  { %v3852_v5 = vmul.f32 50.0, %v3781_v9 }
 0x491   :  { %3917 = vst.msk [vmem:[%s7722_s7 + $0x1c0] sm:$0xff] %vm3860_vm0, %v3852_v5 }
 0x492   :  { %v3783_v46 = vpop.xlane.xlu1 %3782 }
 0x493   :  { %v3853_v4 = vmul.f32 50.0, %v3783_v46 }
 0x495   :  { %3918 = vst.msk [vmem:[%s7722_s7 + $0x1c8] sm:$0xff] %vm3860_vm0, %v3853_v4 }
 0x496   :  { %v3785_v36 = vpop.xlane.xlu0 %3784 }
 0x497   :  { %v3854_v17 = vmul.f32 50.0, %v3785_v36 }
 0x499   :  { %3919 = vst.msk [vmem:[%s7722_s7 + $0x1d0] sm:$0xff] %vm3860_vm0, %v3854_v17 }
 0x49a   :  { %v3787_v24 = vpop.xlane.xlu1 %3786 }
 0x49b   :  { %v3855_v3 = vmul.f32 50.0, %v3787_v24 }
 0x49d   :  { %3920 = vst.msk [vmem:[%s7722_s7 + $0x1d8] sm:$0xff] %vm3860_vm0, %v3855_v3 }
 0x49e   :  { %v3789_v62 = vpop.xlane.xlu0 %3788 }
 0x49f   :  { %v3856_v61 = vmul.f32 50.0, %v3789_v62 }
 0x4a1   :  { %3921 = vst.msk [vmem:[%s7722_s7 + $0x1e0] sm:$0xff] %vm3860_vm0, %v3856_v61 }
 0x4a2   :  { %v3791_v1 = vpop.xlane.xlu1 %3790 }
 0x4a3   :  { %v3857_v0 = vmul.f32 50.0, %v3791_v1 }
 0x4a5   :  { %3922 = vst.msk [vmem:[%s7722_s7 + $0x1e8] sm:$0xff] %vm3860_vm0, %v3857_v0 }
 0x4a6   :  { %v3793_v15 = vpop.xlane.xlu0 %3792 }
 0x4a7   :  { %v3858_v41 = vmul.f32 50.0, %v3793_v15 }
 0x4a9   :  { %3923 = vst.msk [vmem:[%s7722_s7 + $0x1f0] sm:$0xff] %vm3860_vm0, %v3858_v41 }
 0x4aa   :  { %v3795_v22 = vpop.xlane.xlu1 %3794 }
 0x4ab   :  { %v3859_v7 = vmul.f32 50.0, %v3795_v22 }
 0x4ad   :  { %3924 = vst.msk [vmem:[%s7722_s7 + $0x1f8] sm:$0xff] %vm3860_vm0, %v3859_v7 }
 0x4ae   :  { %3929 = vsyncpa [#allocation3], 1 }
 0x4af   :  { %3930 = vsyncpa [#allocation5], 1 }
 0x4b0   :  { %3931 = vsyncpa [#allocation8], 1 }

// kernel: tpu_custom_call.1
= control target key start
LH: loop header
LB: loop body
LE: loop exit
PB: predicated region body
PF: predicated region fallthrough
CT: control target
= control target key end

     0   :  { %12 = vsyncpa [#allocation3], 0  ;;  %s7715_s0 = inlined_call_operand.hbm [shape: f32[512,128], index: 0, kind: input, shape index: {}]   ;;  %s7716_s1 = inlined_call_operand.hbm [shape: bf16[128,256], index: 1, kind: input, shape index: {}]   ;;  %s7717_s2 = inlined_call_operand.vmem [shape: f32[1,256], index: 2, kind: input, shape index: {}]   ;;  %s7718_s3 = inlined_call_operand.hbm [shape: bf16[256,256], index: 3, kind: input, shape index: {}]   ;;  %s7719_s4 = inlined_call_operand.vmem [shape: f32[1,256], index: 4, kind: input, shape index: {}]   ;;  %s7720_s5 = inlined_call_operand.hbm [shape: bf16[256,128], index: 5, kind: input, shape index: {}]   ;;  %s7721_s6 = inlined_call_operand.vmem [shape: f32[1,128], index: 6, kind: input, shape index: {}]   ;;  %s7722_s7 = inlined_call_operand.vmem [shape: f32[512,1], index: 7, kind: output, shape index: {}]  }
   0x1   :  { %13 = vsyncpa [#allocation5], 0 }
   0x2   :  { %14 = vsyncpa [#allocation8], 0  ;;  %s5541_s24 = smov [#allocation4]   ;;  %s5542_s26 = smov [#allocation2]  }
   0x3   :  { %s32_s25 = sshll.u32 %s5541_s24, 4  ;;  %s20_s27 = sshll.u32 %s5542_s26, 4  ;;  %s33_s25 = int_to_ptr.vmem [resolvable:$true] %s32_s25  ;;  %s21_s27 = int_to_ptr.vmem [resolvable:$true] %s20_s27 }
   0x4   :  { %s5463_s28 = scalar_lea.vmem %s33_s25, 2048  ;;  %p5468_p1 = scmp.lt.s32.totalorder %s33_s25, %s33_s25 }
   0x5   :  { %p5464_p0 = scmp.ne.s32.totalorder %s33_s25, %s5463_s28  ;;  %p5469_p2 = scmp.lt.s32.totalorder %s5463_s28, %s5463_s28 }
   0x7   :  { %p5470_p3 = por %p5469_p2, %p5468_p1 }
   0x9   :  { %p5471_p4 = pnand %p5470_p3, %p5464_p0 }
   0xb   :  { %5474 = shalt.err (!%p5471_p4)
}
   0xc   :  { %s5543_s29 = smov 128   ;;  %s5544_s30 = smov 8  }
   0xd   :  { %38 = dma.hbm_to_vmem [thread:$0]  %s7716_s1, 2048, %s33_s25, [#allocation5], %s5543_s29, %s5543_s29, %s5544_s30  }
   0xe   :  { %s5483_s10 = scalar_lea.vmem %s21_s27, 8192  ;;  %p5488_p6 = scmp.lt.s32.totalorder %s21_s27, %s21_s27 }
   0xf   :  { %p5484_p5 = scmp.ne.s32.totalorder %s21_s27, %s5483_s10  ;;  %p5489_p7 = scmp.lt.s32.totalorder %s5483_s10, %s5483_s10 }
  0x11   :  { %p5490_p8 = por %p5489_p7, %p5488_p6 }
  0x13   :  { %p5491_p9 = pnand %p5490_p8, %p5484_p5 }
  0x15   :  { %5494 = shalt.err (!%p5491_p9)
}
  0x16   :  { %26 = dma.hbm_to_vmem [thread:$0]  %s7715_s0, 8192, %s21_s27, [#allocation3], %s5543_s29, %s5543_s29, %s5544_s30  }
  0x17   :  { %s5545_s13 = smov [#allocation6]   ;;  %s5546_s15 = smov [#allocation7]  }
  0x18   :  { %s46_s14 = sshll.u32 %s5545_s13, 4  ;;  %s60_s16 = sshll.u32 %s5546_s15, 4  ;;  %s47_s14 = int_to_ptr.vmem [resolvable:$true] %s46_s14  ;;  %s61_s16 = int_to_ptr.vmem [resolvable:$true] %s60_s16 }
  0x19   :  { %s5503_s17 = scalar_lea.vmem %s47_s14, 4096  ;;  %p5508_p11 = scmp.lt.s32.totalorder %s47_s14, %s47_s14 }
  0x1a   :  { %p5504_p10 = scmp.ne.s32.totalorder %s47_s14, %s5503_s17  ;;  %p5509_p12 = scmp.lt.s32.totalorder %s5503_s17, %s5503_s17 }
  0x1c   :  { %p5510_p13 = por %p5509_p12, %p5508_p11 }
  0x1e   :  { %p5511_p0 = pnand %p5510_p13, %p5504_p10 }
  0x20   :  { %5514 = shalt.err (!%p5511_p0)
}
  0x21   :  { %52 = dma.hbm_to_vmem [thread:$0]  %s7718_s3, 4096, %s47_s14, [#allocation5], %s5543_s29, %s5543_s29, %s5544_s30  }
  0x22   :  { %s5523_s19 = scalar_lea.vmem %s61_s16, 2048  ;;  %p5528_p2 = scmp.lt.s32.totalorder %s61_s16, %s61_s16 }
  0x23   :  { %p5524_p1 = scmp.ne.s32.totalorder %s61_s16, %s5523_s19  ;;  %p5529_p3 = scmp.lt.s32.totalorder %s5523_s19, %s5523_s19 }
  0x25   :  { %p5530_p4 = por %p5529_p3, %p5528_p2 }
  0x27   :  { %p5531_p5 = pnand %p5530_p4, %p5524_p1 }
  0x29   :  { %5534 = shalt.err (!%p5531_p5)
}
  0x2a   :  { %s5547_s0 = smov 64   ;;  %s5548_s20 = smov 4  }
  0x2b   :  { %66 = dma.hbm_to_vmem [thread:$0]  %s7720_s5, 2048, %s61_s16, [#allocation8], %s5547_s0, %s5547_s0, %s5548_s20  }
  0x2c   :  { %5535 = dma.done.wait [#allocation3], 8192  }
  0x2d   :  { %5536 = vsyncadd [#allocation3], 4294959104 }
  0x2e   :  { %5537 = dma.done.wait [#allocation5], 6144  }
  0x2f   :  { %5538 = vsyncadd [#allocation5], 4294961152 }
  0x30   :  { %5539 = dma.done.wait [#allocation8], 2048  }
  0x31   :  { %5540 = vsyncadd [#allocation8], 4294965248  ;;  %v7725_v0 = vmov 0   ;;  %v4278_v1 = vld [vmem:[#allocation4 + $0x74] ss:$8 sps:$4 sm:$0xff]   ;;  %v82_v17 = vld [vmem:[#allocation2] sm:$0xff] }
  0x32   :  { %318 = vmatprep.mubr.bf16.mxu0 %v7725_v0  ;;  %478 = vmatprep.mubr.bf16.mxu1 %v7725_v0  ;;  %v4280_v2 = vld [vmem:[#allocation4 + $0x70] ss:$8 sps:$4 sm:$0xff]   ;;  %v4281_v3 = vld [vmem:[#allocation4 + $0x64] ss:$8 sps:$4 sm:$0xff]   ;;  %v4283_v4 = vld [vmem:[#allocation4 + $0x60] ss:$8 sps:$4 sm:$0xff]  }
  0x33   :  { %286 = vmatprep.subr.bf16.mxu0 %v4278_v1  ;;  %4253 = vmatprep.subr.bf16.mxu1 %v4278_v1  ;;  %v4284_v5 = vld [vmem:[#allocation4 + $0x54] ss:$8 sps:$4 sm:$0xff]   ;;  %v4286_v6 = vld [vmem:[#allocation4 + $0x50] ss:$8 sps:$4 sm:$0xff]   ;;  %v4287_v7 = vld [vmem:[#allocation4 + $0x44] ss:$8 sps:$4 sm:$0xff]  }
  0x34   :  { %287 = vmatpush1.bf16.msra.mxu0 %v4280_v2  ;;  %4261 = vmatpush1.bf16.msra.mxu1 %v4280_v2  ;;  %v4289_v8 = vld [vmem:[#allocation4 + $0x40] ss:$8 sps:$4 sm:$0xff]   ;;  %v4290_v9 = vld [vmem:[#allocation4 + $0x34] ss:$8 sps:$4 sm:$0xff]   ;;  %v4292_v10 = vld [vmem:[#allocation4 + $0x30] ss:$8 sps:$4 sm:$0xff]  }
  0x35   :  { %288 = vmatprep.subr.bf16.mxu0 %v4281_v3  ;;  %4254 = vmatprep.subr.bf16.mxu1 %v4281_v3  ;;  %v4293_v11 = vld [vmem:[#allocation4 + $0x24] ss:$8 sps:$4 sm:$0xff]   ;;  %v4295_v12 = vld [vmem:[#allocation4 + $0x20] ss:$8 sps:$4 sm:$0xff]   ;;  %v4296_v13 = vld [vmem:[#allocation4 + $0x14] ss:$8 sps:$4 sm:$0xff]  }
  0x36   :  { %v4298_v14 = vld [vmem:[#allocation4 + $0x10] ss:$8 sps:$4 sm:$0xff]   ;;  %v4299_v15 = vld [vmem:[#allocation4 + $0x4] ss:$8 sps:$4 sm:$0xff]   ;;  %v4301_v16 = vld [vmem:[#allocation4] ss:$8 sps:$4 sm:$0xff]  }
  0x37   :  { %v83_v18 = vld [vmem:[#allocation2 + $0x8] sm:$0xff]  ;;  %v114_v19 = vld [vmem:[#allocation2 + $0x100] sm:$0xff]  ;;  %v4304_v21 = vld [vmem:[#allocation6 + $0x74] ss:$8 sps:$4 sm:$0xff]   ;;  %vm3860_vm0 = vcmask 7168  }
  0x38   :  { %289 = vmatpush1.bf16.msra.mxu0 %v4283_v4  ;;  %4262 = vmatpush1.bf16.msra.mxu1 %v4283_v4  ;;  %v115_v20 = vld [vmem:[#allocation2 + $0x108] sm:$0xff]  ;;  %v146_v22 = vpack.c.bf16 %v83_v18, %v82_v17  ;;  %v4302_v24 = vld [vmem:[#allocation6 + $0x70] ss:$8 sps:$4 sm:$0xff]   ;;  %v4310_v31 = vld [vmem:[#allocation6 + $0x54] ss:$8 sps:$4 sm:$0xff]  }
  0x39   :  { %290 = vmatprep.subr.bf16.mxu0 %v4284_v5  ;;  %4255 = vmatprep.subr.bf16.mxu1 %v4284_v5  ;;  %v162_v23 = vpack.c.bf16 %v115_v20, %v114_v19  ;;  %v4307_v25 = vld [vmem:[#allocation6 + $0x64] ss:$8 sps:$4 sm:$0xff]   ;;  %v84_v26 = vld [vmem:[#allocation2 + $0x10] sm:$0xff]  ;;  %v85_v27 = vld [vmem:[#allocation2 + $0x18] sm:$0xff] }
  0x3a   :  { %v116_v28 = vld [vmem:[#allocation2 + $0x110] sm:$0xff]  ;;  %v117_v29 = vld [vmem:[#allocation2 + $0x118] sm:$0xff]  ;;  %v4305_v30 = vld [vmem:[#allocation6 + $0x60] ss:$8 sps:$4 sm:$0xff]   ;;  %v147_v32 = vpack.c.bf16 %v85_v27, %v84_v26 }
  0x3b   :  { %v163_v33 = vpack.c.bf16 %v117_v29, %v116_v28  ;;  %v4308_v34 = vld [vmem:[#allocation6 + $0x50] ss:$8 sps:$4 sm:$0xff]   ;;  %v4313_v35 = vld [vmem:[#allocation6 + $0x44] ss:$8 sps:$4 sm:$0xff]   ;;  %v4311_v40 = vld [vmem:[#allocation6 + $0x40] ss:$8 sps:$4 sm:$0xff]  }
  0x3c   :  { %291 = vmatpush1.bf16.msra.mxu0 %v4286_v6  ;;  %4263 = vmatpush1.bf16.msra.mxu1 %v4286_v6  ;;  %v86_v36 = vld [vmem:[#allocation2 + $0x20] sm:$0xff]  ;;  %v87_v37 = vld [vmem:[#allocation2 + $0x28] sm:$0xff]  ;;  %v4316_v41 = vld [vmem:[#allocation6 + $0x34] ss:$8 sps:$4 sm:$0xff]  }
  0x3d   :  { %292 = vmatprep.subr.bf16.mxu0 %v4287_v7  ;;  %4256 = vmatprep.subr.bf16.mxu1 %v4287_v7  ;;  %v118_v38 = vld [vmem:[#allocation2 + $0x120] sm:$0xff]  ;;  %v119_v39 = vld [vmem:[#allocation2 + $0x128] sm:$0xff]  ;;  %v148_v42 = vpack.c.bf16 %v87_v37, %v86_v36  ;;  %v4314_v44 = vld [vmem:[#allocation6 + $0x30] ss:$8 sps:$4 sm:$0xff]  }
  0x3e   :  { %v164_v43 = vpack.c.bf16 %v119_v39, %v118_v38  ;;  %v4319_v45 = vld [vmem:[#allocation6 + $0x24] ss:$8 sps:$4 sm:$0xff]   ;;  %v88_v46 = vld [vmem:[#allocation2 + $0x30] sm:$0xff]  ;;  %v89_v47 = vld [vmem:[#allocation2 + $0x38] sm:$0xff] }
  0x3f   :  { %v120_v48 = vld [vmem:[#allocation2 + $0x130] sm:$0xff]  ;;  %v121_v49 = vld [vmem:[#allocation2 + $0x138] sm:$0xff]  ;;  %v4317_v50 = vld [vmem:[#allocation6 + $0x20] ss:$8 sps:$4 sm:$0xff]   ;;  %v149_v52 = vpack.c.bf16 %v89_v47, %v88_v46 }
  0x40   :  { %293 = vmatpush1.bf16.msra.mxu0 %v4289_v8  ;;  %4264 = vmatpush1.bf16.msra.mxu1 %v4289_v8  ;;  %v4322_v51 = vld [vmem:[#allocation6 + $0x14] ss:$8 sps:$4 sm:$0xff]   ;;  %v165_v53 = vpack.c.bf16 %v121_v49, %v120_v48  ;;  %v4320_v54 = vld [vmem:[#allocation6 + $0x10] ss:$8 sps:$4 sm:$0xff]   ;;  %v4325_v55 = vld [vmem:[#allocation6 + $0x4] ss:$8 sps:$4 sm:$0xff]  }
  0x41   :  { %294 = vmatprep.subr.bf16.mxu0 %v4290_v9  ;;  %4257 = vmatprep.subr.bf16.mxu1 %v4290_v9  ;;  %v90_v56 = vld [vmem:[#allocation2 + $0x40] sm:$0xff]  ;;  %v91_v57 = vld [vmem:[#allocation2 + $0x48] sm:$0xff]  ;;  %v4328_v61 = vld [vmem:[#allocation6 + $0xf4] ss:$8 sps:$4 sm:$0xff]  }
  0x42   :  { %v122_v58 = vld [vmem:[#allocation2 + $0x140] sm:$0xff]  ;;  %v123_v59 = vld [vmem:[#allocation2 + $0x148] sm:$0xff]  ;;  %v150_v62 = vpack.c.bf16 %v91_v57, %v90_v56  ;;  %v4326_v1 = vld [vmem:[#allocation6 + $0xf0] ss:$8 sps:$4 sm:$0xff]  }
  0x43   :  { %v4323_v60 = vld [vmem:[#allocation6] ss:$8 sps:$4 sm:$0xff]   ;;  %v166_v63 = vpack.c.bf16 %v123_v59, %v122_v58  ;;  %v4331_v2 = vld [vmem:[#allocation6 + $0xe4] ss:$8 sps:$4 sm:$0xff]   ;;  %v92_v3 = vld [vmem:[#allocation2 + $0x50] sm:$0xff] }
  0x44   :  { %295 = vmatpush1.bf16.msra.mxu0 %v4292_v10  ;;  %4265 = vmatpush1.bf16.msra.mxu1 %v4292_v10  ;;  %v93_v4 = vld [vmem:[#allocation2 + $0x58] sm:$0xff]  ;;  %v124_v5 = vld [vmem:[#allocation2 + $0x150] sm:$0xff]  ;;  %v4329_v7 = vld [vmem:[#allocation6 + $0xe0] ss:$8 sps:$4 sm:$0xff]  }
  0x45   :  { %296 = vmatprep.subr.bf16.mxu0 %v4293_v11  ;;  %4258 = vmatprep.subr.bf16.mxu1 %v4293_v11  ;;  %v125_v6 = vld [vmem:[#allocation2 + $0x158] sm:$0xff]  ;;  %v151_v9 = vpack.c.bf16 %v93_v4, %v92_v3  ;;  %v96_v18 = vld [vmem:[#allocation2 + $0x70] sm:$0xff]  ;;  %v130_v26 = vld [vmem:[#allocation2 + $0x180] sm:$0xff] }
  0x46   :  { %v4334_v8 = vld [vmem:[#allocation6 + $0xd4] ss:$8 sps:$4 sm:$0xff]   ;;  %v167_v10 = vpack.c.bf16 %v125_v6, %v124_v5  ;;  %v4332_v11 = vld [vmem:[#allocation6 + $0xd0] ss:$8 sps:$4 sm:$0xff]   ;;  %v131_v27 = vld [vmem:[#allocation2 + $0x188] sm:$0xff] }
  0x47   :  { %v97_v19 = vld [vmem:[#allocation2 + $0x78] sm:$0xff]  ;;  %v128_v20 = vld [vmem:[#allocation2 + $0x170] sm:$0xff]  ;;  %v170_v29 = vpack.c.bf16 %v131_v27, %v130_v26  ;;  %v102_v36 = vld [vmem:[#allocation2 + $0xa0] sm:$0xff] }
  0x48   :  { %297 = vmatpush1.bf16.msra.mxu0 %v4295_v12  ;;  %4266 = vmatpush1.bf16.msra.mxu1 %v4295_v12  ;;  %v94_v12 = vld [vmem:[#allocation2 + $0x60] sm:$0xff]  ;;  %v103_v37 = vld [vmem:[#allocation2 + $0xa8] sm:$0xff]  ;;  %v4340_v56 = vld [vmem:[#allocation6 + $0xb4] ss:$8 sps:$4 sm:$0xff]  }
  0x49   :  { %298 = vmatprep.subr.bf16.mxu0 %v4296_v13  ;;  %4259 = vmatprep.subr.bf16.mxu1 %v4296_v13  ;;  %v95_v13 = vld [vmem:[#allocation2 + $0x68] sm:$0xff]  ;;  %v134_v38 = vld [vmem:[#allocation2 + $0x1a0] sm:$0xff]  ;;  %v4338_v57 = vld [vmem:[#allocation6 + $0xb0] ss:$8 sps:$4 sm:$0xff]  }
  0x4a   :  { %v135_v39 = vld [vmem:[#allocation2 + $0x1a8] sm:$0xff]  ;;  %v106_v48 = vld [vmem:[#allocation2 + $0xc0] sm:$0xff]  ;;  %v108_v58 = vld [vmem:[#allocation2 + $0xd0] sm:$0xff] }
  0x4b   :  { %v107_v49 = vld [vmem:[#allocation2 + $0xc8] sm:$0xff]  ;;  %v109_v59 = vld [vmem:[#allocation2 + $0xd8] sm:$0xff]  ;;  %v110_v5 = vld [vmem:[#allocation2 + $0xe0] sm:$0xff] }
  0x4c   :  { %299 = vmatpush1.bf16.msra.mxu0 %v4298_v14  ;;  %4267 = vmatpush1.bf16.msra.mxu1 %v4298_v14  ;;  %v126_v14 = vld [vmem:[#allocation2 + $0x160] sm:$0xff]  ;;  %v4346_v3 = vld [vmem:[#allocation6 + $0x94] ss:$8 sps:$4 sm:$0xff]   ;;  %v4344_v4 = vld [vmem:[#allocation6 + $0x90] ss:$8 sps:$4 sm:$0xff]  }
  0x4d   :  { %300 = vmatprep.subr.bf16.mxu0 %v4299_v15  ;;  %4260 = vmatprep.subr.bf16.mxu1 %v4299_v15  ;;  %v127_v15 = vld [vmem:[#allocation2 + $0x168] sm:$0xff] }
  0x4e   :  { %v168_v17 = vpack.c.bf16 %v127_v15, %v126_v14  ;;  %v111_v6 = vld [vmem:[#allocation2 + $0xe8] sm:$0xff]  ;;  %v113_v14 = vld [vmem:[#allocation2 + $0xf8] sm:$0xff]  ;;  %v144_v15 = vld [vmem:[#allocation2 + $0x1f0] sm:$0xff] }
  0x50   :  { %301 = vmatpush1.bf16.msra.mxu0 %v4301_v16  ;;  %4268 = vmatpush1.bf16.msra.mxu1 %v4301_v16  ;;  %v152_v16 = vpack.c.bf16 %v95_v13, %v94_v12  ;;  %v112_v13 = vld [vmem:[#allocation2 + $0xf0] sm:$0xff] }
  0x51   :  { %1803 = vmatprep.subr.bf16.mxu1 %v4304_v21  ;;  %3251 = vmatprep.subr.bf16.mxu0 %v7725_v0  ;;  %v129_v21 = vld [vmem:[#allocation2 + $0x178] sm:$0xff] }
  0x53   :  { %319 = vmatmul.mubr.bf16.vlgmr.msra.gmra.mxu0 %v146_v22  ;;  %479 = vmatmul.mubr.bf16.vlgmr.msra.gmra.mxu1 %v162_v23  ;;  %v153_v22 = vpack.c.bf16 %v97_v19, %v96_v18  ;;  %v169_v23 = vpack.c.bf16 %v129_v21, %v128_v20  ;;  %v196_v19 = vlaneseq }
  0x54   :  { %328 = vmatprep.mubr.bf16.mxu0 %v7725_v0  ;;  %488 = vmatprep.mubr.bf16.mxu1 %v7725_v0 }
  0x55   :  { %1804 = vmatpush1.bf16.msra.mxu1 %v4302_v24  ;;  %v98_v24 = vld [vmem:[#allocation2 + $0x80] sm:$0xff]  ;;  %v5635_v20 = vshrl.u32 %v196_v19, 7 }
  0x56   :  { %1805 = vmatprep.subr.bf16.mxu1 %v4307_v25  ;;  %v99_v25 = vld [vmem:[#allocation2 + $0x88] sm:$0xff] }
  0x57   :  { %v154_v28 = vpack.c.bf16 %v99_v25, %v98_v24  ;;  %7781 = vst [vmem:[#allocation12_spill] sm:$0xff] %v5635_v20  ;;  %v7724_v21 = vsub.s32 0, %v5635_v20 }
  0x59   :  { %1806 = vmatpush1.bf16.msra.mxu1 %v4305_v30  ;;  %v100_v30 = vld [vmem:[#allocation2 + $0x90] sm:$0xff] }
  0x5a   :  { %1807 = vmatprep.subr.bf16.mxu1 %v4310_v31  ;;  %v101_v31 = vld [vmem:[#allocation2 + $0x98] sm:$0xff] }
  0x5b   :  { %329 = vmatmul.mubr.bf16.gmra.mxu0 %v147_v32  ;;  %489 = vmatmul.mubr.bf16.gmra.mxu1 %v163_v33  ;;  %v132_v32 = vld [vmem:[#allocation2 + $0x190] sm:$0xff]  ;;  %v133_v33 = vld [vmem:[#allocation2 + $0x198] sm:$0xff] }
  0x5c   :  { %338 = vmatprep.mubr.bf16.mxu0 %v7725_v0  ;;  %498 = vmatprep.mubr.bf16.mxu1 %v7725_v0 }
  0x5d   :  { %1808 = vmatpush1.bf16.msra.mxu1 %v4308_v34  ;;  %v155_v34 = vpack.c.bf16 %v101_v31, %v100_v30 }
  0x5e   :  { %1809 = vmatprep.subr.bf16.mxu1 %v4313_v35  ;;  %v171_v35 = vpack.c.bf16 %v133_v33, %v132_v32 }
  0x61   :  { %1810 = vmatpush1.bf16.msra.mxu1 %v4311_v40  ;;  %v156_v40 = vpack.c.bf16 %v103_v37, %v102_v36 }
  0x62   :  { %1811 = vmatprep.subr.bf16.mxu1 %v4316_v41  ;;  %v172_v41 = vpack.c.bf16 %v135_v39, %v134_v38 }
  0x63   :  { %339 = vmatmul.mubr.bf16.gmra.mxu0 %v148_v42  ;;  %499 = vmatmul.mubr.bf16.gmra.mxu1 %v164_v43  ;;  %v104_v42 = vld [vmem:[#allocation2 + $0xb0] sm:$0xff]  ;;  %v105_v43 = vld [vmem:[#allocation2 + $0xb8] sm:$0xff] }
  0x64   :  { %348 = vmatprep.mubr.bf16.mxu0 %v7725_v0  ;;  %508 = vmatprep.mubr.bf16.mxu1 %v7725_v0  ;;  %v157_v46 = vpack.c.bf16 %v105_v43, %v104_v42 }
  0x65   :  { %1812 = vmatpush1.bf16.msra.mxu1 %v4314_v44  ;;  %v136_v44 = vld [vmem:[#allocation2 + $0x1b0] sm:$0xff] }
  0x66   :  { %1813 = vmatprep.subr.bf16.mxu1 %v4319_v45  ;;  %v137_v45 = vld [vmem:[#allocation2 + $0x1b8] sm:$0xff] }
  0x67   :  { %v173_v47 = vpack.c.bf16 %v137_v45, %v136_v44 }
  0x69   :  { %1814 = vmatpush1.bf16.msra.mxu1 %v4317_v50  ;;  %v4337_v50 = vld [vmem:[#allocation6 + $0xc4] ss:$8 sps:$4 sm:$0xff]  }
  0x6a   :  { %1815 = vmatprep.subr.bf16.mxu1 %v4322_v51  ;;  %v138_v51 = vld [vmem:[#allocation2 + $0x1c0] sm:$0xff] }
  0x6b   :  { %349 = vmatmul.mubr.bf16.gmra.mxu0 %v149_v52  ;;  %509 = vmatmul.mubr.bf16.gmra.mxu1 %v165_v53  ;;  %v139_v52 = vld [vmem:[#allocation2 + $0x1c8] sm:$0xff] }
  0x6c   :  { %358 = vmatprep.mubr.bf16.mxu0 %v7725_v0  ;;  %518 = vmatprep.mubr.bf16.mxu1 %v7725_v0  ;;  %v4335_v53 = vld [vmem:[#allocation6 + $0xc0] ss:$8 sps:$4 sm:$0xff]  }
  0x6d   :  { %1816 = vmatpush1.bf16.msra.mxu1 %v4320_v54  ;;  %v158_v54 = vpack.c.bf16 %v107_v49, %v106_v48 }
  0x6e   :  { %1817 = vmatprep.subr.bf16.mxu1 %v4325_v55  ;;  %v174_v55 = vpack.c.bf16 %v139_v52, %v138_v51 }
  0x71   :  { %1818 = vmatpush1.bf16.msra.mxu1 %v4323_v60  ;;  %v140_v60 = vld [vmem:[#allocation2 + $0x1d0] sm:$0xff] }
  0x72   :  { %1819 = vmatprep.subr.bf16.mxu1 %v4328_v61  ;;  %v141_v61 = vld [vmem:[#allocation2 + $0x1d8] sm:$0xff] }
  0x73   :  { %359 = vmatmul.mubr.bf16.gmra.mxu0 %v150_v62  ;;  %519 = vmatmul.mubr.bf16.gmra.mxu1 %v166_v63  ;;  %v4343_v62 = vld [vmem:[#allocation6 + $0xa4] ss:$8 sps:$4 sm:$0xff]   ;;  %v4341_v63 = vld [vmem:[#allocation6 + $0xa0] ss:$8 sps:$4 sm:$0xff]  }
  0x74   :  { %368 = vmatprep.mubr.bf16.mxu0 %v7725_v0  ;;  %528 = vmatprep.mubr.bf16.mxu1 %v7725_v0 }
  0x75   :  { %1820 = vmatpush2.bf16.msra.mxu1 %v4326_v1  ;;  %v159_v1 = vpack.c.bf16 %v109_v59, %v108_v58 }
  0x76   :  { %1821 = vmatprep.subr.bf16.mxu1 %v4331_v2  ;;  %v175_v2 = vpack.c.bf16 %v141_v61, %v140_v60 }
  0x79   :  { %1822 = vmatpush2.bf16.msra.mxu1 %v4329_v7  ;;  %v142_v7 = vld [vmem:[#allocation2 + $0x1e0] sm:$0xff] }
  0x7a   :  { %1823 = vmatprep.subr.bf16.mxu1 %v4334_v8  ;;  %v143_v8 = vld [vmem:[#allocation2 + $0x1e8] sm:$0xff] }
  0x7b   :  { %369 = vmatmul.mubr.bf16.gmra.mxu0 %v151_v9  ;;  %529 = vmatmul.mubr.bf16.gmra.mxu1 %v167_v10  ;;  %v4349_v9 = vld [vmem:[#allocation6 + $0x84] ss:$8 sps:$4 sm:$0xff]   ;;  %v4347_v10 = vld [vmem:[#allocation6 + $0x80] ss:$8 sps:$4 sm:$0xff]   ;;  %v176_v12 = vpack.c.bf16 %v143_v8, %v142_v7 }
  0x7c   :  { %378 = vmatprep.mubr.bf16.mxu0 %v7725_v0  ;;  %538 = vmatprep.mubr.bf16.mxu1 %v7725_v0 }
  0x7d   :  { %1824 = vmatpush2.bf16.msra.mxu1 %v4332_v11  ;;  %v160_v11 = vpack.c.bf16 %v111_v6, %v110_v5 }
  0x7e   :  { %1825 = vmatprep.subr.bf16.mxu1 %v4337_v50 }
  0x81   :  { %1826 = vmatpush2.bf16.msra.mxu1 %v4335_v53 }
  0x82   :  { %1827 = vmatprep.subr.bf16.mxu1 %v4340_v56 }
  0x83   :  { %379 = vmatmul.mubr.bf16.gmra.mxu0 %v152_v16  ;;  %539 = vmatmul.mubr.bf16.gmra.mxu1 %v168_v17  ;;  %v145_v16 = vld [vmem:[#allocation2 + $0x1f8] sm:$0xff]  ;;  %v161_v17 = vpack.c.bf16 %v113_v14, %v112_v13 }
  0x84   :  { %388 = vmatprep.mubr.bf16.mxu0 %v7725_v0  ;;  %548 = vmatprep.mubr.bf16.mxu1 %v7725_v0  ;;  %v177_v18 = vpack.c.bf16 %v145_v16, %v144_v15 }
  0x85   :  { %1828 = vmatpush2.bf16.msra.mxu1 %v4338_v57 }
  0x86   :  { %1829 = vmatprep.subr.bf16.mxu1 %v4343_v62 }
  0x89   :  { %1830 = vmatpush2.bf16.msra.mxu1 %v4341_v63 }
  0x8a   :  { %1831 = vmatprep.subr.bf16.mxu1 %v4346_v3 }
  0x8b   :  { %389 = vmatmul.mubr.bf16.gmra.mxu0 %v153_v22  ;;  %549 = vmatmul.mubr.bf16.gmra.mxu1 %v169_v23  ;;  %v194_v22 = vld [vmem:[%s7717_s2] sm:$0x3]  ;;  %v7723_v23 = vsub.s32 1, %v5635_v20 }
  0x8c   :  { %398 = vmatprep.mubr.bf16.mxu0 %v7725_v0  ;;  %558 = vmatprep.mubr.bf16.mxu1 %v7725_v0  ;;  %v5644_v24 = vrot.slane %v194_v22, %v7724_v21 }
  0x8d   :  { %1832 = vmatpush2.bf16.msra.mxu1 %v4344_v4  ;;  %v5648_v25 = vrot.slane %v194_v22, %v7723_v23 }
  0x8e   :  { %1833 = vmatprep.subr.bf16.mxu1 %v4349_v9 }
  0x91   :  { %1834 = vmatpush2.bf16.msra.mxu1 %v4347_v10 }
  0x93   :  { %399 = vmatmul.mubr.bf16.gmra.mxu0 %v154_v28  ;;  %559 = vmatmul.mubr.bf16.gmra.mxu1 %v170_v29 }
  0x94   :  { %408 = vmatprep.mubr.bf16.mxu0 %v7725_v0  ;;  %568 = vmatprep.mubr.bf16.mxu1 %v7725_v0 }
  0x9b   :  { %409 = vmatmul.mubr.bf16.gmra.mxu0 %v155_v34  ;;  %569 = vmatmul.mubr.bf16.gmra.mxu1 %v171_v35 }
  0x9c   :  { %418 = vmatprep.mubr.bf16.mxu0 %v7725_v0  ;;  %578 = vmatprep.mubr.bf16.mxu1 %v7725_v0 }
  0xa3   :  { %419 = vmatmul.mubr.bf16.gmra.mxu0 %v156_v40  ;;  %579 = vmatmul.mubr.bf16.gmra.mxu1 %v172_v41 }
  0xa4   :  { %428 = vmatprep.mubr.bf16.mxu0 %v7725_v0  ;;  %588 = vmatprep.mubr.bf16.mxu1 %v7725_v0 }
  0xab   :  { %429 = vmatmul.mubr.bf16.gmra.mxu0 %v157_v46  ;;  %589 = vmatmul.mubr.bf16.gmra.mxu1 %v173_v47 }
  0xac   :  { %438 = vmatprep.mubr.bf16.mxu0 %v7725_v0  ;;  %598 = vmatprep.mubr.bf16.mxu1 %v7725_v0 }
  0xb3   :  { %439 = vmatmul.mubr.bf16.gmra.mxu0 %v158_v54  ;;  %599 = vmatmul.mubr.bf16.gmra.mxu1 %v174_v55 }
  0xb4   :  { %448 = vmatprep.mubr.bf16.mxu0 %v7725_v0  ;;  %608 = vmatprep.mubr.bf16.mxu1 %v7725_v0 }
  0xbb   :  { %449 = vmatmul.mubr.bf16.gmra.mxu0 %v159_v1  ;;  %609 = vmatmul.mubr.bf16.gmra.mxu1 %v175_v2 }
  0xbc   :  { %458 = vmatprep.mubr.bf16.mxu0 %v7725_v0  ;;  %618 = vmatprep.mubr.bf16.mxu1 %v7725_v0 }
  0xc3   :  { %459 = vmatmul.mubr.bf16.gmra.mxu0 %v160_v11  ;;  %619 = vmatmul.mubr.bf16.gmra.mxu1 %v176_v12 }
  0xc4   :  { %468 = vmatprep.mubr.bf16.mxu0 %v7725_v0  ;;  %628 = vmatprep.mubr.bf16.mxu1 %v7725_v0 }
  0xcb   :  { %469 = vmatmul.mubr.bf16.gmra.mxu0 %v161_v17  ;;  %629 = vmatmul.mubr.bf16.gmra.mxu1 %v177_v18 }
 0x113   :  { %v320_v26 = vpop.f32.mrf.mxu0  ;;  %v480_v27 = vpop.f32.mrf.mxu1 }
 0x114   :  { %v5651_v28 = vadd.f32 %v320_v26, %v5644_v24  ;;  %v5654_v29 = vadd.f32 %v480_v27, %v5644_v24 }
 0x115   :  { %v322_v30 = vpop.f32.mrf.mxu0  ;;  %v482_v31 = vpop.f32.mrf.mxu1 }
 0x116   :  { %7782 = vst [vmem:[#allocation13_spill] sm:$0xff] %v5654_v29  ;;  %v3948_v32 = vmul.f32 -1.442695, %v5651_v28  ;;  %v5658_v33 = vadd.f32 %v322_v30, %v5648_v25  ;;  %v4012_v34 = vmul.f32 -1.442695, %v5654_v29  ;;  %v5662_v35 = vadd.f32 %v482_v31, %v5648_v25 }
 0x117   :  { %v324_v36 = vpop.f32.mrf.mxu0  ;;  %v484_v37 = vpop.f32.mrf.mxu1 }
 0x118   :  { %7783 = vst [vmem:[#allocation14_spill] sm:$0xff] %v5662_v35  ;;  %4366 = vpow2.f32 %v3948_v32  ;;  %v3949_v38 = vmul.f32 -1.442695, %v5658_v33  ;;  %v5666_v39 = vadd.f32 %v324_v36, %v5644_v24  ;;  %v4013_v40 = vmul.f32 -1.442695, %v5662_v35 }
 0x119   :  { %v326_v41 = vpop.f32.mrf.mxu0  ;;  %4368 = vpow2.f32 %v4012_v34  ;;  %v5670_v42 = vadd.f32 %v484_v37, %v5644_v24  ;;  %v486_v43 = vpop.f32.mrf.mxu1 }
 0x11a   :  { %4370 = vpow2.f32 %v3949_v38  ;;  %v3950_v44 = vmul.f32 -1.442695, %v5666_v39  ;;  %v5674_v45 = vadd.f32 %v326_v41, %v5648_v25  ;;  %v5677_v46 = vadd.f32 %v486_v43, %v5648_v25 }
 0x11b   :  { %7784 = vst [vmem:[#allocation15_spill] sm:$0xff] %v5670_v42  ;;  %v330_v47 = vpop.f32.mrf.mxu0  ;;  %4372 = vpow2.f32 %v4013_v40  ;;  %v4014_v48 = vmul.f32 -1.442695, %v5670_v42  ;;  %v490_v49 = vpop.f32.mrf.mxu1 }
 0x11c   :  { %7785 = vst [vmem:[#allocation16_spill] sm:$0xff] %v5677_v46  ;;  %4374 = vpow2.f32 %v3950_v44  ;;  %v3951_v50 = vmul.f32 -1.442695, %v5674_v45  ;;  %v5682_v51 = vadd.f32 %v330_v47, %v5644_v24  ;;  %v4015_v52 = vmul.f32 -1.442695, %v5677_v46 }
 0x11d   :  { %v332_v53 = vpop.f32.mrf.mxu0  ;;  %4376 = vpow2.f32 %v4014_v48  ;;  %v5686_v54 = vadd.f32 %v490_v49, %v5644_v24  ;;  %v492_v55 = vpop.f32.mrf.mxu1 }
 0x11e   :  { %4378 = vpow2.f32 %v3951_v50  ;;  %v3952_v56 = vmul.f32 -1.442695, %v5682_v51  ;;  %v5690_v57 = vadd.f32 %v332_v53, %v5648_v25  ;;  %v5693_v58 = vadd.f32 %v492_v55, %v5648_v25 }
 0x11f   :  { %7786 = vst [vmem:[#allocation17_spill] sm:$0xff] %v5686_v54  ;;  %v334_v59 = vpop.f32.mrf.mxu0  ;;  %4380 = vpow2.f32 %v4015_v52  ;;  %v4016_v60 = vmul.f32 -1.442695, %v5686_v54  ;;  %v494_v61 = vpop.f32.mrf.mxu1 }
 0x120   :  { %7787 = vst [vmem:[#allocation18_spill] sm:$0xff] %v5693_v58  ;;  %4382 = vpow2.f32 %v3952_v56  ;;  %v3953_v62 = vmul.f32 -1.442695, %v5690_v57  ;;  %v5698_v63 = vadd.f32 %v334_v59, %v5644_v24  ;;  %v4017_v1 = vmul.f32 -1.442695, %v5693_v58 }
 0x121   :  { %v336_v2 = vpop.f32.mrf.mxu0  ;;  %4384 = vpow2.f32 %v4016_v60  ;;  %v5702_v3 = vadd.f32 %v494_v61, %v5644_v24  ;;  %v496_v4 = vpop.f32.mrf.mxu1 }
 0x122   :  { %4386 = vpow2.f32 %v3953_v62  ;;  %v3954_v5 = vmul.f32 -1.442695, %v5698_v63  ;;  %v5706_v6 = vadd.f32 %v336_v2, %v5648_v25  ;;  %v5709_v7 = vadd.f32 %v496_v4, %v5648_v25 }
 0x123   :  { %7788 = vst [vmem:[#allocation19_spill] sm:$0xff] %v5702_v3  ;;  %v340_v8 = vpop.f32.mrf.mxu0  ;;  %4388 = vpow2.f32 %v4017_v1  ;;  %v4018_v9 = vmul.f32 -1.442695, %v5702_v3  ;;  %v5712_v10 = vpop.f32.mrf.mxu1 }
 0x124   :  { %7789 = vst [vmem:[#allocation20_spill] sm:$0xff] %v5709_v7  ;;  %4390 = vpow2.f32 %v3954_v5  ;;  %v3955_v11 = vmul.f32 -1.442695, %v5706_v6  ;;  %v5716_v12 = vadd.f32 %v340_v8, %v5644_v24  ;;  %v4019_v13 = vmul.f32 -1.442695, %v5709_v7 }
 0x125   :  { %v4367_v14 = vpop.eup %4366  ;;  %v342_v15 = vpop.f32.mrf.mxu0  ;;  %4392 = vpow2.f32 %v4018_v9 }
 0x126   :  { %v5719_v16 = vpop.eup %4368  ;;  %v1023_v17 = vadd.f32 1.0, %v4367_v14  ;;  %4394 = vpow2.f32 %v3955_v11  ;;  %v3956_v18 = vmul.f32 -1.442695, %v5716_v12  ;;  %v5723_v19 = vadd.f32 %v342_v15, %v5648_v25  ;;  %v5725_v27 = vpop.f32.mrf.mxu1 }
 0x127   :  { %v4371_v22 = vpop.eup %4370  ;;  %v344_v26 = vpop.f32.mrf.mxu0  ;;  %4396 = vpow2.f32 %v4019_v13 }
 0x128   :  { %v5727_v30 = vpop.eup %4372  ;;  %4398 = vrcp.f32 %v1023_v17  ;;  %v1024_v31 = vadd.f32 1.0, %v4371_v22  ;;  %v3957_v32 = vmul.f32 -1.442695, %v5723_v19  ;;  %v5731_v34 = vadd.f32 %v344_v26, %v5644_v24  ;;  %v5739_v48 = vpop.f32.mrf.mxu1 }
 0x129   :  { %v4375_v36 = vpop.eup %4374  ;;  %4400 = vpow2.f32 %v3956_v18  ;;  %v346_v37 = vpop.f32.mrf.mxu0 }
 0x12a   :  { %v5733_v38 = vpop.eup %4376  ;;  %4402 = vrcp.f32 %v1024_v31  ;;  %v1025_v40 = vadd.f32 1.0, %v4375_v36  ;;  %v3958_v41 = vmul.f32 -1.442695, %v5731_v34  ;;  %v5737_v43 = vadd.f32 %v346_v37, %v5648_v25  ;;  %v5753_v4 = vpop.f32.mrf.mxu1 }
 0x12b   :  { %v4379_v44 = vpop.eup %4378  ;;  %4404 = vpow2.f32 %v3957_v32  ;;  %v350_v47 = vpop.f32.mrf.mxu0 }
 0x12c   :  { %v5741_v49 = vpop.eup %4380  ;;  %4406 = vrcp.f32 %v1025_v40  ;;  %v1026_v50 = vadd.f32 1.0, %v4379_v44  ;;  %v3959_v52 = vmul.f32 -1.442695, %v5737_v43  ;;  %v5745_v53 = vadd.f32 %v350_v47, %v5644_v24  ;;  %v5767_v32 = vpop.f32.mrf.mxu1 }
 0x12d   :  { %v4383_v55 = vpop.eup %4382  ;;  %4408 = vpow2.f32 %v3958_v41  ;;  %v352_v56 = vpop.f32.mrf.mxu0 }
 0x12e   :  { %v5747_v59 = vpop.eup %4384  ;;  %4410 = vrcp.f32 %v1026_v50  ;;  %v1027_v60 = vadd.f32 1.0, %v4383_v55  ;;  %v3960_v61 = vmul.f32 -1.442695, %v5745_v53  ;;  %v5751_v62 = vadd.f32 %v352_v56, %v5648_v25 }
 0x12f   :  { %v4387_v1 = vpop.eup %4386  ;;  %4412 = vpow2.f32 %v3959_v52  ;;  %v354_v2 = vpop.f32.mrf.mxu0 }
 0x130   :  { %v5755_v5 = vpop.eup %4388  ;;  %4414 = vrcp.f32 %v1027_v60  ;;  %v1028_v8 = vadd.f32 1.0, %v4387_v1  ;;  %v3961_v9 = vmul.f32 -1.442695, %v5751_v62  ;;  %v5759_v11 = vadd.f32 %v354_v2, %v5644_v24  ;;  %v5779_v1 = vpop.f32.mrf.mxu1 }
 0x131   :  { %v4391_v13 = vpop.eup %4390  ;;  %4416 = vpow2.f32 %v3960_v61  ;;  %v356_v14 = vpop.f32.mrf.mxu0 }
 0x132   :  { %v5761_v15 = vpop.eup %4392  ;;  %4418 = vrcp.f32 %v1028_v8  ;;  %v1029_v17 = vadd.f32 1.0, %v4391_v13  ;;  %v3962_v18 = vmul.f32 -1.442695, %v5759_v11  ;;  %v5765_v22 = vadd.f32 %v356_v14, %v5648_v25 }
 0x133   :  { %v4395_v26 = vpop.eup %4394  ;;  %4420 = vpow2.f32 %v3961_v9  ;;  %v360_v31 = vpop.f32.mrf.mxu0 }
 0x134   :  { %v5769_v36 = vpop.eup %4396  ;;  %4422 = vrcp.f32 %v1029_v17  ;;  %v1030_v37 = vadd.f32 1.0, %v4395_v26  ;;  %v3963_v40 = vmul.f32 -1.442695, %v5765_v22  ;;  %v5773_v41 = vadd.f32 %v360_v31, %v5644_v24 }
 0x135   :  { %v4399_v44 = vpop.eup %4398  ;;  %4424 = vpow2.f32 %v3962_v18  ;;  %v362_v47 = vpop.f32.mrf.mxu0 }
 0x136   :  { %v4401_v50 = vpop.eup %4400  ;;  %4426 = vrcp.f32 %v1030_v37  ;;  %v3964_v52 = vmul.f32 -1.442695, %v5773_v41  ;;  %v5777_v55 = vadd.f32 %v362_v47, %v5648_v25  ;;  %v1407_v21 = vmul.f32 %v4399_v44, %v5651_v28 }
 0x137   :  { %v4403_v56 = vpop.eup %4402  ;;  %v1031_v60 = vadd.f32 1.0, %v4401_v50  ;;  %4428 = vpow2.f32 %v3963_v40  ;;  %v364_v61 = vpop.f32.mrf.mxu0 }
 0x138   :  { %v4405_v2 = vpop.eup %4404  ;;  %4430 = vpow2.f32 %v3964_v52  ;;  %v3965_v8 = vmul.f32 -1.442695, %v5777_v55  ;;  %v5783_v9 = vadd.f32 %v364_v61, %v5644_v24  ;;  %v1087_v52 = vadd.f32 1.0, %v5719_v16  ;;  %v5791_v61 = vpop.f32.mrf.mxu1 }
 0x139   :  { %v4407_v13 = vpop.eup %4406  ;;  %4432 = vrcp.f32 %v1031_v60  ;;  %v1032_v14 = vadd.f32 1.0, %v4405_v2  ;;  %v366_v17 = vpop.f32.mrf.mxu0  ;;  %v1408_v2 = vmul.f32 %v4403_v56, %v5658_v33 }
 0x13a   :  { %v4409_v18 = vpop.eup %4408  ;;  %4434 = vpow2.f32 %v3965_v8  ;;  %v3966_v26 = vmul.f32 -1.442695, %v5783_v9  ;;  %v5787_v31 = vadd.f32 %v366_v17, %v5648_v25  ;;  %v1409_v40 = vmul.f32 %v4407_v13, %v5666_v39  ;;  %v5804_v28 = vpop.f32.mrf.mxu1 }
 0x13b   :  { %v4411_v37 = vpop.eup %4410  ;;  %4436 = vrcp.f32 %v1032_v14  ;;  %v1033_v47 = vadd.f32 1.0, %v4409_v18  ;;  %v370_v50 = vpop.f32.mrf.mxu0 }
 0x13c   :  { %v4413_v60 = vpop.eup %4412  ;;  %v1410_v8 = vmul.f32 %v4411_v37, %v5674_v45  ;;  %4438 = vpow2.f32 %v3966_v26  ;;  %v3967_v23 = vmul.f32 -1.442695, %v5787_v31  ;;  %v5798_v13 = vadd.f32 %v370_v50, %v5644_v24 }
 0x13d   :  { %v4415_v17 = vpop.eup %4414  ;;  %4440 = vrcp.f32 %v1033_v47  ;;  %v1034_v39 = vadd.f32 1.0, %v4413_v60  ;;  %v372_v14 = vpop.f32.mrf.mxu0  ;;  %v1535_v45 = vpack.c.bf16 %v1409_v40, %v1407_v21 }
 0x13e   :  { %v4417_v16 = vpop.eup %4416  ;;  %4442 = vpow2.f32 %v3967_v23  ;;  %v5801_v18 = vadd.f32 %v372_v14, %v5648_v25  ;;  %v1536_v33 = vpack.c.bf16 %v1410_v8, %v1408_v2  ;;  %v3968_v37 = vmul.f32 -1.442695, %v5798_v13 }
 0x13f   :  { %v4419_v56 = vpop.eup %4418  ;;  %4444 = vrcp.f32 %v1034_v39  ;;  %v1035_v26 = vadd.f32 1.0, %v4417_v16  ;;  %v374_v0 = vpop.f32.mrf.mxu0  ;;  %v1411_v3 = vmul.f32 %v4415_v17, %v5682_v51 }
 0x140   :  { %v4421_v44 = vpop.eup %4420  ;;  %v3969_v47 = vmul.f32 -1.442695, %v5801_v18  ;;  %v5808_v50 = vadd.f32 %v374_v0, %v5644_v24  ;;  %1835 = vmatprep.mubr.bf16.mxu1 %v1536_v33  ;;  %4446 = vrcp.f32 %v1087_v52  ;;  %v5814_v0 = vpop.f32.mrf.mxu1 }
 0x141   :  { %v4423_v23 = vpop.eup %4422  ;;  %4448 = vrcp.f32 %v1035_v26  ;;  %v1036_v60 = vadd.f32 1.0, %v4421_v44  ;;  %v376_v2 = vpop.f32.mrf.mxu0  ;;  %1836 = vmatmul.mubr.bf16.vlgmr.msra.gmra.mxu1 %v1535_v45  ;;  %v1412_v44 = vmul.f32 %v4419_v56, %v5690_v57 }
 0x142   :  { %v4425_v21 = vpop.eup %4424  ;;  %4450 = vpow2.f32 %v3968_v37  ;;  %v3970_v40 = vmul.f32 -1.442695, %v5808_v50  ;;  %v5812_v8 = vadd.f32 %v376_v2, %v5648_v25  ;;  %v1413_v52 = vmul.f32 %v4423_v23, %v5698_v63  ;;  %v5828_v57 = vpop.f32.mrf.mxu1 }
 0x143   :  { %v4427_v39 = vpop.eup %4426  ;;  %4452 = vrcp.f32 %v1036_v60  ;;  %v1037_v14 = vadd.f32 1.0, %v4425_v21  ;;  %v380_v16 = vpop.f32.mrf.mxu0 }
 0x144   :  { %v4429_v33 = vpop.eup %4428  ;;  %v1414_v26 = vmul.f32 %v4427_v39, %v5706_v6  ;;  %4454 = vpow2.f32 %v3969_v47  ;;  %v5819_v45 = vadd.f32 %v380_v16, %v5644_v24  ;;  %v3971_v60 = vmul.f32 -1.442695, %v5812_v8 }
 0x145   :  { %v4431_v37 = vpop.eup %4430  ;;  %4456 = vrcp.f32 %v1037_v14  ;;  %v1038_v2 = vadd.f32 1.0, %v4429_v33  ;;  %v382_v21 = vpop.f32.mrf.mxu0  ;;  %v1537_v51 = vpack.c.bf16 %v1413_v52, %v1411_v3 }
 0x146   :  { %v4433_v20 = vpop.eup %4432  ;;  %v1039_v54 = vadd.f32 1.0, %v4431_v37  ;;  %4458 = vpow2.f32 %v3970_v40  ;;  %v5825_v63 = vadd.f32 %v382_v21, %v5648_v25  ;;  %v3972_v47 = vmul.f32 -1.442695, %v5819_v45  ;;  %v5839_v52 = vpop.f32.mrf.mxu1 }
 0x147   :  { %v4435_v6 = vpop.eup %4434  ;;  %4460 = vrcp.f32 %v1038_v2  ;;  %v384_v23 = vpop.f32.mrf.mxu0  ;;  %v1538_v39 = vpack.c.bf16 %v1414_v26, %v1412_v44 }
 0x148   :  { %v4437_v56 = vpop.eup %4436  ;;  %4462 = vrcp.f32 %v1039_v54  ;;  %v1040_v14 = vadd.f32 1.0, %v4435_v6  ;;  %v5831_v16 = vadd.f32 %v384_v23, %v5644_v24  ;;  %v3973_v40 = vmul.f32 -1.442695, %v5825_v63  ;;  %v5854_v42 = vpop.f32.mrf.mxu1 }
 0x149   :  { %v4439_v17 = vpop.eup %4438  ;;  %4464 = vpow2.f32 %v3971_v60  ;;  %1845 = vmatprep.mubr.bf16.mxu1 %v1538_v39  ;;  %v386_v33 = vpop.f32.mrf.mxu0 }
 0x14a   :  { %v4441_v37 = vpop.eup %4440  ;;  %4466 = vrcp.f32 %v1040_v14  ;;  %v1041_v2 = vadd.f32 1.0, %v4439_v17  ;;  %v5835_v26 = vadd.f32 %v386_v33, %v5648_v25  ;;  %1846 = vmatmul.mubr.bf16.gmra.mxu1 %v1537_v51  ;;  %v3974_v21 = vmul.f32 -1.442695, %v5831_v16 }
 0x14b   :  { %v4443_v44 = vpop.eup %4442  ;;  %v1417_v54 = vmul.f32 %v4441_v37, %v5731_v34  ;;  %4468 = vpow2.f32 %v3972_v47  ;;  %v390_v3 = vpop.f32.mrf.mxu0  ;;  %v1415_v51 = vmul.f32 %v4433_v20, %v5716_v12  ;;  %v1416_v34 = vmul.f32 %v4437_v56, %v5723_v19 }
 0x14c   :  { %v4445_v60 = vpop.eup %4444  ;;  %4470 = vrcp.f32 %v1041_v2  ;;  %v1042_v6 = vadd.f32 1.0, %v4443_v44  ;;  %v3975_v23 = vmul.f32 -1.442695, %v5835_v26  ;;  %v5843_v39 = vadd.f32 %v390_v3, %v5644_v24 }
 0x14d   :  { %v5845_v14 = vpop.eup %4446  ;;  %v1418_v47 = vmul.f32 %v4445_v60, %v5737_v43  ;;  %4472 = vpow2.f32 %v3973_v40  ;;  %v392_v17 = vpop.f32.mrf.mxu0  ;;  %v1539_v58 = vpack.c.bf16 %v1417_v54, %v1415_v51 }
 0x14e   :  { %7790 = vst [vmem:[#allocation21_spill] sm:$0xff] %v5845_v14  ;;  %v4449_v33 = vpop.eup %4448  ;;  %4474 = vrcp.f32 %v1042_v6  ;;  %v3976_v37 = vmul.f32 -1.442695, %v5843_v39  ;;  %v5852_v2 = vadd.f32 %v392_v17, %v5648_v25 }
 0x14f   :  { %v4451_v44 = vpop.eup %4450  ;;  %4476 = vpow2.f32 %v3974_v21  ;;  %v394_v3 = vpop.f32.mrf.mxu0  ;;  %v1540_v7 = vpack.c.bf16 %v1418_v47, %v1416_v34 }
 0x150   :  { %v4453_v20 = vpop.eup %4452  ;;  %v1043_v12 = vadd.f32 1.0, %v4451_v44  ;;  %4478 = vpow2.f32 %v3975_v23  ;;  %v3977_v19 = vmul.f32 -1.442695, %v5852_v2  ;;  %v5858_v43 = vadd.f32 %v394_v3, %v5644_v24  ;;  %v5865_v47 = vpop.f32.mrf.mxu1 }
 0x151   :  { %v4455_v56 = vpop.eup %4454  ;;  %4480 = vpow2.f32 %v3976_v37  ;;  %1855 = vmatprep.mubr.bf16.mxu1 %v1540_v7  ;;  %v396_v40 = vpop.f32.mrf.mxu0 }
 0x152   :  { %v4457_v60 = vpop.eup %4456  ;;  %4482 = vrcp.f32 %v1043_v12  ;;  %v1044_v21 = vadd.f32 1.0, %v4455_v56  ;;  %v3978_v6 = vmul.f32 -1.442695, %v5858_v43  ;;  %v5862_v54 = vadd.f32 %v396_v40, %v5648_v25  ;;  %1856 = vmatmul.mubr.bf16.gmra.mxu1 %v1539_v58  ;;  %v5878_v29 = vpop.f32.mrf.mxu1 }
 0x153   :  { %v4459_v51 = vpop.eup %4458  ;;  %v1421_v23 = vmul.f32 %v4457_v60, %v5759_v11  ;;  %4484 = vpow2.f32 %v3977_v19  ;;  %v400_v34 = vpop.f32.mrf.mxu0  ;;  %v1420_v12 = vmul.f32 %v4453_v20, %v5751_v62  ;;  %v1419_v19 = vmul.f32 %v4449_v33, %v5745_v53 }
 0x154   :  { %v4461_v17 = vpop.eup %4460  ;;  %4486 = vrcp.f32 %v1044_v21  ;;  %v1045_v7 = vadd.f32 1.0, %v4459_v51  ;;  %v3979_v37 = vmul.f32 -1.442695, %v5862_v54  ;;  %v5869_v44 = vadd.f32 %v400_v34, %v5644_v24 }
 0x155   :  { %v4463_v3 = vpop.eup %4462  ;;  %v1422_v58 = vmul.f32 %v4461_v17, %v5765_v22  ;;  %4488 = vpow2.f32 %v3978_v6  ;;  %v402_v56 = vpop.f32.mrf.mxu0  ;;  %v1541_v53 = vpack.c.bf16 %v1421_v23, %v1419_v19 }
 0x156   :  { %v4465_v11 = vpop.eup %4464  ;;  %4490 = vrcp.f32 %v1045_v7  ;;  %v3980_v40 = vmul.f32 -1.442695, %v5869_v44  ;;  %v5876_v60 = vadd.f32 %v402_v56, %v5648_v25  ;;  %v5889_v23 = vpop.f32.mrf.mxu1 }
 0x157   :  { %v4467_v21 = vpop.eup %4466  ;;  %v1046_v51 = vadd.f32 1.0, %v4465_v11  ;;  %4492 = vpow2.f32 %v3979_v37  ;;  %v404_v34 = vpop.f32.mrf.mxu0  ;;  %v1542_v14 = vpack.c.bf16 %v1422_v58, %v1420_v12 }
 0x158   :  { %v4469_v62 = vpop.eup %4468  ;;  %4494 = vpow2.f32 %v3980_v40  ;;  %v3981_v22 = vmul.f32 -1.442695, %v5876_v60  ;;  %v5882_v20 = vadd.f32 %v404_v34, %v5644_v24  ;;  %v5902_v35 = vpop.f32.mrf.mxu1 }
 0x159   :  { %v4471_v33 = vpop.eup %4470  ;;  %4496 = vrcp.f32 %v1046_v51  ;;  %v1047_v6 = vadd.f32 1.0, %v4469_v62  ;;  %1865 = vmatprep.mubr.bf16.mxu1 %v1542_v14  ;;  %v406_v17 = vpop.f32.mrf.mxu0  ;;  %7791 = vst [vmem:[#allocation22_spill] sm:$0xff] %v5902_v35 }
 0x15a   :  { %v4473_v7 = vpop.eup %4472  ;;  %4498 = vpow2.f32 %v3981_v22  ;;  %v3982_v37 = vmul.f32 -1.442695, %v5882_v20  ;;  %v5886_v12 = vadd.f32 %v406_v17, %v5648_v25  ;;  %1866 = vmatmul.mubr.bf16.gmra.mxu1 %v1541_v53  ;;  %v1425_v56 = vmul.f32 %v4471_v33, %v5783_v9 }
 0x15b   :  { %v4475_v58 = vpop.eup %4474  ;;  %4500 = vrcp.f32 %v1047_v6  ;;  %v1048_v11 = vadd.f32 1.0, %v4473_v7  ;;  %v410_v40 = vpop.f32.mrf.mxu0  ;;  %v1423_v22 = vmul.f32 %v4463_v3, %v5773_v41  ;;  %v1424_v53 = vmul.f32 %v4467_v21, %v5777_v55 }
 0x15c   :  { %v4477_v19 = vpop.eup %4476  ;;  %v1426_v14 = vmul.f32 %v4475_v58, %v5787_v31  ;;  %4502 = vpow2.f32 %v3982_v37  ;;  %v3983_v51 = vmul.f32 -1.442695, %v5886_v12  ;;  %v5894_v34 = vadd.f32 %v410_v40, %v5644_v24 }
 0x15d   :  { %v4479_v62 = vpop.eup %4478  ;;  %4504 = vrcp.f32 %v1048_v11  ;;  %v1049_v9 = vadd.f32 1.0, %v4477_v19  ;;  %v412_v33 = vpop.f32.mrf.mxu0  ;;  %v1543_v3 = vpack.c.bf16 %v1425_v56, %v1423_v22 }
 0x15e   :  { %v4481_v6 = vpop.eup %4480  ;;  %v1050_v17 = vadd.f32 1.0, %v4479_v62  ;;  %4506 = vpow2.f32 %v3983_v51  ;;  %v3984_v7 = vmul.f32 -1.442695, %v5894_v34  ;;  %v5900_v31 = vadd.f32 %v412_v33, %v5648_v25 }
 0x15f   :  { %v4483_v37 = vpop.eup %4482  ;;  %4508 = vrcp.f32 %v1049_v9  ;;  %v1051_v58 = vadd.f32 1.0, %v4481_v6  ;;  %v414_v40 = vpop.f32.mrf.mxu0  ;;  %v1544_v46 = vpack.c.bf16 %v1426_v14, %v1424_v53  ;;  %v1088_v9 = vadd.f32 1.0, %v5727_v30 }
 0x160   :  { %v4485_v41 = vpop.eup %4484  ;;  %4510 = vrcp.f32 %v1050_v17  ;;  %v3985_v55 = vmul.f32 -1.442695, %v5900_v31  ;;  %v5906_v19 = vadd.f32 %v414_v40, %v5644_v24  ;;  %v5909_v6 = vpop.f32.mrf.mxu1 }
 0x161   :  { %v4487_v21 = vpop.eup %4486  ;;  %4512 = vrcp.f32 %v1051_v58  ;;  %v1052_v11 = vadd.f32 1.0, %v4485_v41  ;;  %1875 = vmatprep.mubr.bf16.mxu1 %v1544_v46  ;;  %v416_v51 = vpop.f32.mrf.mxu0  ;;  %7792 = vst [vmem:[#allocation23_spill] sm:$0xff] %v5909_v6 }
 0x162   :  { %v4489_v62 = vpop.eup %4488  ;;  %4514 = vpow2.f32 %v3984_v7  ;;  %1876 = vmatmul.mubr.bf16.gmra.mxu1 %v1543_v3  ;;  %v3986_v58 = vmul.f32 -1.442695, %v5906_v19  ;;  %v5913_v46 = vadd.f32 %v416_v51, %v5648_v25  ;;  %v1427_v51 = vmul.f32 %v4483_v37, %v5798_v13 }
 0x163   :  { %v4491_v14 = vpop.eup %4490  ;;  %4516 = vrcp.f32 %v1052_v11  ;;  %v1053_v53 = vadd.f32 1.0, %v4489_v62  ;;  %v420_v33 = vpop.f32.mrf.mxu0  ;;  %v1428_v11 = vmul.f32 %v4487_v21, %v5801_v18 }
 0x164   :  { %v4493_v56 = vpop.eup %4492  ;;  %4518 = vpow2.f32 %v3985_v55  ;;  %v1429_v30 = vmul.f32 %v4491_v14, %v5808_v50  ;;  %v1089_v55 = vadd.f32 1.0, %v5733_v38  ;;  %v5923_v50 = vadd.f32 %v420_v33, %v5644_v24 }
 0x165   :  { %v4495_v22 = vpop.eup %4494  ;;  %4520 = vrcp.f32 %v1053_v53  ;;  %v1054_v17 = vadd.f32 1.0, %v4493_v56  ;;  %v422_v7 = vpop.f32.mrf.mxu0  ;;  %v3987_v18 = vmul.f32 -1.442695, %v5913_v46 }
 0x166   :  { %v4497_v40 = vpop.eup %4496  ;;  %v1055_v41 = vadd.f32 1.0, %v4495_v22  ;;  %4522 = vrcp.f32 %v1088_v9  ;;  %v5919_v56 = vpop.f32.mrf.mxu1  ;;  %v1545_v22 = vpack.c.bf16 %v1429_v30, %v1427_v51  ;;  %v5928_v13 = vadd.f32 %v422_v7, %v5648_v25 }
 0x167   :  { %v4499_v3 = vpop.eup %4498  ;;  %v1430_v62 = vmul.f32 %v4497_v40, %v5812_v8  ;;  %4524 = vrcp.f32 %v1054_v17  ;;  %v424_v53 = vpop.f32.mrf.mxu0  ;;  %v1090_v40 = vadd.f32 1.0, %v5741_v49  ;;  %v1091_v30 = vadd.f32 1.0, %v5747_v59 }
 0x168   :  { %v4501_v6 = vpop.eup %4500  ;;  %4526 = vrcp.f32 %v1055_v41  ;;  %v1056_v35 = vadd.f32 1.0, %v4499_v3  ;;  %v5930_v33 = vpop.f32.mrf.mxu1  ;;  %v3988_v3 = vmul.f32 -1.442695, %v5923_v50 }
 0x169   :  { %v4503_v9 = vpop.eup %4502  ;;  %4528 = vpow2.f32 %v3986_v58  ;;  %v1546_v21 = vpack.c.bf16 %v1430_v62, %v1428_v11  ;;  %v426_v8 = vpop.f32.mrf.mxu0  ;;  %v5937_v62 = vadd.f32 %v424_v53, %v5644_v24  ;;  %v1431_v59 = vmul.f32 %v4501_v6, %v5819_v45 }
 0x16a   :  { %v4505_v14 = vpop.eup %4504  ;;  %4530 = vrcp.f32 %v1056_v35  ;;  %v1057_v38 = vadd.f32 1.0, %v4503_v9  ;;  %v3989_v9 = vmul.f32 -1.442695, %v5928_v13  ;;  %v1092_v53 = vadd.f32 1.0, %v5755_v5 }
 0x16b   :  { %v4507_v17 = vpop.eup %4506  ;;  %4532 = vrcp.f32 %v1089_v55  ;;  %1885 = vmatprep.mubr.bf16.mxu1 %v1546_v21  ;;  %v430_v37 = vpop.f32.mrf.mxu0  ;;  %v1432_v51 = vmul.f32 %v4505_v14, %v5825_v63  ;;  %v1093_v45 = vadd.f32 1.0, %v5761_v15 }
 0x16c   :  { %v4509_v58 = vpop.eup %4508  ;;  %4534 = vrcp.f32 %v1057_v38  ;;  %v1058_v41 = vadd.f32 1.0, %v4507_v17  ;;  %1886 = vmatmul.mubr.bf16.gmra.mxu1 %v1545_v22  ;;  %v5941_v38 = vpop.f32.mrf.mxu1  ;;  %v5953_v6 = vadd.f32 %v430_v37, %v5644_v24  ;;  %v5966_v37 = vadd.f32 %v5725_v27, %v5648_v25 }
 0x16d   :  { %v4511_v35 = vpop.eup %4510  ;;  %4536 = vpow2.f32 %v3987_v18  ;;  %v1433_v49 = vmul.f32 %v4509_v58, %v5831_v16  ;;  %v432_v21 = vpop.f32.mrf.mxu0  ;;  %v5945_v16 = vadd.f32 %v426_v8, %v5648_v25 }
 0x16e   :  { %v4513_v11 = vpop.eup %4512  ;;  %v1434_v7 = vmul.f32 %v4511_v35, %v5835_v26  ;;  %4538 = vrcp.f32 %v1058_v41 }
 0x16f   :  { %v4515_v55 = vpop.eup %4514  ;;  %4540 = vrcp.f32 %v1090_v40  ;;  %v3990_v40 = vmul.f32 -1.442695, %v5937_v62  ;;  %v1547_v58 = vpack.c.bf16 %v1433_v49, %v1431_v59  ;;  %v434_v8 = vpop.f32.mrf.mxu0  ;;  %v3991_v35 = vmul.f32 -1.442695, %v5945_v16 }
 0x170   :  { %v4517_v18 = vpop.eup %4516  ;;  %v1059_v22 = vadd.f32 1.0, %v4515_v55  ;;  %4542 = vpow2.f32 %v3988_v3  ;;  %v1548_v17 = vpack.c.bf16 %v1434_v7, %v1432_v51  ;;  %v5955_v3 = vpop.f32.mrf.mxu1 }
 0x171   :  { %v4519_v26 = vpop.eup %4518  ;;  %4544 = vrcp.f32 %v1091_v30  ;;  %v5960_v30 = vadd.f32 %v5712_v10, %v5644_v24  ;;  %v1436_v7 = vmul.f32 %v4517_v18, %v5852_v2  ;;  %v5971_v10 = vadd.f32 %v432_v21, %v5648_v25 }
 0x172   :  { %v4521_v63 = vpop.eup %4520  ;;  %4546 = vrcp.f32 %v1059_v22  ;;  %v1060_v14 = vadd.f32 1.0, %v4519_v26  ;;  %1895 = vmatprep.mubr.bf16.mxu1 %v1548_v17  ;;  %v3992_v2 = vmul.f32 -1.442695, %v5953_v6  ;;  %v5974_v26 = vpop.f32.mrf.mxu1  ;;  %v5981_v21 = vadd.f32 %v434_v8, %v5644_v24 }
 0x173   :  { %v5949_v41 = vpop.eup %4522  ;;  %4548 = vpow2.f32 %v3989_v9  ;;  %7793 = vst [vmem:[#allocation24_spill] sm:$0xff] %v5960_v30  ;;  %v1437_v51 = vmul.f32 %v4521_v63, %v5858_v43  ;;  %v1094_v9 = vadd.f32 1.0, %v5769_v36  ;;  %v4020_v43 = vmul.f32 -1.442695, %v5960_v30 }
 0x174   :  { %v4525_v5 = vpop.eup %4524  ;;  %4550 = vrcp.f32 %v1060_v14  ;;  %1896 = vmatmul.mubr.bf16.gmra.mxu1 %v1547_v58  ;;  %v3993_v63 = vmul.f32 -1.442695, %v5971_v10  ;;  %v5986_v14 = vadd.f32 %v5739_v48, %v5644_v24 }
 0x175   :  { %v4527_v49 = vpop.eup %4526  ;;  %v1438_v15 = vmul.f32 %v4525_v5, %v5862_v54  ;;  %4552 = vrcp.f32 %v1092_v53  ;;  %v436_v54 = vpop.f32.mrf.mxu0  ;;  %v1435_v53 = vmul.f32 %v4513_v11, %v5843_v39  ;;  %v4021_v11 = vmul.f32 -1.442695, %v5966_v37 }
 0x176   :  { %v4529_v55 = vpop.eup %4528  ;;  %4554 = vpow2.f32 %v3990_v40  ;;  %7794 = vst [vmem:[#allocation25_spill] sm:$0xff] %v5986_v14  ;;  %v5989_v5 = vpop.f32.mrf.mxu1 }
 0x177   :  { %v4531_v59 = vpop.eup %4530  ;;  %v1061_v22 = vadd.f32 1.0, %v4529_v55  ;;  %4556 = vrcp.f32 %v1093_v45  ;;  %v1550_v18 = vpack.c.bf16 %v1438_v15, %v1436_v7  ;;  %v1549_v40 = vpack.c.bf16 %v1437_v51, %v1435_v53  ;;  %v440_v45 = vpop.f32.mrf.mxu0 }
 0x178   :  { %v5976_v27 = vpop.eup %4532  ;;  %4558 = vpow2.f32 %v3991_v35  ;;  %v5995_v7 = vadd.f32 %v436_v54, %v5648_v25  ;;  %v1440_v15 = vmul.f32 %v4531_v59, %v5876_v60  ;;  %v3994_v55 = vmul.f32 -1.442695, %v5981_v21  ;;  %v6012_v53 = vpop.f32.mrf.mxu1 }
 0x179   :  { %v4535_v36 = vpop.eup %4534  ;;  %4560 = vrcp.f32 %v1061_v22  ;;  %1905 = vmatprep.mubr.bf16.mxu1 %v1550_v18  ;;  %v6001_v51 = vadd.f32 %v5753_v4, %v5648_v25  ;;  %v6010_v60 = vadd.f32 %v440_v45, %v5644_v24  ;;  %v442_v59 = vpop.f32.mrf.mxu0 }
 0x17a   :  { %v4537_v17 = vpop.eup %4536  ;;  %4562 = vrcp.f32 %v1094_v9  ;;  %v1441_v22 = vmul.f32 %v4535_v36, %v5882_v20  ;;  %v3995_v20 = vmul.f32 -1.442695, %v5995_v7 }
 0x17b   :  { %v4539_v58 = vpop.eup %4538  ;;  %v1062_v39 = vadd.f32 1.0, %v4537_v17  ;;  %4564 = vpow2.f32 %v3992_v2  ;;  %7795 = vst [vmem:[#allocation26_spill] sm:$0xff] %v6001_v51  ;;  %v4022_v2 = vmul.f32 -1.442695, %v5986_v14  ;;  %v444_v45 = vpop.f32.mrf.mxu0 }
 0x17c   :  { %v5991_v8 = vpop.eup %4540  ;;  %v1442_v35 = vmul.f32 %v4539_v58, %v5886_v12  ;;  %4566 = vpow2.f32 %v4020_v43  ;;  %1906 = vmatmul.mubr.bf16.gmra.mxu1 %v1549_v40  ;;  %v1439_v43 = vmul.f32 %v4527_v49, %v5869_v44  ;;  %v6019_v40 = vadd.f32 %v5767_v32, %v5644_v24  ;;  %v4350_v32 = vld [vmem:[#allocation7 + $0x38] sm:$0xff]  }
 0x17d   :  { %v4543_v48 = vpop.eup %4542  ;;  %4568 = vrcp.f32 %v1062_v39  ;;  %v6024_v39 = vadd.f32 %v442_v59, %v5648_v25  ;;  %3252 = vmatpush1.bf16.msra.mxu0 %v4350_v32 }
 0x17e   :  { %v6003_v9 = vpop.eup %4544  ;;  %v1063_v12 = vadd.f32 1.0, %v4543_v48  ;;  %4570 = vpow2.f32 %v3993_v63  ;;  %v1552_v18 = vpack.c.bf16 %v1442_v35, %v1440_v15  ;;  %v4023_v63 = vmul.f32 -1.442695, %v6001_v51  ;;  %7796 = vst [vmem:[#allocation27_spill] sm:$0xff] %v6019_v40  ;;  %v6027_v35 = vpop.f32.mrf.mxu1 }
 0x17f   :  { %v6007_v54 = vpop.eup %4546  ;;  %4572 = vpow2.f32 %v4021_v11  ;;  %v1551_v44 = vpack.c.bf16 %v1441_v22, %v1439_v43  ;;  %v3996_v11 = vmul.f32 -1.442695, %v6010_v60  ;;  %v6034_v22 = vadd.f32 %v5779_v1, %v5648_v25  ;;  %v446_v43 = vpop.f32.mrf.mxu0 }
 0x180   :  { %v4549_v4 = vpop.eup %4548  ;;  %4574 = vrcp.f32 %v1063_v12  ;;  %1915 = vmatprep.mubr.bf16.mxu1 %v1552_v18  ;;  %v4024_v12 = vmul.f32 -1.442695, %v6019_v40  ;;  %v3997_v18 = vmul.f32 -1.442695, %v6024_v39 }
 0x181   :  { %v4551_v36 = vpop.eup %4550  ;;  %v1064_v17 = vadd.f32 1.0, %v4549_v4  ;;  %4576 = vpow2.f32 %v3994_v55  ;;  %7797 = vst [vmem:[#allocation28_spill] sm:$0xff] %v6034_v22 }
 0x182   :  { %v6021_v58 = vpop.eup %4552  ;;  %4578 = vpow2.f32 %v4022_v2  ;;  %v1444_v30 = vmul.f32 %v4551_v36, %v5900_v31 }
 0x183   :  { %v4555_v49 = vpop.eup %4554  ;;  %4580 = vrcp.f32 %v1064_v17  ;;  %v7798_v17 = vmov 0  }
 0x184   :  { %v6029_v48 = vpop.eup %4556  ;;  %v1065_v15 = vadd.f32 1.0, %v4555_v49  ;;  %4582 = vpow2.f32 %v3995_v20  ;;  %1916 = vmatmul.mubr.bf16.gmra.mxu1 %v1551_v44  ;;  %v6039_v20 = vpop.f32.mrf.mxu1  ;;  %3253 = vmatprep.subr.bf16.mxu0 %v7798_v17  ;;  %v6043_v44 = vadd.f32 %v444_v45, %v5644_v24  ;;  %v6051_v45 = vadd.f32 %v5791_v61, %v5644_v24 }
 0x185   :  { %v4559_v55 = vpop.eup %4558  ;;  %4584 = vpow2.f32 %v4023_v63 }
 0x186   :  { %v4561_v2 = vpop.eup %4560  ;;  %4586 = vrcp.f32 %v1065_v15  ;;  %v1066_v59 = vadd.f32 1.0, %v4559_v55  ;;  %v4025_v15 = vmul.f32 -1.442695, %v6034_v22  ;;  %7799 = vst [vmem:[#allocation29_spill] sm:$0xff] %v6051_v45 }
 0x187   :  { %v6037_v4 = vpop.eup %4562  ;;  %4588 = vpow2.f32 %v3996_v11  ;;  %v1445_v32 = vmul.f32 %v4561_v2, %v5906_v19  ;;  %v4351_v11 = vld [vmem:[#allocation7 + $0x30] sm:$0xff]   ;;  %v1443_v19 = vmul.f32 %v6007_v54, %v5894_v34 }
 0x188   :  { %v4565_v63 = vpop.eup %4564  ;;  %4590 = vrcp.f32 %v1066_v59  ;;  %v450_v59 = vpop.f32.mrf.mxu0  ;;  %3254 = vmatpush1.bf16.msra.mxu0 %v4351_v11 }
 0x189   :  { %v4567_v1 = vpop.eup %4566  ;;  %v1067_v49 = vadd.f32 1.0, %v4565_v63  ;;  %4592 = vpow2.f32 %v4024_v12  ;;  %v6053_v12 = vpop.f32.mrf.mxu1  ;;  %3255 = vmatprep.subr.bf16.mxu0 %v7798_v17 }
 0x18a   :  { %v4569_v55 = vpop.eup %4568  ;;  %v1095_v40 = vadd.f32 1.0, %v4567_v1  ;;  %4594 = vpow2.f32 %v3997_v18  ;;  %v3998_v18 = vmul.f32 -1.442695, %v6043_v44  ;;  %v6060_v1 = vadd.f32 %v446_v43, %v5648_v25  ;;  %v452_v54 = vpop.f32.mrf.mxu0 }
 0x18b   :  { %v4571_v14 = vpop.eup %4570  ;;  %v1446_v51 = vmul.f32 %v4569_v55, %v5913_v46  ;;  %4596 = vrcp.f32 %v1067_v49  ;;  %v1553_v49 = vpack.c.bf16 %v1445_v32, %v1443_v19 }
 0x18c   :  { %v4573_v63 = vpop.eup %4572  ;;  %4598 = vrcp.f32 %v1095_v40  ;;  %v1068_v2 = vadd.f32 1.0, %v4571_v14  ;;  %v4026_v14 = vmul.f32 -1.442695, %v6051_v45  ;;  %v6063_v40 = vpop.f32.mrf.mxu1 }
 0x18d   :  { %v4575_v31 = vpop.eup %4574  ;;  %v1096_v36 = vadd.f32 1.0, %v4573_v63  ;;  %4600 = vpow2.f32 %v4025_v15  ;;  %v1554_v46 = vpack.c.bf16 %v1446_v51, %v1444_v30  ;;  %v6067_v30 = vadd.f32 %v5804_v28, %v5648_v25 }
 0x18e   :  { %v4577_v61 = vpop.eup %4576  ;;  %4602 = vrcp.f32 %v1068_v2  ;;  %v3999_v63 = vmul.f32 -1.442695, %v6060_v1 }
 0x18f   :  { %v4579_v55 = vpop.eup %4578  ;;  %4604 = vrcp.f32 %v1096_v36  ;;  %v1069_v34 = vadd.f32 1.0, %v4577_v61  ;;  %1925 = vmatprep.mubr.bf16.mxu1 %v1554_v46  ;;  %7800 = vst [vmem:[#allocation30_spill] sm:$0xff] %v6067_v30  ;;  %v6071_v36 = vadd.f32 %v450_v59, %v5644_v24  ;;  %v454_v46 = vpop.f32.mrf.mxu0  ;;  %v4027_v28 = vmul.f32 -1.442695, %v6067_v30 }
 0x190   :  { %v4581_v11 = vpop.eup %4580  ;;  %v1097_v15 = vadd.f32 1.0, %v4579_v55  ;;  %4606 = vpow2.f32 %v3998_v18  ;;  %1926 = vmatmul.mubr.bf16.gmra.mxu1 %v1553_v49  ;;  %v6073_v18 = vpop.f32.mrf.mxu1  ;;  %v6078_v49 = vadd.f32 %v5814_v0, %v5644_v24  ;;  %v6083_v59 = vadd.f32 %v5828_v57, %v5648_v25  ;;  %v4352_v0 = vld [vmem:[#allocation7 + $0x28] sm:$0xff]  }
 0x191   :  { %v4583_v51 = vpop.eup %4582  ;;  %4608 = vrcp.f32 %v1069_v34  ;;  %v1447_v30 = vmul.f32 %v4575_v31, %v5923_v50  ;;  %3256 = vmatpush1.bf16.msra.mxu0 %v4352_v0 }
 0x192   :  { %v4585_v43 = vpop.eup %4584  ;;  %4610 = vrcp.f32 %v1097_v15  ;;  %v1070_v32 = vadd.f32 1.0, %v4583_v51  ;;  %7801 = vst [vmem:[#allocation31_spill] sm:$0xff] %v6078_v49  ;;  %7802 = vst [vmem:[#allocation32_spill] sm:$0xff] %v6083_v59  ;;  %v1448_v51 = vmul.f32 %v4581_v11, %v5928_v13  ;;  %v6092_v57 = vpop.f32.mrf.mxu1  ;;  %v4028_v13 = vmul.f32 -1.442695, %v6078_v49  ;;  %3257 = vmatprep.subr.bf16.mxu0 %v7798_v17 }
 0x193   :  { %v4587_v19 = vpop.eup %4586  ;;  %v1098_v2 = vadd.f32 1.0, %v4585_v43  ;;  %4612 = vpow2.f32 %v4026_v14  ;;  %v6098_v11 = vadd.f32 %v454_v46, %v5644_v24 }
 0x194   :  { %v4589_v61 = vpop.eup %4588  ;;  %4614 = vrcp.f32 %v1070_v32  ;;  %v1449_v34 = vmul.f32 %v4587_v19, %v5937_v62  ;;  %v6088_v32 = vadd.f32 %v452_v54, %v5648_v25  ;;  %v4000_v19 = vmul.f32 -1.442695, %v6071_v36  ;;  %v6107_v46 = vpop.f32.mrf.mxu1 }
 0x195   :  { %v4591_v55 = vpop.eup %4590  ;;  %4616 = vrcp.f32 %v1098_v2  ;;  %v1071_v15 = vadd.f32 1.0, %v4589_v61  ;;  %v456_v2 = vpop.f32.mrf.mxu0 }
 0x196   :  { %v4593_v14 = vpop.eup %4592  ;;  %v1450_v43 = vmul.f32 %v4591_v55, %v5945_v16  ;;  %4618 = vpow2.f32 %v3999_v63  ;;  %v1555_v50 = vpack.c.bf16 %v1449_v34, %v1447_v30  ;;  %v4001_v63 = vmul.f32 -1.442695, %v6088_v32 }
 0x197   :  { %v4595_v45 = vpop.eup %4594  ;;  %4620 = vrcp.f32 %v1071_v15  ;;  %v1099_v62 = vadd.f32 1.0, %v4593_v14  ;;  %v4029_v15 = vmul.f32 -1.442695, %v6083_v59  ;;  %v460_v14 = vpop.f32.mrf.mxu0 }
 0x198   :  { %v4597_v61 = vpop.eup %4596  ;;  %v1072_v22 = vadd.f32 1.0, %v4595_v45  ;;  %4622 = vpow2.f32 %v4027_v28  ;;  %v1556_v16 = vpack.c.bf16 %v1450_v43, %v1448_v51  ;;  %v6104_v45 = vadd.f32 %v5839_v52, %v5644_v24 }
 0x199   :  { %v6095_v54 = vpop.eup %4598  ;;  %4624 = vrcp.f32 %v1099_v62  ;;  %v6116_v52 = vadd.f32 %v5854_v42, %v5648_v25  ;;  %v4002_v51 = vmul.f32 -1.442695, %v6098_v11 }
 0x19a   :  { %7803 = vst [vmem:[#allocation33_spill] sm:$0xff] %v6095_v54  ;;  %v4601_v31 = vpop.eup %4600  ;;  %4626 = vrcp.f32 %v1072_v22  ;;  %7804 = vst [vmem:[#allocation34_spill] sm:$0xff] %v6104_v45  ;;  %1935 = vmatprep.mubr.bf16.mxu1 %v1556_v16  ;;  %v6112_v22 = vadd.f32 %v456_v2, %v5648_v25  ;;  %v4030_v62 = vmul.f32 -1.442695, %v6104_v45  ;;  %v6123_v2 = vadd.f32 %v460_v14, %v5644_v24 }
 0x19b   :  { %v4603_v28 = vpop.eup %4602  ;;  %v1100_v55 = vadd.f32 1.0, %v4601_v31  ;;  %4628 = vpow2.f32 %v4000_v19  ;;  %1936 = vmatmul.mubr.bf16.gmra.mxu1 %v1555_v50  ;;  %7806 = vst [vmem:[#allocation36_spill] sm:$0xff] %v6116_v52  ;;  %v4353_v19 = vld [vmem:[#allocation7 + $0x20] sm:$0xff]   ;;  %v6125_v50 = vpop.f32.mrf.mxu1 }
 0x19c   :  { %v6109_v30 = vpop.eup %4604  ;;  %4630 = vpow2.f32 %v4028_v13  ;;  %v462_v13 = vpop.f32.mrf.mxu0  ;;  %v4003_v31 = vmul.f32 -1.442695, %v6112_v22  ;;  %3258 = vmatpush1.bf16.msra.mxu0 %v4353_v19 }
 0x19d   :  { %7805 = vst [vmem:[#allocation35_spill] sm:$0xff] %v6109_v30  ;;  %v4607_v34 = vpop.eup %4606  ;;  %4632 = vrcp.f32 %v1100_v55  ;;  %v4031_v55 = vmul.f32 -1.442695, %v6116_v52  ;;  %3259 = vmatprep.subr.bf16.mxu0 %v7798_v17  ;;  %v6140_v19 = vadd.f32 %v462_v13, %v5648_v25 }
 0x19e   :  { %v4609_v43 = vpop.eup %4608  ;;  %v1073_v0 = vadd.f32 1.0, %v4607_v34  ;;  %4634 = vpow2.f32 %v4001_v63 }
 0x19f   :  { %v6120_v16 = vpop.eup %4610  ;;  %4636 = vpow2.f32 %v4029_v15  ;;  %v1453_v34 = vmul.f32 %v4609_v43, %v5981_v21  ;;  %v6132_v15 = vadd.f32 %v5865_v47, %v5644_v24  ;;  %v1451_v21 = vmul.f32 %v4597_v61, %v5953_v6  ;;  %v6144_v47 = vpop.f32.mrf.mxu1 }
 0x1a0   :  { %7807 = vst [vmem:[#allocation37_spill] sm:$0xff] %v6120_v16  ;;  %v4613_v42 = vpop.eup %4612  ;;  %4638 = vrcp.f32 %v1073_v0  ;;  %v1452_v0 = vmul.f32 %v4603_v28, %v5971_v10  ;;  %v4354_v10 = vld [vmem:[#allocation7 + $0x18] sm:$0xff]   ;;  %v464_v6 = vpop.f32.mrf.mxu0 }
 0x1a1   :  { %v4615_v63 = vpop.eup %4614  ;;  %v1101_v45 = vadd.f32 1.0, %v4613_v42  ;;  %4640 = vpow2.f32 %v4002_v51  ;;  %7808 = vst [vmem:[#allocation38_spill] sm:$0xff] %v6132_v15  ;;  %v4004_v51 = vmul.f32 -1.442695, %v6123_v2  ;;  %v1557_v61 = vpack.c.bf16 %v1453_v34, %v1451_v21  ;;  %3260 = vmatpush1.bf16.msra.mxu0 %v4354_v10 }
 0x1a2   :  { %v6135_v14 = vpop.eup %4616  ;;  %v1454_v49 = vmul.f32 %v4615_v63, %v5995_v7  ;;  %4642 = vpow2.f32 %v4030_v62  ;;  %v4032_v7 = vmul.f32 -1.442695, %v6132_v15  ;;  %v6151_v62 = vadd.f32 %v5878_v29, %v5648_v25  ;;  %3261 = vmatprep.subr.bf16.mxu0 %v7798_v17  ;;  %v466_v21 = vpop.f32.mrf.mxu0 }
 0x1a3   :  { %7809 = vst [vmem:[#allocation39_spill] sm:$0xff] %v6135_v14  ;;  %v4619_v52 = vpop.eup %4618  ;;  %4644 = vrcp.f32 %v1101_v45  ;;  %v4005_v63 = vmul.f32 -1.442695, %v6140_v19  ;;  %v6160_v29 = vadd.f32 %v464_v6, %v5644_v24 }
 0x1a4   :  { %v6146_v43 = vpop.eup %4620  ;;  %v1074_v42 = vadd.f32 1.0, %v4619_v52  ;;  %4646 = vpow2.f32 %v4003_v31  ;;  %v1558_v59 = vpack.c.bf16 %v1454_v49, %v1452_v0  ;;  %7810 = vst [vmem:[#allocation40_spill] sm:$0xff] %v6151_v62  ;;  %v6156_v52 = vpop.f32.mrf.mxu1  ;;  %v4033_v0 = vmul.f32 -1.442695, %v6151_v62 }
 0x1a5   :  { %v4623_v28 = vpop.eup %4622  ;;  %4648 = vpow2.f32 %v4031_v55 }
 0x1a6   :  { %v6153_v45 = vpop.eup %4624  ;;  %4650 = vrcp.f32 %v1074_v42  ;;  %v1102_v13 = vadd.f32 1.0, %v4623_v28  ;;  %1945 = vmatprep.mubr.bf16.mxu1 %v1558_v59  ;;  %v6167_v28 = vadd.f32 %v5889_v23, %v5644_v24  ;;  %v6174_v23 = vadd.f32 %v466_v21, %v5648_v25 }
 0x1a7   :  { %7811 = vst [vmem:[#allocation41_spill] sm:$0xff] %v6153_v45  ;;  %v4627_v49 = vpop.eup %4626  ;;  %4652 = vpow2.f32 %v4004_v51  ;;  %1946 = vmatmul.mubr.bf16.gmra.mxu1 %v1557_v61  ;;  %v4355_v51 = vld [vmem:[#allocation7 + $0x10] sm:$0xff]   ;;  %v6169_v61 = vpop.f32.mrf.mxu1 }
 0x1a8   :  { %v4629_v31 = vpop.eup %4628  ;;  %4654 = vrcp.f32 %v1102_v13  ;;  %7813 = vst [vmem:[#allocation43_spill] sm:$0xff] %v6167_v28  ;;  %3262 = vmatpush1.bf16.msra.mxu0 %v4355_v51  ;;  %v4034_v51 = vmul.f32 -1.442695, %v6167_v28 }
 0x1a9   :  { %v4631_v55 = vpop.eup %4630  ;;  %v1075_v34 = vadd.f32 1.0, %v4629_v31  ;;  %4656 = vpow2.f32 %v4032_v7  ;;  %v4006_v7 = vmul.f32 -1.442695, %v6160_v29  ;;  %v4356_v31 = vld [vmem:[#allocation7 + $0x8] sm:$0xff]   ;;  %3263 = vmatprep.subr.bf16.mxu0 %v7798_v17 }
 0x1aa   :  { %v6163_v59 = vpop.eup %4632  ;;  %v1103_v42 = vadd.f32 1.0, %v4631_v55  ;;  %4658 = vpow2.f32 %v4005_v63  ;;  %v470_v63 = vpop.f32.mrf.mxu0 }
 0x1ab   :  { %7812 = vst [vmem:[#allocation42_spill] sm:$0xff] %v6163_v59  ;;  %v4635_v10 = vpop.eup %4634  ;;  %4660 = vrcp.f32 %v1075_v34  ;;  %v7814_v34 = vld [vmem:[#allocation22_spill] sm:$0xff]  ;;  %v6181_v59 = vpop.f32.mrf.mxu1 }
 0x1ac   :  { %v4637_v6 = vpop.eup %4636  ;;  %4662 = vrcp.f32 %v1103_v42  ;;  %v1076_v13 = vadd.f32 1.0, %v4635_v10  ;;  %v6178_v45 = vadd.f32 %v7814_v34, %v5648_v25  ;;  %3264 = vmatpush1.bf16.msra.mxu0 %v4356_v31  ;;  %v472_v21 = vpop.f32.mrf.mxu0 }
 0x1ad   :  { %v4639_v15 = vpop.eup %4638  ;;  %v1104_v62 = vadd.f32 1.0, %v4637_v6  ;;  %4664 = vpow2.f32 %v4033_v0  ;;  %3265 = vmatprep.subr.bf16.mxu0 %v7798_v17  ;;  %v6192_v31 = vpop.f32.mrf.mxu1 }
 0x1ae   :  { %v4641_v55 = vpop.eup %4640  ;;  %4666 = vrcp.f32 %v1076_v13  ;;  %7815 = vst [vmem:[#allocation22_spill] sm:$0xff] %v6178_v45  ;;  %v4357_v13 = vld [vmem:[#allocation7] sm:$0xff]   ;;  %v1457_v14 = vmul.f32 %v4639_v15, %v6043_v44  ;;  %v1455_v15 = vmul.f32 %v6146_v43, %v6010_v60 }
 0x1af   :  { %v4643_v42 = vpop.eup %4642  ;;  %4668 = vrcp.f32 %v1104_v62  ;;  %v1077_v10 = vadd.f32 1.0, %v4641_v55  ;;  %v4007_v62 = vmul.f32 -1.442695, %v6174_v23  ;;  %v4035_v55 = vmul.f32 -1.442695, %v6178_v45  ;;  %v4358_v45 = vld [vmem:[#allocation7 + $0x78] sm:$0xff]   ;;  %v6213_v43 = vpop.f32.mrf.mxu1 }
 0x1b0   :  { %v6183_v0 = vpop.eup %4644  ;;  %v1105_v6 = vadd.f32 1.0, %v4643_v42  ;;  %4670 = vpow2.f32 %v4006_v7  ;;  %v6190_v7 = vadd.f32 %v470_v63, %v5644_v24  ;;  %3266 = vmatpush1.bf16.msra.mxu0 %v4357_v13  ;;  %v1559_v13 = vpack.c.bf16 %v1457_v14, %v1455_v15 }
 0x1b1   :  { %7816 = vst [vmem:[#allocation44_spill] sm:$0xff] %v6183_v0  ;;  %v4647_v16 = vpop.eup %4646  ;;  %4672 = vrcp.f32 %v1077_v10  ;;  %v1456_v10 = vmul.f32 %v4627_v49, %v6024_v39  ;;  %3267 = vmatprep.subr.bf16.mxu0 %v7798_v17 }
 0x1b2   :  { %v4649_v34 = vpop.eup %4648  ;;  %4674 = vrcp.f32 %v1105_v6  ;;  %v1078_v54 = vadd.f32 1.0, %v4647_v16  ;;  %v7817_v16 = vld [vmem:[#allocation23_spill] sm:$0xff]  ;;  %v4008_v60 = vmul.f32 -1.442695, %v6190_v7 }
 0x1b3   :  { %v4651_v28 = vpop.eup %4650  ;;  %v1106_v0 = vadd.f32 1.0, %v4649_v34  ;;  %4676 = vpow2.f32 %v4034_v51  ;;  %v6198_v30 = vadd.f32 %v7817_v16, %v5644_v24  ;;  %v474_v51 = vpop.f32.mrf.mxu0 }
 0x1b4   :  { %v4653_v42 = vpop.eup %4652  ;;  %v1458_v6 = vmul.f32 %v4651_v28, %v6060_v1  ;;  %4678 = vrcp.f32 %v1078_v54  ;;  %v6206_v1 = vadd.f32 %v472_v21, %v5648_v25  ;;  %v6210_v54 = vadd.f32 %v5919_v56, %v5648_v25  ;;  %3268 = vmatpush2.bf16.msra.mxu0 %v4358_v45  ;;  %v4359_v21 = vld [vmem:[#allocation7 + $0x70] sm:$0xff]  }
 0x1b5   :  { %7818 = vst [vmem:[#allocation23_spill] sm:$0xff] %v6198_v30  ;;  %v6200_v44 = vpop.eup %4654  ;;  %4680 = vrcp.f32 %v1106_v0  ;;  %v1079_v63 = vadd.f32 1.0, %v4653_v42  ;;  %v6219_v56 = vadd.f32 %v474_v51, %v5644_v24  ;;  %v476_v14 = vpop.f32.mrf.mxu0  ;;  %3269 = vmatprep.subr.bf16.mxu0 %v7798_v17 }
 0x1b6   :  { %v4657_v39 = vpop.eup %4656  ;;  %4682 = vpow2.f32 %v4007_v62  ;;  %7819 = vst [vmem:[#allocation45_spill] sm:$0xff] %v6210_v54  ;;  %v1560_v49 = vpack.c.bf16 %v1458_v6, %v1456_v10  ;;  %v4036_v62 = vmul.f32 -1.442695, %v6198_v30  ;;  %v4009_v6 = vmul.f32 -1.442695, %v6206_v1 }
 0x1b7   :  { %v4659_v28 = vpop.eup %4658  ;;  %4684 = vrcp.f32 %v1079_v63  ;;  %v1107_v34 = vadd.f32 1.0, %v4657_v39  ;;  %v4037_v63 = vmul.f32 -1.442695, %v6210_v54  ;;  %v6228_v39 = vpop.f32.mrf.mxu1 }
 0x1b8   :  { %v4661_v0 = vpop.eup %4660  ;;  %v1080_v42 = vadd.f32 1.0, %v4659_v28  ;;  %4686 = vpow2.f32 %v4035_v55  ;;  %1955 = vmatprep.mubr.bf16.mxu1 %v1560_v49  ;;  %v6225_v55 = vadd.f32 %v5930_v33, %v5644_v24  ;;  %v6233_v49 = vadd.f32 %v476_v14, %v5648_v25  ;;  %3270 = vmatpush2.bf16.msra.mxu0 %v4359_v21  ;;  %v4360_v33 = vld [vmem:[#allocation7 + $0x68] sm:$0xff]  }
 0x1b9   :  { %v6216_v16 = vpop.eup %4662  ;;  %4688 = vrcp.f32 %v1107_v34  ;;  %1956 = vmatmul.mubr.bf16.gmra.mxu1 %v1559_v13  ;;  %v6237_v28 = vadd.f32 %v5941_v38, %v5648_v25  ;;  %v4010_v34 = vmul.f32 -1.442695, %v6219_v56  ;;  %3271 = vmatprep.subr.bf16.mxu0 %v7798_v17  ;;  %v6246_v38 = vadd.f32 %v5955_v3, %v5644_v24  ;;  %v6248_v21 = vpop.f32.mrf.mxu1 }
 0x1ba   :  { %v4665_v10 = vpop.eup %4664  ;;  %4690 = vrcp.f32 %v1080_v42  ;;  %7820 = vst [vmem:[#allocation46_spill] sm:$0xff] %v6225_v55 }
 0x1bb   :  { %v4667_v45 = vpop.eup %4666  ;;  %v1108_v15 = vadd.f32 1.0, %v4665_v10  ;;  %4692 = vpow2.f32 %v4008_v60  ;;  %7821 = vst [vmem:[#allocation47_spill] sm:$0xff] %v6237_v28  ;;  %v4039_v30 = vmul.f32 -1.442695, %v6237_v28 }
 0x1bc   :  { %v6230_v51 = vpop.eup %4668  ;;  %4694 = vpow2.f32 %v4036_v62  ;;  %v4038_v62 = vmul.f32 -1.442695, %v6225_v55  ;;  %3272 = vmatpush2.bf16.msra.mxu0 %v4360_v33  ;;  %v6264_v33 = vadd.f32 %v5989_v5, %v5644_v24 }
 0x1bd   :  { %v4671_v13 = vpop.eup %4670  ;;  %4696 = vrcp.f32 %v1108_v15  ;;  %v4011_v15 = vmul.f32 -1.442695, %v6233_v49  ;;  %3273 = vmatprep.subr.bf16.mxu0 %v7798_v17 }
 0x1be   :  { %v4673_v60 = vpop.eup %4672  ;;  %v1081_v42 = vadd.f32 1.0, %v4671_v13  ;;  %4698 = vpow2.f32 %v4009_v6  ;;  %v4361_v13 = vld [vmem:[#allocation7 + $0x60] sm:$0xff]   ;;  %7823 = vst [vmem:[#allocation49_spill] sm:$0xff] %v6264_v33 }
 0x1bf   :  { %v6242_v10 = vpop.eup %4674  ;;  %4700 = vpow2.f32 %v4037_v63  ;;  %v1461_v55 = vmul.f32 %v4673_v60, %v6098_v11  ;;  %v6255_v63 = vadd.f32 %v5974_v26, %v5648_v25  ;;  %v4040_v26 = vmul.f32 -1.442695, %v6246_v38  ;;  %v6268_v60 = vpop.f32.mrf.mxu1 }
 0x1c0   :  { %7822 = vst [vmem:[#allocation48_spill] sm:$0xff] %v6242_v10  ;;  %v4677_v14 = vpop.eup %4676  ;;  %4702 = vrcp.f32 %v1081_v42  ;;  %v1460_v42 = vmul.f32 %v4667_v45, %v6088_v32  ;;  %3274 = vmatpush2.bf16.msra.mxu0 %v4361_v13  ;;  %v4363_v13 = vld [vmem:[#allocation7 + $0x50] sm:$0xff]  }
 0x1c1   :  { %v4679_v6 = vpop.eup %4678  ;;  %v1109_v54 = vadd.f32 1.0, %v4677_v14  ;;  %4704 = vpow2.f32 %v4010_v34  ;;  %v1459_v34 = vmul.f32 %v4661_v0, %v6071_v36  ;;  %v4041_v5 = vmul.f32 -1.442695, %v6255_v63  ;;  %3275 = vmatprep.subr.bf16.mxu0 %v7798_v17 }
 0x1c2   :  { %v6258_v3 = vpop.eup %4680  ;;  %v1462_v10 = vmul.f32 %v4679_v6, %v6112_v22  ;;  %4706 = vpow2.f32 %v4038_v62  ;;  %v4362_v22 = vld [vmem:[#allocation7 + $0x58] sm:$0xff]   ;;  %v6275_v36 = vadd.f32 %v6012_v53, %v5648_v25  ;;  %v6285_v53 = vadd.f32 %v6027_v35, %v5644_v24 }
 0x1c3   :  { %v4683_v11 = vpop.eup %4682  ;;  %4708 = vrcp.f32 %v1109_v54  ;;  %v1561_v62 = vpack.c.bf16 %v1461_v55, %v1459_v34  ;;  %v6281_v55 = vpop.f32.mrf.mxu1 }
 0x1c4   :  { %v6270_v14 = vpop.eup %4684  ;;  %v1082_v28 = vadd.f32 1.0, %v4683_v11  ;;  %4710 = vpow2.f32 %v4011_v15  ;;  %v1562_v32 = vpack.c.bf16 %v1462_v10, %v1460_v42  ;;  %v4042_v15 = vmul.f32 -1.442695, %v6264_v33  ;;  %7824 = vst [vmem:[#allocation50_spill] sm:$0xff] %v6285_v53  ;;  %3276 = vmatpush2.bf16.msra.mxu0 %v4362_v22 }
 0x1c5   :  { %v4687_v45 = vpop.eup %4686  ;;  %4712 = vpow2.f32 %v4039_v30  ;;  %3277 = vmatprep.subr.bf16.mxu0 %v7798_v17  ;;  %v6295_v35 = vpop.f32.mrf.mxu1 }
 0x1c6   :  { %v6278_v54 = vpop.eup %4688  ;;  %4714 = vrcp.f32 %v1082_v28  ;;  %v1110_v0 = vadd.f32 1.0, %v4687_v45  ;;  %1965 = vmatprep.mubr.bf16.mxu1 %v1562_v32  ;;  %v4043_v28 = vmul.f32 -1.442695, %v6275_v36  ;;  %v6293_v32 = vadd.f32 %v6039_v20, %v5648_v25 }
 0x1c7   :  { %v4691_v10 = vpop.eup %4690  ;;  %4716 = vpow2.f32 %v4040_v26  ;;  %1966 = vmatmul.mubr.bf16.gmra.mxu1 %v1561_v62  ;;  %v4044_v62 = vmul.f32 -1.442695, %v6285_v53  ;;  %v6301_v20 = vadd.f32 %v6053_v12, %v5644_v24 }
 0x1c8   :  { %v4693_v30 = vpop.eup %4692  ;;  %4718 = vrcp.f32 %v1110_v0  ;;  %7825 = vst [vmem:[#allocation51_spill] sm:$0xff] %v6293_v32  ;;  %3278 = vmatpush2.bf16.msra.mxu0 %v4363_v13  ;;  %v6306_v13 = vadd.f32 %v6063_v40, %v5648_v25  ;;  %v6316_v40 = vadd.f32 %v6073_v18, %v5644_v24 }
 0x1c9   :  { %v4695_v6 = vpop.eup %4694  ;;  %v1083_v42 = vadd.f32 1.0, %v4693_v30  ;;  %4720 = vpow2.f32 %v4041_v5  ;;  %v4364_v5 = vld [vmem:[#allocation7 + $0x48] sm:$0xff]   ;;  %3279 = vmatprep.subr.bf16.mxu0 %v7798_v17 }
 0x1ca   :  { %v6289_v11 = vpop.eup %4696  ;;  %v1111_v34 = vadd.f32 1.0, %v4695_v6  ;;  %4722 = vpow2.f32 %v4042_v15 }
 0x1cb   :  { %v4699_v26 = vpop.eup %4698  ;;  %4724 = vrcp.f32 %v1083_v42 }
 0x1cc   :  { %v4701_v22 = vpop.eup %4700  ;;  %4726 = vrcp.f32 %v1111_v34  ;;  %v1084_v45 = vadd.f32 1.0, %v4699_v26  ;;  %v4045_v34 = vmul.f32 -1.442695, %v6293_v32  ;;  %v6308_v26 = vpop.f32.mrf.mxu1  ;;  %3280 = vmatpush2.bf16.msra.mxu0 %v4364_v5 }
 0x1cd   :  { %v4703_v0 = vpop.eup %4702  ;;  %v1112_v30 = vadd.f32 1.0, %v4701_v22  ;;  %4728 = vpow2.f32 %v4043_v28  ;;  %3281 = vmatprep.subr.bf16.mxu0 %v7798_v17  ;;  %v1464_v17 = vmul.f32 %v4691_v10, %v6140_v19  ;;  %v6335_v19 = vadd.f32 %v6107_v46, %v5644_v24  ;;  %v4365_v10 = vld [vmem:[#allocation7 + $0x40] sm:$0xff]  }
 0x1ce   :  { %v4705_v15 = vpop.eup %4704  ;;  %4730 = vrcp.f32 %v1084_v45  ;;  %v1465_v32 = vmul.f32 %v4703_v0, %v6160_v29  ;;  %v6320_v5 = vpop.f32.mrf.mxu1  ;;  %v1463_v29 = vmul.f32 %v6270_v14, %v6123_v2 }
 0x1cf   :  { %v4707_v6 = vpop.eup %4706  ;;  %4732 = vrcp.f32 %v1112_v30  ;;  %v1085_v42 = vadd.f32 1.0, %v4705_v15  ;;  %v4046_v15 = vmul.f32 -1.442695, %v6301_v20  ;;  %7826 = vst [vmem:[#allocation52_spill] sm:$0xff] %v6335_v19 }
 0x1d0   :  { %v6310_v28 = vpop.eup %4708  ;;  %v1113_v22 = vadd.f32 1.0, %v4707_v6  ;;  %4734 = vpow2.f32 %v4044_v62  ;;  %v4047_v62 = vmul.f32 -1.442695, %v6306_v13  ;;  %v6341_v2 = vpop.f32.mrf.mxu1  ;;  %3282 = vmatpush2.bf16.msra.mxu0 %v4365_v10 }
 0x1d1   :  { %v4711_v45 = vpop.eup %4710  ;;  %4736 = vrcp.f32 %v1085_v42 }
 0x1d2   :  { %v4713_v12 = vpop.eup %4712  ;;  %4738 = vrcp.f32 %v1113_v22  ;;  %v1086_v30 = vadd.f32 1.0, %v4711_v45  ;;  %v6326_v22 = vadd.f32 %v6092_v57, %v5648_v25  ;;  %v4048_v45 = vmul.f32 -1.442695, %v6316_v40 }
 0x1d3   :  { %v4715_v53 = vpop.eup %4714  ;;  %v1114_v33 = vadd.f32 1.0, %v4713_v12  ;;  %4740 = vpow2.f32 %v4045_v34  ;;  %v1563_v57 = vpack.c.bf16 %v1465_v32, %v1463_v29  ;;  %v6348_v32 = vadd.f32 %v6144_v47, %v5644_v24 }
 0x1d4   :  { %v4717_v6 = vpop.eup %4716  ;;  %v1466_v42 = vmul.f32 %v4715_v53, %v6174_v23  ;;  %4742 = vrcp.f32 %v1086_v30  ;;  %v6339_v30 = vadd.f32 %v6125_v50, %v5648_v25  ;;  %v4050_v50 = vmul.f32 -1.442695, %v6335_v19 }
 0x1d5   :  { %v6328_v18 = vpop.eup %4718  ;;  %4744 = vrcp.f32 %v1114_v33  ;;  %v1115_v0 = vadd.f32 1.0, %v4717_v6  ;;  %7827 = vst [vmem:[#allocation53_spill] sm:$0xff] %v6348_v32  ;;  %v6362_v47 = vadd.f32 %v6169_v61, %v5644_v24  ;;  %v4052_v10 = vmul.f32 -1.442695, %v6348_v32 }
 0x1d6   :  { %v4721_v34 = vpop.eup %4720  ;;  %4746 = vpow2.f32 %v4046_v15  ;;  %v1564_v23 = vpack.c.bf16 %v1466_v42, %v1464_v17  ;;  %v4049_v15 = vmul.f32 -1.442695, %v6326_v22  ;;  %v6353_v17 = vadd.f32 %v6156_v52, %v5648_v25 }
 0x1d7   :  { %v4723_v53 = vpop.eup %4722  ;;  %4748 = vrcp.f32 %v1115_v0  ;;  %v1116_v12 = vadd.f32 1.0, %v4721_v34  ;;  %v4051_v29 = vmul.f32 -1.442695, %v6339_v30  ;;  %v6356_v0 = vpop.f32.mrf.mxu1  ;;  %v6376_v61 = vadd.f32 %v6192_v31, %v5644_v24 }
 0x1d8   :  { %v4725_v33 = vpop.eup %4724  ;;  %v1117_v14 = vadd.f32 1.0, %v4723_v53  ;;  %4750 = vpow2.f32 %v4047_v62  ;;  %1975 = vmatprep.mubr.bf16.mxu1 %v1564_v23  ;;  %7828 = vst [vmem:[#allocation54_spill] sm:$0xff] %v6353_v17  ;;  %v6366_v23 = vadd.f32 %v6181_v59, %v5648_v25  ;;  %v6387_v31 = vadd.f32 %v6213_v43, %v5648_v25 }
 0x1d9   :  { %v6344_v46 = vpop.eup %4726  ;;  %4752 = vrcp.f32 %v1116_v12  ;;  %1976 = vmatmul.mubr.bf16.gmra.mxu1 %v1563_v57  ;;  %v4053_v57 = vmul.f32 -1.442695, %v6353_v17  ;;  %v6378_v59 = vpop.f32.mrf.mxu1 }
 0x1da   :  { %v4729_v6 = vpop.eup %4728  ;;  %4754 = vrcp.f32 %v1117_v14  ;;  %v7829_v14 = vld [vmem:[#allocation14_spill] sm:$0xff] }
 0x1db   :  { %v4731_v62 = vpop.eup %4730  ;;  %v1118_v42 = vadd.f32 1.0, %v4729_v6  ;;  %4756 = vpow2.f32 %v4048_v45  ;;  %7831 = vst [vmem:[#allocation14_spill] sm:$0xff] %v6387_v31 }
 0x1dc   :  { %v6358_v34 = vpop.eup %4732  ;;  %4758 = vpow2.f32 %v4049_v15  ;;  %v1472_v15 = vmul.f32 %v5949_v41, %v7829_v14  ;;  %v1468_v14 = vmul.f32 %v4731_v62, %v6206_v1 }
 0x1dd   :  { %v4735_v52 = vpop.eup %4734  ;;  %4760 = vrcp.f32 %v1118_v42  ;;  %v7830_v42 = vld [vmem:[#allocation16_spill] sm:$0xff] }
 0x1de   :  { %v4737_v45 = vpop.eup %4736  ;;  %v1119_v53 = vadd.f32 1.0, %v4735_v52  ;;  %4762 = vpow2.f32 %v4050_v50  ;;  %v1474_v32 = vmul.f32 %v5991_v8, %v7830_v42  ;;  %v4054_v50 = vmul.f32 -1.442695, %v6362_v47 }
 0x1df   :  { %v6370_v12 = vpop.eup %4738  ;;  %4764 = vpow2.f32 %v4051_v29  ;;  %v4055_v52 = vmul.f32 -1.442695, %v6366_v23  ;;  %v1469_v19 = vmul.f32 %v4737_v45, %v6219_v56  ;;  %v1467_v56 = vmul.f32 %v4725_v33, %v6190_v7  ;;  %v6399_v45 = vpop.f32.mrf.mxu1 }
 0x1e0   :  { %v4741_v6 = vpop.eup %4740  ;;  %4766 = vrcp.f32 %v1119_v53  ;;  %v6395_v53 = vadd.f32 %v6228_v39, %v5644_v24  ;;  %v6406_v39 = vadd.f32 %v6248_v21, %v5648_v25  ;;  %v6419_v21 = vadd.f32 %v6268_v60, %v5644_v24 }
 0x1e1   :  { %v4743_v17 = vpop.eup %4742  ;;  %v1120_v41 = vadd.f32 1.0, %v4741_v6  ;;  %4768 = vpow2.f32 %v4052_v10  ;;  %v4056_v10 = vmul.f32 -1.442695, %v6376_v61 }
 0x1e2   :  { %v6389_v29 = vpop.eup %4744  ;;  %v1470_v8 = vmul.f32 %v4743_v17, %v6233_v49  ;;  %4770 = vpow2.f32 %v4053_v57  ;;  %7832 = vst [vmem:[#allocation16_spill] sm:$0xff] %v6395_v53  ;;  %v1565_v49 = vpack.c.bf16 %v1469_v19, %v1467_v56  ;;  %v4057_v17 = vmul.f32 -1.442695, %v6387_v31  ;;  %7833 = vst [vmem:[#allocation55_spill] sm:$0xff] %v6406_v39  ;;  %v6413_v19 = vpop.f32.mrf.mxu1 }
 0x1e3   :  { %v4747_v42 = vpop.eup %4746  ;;  %4772 = vrcp.f32 %v1120_v41  ;;  %v4058_v57 = vmul.f32 -1.442695, %v6395_v53  ;;  %v1568_v41 = vpack.c.bf16 %v1474_v32, %v1472_v15 }
 0x1e4   :  { %v6401_v43 = vpop.eup %4748  ;;  %v1121_v6 = vadd.f32 1.0, %v4747_v42  ;;  %4774 = vpow2.f32 %v4054_v50  ;;  %v1566_v1 = vpack.c.bf16 %v1470_v8, %v1468_v14  ;;  %v7835_v14 = vld [vmem:[#allocation21_spill] sm:$0xff] }
 0x1e5   :  { %v4751_v62 = vpop.eup %4750  ;;  %4776 = vpow2.f32 %v4055_v52  ;;  %v7834_v52 = vld [vmem:[#allocation13_spill] sm:$0xff] }
 0x1e6   :  { %v6408_v7 = vpop.eup %4752  ;;  %4778 = vrcp.f32 %v1121_v6  ;;  %v1122_v33 = vadd.f32 1.0, %v4751_v62  ;;  %1985 = vmatprep.mubr.bf16.mxu1 %v1566_v1  ;;  %v1471_v8 = vmul.f32 %v7835_v14, %v7834_v52  ;;  %7836 = vst [vmem:[#allocation13_spill] sm:$0xff] %v6419_v21  ;;  %v7837_v6 = vld [vmem:[#allocation15_spill] sm:$0xff]  ;;  %v7838_v62 = vld [vmem:[#allocation18_spill] sm:$0xff]  ;;  %v7839_v52 = vld [vmem:[#allocation20_spill] sm:$0xff]  ;;  %v6432_v14 = vadd.f32 %v6281_v55, %v5648_v25 }
 0x1e7   :  { %v6411_v42 = vpop.eup %4754  ;;  %4780 = vpow2.f32 %v4056_v10  ;;  %1986 = vmatmul.mubr.bf16.gmra.mxu1 %v1565_v49  ;;  %v1473_v32 = vmul.f32 %v5976_v27, %v7837_v6  ;;  %v4059_v10 = vmul.f32 -1.442695, %v6406_v39  ;;  %v1476_v49 = vmul.f32 %v6021_v58, %v7838_v62  ;;  %v6434_v27 = vpop.f32.mrf.mxu1 }
 0x1e8   :  { %v4757_v50 = vpop.eup %4756  ;;  %4782 = vrcp.f32 %v1122_v33  ;;  %1995 = vmatprep.mubr.bf16.mxu1 %v1568_v41  ;;  %v1478_v33 = vmul.f32 %v6037_v4, %v7839_v52  ;;  %7840 = vst [vmem:[#allocation21_spill] sm:$0xff] %v6432_v14  ;;  %v4060_v6 = vmul.f32 -1.442695, %v6419_v21  ;;  %v6441_v4 = vadd.f32 %v6295_v35, %v5644_v24 }
 0x1e9   :  { %v4759_v56 = vpop.eup %4758  ;;  %v1123_v15 = vadd.f32 1.0, %v4757_v50  ;;  %4784 = vpow2.f32 %v4057_v17  ;;  %v1567_v58 = vpack.c.bf16 %v1473_v32, %v1471_v8  ;;  %v4061_v52 = vmul.f32 -1.442695, %v6432_v14 }
 0x1ea   :  { %v6424_v1 = vpop.eup %4760  ;;  %v1124_v41 = vadd.f32 1.0, %v4759_v56  ;;  %4786 = vpow2.f32 %v4058_v57  ;;  %7841 = vst [vmem:[#allocation15_spill] sm:$0xff] %v6441_v4  ;;  %v1570_v55 = vpack.c.bf16 %v1478_v33, %v1476_v49  ;;  %v6450_v32 = vadd.f32 %v6308_v26, %v5648_v25  ;;  %v7844_v33 = vld [vmem:[#allocation19_spill] sm:$0xff] }
 0x1eb   :  { %v4763_v60 = vpop.eup %4762  ;;  %4788 = vrcp.f32 %v1123_v15 }
 0x1ec   :  { %v4765_v17 = vpop.eup %4764  ;;  %4790 = vrcp.f32 %v1124_v41  ;;  %v1125_v50 = vadd.f32 1.0, %v4763_v60  ;;  %v6444_v41 = vpop.f32.mrf.mxu1  ;;  %7842 = vst [vmem:[#allocation18_spill] sm:$0xff] %v6450_v32 }
 0x1ed   :  { %v6437_v39 = vpop.eup %4766  ;;  %v1126_v62 = vadd.f32 1.0, %v4765_v17  ;;  %4792 = vpow2.f32 %v4059_v10  ;;  %v7843_v10 = vld [vmem:[#allocation17_spill] sm:$0xff]  ;;  %v1477_v17 = vmul.f32 %v6029_v48, %v7844_v33 }
 0x1ee   :  { %v4769_v57 = vpop.eup %4768  ;;  %4794 = vrcp.f32 %v1125_v50  ;;  %v1475_v49 = vmul.f32 %v6003_v9, %v7843_v10  ;;  %v4062_v50 = vmul.f32 -1.442695, %v6441_v4  ;;  %v6465_v9 = vadd.f32 %v6320_v5, %v5644_v24  ;;  %v630_v48 = vpop.f32.mrf.mxu1 }
 0x1ef   :  { %v4771_v56 = vpop.eup %4770  ;;  %4796 = vrcp.f32 %v1126_v62  ;;  %v1127_v15 = vadd.f32 1.0, %v4769_v57  ;;  %1996 = vmatmul.mubr.bf16.gmra.mxu1 %v1567_v58  ;;  %v7845_v62 = vld [vmem:[#allocation35_spill] sm:$0xff]  ;;  %v4063_v10 = vmul.f32 -1.442695, %v6450_v32 }
 0x1f0   :  { %v6446_v60 = vpop.eup %4772  ;;  %v1128_v8 = vadd.f32 1.0, %v4771_v56  ;;  %4798 = vpow2.f32 %v4060_v6  ;;  %2005 = vmatprep.mubr.bf16.mxu1 %v1570_v55  ;;  %v1480_v57 = vmul.f32 %v7845_v62, %v5966_v37  ;;  %v7846_v6 = vld [vmem:[#allocation26_spill] sm:$0xff]  ;;  %v7847_v56 = vld [vmem:[#allocation39_spill] sm:$0xff]  ;;  %7848 = vst [vmem:[#allocation20_spill] sm:$0xff] %v6465_v9  ;;  %v6470_v37 = vadd.f32 %v6341_v2, %v5648_v25 }
 0x1f1   :  { %v4775_v35 = vpop.eup %4774  ;;  %4800 = vrcp.f32 %v1127_v15  ;;  %v1482_v14 = vmul.f32 %v7847_v56, %v7846_v6  ;;  %v4064_v56 = vmul.f32 -1.442695, %v6465_v9  ;;  %v6481_v2 = vadd.f32 %v6378_v59, %v5648_v25  ;;  %v7859_v9 = vld [vmem:[#allocation30_spill] sm:$0xff] }
 0x1f2   :  { %v4777_v58 = vpop.eup %4776  ;;  %4802 = vrcp.f32 %v1128_v8  ;;  %v1129_v26 = vadd.f32 1.0, %v4775_v35  ;;  %7849 = vst [vmem:[#allocation17_spill] sm:$0xff] %v6470_v37  ;;  %v6474_v8 = vadd.f32 %v6356_v0, %v5644_v24  ;;  %v632_v0 = vpop.f32.mrf.mxu1 }
 0x1f3   :  { %v6461_v55 = vpop.eup %4778  ;;  %v1130_v21 = vadd.f32 1.0, %v4777_v58  ;;  %4804 = vpow2.f32 %v4061_v52  ;;  %v1569_v52 = vpack.c.bf16 %v1477_v17, %v1475_v49  ;;  %v1572_v58 = vpack.c.bf16 %v1482_v14, %v1480_v57  ;;  %7851 = vst [vmem:[#allocation35_spill] sm:$0xff] %v6481_v2  ;;  %v7852_v17 = vld [vmem:[#allocation24_spill] sm:$0xff] }
 0x1f4   :  { %v4781_v15 = vpop.eup %4780  ;;  %4806 = vrcp.f32 %v1129_v26  ;;  %7850 = vst [vmem:[#allocation19_spill] sm:$0xff] %v6474_v8  ;;  %v4066_v49 = vmul.f32 -1.442695, %v6474_v8  ;;  %v6503_v8 = vadd.f32 %v6413_v19, %v5648_v25 }
 0x1f5   :  { %v6476_v35 = vpop.eup %4782  ;;  %4808 = vrcp.f32 %v1130_v21  ;;  %v1131_v33 = vadd.f32 1.0, %v4781_v15  ;;  %v4065_v21 = vmul.f32 -1.442695, %v6470_v37  ;;  %v7854_v15 = vld [vmem:[#allocation25_spill] sm:$0xff] }
 0x1f6   :  { %v4785_v5 = vpop.eup %4784  ;;  %4810 = vpow2.f32 %v4062_v50  ;;  %v7853_v50 = vld [vmem:[#allocation33_spill] sm:$0xff]  ;;  %7860 = vst [vmem:[#allocation39_spill] sm:$0xff] %v6503_v8 }
 0x1f7   :  { %v4787_v62 = vpop.eup %4786  ;;  %4812 = vrcp.f32 %v1131_v33  ;;  %v1132_v6 = vadd.f32 1.0, %v4785_v5  ;;  %2006 = vmatmul.mubr.bf16.gmra.mxu1 %v1569_v52  ;;  %v1479_v57 = vmul.f32 %v7853_v50, %v7852_v17  ;;  %v7855_v33 = vld [vmem:[#allocation37_spill] sm:$0xff]  ;;  %v6495_v52 = vadd.f32 %v6399_v45, %v5644_v24  ;;  %v634_v45 = vpop.f32.mrf.mxu1 }
 0x1f8   :  { %v6483_v26 = vpop.eup %4788  ;;  %v1133_v4 = vadd.f32 1.0, %v4787_v62  ;;  %4814 = vpow2.f32 %v4063_v10  ;;  %2015 = vmatprep.mubr.bf16.mxu1 %v1572_v58  ;;  %v1481_v59 = vmul.f32 %v7855_v33, %v7854_v15  ;;  %v7857_v10 = vld [vmem:[#allocation28_spill] sm:$0xff]  ;;  %v7858_v62 = vld [vmem:[#allocation42_spill] sm:$0xff]  ;;  %v1486_v58 = vmul.f32 %v6200_v44, %v7859_v9 }
 0x1f9   :  { %v6487_v14 = vpop.eup %4790  ;;  %4816 = vrcp.f32 %v1132_v6  ;;  %7856 = vst [vmem:[#allocation26_spill] sm:$0xff] %v6495_v52  ;;  %v1484_v37 = vmul.f32 %v7858_v62, %v7857_v10  ;;  %v4067_v6 = vmul.f32 -1.442695, %v6481_v2  ;;  %v6512_v33 = vadd.f32 %v6434_v27, %v5644_v24 }
 0x1fa   :  { %v4793_v5 = vpop.eup %4792  ;;  %4818 = vrcp.f32 %v1133_v4  ;;  %v6516_v44 = vadd.f32 %v6444_v41, %v5648_v25  ;;  %v1571_v4 = vpack.c.bf16 %v1481_v59, %v1479_v57  ;;  %v4068_v9 = vmul.f32 -1.442695, %v6495_v52  ;;  %v636_v41 = vpop.f32.mrf.mxu1 }
 0x1fb   :  { %v6505_v17 = vpop.eup %4794  ;;  %v1134_v50 = vadd.f32 1.0, %v4793_v5  ;;  %4820 = vpow2.f32 %v4064_v56  ;;  %7861 = vst [vmem:[#allocation24_spill] sm:$0xff] %v6512_v33  ;;  %v4069_v10 = vmul.f32 -1.442695, %v6503_v8  ;;  %v6525_v27 = vadd.f32 %v630_v48, %v5644_v24  ;;  %v7870_v8 = vld [vmem:[#allocation36_spill] sm:$0xff] }
 0x1fc   :  { %v6508_v15 = vpop.eup %4796  ;;  %4822 = vpow2.f32 %v4065_v21  ;;  %7862 = vst [vmem:[#allocation33_spill] sm:$0xff] %v6516_v44  ;;  %v1574_v21 = vpack.c.bf16 %v1486_v58, %v1484_v37  ;;  %v4070_v57 = vmul.f32 -1.442695, %v6512_v33  ;;  %v4071_v59 = vmul.f32 -1.442695, %v6516_v44  ;;  %v7865_v37 = vld [vmem:[#allocation27_spill] sm:$0xff] }
 0x1fd   :  { %v4799_v19 = vpop.eup %4798  ;;  %4824 = vrcp.f32 %v1134_v50  ;;  %7863 = vst [vmem:[#allocation25_spill] sm:$0xff] %v6525_v27  ;;  %v7866_v58 = vld [vmem:[#allocation41_spill] sm:$0xff]  ;;  %v1490_v32 = vmul.f32 %v6258_v3, %v7870_v8  ;;  %v6554_v31 = vadd.f32 %v636_v41, %v5648_v25 }
 0x1fe   :  { %v6519_v56 = vpop.eup %4800  ;;  %v1135_v5 = vadd.f32 1.0, %v4799_v19  ;;  %4826 = vpow2.f32 %v4066_v49  ;;  %v6530_v49 = vadd.f32 %v632_v0, %v5648_v25  ;;  %v7867_v19 = vld [vmem:[#allocation29_spill] sm:$0xff] }
 0x1ff   :  { %v6522_v62 = vpop.eup %4802  ;;  %4828 = vpow2.f32 %v4067_v6  ;;  %2016 = vmatmul.mubr.bf16.gmra.mxu1 %v1571_v4  ;;  %v1483_v6 = vmul.f32 %v7866_v58, %v7865_v37  ;;  %v7868_v4 = vld [vmem:[#allocation44_spill] sm:$0xff]  ;;  %v6548_v37 = vadd.f32 %v634_v45, %v5644_v24  ;;  %7872 = vst [vmem:[#allocation42_spill] sm:$0xff] %v6554_v31 }
 0x200   :  { %v4805_v2 = vpop.eup %4804  ;;  %4830 = vrcp.f32 %v1135_v5  ;;  %2025 = vmatprep.mubr.bf16.mxu1 %v1574_v21  ;;  %7864 = vst [vmem:[#allocation37_spill] sm:$0xff] %v6530_v49  ;;  %v1485_v48 = vmul.f32 %v7868_v4, %v7867_v19  ;;  %v1631_v5 = vld [vmem:[%s7719_s4] sm:$0x3]  ;;  %v4073_v24 = vmul.f32 -1.442695, %v6530_v49 }
 0x201   :  { %v6532_v50 = vpop.eup %4806  ;;  %v1136_v52 = vadd.f32 1.0, %v4805_v2  ;;  %4832 = vpow2.f32 %v4068_v9  ;;  %v1837_v33 = vpop.f32.mrf.mxu1  ;;  %v7869_v21 = vld [vmem:[#allocation32_spill] sm:$0xff]  ;;  %7871 = vst [vmem:[#allocation28_spill] sm:$0xff] %v6548_v37  ;;  %v4072_v2 = vmul.f32 -1.442695, %v6525_v27 }
 0x202   :  { %v6541_v44 = vpop.eup %4808  ;;  %v1488_v0 = vmul.f32 %v6230_v51, %v7869_v21  ;;  %4834 = vpow2.f32 %v4069_v10  ;;  %v7873_v51 = vld [vmem:[#allocation12_spill] sm:$0xff]  ;;  %v1573_v8 = vpack.c.bf16 %v1485_v48, %v1483_v6  ;;  %v4075_v48 = vmul.f32 -1.442695, %v6554_v31 }
 0x203   :  { %v4811_v58 = vpop.eup %4810  ;;  %4836 = vrcp.f32 %v1136_v52  ;;  %v1839_v9 = vpop.f32.mrf.mxu1  ;;  %v7874_v21 = vsub.s32 0, %v7873_v51  ;;  %v7875_v25 = vsub.s32 1, %v7873_v51  ;;  %v7880_v51 = vld [vmem:[#allocation40_spill] sm:$0xff] }
 0x204   :  { %v6551_v19 = vpop.eup %4812  ;;  %v1137_v4 = vadd.f32 1.0, %v4811_v58  ;;  %4838 = vpow2.f32 %v4070_v57  ;;  %v4074_v58 = vmul.f32 -1.442695, %v6548_v37  ;;  %v1576_v57 = vpack.c.bf16 %v1490_v32, %v1488_v0  ;;  %v7877_v0 = vld [vmem:[#allocation34_spill] sm:$0xff] }
 0x205   :  { %v6558_v53 = vrot.slane %v1631_v5, %v7874_v21  ;;  %v4815_v3 = vpop.eup %4814  ;;  %4840 = vpow2.f32 %v4071_v59  ;;  %v1841_v52 = vpop.f32.mrf.mxu1  ;;  %v6568_v41 = vrot.slane %v1631_v5, %v7875_v25  ;;  %v7881_v25 = vld [vmem:[#allocation22_spill] sm:$0xff] }
 0x206   :  { %v6561_v45 = vpop.eup %4816  ;;  %4842 = vrcp.f32 %v1137_v4  ;;  %v1138_v10 = vadd.f32 1.0, %v4815_v3  ;;  %v7876_v3 = vld [vmem:[#allocation31_spill] sm:$0xff] }
 0x207   :  { %v6564_v27 = vpop.eup %4818  ;;  %4844 = vpow2.f32 %v4072_v2  ;;  %2026 = vmatmul.mubr.bf16.gmra.mxu1 %v1573_v8  ;;  %v1843_v6 = vpop.f32.mrf.mxu1  ;;  %v6572_v4 = vadd.f32 %v1837_v33, %v6558_v53  ;;  %v1487_v32 = vmul.f32 %v6216_v16, %v7876_v3  ;;  %v7878_v2 = vld [vmem:[#allocation48_spill] sm:$0xff]  ;;  %v6585_v16 = vadd.f32 %v1839_v9, %v6568_v41 }
 0x208   :  { %v4821_v59 = vpop.eup %4820  ;;  %4846 = vrcp.f32 %v1138_v10  ;;  %2035 = vmatprep.mubr.bf16.mxu1 %v1576_v57  ;;  %v1489_v8 = vmul.f32 %v7878_v2, %v7877_v0  ;;  %v1492_v10 = vmul.f32 %v6289_v11, %v7880_v51  ;;  %v1494_v57 = vmul.f32 %v6328_v18, %v7881_v25 }
 0x209   :  { %v4823_v21 = vpop.eup %4822  ;;  %v1139_v37 = vadd.f32 1.0, %v4821_v59  ;;  %4848 = vpow2.f32 %v4073_v24  ;;  %v4108_v24 = vmul.f32 -1.442695, %v6572_v4 }
 0x20a   :  { %v6578_v5 = vpop.eup %4824  ;;  %v1140_v31 = vadd.f32 1.0, %v4823_v21  ;;  %4850 = vpow2.f32 %v4074_v58  ;;  %v1847_v33 = vpop.f32.mrf.mxu1  ;;  %v1575_v11 = vpack.c.bf16 %v1489_v8, %v1487_v32  ;;  %v1578_v58 = vpack.c.bf16 %v1494_v57, %v1492_v10  ;;  %v7884_v10 = vld [vmem:[#allocation38_spill] sm:$0xff]  ;;  %v7885_v57 = vld [vmem:[#allocation43_spill] sm:$0xff] }
 0x20b   :  { %7879 = vst [vmem:[#allocation30_spill] sm:$0xff] %v6578_v5  ;;  %v4827_v49 = vpop.eup %4826  ;;  %4852 = vrcp.f32 %v1139_v37  ;;  %v6591_v21 = vadd.f32 %v1841_v52, %v6558_v53  ;;  %v1491_v52 = vmul.f32 %v6278_v54, %v7884_v10  ;;  %v6611_v54 = vadd.f32 %v1847_v33, %v6558_v53 }
 0x20c   :  { %v4829_v3 = vpop.eup %4828  ;;  %4854 = vrcp.f32 %v1140_v31  ;;  %v1141_v59 = vadd.f32 1.0, %v4827_v49  ;;  %v1849_v0 = vpop.f32.mrf.mxu1  ;;  %v4109_v31 = vmul.f32 -1.442695, %v6585_v16 }
 0x20d   :  { %v6588_v2 = vpop.eup %4830  ;;  %v1142_v51 = vadd.f32 1.0, %v4829_v3  ;;  %4856 = vpow2.f32 %v4075_v48  ;;  %v6597_v48 = vadd.f32 %v1843_v6, %v6568_v41  ;;  %v1493_v3 = vmul.f32 %v6310_v28, %v7885_v57 }
 0x20e   :  { %7882 = vst [vmem:[#allocation27_spill] sm:$0xff] %v6588_v2  ;;  %v4833_v18 = vpop.eup %4832  ;;  %4858 = vrcp.f32 %v1141_v59  ;;  %v1851_v37 = vpop.f32.mrf.mxu1  ;;  %v7886_v59 = vld [vmem:[#allocation45_spill] sm:$0xff]  ;;  %v4110_v6 = vmul.f32 -1.442695, %v6591_v21 }
 0x20f   :  { %v4835_v9 = vpop.eup %4834  ;;  %4860 = vrcp.f32 %v1142_v51  ;;  %v1143_v25 = vadd.f32 1.0, %v4833_v18  ;;  %2036 = vmatmul.mubr.bf16.gmra.mxu1 %v1575_v11  ;;  %v1496_v11 = vmul.f32 %v6358_v34, %v7886_v59  ;;  %v7887_v18 = vld [vmem:[#allocation47_spill] sm:$0xff]  ;;  %v4111_v34 = vmul.f32 -1.442695, %v6597_v48 }
 0x210   :  { %v6594_v49 = vpop.eup %4836  ;;  %v1144_v5 = vadd.f32 1.0, %v4835_v9  ;;  %2045 = vmatprep.mubr.bf16.mxu1 %v1578_v58  ;;  %4862 = vpow2.f32 %v4108_v24  ;;  %v1853_v32 = vpop.f32.mrf.mxu1  ;;  %v1498_v58 = vmul.f32 %v6389_v29, %v7887_v18 }
 0x211   :  { %7883 = vst [vmem:[#allocation41_spill] sm:$0xff] %v6594_v49  ;;  %v4839_v8 = vpop.eup %4838  ;;  %4864 = vrcp.f32 %v1143_v25  ;;  %v6615_v25 = vadd.f32 %v1849_v0, %v6568_v41  ;;  %v4112_v0 = vmul.f32 -1.442695, %v6611_v54 }
 0x212   :  { %v4841_v51 = vpop.eup %4840  ;;  %4866 = vrcp.f32 %v1144_v5  ;;  %v1145_v24 = vadd.f32 1.0, %v4839_v8  ;;  %v1857_v9 = vpop.f32.mrf.mxu1  ;;  %v1577_v8 = vpack.c.bf16 %v1493_v3, %v1491_v52  ;;  %v1580_v59 = vpack.c.bf16 %v1498_v58, %v1496_v11 }
 0x213   :  { %v6608_v49 = vpop.eup %4842  ;;  %v1146_v2 = vadd.f32 1.0, %v4841_v51  ;;  %4868 = vpow2.f32 %v4109_v31  ;;  %v6620_v31 = vadd.f32 %v1851_v37, %v6558_v53  ;;  %v4113_v37 = vmul.f32 -1.442695, %v6615_v25 }
 0x214   :  { %7888 = vst [vmem:[#allocation29_spill] sm:$0xff] %v6608_v49  ;;  %v4845_v28 = vpop.eup %4844  ;;  %4870 = vrcp.f32 %v1145_v24  ;;  %v1859_v29 = vpop.f32.mrf.mxu1  ;;  %v6624_v24 = vadd.f32 %v1853_v32, %v6568_v41  ;;  %v1500_v32 = vmul.f32 %v6408_v7, %v6255_v63 }
 0x215   :  { %v6617_v5 = vpop.eup %4846  ;;  %4872 = vrcp.f32 %v1146_v2  ;;  %v1147_v10 = vadd.f32 1.0, %v4845_v28  ;;  %v7889_v2 = vld [vmem:[#allocation23_spill] sm:$0xff] }
 0x216   :  { %v4849_v57 = vpop.eup %4848  ;;  %4874 = vpow2.f32 %v4110_v6  ;;  %v1861_v33 = vpop.f32.mrf.mxu1  ;;  %v1495_v52 = vmul.f32 %v6344_v46, %v7889_v2  ;;  %v7890_v6 = vld [vmem:[#allocation46_spill] sm:$0xff]  ;;  %v1502_v46 = vmul.f32 %v6424_v1, %v6275_v36  ;;  %v4115_v63 = vmul.f32 -1.442695, %v6624_v24 }
 0x217   :  { %v4851_v51 = vpop.eup %4850  ;;  %4876 = vrcp.f32 %v1147_v10  ;;  %v1148_v18 = vadd.f32 1.0, %v4849_v57  ;;  %2046 = vmatmul.mubr.bf16.gmra.mxu1 %v1577_v8  ;;  %v1497_v28 = vmul.f32 %v6370_v12, %v7890_v6  ;;  %v6638_v8 = vadd.f32 %v1857_v9, %v6558_v53 }
 0x218   :  { %v6626_v49 = vpop.eup %4852  ;;  %v1149_v3 = vadd.f32 1.0, %v4851_v51  ;;  %2055 = vmatprep.mubr.bf16.mxu1 %v1580_v59  ;;  %4878 = vpow2.f32 %v4111_v34  ;;  %v1863_v11 = vpop.f32.mrf.mxu1  ;;  %v4114_v34 = vmul.f32 -1.442695, %v6620_v31  ;;  %v6644_v57 = vadd.f32 %v1859_v29, %v6568_v41 }
 0x219   :  { %v6631_v58 = vpop.eup %4854  ;;  %4880 = vrcp.f32 %v1148_v18  ;;  %v6652_v9 = vadd.f32 %v1861_v33, %v6558_v53  ;;  %v1579_v18 = vpack.c.bf16 %v1497_v28, %v1495_v52  ;;  %v4116_v29 = vmul.f32 -1.442695, %v6638_v8  ;;  %v7893_v28 = vld [vmem:[#allocation49_spill] sm:$0xff] }
 0x21a   :  { %v4857_v10 = vpop.eup %4856  ;;  %4882 = vrcp.f32 %v1149_v3  ;;  %v1867_v59 = vpop.f32.mrf.mxu1  ;;  %v6656_v2 = vadd.f32 %v1863_v11, %v6568_v41  ;;  %v1499_v11 = vmul.f32 %v6401_v43, %v6246_v38  ;;  %v7896_v38 = vld [vmem:[#allocation51_spill] sm:$0xff] }
 0x21b   :  { %v6646_v51 = vpop.eup %4858  ;;  %v1150_v12 = vadd.f32 1.0, %v4857_v10  ;;  %4884 = vpow2.f32 %v4112_v0  ;;  %v1582_v0 = vpack.c.bf16 %v1502_v46, %v1500_v32  ;;  %v4117_v10 = vmul.f32 -1.442695, %v6644_v57 }
 0x21c   :  { %7891 = vst [vmem:[#allocation44_spill] sm:$0xff] %v6646_v51  ;;  %v6649_v7 = vpop.eup %4860  ;;  %4886 = vpow2.f32 %v4113_v37  ;;  %v1869_v36 = vpop.f32.mrf.mxu1  ;;  %v6664_v33 = vadd.f32 %v1867_v59, %v6558_v53  ;;  %v4118_v32 = vmul.f32 -1.442695, %v6652_v9  ;;  %v1504_v43 = vmul.f32 %v6446_v60, %v7896_v38 }
 0x21d   :  { %v4863_v1 = vpop.eup %4862  ;;  %4888 = vrcp.f32 %v1150_v12  ;;  %v1501_v12 = vmul.f32 %v6411_v42, %v7893_v28  ;;  %v6675_v59 = vadd.f32 %v1869_v36, %v6568_v41  ;;  %v1506_v42 = vmul.f32 %v6476_v35, %v6306_v13 }
 0x21e   :  { %v6658_v3 = vpop.eup %4864  ;;  %v2540_v6 = vadd.f32 1.0, %v4863_v1  ;;  %4890 = vpow2.f32 %v4114_v34  ;;  %v1871_v37 = vpop.f32.mrf.mxu1 }
 0x21f   :  { %7892 = vst [vmem:[#allocation32_spill] sm:$0xff] %v6658_v3  ;;  %v6661_v51 = vpop.eup %4866  ;;  %2056 = vmatmul.mubr.bf16.gmra.mxu1 %v1579_v18  ;;  %4892 = vpow2.f32 %v4115_v63  ;;  %v4119_v63 = vmul.f32 -1.442695, %v6656_v2  ;;  %v4121_v60 = vmul.f32 -1.442695, %v6675_v59 }
 0x220   :  { %v4869_v52 = vpop.eup %4868  ;;  %2065 = vmatprep.mubr.bf16.mxu1 %v1582_v0  ;;  %4894 = vrcp.f32 %v2540_v6  ;;  %v1873_v46 = vpop.f32.mrf.mxu1  ;;  %v6684_v0 = vadd.f32 %v1871_v37, %v6558_v53 }
 0x221   :  { %v6671_v34 = vpop.eup %4870  ;;  %v2541_v1 = vadd.f32 1.0, %v4869_v52  ;;  %4896 = vpow2.f32 %v4116_v29  ;;  %v4120_v29 = vmul.f32 -1.442695, %v6664_v33  ;;  %v6691_v13 = vadd.f32 %v1873_v46, %v6568_v41 }
 0x222   :  { %7894 = vst [vmem:[#allocation36_spill] sm:$0xff] %v6671_v34  ;;  %v6677_v18 = vpop.eup %4872  ;;  %4898 = vpow2.f32 %v4117_v10  ;;  %v1877_v6 = vpop.f32.mrf.mxu1  ;;  %v1584_v10 = vpack.c.bf16 %v1506_v42, %v1504_v43 }
 0x223   :  { %7895 = vst [vmem:[#allocation12_spill] sm:$0xff] %v6677_v18  ;;  %v4875_v52 = vpop.eup %4874  ;;  %4900 = vrcp.f32 %v2541_v1  ;;  %v1581_v18 = vpack.c.bf16 %v1501_v12, %v1499_v11  ;;  %v4122_v1 = vmul.f32 -1.442695, %v6684_v0  ;;  %v7898_v11 = vld [vmem:[#allocation50_spill] sm:$0xff]  ;;  %v6701_v46 = vadd.f32 %v1877_v6, %v6558_v53 }
 0x224   :  { %v6687_v28 = vpop.eup %4876  ;;  %v2542_v36 = vadd.f32 1.0, %v4875_v52  ;;  %4902 = vpow2.f32 %v4118_v32  ;;  %v1879_v34 = vpop.f32.mrf.mxu1  ;;  %v1503_v12 = vmul.f32 %v6437_v39, %v7898_v11  ;;  %v4123_v52 = vmul.f32 -1.442695, %v6691_v13 }
 0x225   :  { %7897 = vst [vmem:[#allocation31_spill] sm:$0xff] %v6687_v28  ;;  %v4879_v3 = vpop.eup %4878  ;;  %4904 = vpow2.f32 %v4119_v63  ;;  %v1510_v39 = vmul.f32 %v6508_v15, %v6339_v30 }
 0x226   :  { %v6693_v35 = vpop.eup %4880  ;;  %4906 = vrcp.f32 %v2542_v36  ;;  %v2543_v37 = vadd.f32 1.0, %v4879_v3  ;;  %v1881_v38 = vpop.f32.mrf.mxu1  ;;  %v1505_v3 = vmul.f32 %v6461_v55, %v6301_v20  ;;  %v6717_v20 = vadd.f32 %v1879_v34, %v6568_v41 }
 0x227   :  { %v6696_v28 = vpop.eup %4882  ;;  %2066 = vmatmul.mubr.bf16.gmra.mxu1 %v1581_v18  ;;  %4908 = vpow2.f32 %v4120_v29  ;;  %v1508_v29 = vmul.f32 %v6487_v14, %v6326_v22  ;;  %v4124_v14 = vmul.f32 -1.442695, %v6701_v46  ;;  %v6725_v34 = vadd.f32 %v1881_v38, %v6558_v53 }
 0x228   :  { %v4885_v32 = vpop.eup %4884  ;;  %2075 = vmatprep.mubr.bf16.mxu1 %v1584_v10  ;;  %4910 = vrcp.f32 %v2543_v37  ;;  %v1883_v63 = vpop.f32.mrf.mxu1  ;;  %v6714_v10 = vmul.f32 %v6483_v26, %v6316_v40  ;;  %v7900_v40 = vld [vmem:[#allocation54_spill] sm:$0xff] }
 0x229   :  { %v4887_v43 = vpop.eup %4886  ;;  %v2544_v42 = vadd.f32 1.0, %v4885_v32  ;;  %4912 = vpow2.f32 %v4121_v60  ;;  %v7899_v60 = vld [vmem:[#allocation52_spill] sm:$0xff]  ;;  %v1512_v26 = vmul.f32 %v6522_v62, %v7900_v40 }
 0x22a   :  { %v6706_v18 = vpop.eup %4888  ;;  %v2545_v36 = vadd.f32 1.0, %v4887_v43  ;;  %4914 = vpow2.f32 %v4122_v1  ;;  %v1509_v37 = vmul.f32 %v6505_v17, %v7899_v60  ;;  %v1583_v1 = vpack.c.bf16 %v1505_v3, %v1503_v12 }
 0x22b   :  { %v4891_v6 = vpop.eup %4890  ;;  %4916 = vrcp.f32 %v2544_v42  ;;  %v1586_v43 = vpack.c.bf16 %v1510_v39, %v1508_v29  ;;  %v4125_v12 = vmul.f32 -1.442695, %v6717_v20  ;;  %v6732_v29 = vadd.f32 %v1883_v63, %v6568_v41 }
 0x22c   :  { %v4893_v55 = vpop.eup %4892  ;;  %4918 = vrcp.f32 %v2545_v36  ;;  %v2546_v22 = vadd.f32 1.0, %v4891_v6  ;;  %v1887_v30 = vpop.f32.mrf.mxu1  ;;  %v1514_v36 = vmul.f32 %v6541_v44, %v6366_v23  ;;  %v6740_v23 = vmul.f32 %v6532_v50, %v6362_v47 }
 0x22d   :  { %v4895_v15 = vpop.eup %4894  ;;  %v2547_v32 = vadd.f32 1.0, %v4893_v55  ;;  %4920 = vpow2.f32 %v4123_v52  ;;  %v1585_v52 = vpack.c.bf16 %v1509_v37, %v6714_v10  ;;  %v7901_v55 = vld [vmem:[#allocation53_spill] sm:$0xff]  ;;  %v6743_v44 = vadd.f32 %v1887_v30, %v6558_v53  ;;  %v7902_v30 = vld [vmem:[#allocation16_spill] sm:$0xff] }
 0x22e   :  { %v4897_v11 = vpop.eup %4896  ;;  %4922 = vrcp.f32 %v2546_v22  ;;  %v1889_v42 = vpop.f32.mrf.mxu1  ;;  %v6736_v60 = vmul.f32 %v6519_v56, %v7901_v55  ;;  %v6747_v37 = vmul.f32 %v6551_v19, %v6376_v61  ;;  %v4126_v22 = vmul.f32 -1.442695, %v6725_v34 }
 0x22f   :  { %v4899_v17 = vpop.eup %4898  ;;  %2076 = vmatmul.mubr.bf16.gmra.mxu1 %v1583_v1  ;;  %4924 = vrcp.f32 %v2547_v32  ;;  %v2548_v6 = vadd.f32 1.0, %v4897_v11  ;;  %v1588_v1 = vpack.c.bf16 %v1514_v36, %v1512_v26  ;;  %v6751_v47 = vadd.f32 %v1889_v42, %v6568_v41 }
 0x230   :  { %v4901_v3 = vpop.eup %4900  ;;  %2085 = vmatprep.mubr.bf16.mxu1 %v1586_v43  ;;  %v2549_v62 = vadd.f32 1.0, %v4899_v17  ;;  %4926 = vpow2.f32 %v4124_v14  ;;  %v1891_v38 = vpop.f32.mrf.mxu1  ;;  %v6755_v11 = vmul.f32 %v6564_v27, %v7902_v30  ;;  %v2924_v61 = vmul.f32 %v4895_v15, %v6572_v4 }
 0x231   :  { %v4903_v39 = vpop.eup %4902  ;;  %4928 = vrcp.f32 %v2548_v6  ;;  %v4127_v19 = vmul.f32 -1.442695, %v6732_v29  ;;  %v4128_v36 = vmul.f32 -1.442695, %v6743_v44  ;;  %v2925_v6 = vmul.f32 %v4901_v3, %v6585_v16 }
 0x232   :  { %v4905_v10 = vpop.eup %4904  ;;  %4930 = vrcp.f32 %v2549_v62  ;;  %v2550_v63 = vadd.f32 1.0, %v4903_v39  ;;  %v1893_v14 = vpop.f32.mrf.mxu1  ;;  %v6764_v27 = vadd.f32 %v1891_v38, %v6558_v53 }
 0x233   :  { %v4907_v56 = vpop.eup %4906  ;;  %v2551_v32 = vadd.f32 1.0, %v4905_v10  ;;  %4932 = vpow2.f32 %v4125_v12  ;;  %v6768_v39 = vadd.f32 %v1893_v14, %v6568_v41 }
 0x234   :  { %v4909_v50 = vpop.eup %4908  ;;  %4934 = vrcp.f32 %v2550_v63  ;;  %v1897_v40 = vpop.f32.mrf.mxu1  ;;  %v2926_v17 = vmul.f32 %v4907_v56, %v6591_v21  ;;  %v4129_v21 = vmul.f32 -1.442695, %v6751_v47  ;;  %v7903_v63 = vld [vmem:[#allocation14_spill] sm:$0xff]  ;;  %v4130_v30 = vmul.f32 -1.442695, %v6764_v27 }
 0x235   :  { %v4911_v43 = vpop.eup %4910  ;;  %4936 = vrcp.f32 %v2551_v32  ;;  %v2552_v26 = vadd.f32 1.0, %v4909_v50  ;;  %v7904_v32 = vld [vmem:[#allocation55_spill] sm:$0xff]  ;;  %v7905_v50 = vld [vmem:[#allocation30_spill] sm:$0xff] }
 0x236   :  { %v4913_v42 = vpop.eup %4912  ;;  %v2927_v12 = vmul.f32 %v4911_v43, %v6597_v48  ;;  %4938 = vpow2.f32 %v4126_v22  ;;  %v1899_v4 = vpop.f32.mrf.mxu1  ;;  %v6771_v48 = vadd.f32 %v1897_v40, %v6558_v53  ;;  %v1516_v22 = vmul.f32 %v6561_v45, %v7903_v63 }
 0x237   :  { %v4915_v15 = vpop.eup %4914  ;;  %2086 = vmatmul.mubr.bf16.gmra.mxu1 %v1585_v52  ;;  %4940 = vrcp.f32 %v2552_v26  ;;  %v2553_v62 = vadd.f32 1.0, %v4913_v42  ;;  %v1587_v52 = vpack.c.bf16 %v6740_v23, %v6736_v60  ;;  %v3052_v56 = vpack.c.bf16 %v2926_v17, %v2924_v61 }
 0x238   :  { %v4917_v55 = vpop.eup %4916  ;;  %2095 = vmatprep.mubr.bf16.mxu1 %v1588_v1  ;;  %v2554_v10 = vadd.f32 1.0, %v4915_v15  ;;  %4942 = vpow2.f32 %v4127_v19  ;;  %v3053_v16 = vpack.c.bf16 %v2927_v12, %v2925_v6  ;;  %v1901_v3 = vpop.f32.mrf.mxu1  ;;  %v1518_v1 = vmul.f32 %v7905_v50, %v7904_v32 }
 0x239   :  { %v4919_v38 = vpop.eup %4918  ;;  %4944 = vrcp.f32 %v2553_v62  ;;  %v6781_v19 = vadd.f32 %v1899_v4, %v6568_v41  ;;  %v1589_v60 = vpack.c.bf16 %v6755_v11, %v6747_v37  ;;  %v4131_v45 = vmul.f32 -1.442695, %v6768_v39 }
 0x23a   :  { %v4921_v14 = vpop.eup %4920  ;;  %4946 = vrcp.f32 %v2554_v10  ;;  %3283 = vmatprep.mubr.bf16.mxu0 %v3053_v16  ;;  %v1903_v40 = vpop.f32.mrf.mxu1  ;;  %v4132_v17 = vmul.f32 -1.442695, %v6771_v48  ;;  %v6788_v26 = vadd.f32 %v1901_v3, %v6558_v53  ;;  %v2929_v4 = vmul.f32 %v4919_v38, %v6615_v25  ;;  %v7906_v38 = vld [vmem:[#allocation13_spill] sm:$0xff] }
 0x23b   :  { %v4923_v43 = vpop.eup %4922  ;;  %v2555_v23 = vadd.f32 1.0, %v4921_v14  ;;  %4948 = vpow2.f32 %v4128_v36  ;;  %3284 = vmatmul.mubr.bf16.vlgmr.msra.gmra.mxu0 %v3052_v56  ;;  %v6791_v42 = vadd.f32 %v1903_v40, %v6568_v41  ;;  %v1590_v10 = vpack.c.bf16 %v1518_v1, %v1516_v22 }
 0x23c   :  { %v4925_v61 = vpop.eup %4924  ;;  %4950 = vpow2.f32 %v4129_v21  ;;  %v1907_v6 = vpop.f32.mrf.mxu1  ;;  %v2930_v15 = vmul.f32 %v4923_v43, %v6620_v31  ;;  %v4133_v16 = vmul.f32 -1.442695, %v6781_v19  ;;  %v2928_v56 = vmul.f32 %v4917_v55, %v6611_v54  ;;  %v7908_v43 = vld [vmem:[#allocation21_spill] sm:$0xff] }
 0x23d   :  { %v4927_v12 = vpop.eup %4926  ;;  %v2931_v36 = vmul.f32 %v4925_v61, %v6624_v24  ;;  %4952 = vrcp.f32 %v2555_v23  ;;  %v6799_v25 = vadd.f32 %v1907_v6, %v6558_v53  ;;  %v7907_v24 = vld [vmem:[#allocation27_spill] sm:$0xff]  ;;  %v4134_v22 = vmul.f32 -1.442695, %v6788_v26  ;;  %v7909_v23 = vld [vmem:[#allocation41_spill] sm:$0xff]  ;;  %v7910_v61 = vld [vmem:[#allocation18_spill] sm:$0xff] }
 0x23e   :  { %v4929_v62 = vpop.eup %4928  ;;  %v2556_v21 = vadd.f32 1.0, %v4927_v12  ;;  %4954 = vpow2.f32 %v4130_v30  ;;  %v1909_v3 = vpop.f32.mrf.mxu1  ;;  %v6803_v32 = vmul.f32 %v7907_v24, %v7906_v38  ;;  %v4135_v50 = vmul.f32 -1.442695, %v6791_v42 }
 0x23f   :  { %v4931_v63 = vpop.eup %4930  ;;  %2096 = vmatmul.mubr.bf16.gmra.mxu1 %v1587_v52  ;;  %4956 = vpow2.f32 %v4131_v45  ;;  %v3055_v14 = vpack.c.bf16 %v2931_v36, %v2929_v4  ;;  %v3054_v55 = vpack.c.bf16 %v2930_v15, %v2928_v56  ;;  %v6808_v52 = vadd.f32 %v1909_v3, %v6568_v41  ;;  %v7911_v3 = vld [vmem:[#allocation15_spill] sm:$0xff]  ;;  %v7912_v56 = vld [vmem:[#allocation29_spill] sm:$0xff] }
 0x240   :  { %v4933_v31 = vpop.eup %4932  ;;  %2105 = vmatprep.mubr.bf16.mxu1 %v1590_v10  ;;  %4958 = vrcp.f32 %v2556_v21  ;;  %v1911_v1 = vpop.f32.mrf.mxu1  ;;  %v1520_v45 = vmul.f32 %v7909_v23, %v7908_v43  ;;  %v1522_v6 = vmul.f32 %v6617_v5, %v7910_v61  ;;  %v4136_v10 = vmul.f32 -1.442695, %v6799_v25 }
 0x241   :  { %v4935_v30 = vpop.eup %4934  ;;  %v2557_v54 = vadd.f32 1.0, %v4933_v31  ;;  %4960 = vpow2.f32 %v4132_v17  ;;  %3291 = vmatprep.mubr.bf16.mxu0 %v3055_v14  ;;  %v6815_v12 = vadd.f32 %v1911_v1, %v6558_v53  ;;  %v2933_v17 = vmul.f32 %v4931_v63, %v6644_v57 }
 0x242   :  { %v4937_v40 = vpop.eup %4936  ;;  %4962 = vpow2.f32 %v4133_v16  ;;  %v1913_v4 = vpop.f32.mrf.mxu1  ;;  %v1521_v14 = vmul.f32 %v7912_v56, %v7911_v3  ;;  %v2934_v5 = vmul.f32 %v4935_v30, %v6652_v9  ;;  %v4137_v24 = vmul.f32 -1.442695, %v6808_v52  ;;  %v7913_v30 = vld [vmem:[#allocation20_spill] sm:$0xff] }
 0x243   :  { %v4939_v36 = vpop.eup %4938  ;;  %v2935_v15 = vmul.f32 %v4937_v40, %v6656_v2  ;;  %4964 = vrcp.f32 %v2557_v54  ;;  %3292 = vmatmul.mubr.bf16.gmra.mxu0 %v3054_v55  ;;  %v6825_v2 = vadd.f32 %v1913_v4, %v6568_v41  ;;  %v1592_v1 = vpack.c.bf16 %v1522_v6, %v1520_v45  ;;  %v7914_v6 = vld [vmem:[#allocation17_spill] sm:$0xff]  ;;  %v7915_v4 = vld [vmem:[#allocation35_spill] sm:$0xff] }
 0x244   :  { %v4941_v21 = vpop.eup %4940  ;;  %v2558_v16 = vadd.f32 1.0, %v4939_v36  ;;  %4966 = vpow2.f32 %v4134_v22  ;;  %v1917_v31 = vpop.f32.mrf.mxu1  ;;  %v4138_v55 = vmul.f32 -1.442695, %v6815_v12  ;;  %v2932_v9 = vmul.f32 %v4929_v62, %v6638_v8 }
 0x245   :  { %v4943_v38 = vpop.eup %4942  ;;  %4968 = vpow2.f32 %v4135_v50  ;;  %v3057_v57 = vpack.c.bf16 %v2935_v15, %v2933_v17  ;;  %v1591_v50 = vpack.c.bf16 %v1521_v14, %v6803_v32  ;;  %v6835_v23 = vmul.f32 %v6626_v49, %v7913_v30  ;;  %v7916_v14 = vld [vmem:[#allocation19_spill] sm:$0xff]  ;;  %v7919_v30 = vld [vmem:[#allocation33_spill] sm:$0xff] }
 0x246   :  { %v4945_v63 = vpop.eup %4944  ;;  %4970 = vrcp.f32 %v2558_v16  ;;  %v2559_v54 = vadd.f32 1.0, %v4943_v38  ;;  %v1919_v40 = vpop.f32.mrf.mxu1  ;;  %v6838_v45 = vadd.f32 %v1917_v31, %v6558_v53  ;;  %v4139_v37 = vmul.f32 -1.442695, %v6825_v2 }
 0x247   :  { %v4947_v43 = vpop.eup %4946  ;;  %2106 = vmatmul.mubr.bf16.gmra.mxu1 %v1589_v60  ;;  %4972 = vpow2.f32 %v4136_v10  ;;  %3299 = vmatprep.mubr.bf16.mxu0 %v3057_v57  ;;  %v3056_v11 = vpack.c.bf16 %v2934_v5, %v2932_v9  ;;  %v1524_v32 = vmul.f32 %v6631_v58, %v7914_v6  ;;  %v1526_v49 = vmul.f32 %v6649_v7, %v7915_v4  ;;  %v7917_v5 = vld [vmem:[#allocation44_spill] sm:$0xff] }
 0x248   :  { %v4949_v22 = vpop.eup %4948  ;;  %2115 = vmatprep.mubr.bf16.mxu1 %v1592_v1  ;;  %4974 = vrcp.f32 %v2559_v54  ;;  %v1921_v61 = vpop.f32.mrf.mxu1  ;;  %v2937_v15 = vmul.f32 %v4945_v63, %v6675_v59  ;;  %v6848_v3 = vadd.f32 %v1919_v40, %v6568_v41  ;;  %v6852_v16 = vmul.f32 %v7917_v5, %v7916_v14  ;;  %v7918_v63 = vld [vmem:[#allocation39_spill] sm:$0xff]  ;;  %v7922_v6 = vld [vmem:[#allocation32_spill] sm:$0xff] }
 0x249   :  { %v4951_v8 = vpop.eup %4950  ;;  %v2560_v62 = vadd.f32 1.0, %v4949_v22  ;;  %4976 = vpow2.f32 %v4137_v24  ;;  %v4140_v7 = vmul.f32 -1.442695, %v6838_v45  ;;  %v2938_v59 = vmul.f32 %v4947_v43, %v6684_v0 }
 0x24a   :  { %v4953_v60 = vpop.eup %4952  ;;  %v2561_v36 = vadd.f32 1.0, %v4951_v8  ;;  %4978 = vpow2.f32 %v4138_v55  ;;  %v1923_v31 = vpop.f32.mrf.mxu1  ;;  %v1528_v1 = vmul.f32 %v6661_v51, %v7918_v63  ;;  %v1594_v54 = vpack.c.bf16 %v1526_v49, %v1524_v32  ;;  %v7920_v8 = vld [vmem:[#allocation12_spill] sm:$0xff] }
 0x24b   :  { %v4955_v17 = vpop.eup %4954  ;;  %v2939_v10 = vmul.f32 %v4953_v60, %v6691_v13  ;;  %4980 = vrcp.f32 %v2560_v62  ;;  %3300 = vmatmul.mubr.bf16.gmra.mxu0 %v3056_v11  ;;  %v6859_v55 = vadd.f32 %v1921_v61, %v6558_v53  ;;  %v2936_v9 = vmul.f32 %v4941_v21, %v6664_v33  ;;  %v7921_v60 = vld [vmem:[#allocation26_spill] sm:$0xff] }
 0x24c   :  { %v4957_v56 = vpop.eup %4956  ;;  %4982 = vrcp.f32 %v2561_v36  ;;  %v2562_v58 = vadd.f32 1.0, %v4955_v17  ;;  %v4141_v0 = vmul.f32 -1.442695, %v6848_v3  ;;  %v1530_v62 = vmul.f32 %v7920_v8, %v7919_v30 }
 0x24d   :  { %v4959_v38 = vpop.eup %4958  ;;  %v2563_v24 = vadd.f32 1.0, %v4957_v56  ;;  %4984 = vpow2.f32 %v4139_v37  ;;  %v3059_v13 = vpack.c.bf16 %v2939_v10, %v2937_v15  ;;  %v6866_v37 = vadd.f32 %v1923_v31, %v6568_v41  ;;  %v7923_v15 = vld [vmem:[#allocation24_spill] sm:$0xff] }
 0x24e   :  { %v4961_v57 = vpop.eup %4960  ;;  %4986 = vrcp.f32 %v2562_v58  ;;  %v1593_v33 = vpack.c.bf16 %v6852_v16, %v6835_v23  ;;  %v3058_v21 = vpack.c.bf16 %v2938_v59, %v2936_v9  ;;  %v6872_v32 = vmul.f32 %v7922_v6, %v7921_v60  ;;  %v7924_v10 = vld [vmem:[#allocation36_spill] sm:$0xff] }
 0x24f   :  { %v4963_v40 = vpop.eup %4962  ;;  %2116 = vmatmul.mubr.bf16.gmra.mxu1 %v1591_v50  ;;  %4988 = vrcp.f32 %v2563_v24  ;;  %v2564_v22 = vadd.f32 1.0, %v4961_v57  ;;  %3307 = vmatprep.mubr.bf16.mxu0 %v3059_v13  ;;  %v4142_v49 = vmul.f32 -1.442695, %v6859_v55  ;;  %v6877_v56 = vmul.f32 %v7924_v10, %v7923_v15 }
 0x250   :  { %v4965_v43 = vpop.eup %4964  ;;  %2125 = vmatprep.mubr.bf16.mxu1 %v1594_v54  ;;  %v2565_v51 = vadd.f32 1.0, %v4963_v40  ;;  %4990 = vpow2.f32 %v4140_v7  ;;  %v1927_v61 = vpop.f32.mrf.mxu1  ;;  %v1596_v16 = vpack.c.bf16 %v1530_v62, %v1528_v1  ;;  %v4143_v58 = vmul.f32 -1.442695, %v6866_v37 }
 0x251   :  { %v4967_v11 = vpop.eup %4966  ;;  %4992 = vrcp.f32 %v2564_v22  ;;  %v6880_v23 = vadd.f32 %v1927_v61, %v6558_v53  ;;  %v2940_v24 = vmul.f32 %v4959_v38, %v6701_v46  ;;  %v2941_v54 = vmul.f32 %v4965_v43, %v6717_v20 }
 0x252   :  { %v4969_v50 = vpop.eup %4968  ;;  %4994 = vrcp.f32 %v2565_v51  ;;  %v2566_v4 = vadd.f32 1.0, %v4967_v11  ;;  %v1929_v36 = vpop.f32.mrf.mxu1  ;;  %v7925_v51 = vld [vmem:[#allocation37_spill] sm:$0xff]  ;;  %v7926_v11 = vld [vmem:[#allocation42_spill] sm:$0xff] }
 0x253   :  { %v4971_v17 = vpop.eup %4970  ;;  %v2567_v14 = vadd.f32 1.0, %v4969_v50  ;;  %4996 = vpow2.f32 %v4141_v0  ;;  %3308 = vmatmul.mubr.bf16.gmra.mxu0 %v3058_v21  ;;  %v6884_v7 = vadd.f32 %v1929_v36, %v6568_v41  ;;  %v4144_v46 = vmul.f32 -1.442695, %v6880_v23 }
 0x254   :  { %v4973_v5 = vpop.eup %4972  ;;  %4998 = vrcp.f32 %v2566_v4  ;;  %v1931_v31 = vpop.f32.mrf.mxu1  ;;  %v2942_v13 = vmul.f32 %v4971_v17, %v6725_v34  ;;  %v1532_v61 = vmul.f32 %v6693_v35, %v7925_v51  ;;  %v1595_v36 = vpack.c.bf16 %v6877_v56, %v6872_v32 }
 0x255   :  { %v4975_v59 = vpop.eup %4974  ;;  %5000 = vrcp.f32 %v2567_v14  ;;  %v2568_v57 = vadd.f32 1.0, %v4973_v5  ;;  %v6891_v1 = vadd.f32 %v1931_v31, %v6558_v53  ;;  %v4145_v20 = vmul.f32 -1.442695, %v6884_v7 }
 0x256   :  { %v4977_v63 = vpop.eup %4976  ;;  %v2943_v40 = vmul.f32 %v4975_v59, %v6732_v29  ;;  %5002 = vpow2.f32 %v4142_v49  ;;  %v1933_v9 = vpop.f32.mrf.mxu1  ;;  %v3060_v8 = vpack.c.bf16 %v2942_v13, %v2940_v24  ;;  %v7928_v13 = vld [vmem:[#allocation31_spill] sm:$0xff] }
 0x257   :  { %v4979_v22 = vpop.eup %4978  ;;  %2126 = vmatmul.mubr.bf16.gmra.mxu1 %v1593_v33  ;;  %5004 = vrcp.f32 %v2568_v57  ;;  %v2569_v0 = vadd.f32 1.0, %v4977_v63  ;;  %v6895_v34 = vadd.f32 %v1933_v9, %v6568_v41  ;;  %v1534_v33 = vmul.f32 %v6706_v18, %v7926_v11  ;;  %v7929_v9 = vld [vmem:[#allocation28_spill] sm:$0xff] }
 0x258   :  { %v4981_v38 = vpop.eup %4980  ;;  %2135 = vmatprep.mubr.bf16.mxu1 %v1596_v16  ;;  %v2570_v30 = vadd.f32 1.0, %v4979_v22  ;;  %5006 = vpow2.f32 %v4143_v58  ;;  %v3061_v29 = vpack.c.bf16 %v2943_v40, %v2941_v54  ;;  %v4146_v21 = vmul.f32 -1.442695, %v6891_v1 }
 0x259   :  { %v4983_v43 = vpop.eup %4982  ;;  %5008 = vrcp.f32 %v2569_v0  ;;  %v4147_v6 = vmul.f32 -1.442695, %v6895_v34  ;;  %v1598_v16 = vpack.c.bf16 %v1534_v33, %v1532_v61  ;;  %v2944_v31 = vmul.f32 %v4981_v38, %v6743_v44 }
 0x25a   :  { %v4985_v62 = vpop.eup %4984  ;;  %5010 = vrcp.f32 %v2570_v30  ;;  %3315 = vmatprep.mubr.bf16.mxu0 %v3061_v29  ;;  %v2945_v17 = vmul.f32 %v4983_v43, %v6751_v47  ;;  %v1533_v22 = vmul.f32 %v6696_v28, %v7929_v9 }
 0x25b   :  { %v4987_v50 = vpop.eup %4986  ;;  %v2571_v60 = vadd.f32 1.0, %v4985_v62  ;;  %5012 = vpow2.f32 %v4144_v46  ;;  %3316 = vmatmul.mubr.bf16.gmra.mxu0 %v3060_v8  ;;  %v1937_v4 = vpop.f32.mrf.mxu1 }
 0x25c   :  { %v4989_v49 = vpop.eup %4988  ;;  %5014 = vpow2.f32 %v4145_v20  ;;  %v6907_v35 = vadd.f32 %v1937_v4, %v6558_v53  ;;  %v2946_v15 = vmul.f32 %v4987_v50, %v6764_v27 }
 0x25d   :  { %v4991_v18 = vpop.eup %4990  ;;  %v2947_v10 = vmul.f32 %v4989_v49, %v6768_v39  ;;  %5016 = vrcp.f32 %v2571_v60  ;;  %v1939_v14 = vpop.f32.mrf.mxu1  ;;  %v7927_v39 = vld [vmem:[#allocation25_spill] sm:$0xff] }
 0x25e   :  { %v4993_v5 = vpop.eup %4992  ;;  %5018 = vpow2.f32 %v4146_v21  ;;  %v4148_v58 = vmul.f32 -1.442695, %v6907_v35  ;;  %v6914_v32 = vadd.f32 %v1939_v14, %v6568_v41  ;;  %v2572_v59 = vadd.f32 1.0, %v4991_v18 }
 0x25f   :  { %v4995_v56 = vpop.eup %4994  ;;  %2136 = vmatmul.mubr.bf16.gmra.mxu1 %v1595_v36  ;;  %5020 = vpow2.f32 %v4147_v6  ;;  %v1941_v47 = vpop.f32.mrf.mxu1  ;;  %v3063_v27 = vpack.c.bf16 %v2947_v10, %v2945_v17  ;;  %v1531_v57 = vmul.f32 %v7928_v13, %v7927_v39  ;;  %v3062_v46 = vpack.c.bf16 %v2946_v15, %v2944_v31 }
 0x260   :  { %v4997_v24 = vpop.eup %4996  ;;  %2145 = vmatprep.mubr.bf16.mxu1 %v1598_v16  ;;  %v4149_v63 = vmul.f32 -1.442695, %v6914_v32  ;;  %v6921_v54 = vadd.f32 %v1941_v47, %v6558_v53  ;;  %5022 = vpow2.f32 %v4148_v58  ;;  %v2949_v43 = vmul.f32 %v4995_v56, %v6781_v19 }
 0x261   :  { %v4999_v40 = vpop.eup %4998  ;;  %v2573_v44 = vadd.f32 1.0, %v4997_v24  ;;  %3323 = vmatprep.mubr.bf16.mxu0 %v3063_v27  ;;  %v1943_v0 = vpop.f32.mrf.mxu1  ;;  %v1597_v11 = vpack.c.bf16 %v1533_v22, %v1531_v57  ;;  %v2948_v19 = vmul.f32 %v4993_v5, %v6771_v48 }
 0x262   :  { %v5001_v38 = vpop.eup %5000  ;;  %5024 = vpow2.f32 %v4149_v63  ;;  %v4150_v30 = vmul.f32 -1.442695, %v6921_v54  ;;  %v6927_v20 = vadd.f32 %v1943_v0, %v6568_v41  ;;  %v2950_v33 = vmul.f32 %v4999_v40, %v6788_v26 }
 0x263   :  { %v5003_v29 = vpop.eup %5002  ;;  %v2951_v8 = vmul.f32 %v5001_v38, %v6791_v42  ;;  %5026 = vrcp.f32 %v2572_v59  ;;  %3324 = vmatmul.mubr.bf16.gmra.mxu0 %v3062_v46 }
 0x264   :  { %v5005_v28 = vpop.eup %5004  ;;  %v2574_v62 = vadd.f32 1.0, %v5003_v29  ;;  %5028 = vpow2.f32 %v4150_v30  ;;  %v4151_v51 = vmul.f32 -1.442695, %v6927_v20  ;;  %v3064_v17 = vpack.c.bf16 %v2950_v33, %v2948_v19 }
 0x265   :  { %v5007_v61 = vpop.eup %5006  ;;  %5030 = vrcp.f32 %v2573_v44  ;;  %v3065_v21 = vpack.c.bf16 %v2951_v8, %v2949_v43  ;;  %v2952_v40 = vmul.f32 %v5005_v28, %v6799_v25 }
 0x266   :  { %v5009_v50 = vpop.eup %5008  ;;  %5032 = vrcp.f32 %v2574_v62  ;;  %v2575_v60 = vadd.f32 1.0, %v5007_v61 }
 0x267   :  { %v5011_v6 = vpop.eup %5010  ;;  %2146 = vmatmul.mubr.bf16.gmra.mxu1 %v1597_v11  ;;  %5034 = vpow2.f32 %v4151_v51  ;;  %v1947_v42 = vpop.f32.mrf.mxu1  ;;  %3331 = vmatprep.mubr.bf16.mxu0 %v3065_v21  ;;  %v2953_v5 = vmul.f32 %v5009_v50, %v6808_v52 }
 0x268   :  { %v5013_v4 = vpop.eup %5012  ;;  %5036 = vrcp.f32 %v2575_v60  ;;  %v6935_v49 = vadd.f32 %v1947_v42, %v6558_v53  ;;  %v2954_v24 = vmul.f32 %v5011_v6, %v6815_v12 }
 0x269   :  { %v5015_v36 = vpop.eup %5014  ;;  %v2576_v18 = vadd.f32 1.0, %v5013_v4  ;;  %v1949_v26 = vpop.f32.mrf.mxu1 }
 0x26a   :  { %v5017_v15 = vpop.eup %5016  ;;  %v2577_v10 = vadd.f32 1.0, %v5015_v36  ;;  %v4152_v14 = vmul.f32 -1.442695, %v6935_v49  ;;  %v6939_v16 = vadd.f32 %v1949_v26, %v6568_v41  ;;  %v3066_v46 = vpack.c.bf16 %v2954_v24, %v2952_v40 }
 0x26b   :  { %v5019_v48 = vpop.eup %5018  ;;  %v2955_v58 = vmul.f32 %v5017_v15, %v6825_v2  ;;  %5038 = vrcp.f32 %v2576_v18  ;;  %v1951_v56 = vpop.f32.mrf.mxu1  ;;  %3332 = vmatmul.mubr.bf16.gmra.mxu0 %v3064_v17 }
 0x26c   :  { %v5021_v31 = vpop.eup %5020  ;;  %5040 = vrcp.f32 %v2577_v10  ;;  %v2578_v59 = vadd.f32 1.0, %v5019_v48  ;;  %v4153_v47 = vmul.f32 -1.442695, %v6939_v16  ;;  %v6945_v27 = vadd.f32 %v1951_v56, %v6558_v53 }
 0x26d   :  { %v2579_v39 = vadd.f32 1.0, %v5021_v31  ;;  %5042 = vpow2.f32 %v4152_v14  ;;  %v1953_v13 = vpop.f32.mrf.mxu1  ;;  %v3067_v57 = vpack.c.bf16 %v2955_v58, %v2953_v5  ;;  %v5023_v52 = vpop.eup %5022 }
 0x26e   :  { %5044 = vrcp.f32 %v2578_v59  ;;  %v6949_v2 = vadd.f32 %v1953_v13, %v6568_v41  ;;  %v4154_v9 = vmul.f32 -1.442695, %v6945_v27  ;;  %v2580_v30 = vadd.f32 1.0, %v5023_v52 }
 0x26f   :  { %v5025_v63 = vpop.eup %5024  ;;  %5046 = vrcp.f32 %v2579_v39  ;;  %3339 = vmatprep.mubr.bf16.mxu0 %v3067_v57 }
 0x270   :  { %v5027_v22 = vpop.eup %5026  ;;  %v2581_v44 = vadd.f32 1.0, %v5025_v63  ;;  %5048 = vpow2.f32 %v4153_v47  ;;  %v4155_v0 = vmul.f32 -1.442695, %v6949_v2 }
 0x271   :  { %v5029_v12 = vpop.eup %5028  ;;  %v2956_v11 = vmul.f32 %v5027_v22, %v6838_v45 }
 0x272   :  { %v5031_v38 = vpop.eup %5030  ;;  %5050 = vrcp.f32 %v2581_v44  ;;  %v2582_v29 = vadd.f32 1.0, %v5029_v12 }
 0x273   :  { %v5033_v43 = vpop.eup %5032  ;;  %5052 = vpow2.f32 %v4154_v9  ;;  %3340 = vmatmul.mubr.bf16.gmra.mxu0 %v3066_v46  ;;  %v2957_v51 = vmul.f32 %v5031_v38, %v6848_v3 }
 0x274   :  { %v5035_v8 = vpop.eup %5034  ;;  %5054 = vrcp.f32 %v2582_v29  ;;  %v2958_v28 = vmul.f32 %v5033_v43, %v6859_v55 }
 0x275   :  { %v5037_v25 = vpop.eup %5036  ;;  %v2583_v62 = vadd.f32 1.0, %v5035_v8  ;;  %5056 = vpow2.f32 %v4155_v0 }
 0x276   :  { %v2959_v61 = vmul.f32 %v5037_v25, %v6866_v37  ;;  %5058 = vrcp.f32 %v2580_v30  ;;  %v3068_v6 = vpack.c.bf16 %v2958_v28, %v2956_v11 }
 0x277   :  { %5060 = vrcp.f32 %v2583_v62 }
 0x278   :  { %v5039_v33 = vpop.eup %5038  ;;  %v3069_v21 = vpack.c.bf16 %v2959_v61, %v2957_v51 }
 0x279   :  { %v5041_v50 = vpop.eup %5040  ;;  %v1957_v60 = vpop.f32.mrf.mxu1  ;;  %v2960_v56 = vmul.f32 %v5039_v33, %v6880_v23 }
 0x27a   :  { %v5043_v19 = vpop.eup %5042  ;;  %v6959_v42 = vadd.f32 %v1957_v60, %v6558_v53  ;;  %3347 = vmatprep.mubr.bf16.mxu0 %v3069_v21  ;;  %v2961_v26 = vmul.f32 %v5041_v50, %v6884_v7 }
 0x27b   :  { %v5045_v55 = vpop.eup %5044  ;;  %v2584_v4 = vadd.f32 1.0, %v5043_v19  ;;  %v1959_v36 = vpop.f32.mrf.mxu1  ;;  %3348 = vmatmul.mubr.bf16.gmra.mxu0 %v3068_v6 }
 0x27c   :  { %v5047_v3 = vpop.eup %5046  ;;  %v4156_v37 = vmul.f32 -1.442695, %v6959_v42  ;;  %v6963_v45 = vadd.f32 %v1959_v36, %v6568_v41  ;;  %v2962_v17 = vmul.f32 %v5045_v55, %v6891_v1 }
 0x27d   :  { %v5049_v18 = vpop.eup %5048  ;;  %v2963_v15 = vmul.f32 %v5047_v3, %v6895_v34  ;;  %v1961_v10 = vpop.f32.mrf.mxu1 }
 0x27e   :  { %v2585_v14 = vadd.f32 1.0, %v5049_v18  ;;  %5062 = vpow2.f32 %v4156_v37  ;;  %v4157_v48 = vmul.f32 -1.442695, %v6963_v45  ;;  %v6970_v5 = vadd.f32 %v1961_v10, %v6558_v53 }
 0x27f   :  { %v5051_v58 = vpop.eup %5050  ;;  %5064 = vrcp.f32 %v2584_v4  ;;  %v1963_v31 = vpop.f32.mrf.mxu1  ;;  %v3071_v59 = vpack.c.bf16 %v2963_v15, %v2961_v26  ;;  %v3070_v39 = vpack.c.bf16 %v2962_v17, %v2960_v56 }
 0x280   :  { %v5053_v47 = vpop.eup %5052  ;;  %5066 = vrcp.f32 %v2585_v14  ;;  %v4158_v7 = vmul.f32 -1.442695, %v6970_v5  ;;  %v6975_v1 = vadd.f32 %v1963_v31, %v6568_v41  ;;  %v2965_v40 = vmul.f32 %v5051_v58, %v6914_v32 }
 0x281   :  { %v5055_v34 = vpop.eup %5054  ;;  %v2586_v24 = vadd.f32 1.0, %v5053_v47  ;;  %5068 = vpow2.f32 %v4157_v48  ;;  %3355 = vmatprep.mubr.bf16.mxu0 %v3071_v59 }
 0x282   :  { %v5057_v13 = vpop.eup %5056  ;;  %5070 = vpow2.f32 %v4158_v7  ;;  %v4159_v57 = vmul.f32 -1.442695, %v6975_v1  ;;  %v2966_v9 = vmul.f32 %v5055_v34, %v6921_v54 }
 0x283   :  { %v5059_v23 = vpop.eup %5058  ;;  %5072 = vrcp.f32 %v2586_v24  ;;  %v2587_v52 = vadd.f32 1.0, %v5057_v13  ;;  %3356 = vmatmul.mubr.bf16.gmra.mxu0 %v3070_v39 }
 0x284   :  { %v5061_v63 = vpop.eup %5060  ;;  %5074 = vpow2.f32 %v4159_v57  ;;  %v2964_v44 = vmul.f32 %v5059_v23, %v6907_v35 }
 0x285   :  { %v2967_v22 = vmul.f32 %v5061_v63, %v6927_v20  ;;  %5076 = vrcp.f32 %v2587_v52 }
 0x286   :  { %v3072_v30 = vpack.c.bf16 %v2966_v9, %v2964_v44 }
 0x287   :  { %v1967_v12 = vpop.f32.mrf.mxu1  ;;  %v3073_v0 = vpack.c.bf16 %v2967_v22, %v2965_v40 }
 0x288   :  { %v6983_v46 = vadd.f32 %v1967_v12, %v6558_v53 }
 0x289   :  { %v1969_v38 = vpop.f32.mrf.mxu1  ;;  %3363 = vmatprep.mubr.bf16.mxu0 %v3073_v0 }
 0x28a   :  { %v4160_v29 = vmul.f32 -1.442695, %v6983_v46  ;;  %v6987_v43 = vadd.f32 %v1969_v38, %v6568_v41 }
 0x28b   :  { %v5063_v32 = vpop.eup %5062  ;;  %v1971_v54 = vpop.f32.mrf.mxu1  ;;  %3364 = vmatmul.mubr.bf16.gmra.mxu0 %v3072_v30 }
 0x28c   :  { %v5065_v20 = vpop.eup %5064  ;;  %v2588_v8 = vadd.f32 1.0, %v5063_v32  ;;  %5078 = vpow2.f32 %v4160_v29  ;;  %v4161_v35 = vmul.f32 -1.442695, %v6987_v43  ;;  %v6991_v25 = vadd.f32 %v1971_v54, %v6558_v53 }
 0x28d   :  { %v5067_v28 = vpop.eup %5066  ;;  %v1973_v62 = vpop.f32.mrf.mxu1  ;;  %v2968_v18 = vmul.f32 %v5065_v20, %v6935_v49 }
 0x28e   :  { %v5069_v51 = vpop.eup %5068  ;;  %5080 = vrcp.f32 %v2588_v8  ;;  %v4162_v61 = vmul.f32 -1.442695, %v6991_v25  ;;  %v6995_v11 = vadd.f32 %v1973_v62, %v6568_v41  ;;  %v2969_v3 = vmul.f32 %v5067_v28, %v6939_v16 }
 0x28f   :  { %v5071_v33 = vpop.eup %5070  ;;  %v2589_v21 = vadd.f32 1.0, %v5069_v51  ;;  %5082 = vpow2.f32 %v4161_v35 }
 0x290   :  { %v5073_v50 = vpop.eup %5072  ;;  %v2590_v60 = vadd.f32 1.0, %v5071_v33  ;;  %5084 = vpow2.f32 %v4162_v61  ;;  %v4163_v6 = vmul.f32 -1.442695, %v6995_v11 }
 0x291   :  { %v5075_v19 = vpop.eup %5074  ;;  %5086 = vrcp.f32 %v2589_v21  ;;  %v2970_v4 = vmul.f32 %v5073_v50, %v6945_v27 }
 0x292   :  { %v5077_v55 = vpop.eup %5076  ;;  %5088 = vrcp.f32 %v2590_v60  ;;  %v2591_v36 = vadd.f32 1.0, %v5075_v19 }
 0x293   :  { %v2971_v37 = vmul.f32 %v5077_v55, %v6949_v2  ;;  %5090 = vpow2.f32 %v4163_v6  ;;  %v3074_v17 = vpack.c.bf16 %v2970_v4, %v2968_v18 }
 0x294   :  { %5092 = vrcp.f32 %v2591_v36 }
 0x295   :  { %v3075_v26 = vpack.c.bf16 %v2971_v37, %v2969_v3 }
 0x297   :  { %3371 = vmatprep.mubr.bf16.mxu0 %v3075_v26 }
 0x298   :  { %3372 = vmatmul.mubr.bf16.gmra.mxu0 %v3074_v17 }
 0x299   :  { %v5079_v15 = vpop.eup %5078  ;;  %v1977_v10 = vpop.f32.mrf.mxu1 }
 0x29a   :  { %v2592_v14 = vadd.f32 1.0, %v5079_v15  ;;  %v7003_v48 = vadd.f32 %v1977_v10, %v6558_v53 }
 0x29b   :  { %v5081_v27 = vpop.eup %5080  ;;  %v1979_v58 = vpop.f32.mrf.mxu1 }
 0x29c   :  { %v5083_v56 = vpop.eup %5082  ;;  %v4164_v16 = vmul.f32 -1.442695, %v7003_v48  ;;  %v7007_v2 = vadd.f32 %v1979_v58, %v6568_v41  ;;  %5094 = vrcp.f32 %v2592_v14  ;;  %v2972_v0 = vmul.f32 %v5081_v27, %v6959_v42 }
 0x29d   :  { %v5085_v49 = vpop.eup %5084  ;;  %v2593_v31 = vadd.f32 1.0, %v5083_v56  ;;  %v1981_v59 = vpop.f32.mrf.mxu1 }
 0x29e   :  { %v5087_v47 = vpop.eup %5086  ;;  %v2594_v7 = vadd.f32 1.0, %v5085_v49  ;;  %5096 = vpow2.f32 %v4164_v16  ;;  %v4165_v34 = vmul.f32 -1.442695, %v7007_v2  ;;  %v7011_v24 = vadd.f32 %v1981_v59, %v6558_v53 }
 0x29f   :  { %v5089_v39 = vpop.eup %5088  ;;  %5098 = vrcp.f32 %v2593_v31  ;;  %v1983_v13 = vpop.f32.mrf.mxu1  ;;  %v2973_v22 = vmul.f32 %v5087_v47, %v6963_v45 }
 0x2a0   :  { %v5091_v57 = vpop.eup %5090  ;;  %5100 = vrcp.f32 %v2594_v7  ;;  %v4166_v23 = vmul.f32 -1.442695, %v7011_v24  ;;  %v7015_v52 = vadd.f32 %v1983_v13, %v6568_v41  ;;  %v2974_v40 = vmul.f32 %v5089_v39, %v6970_v5 }
 0x2a1   :  { %v5093_v63 = vpop.eup %5092  ;;  %v2595_v9 = vadd.f32 1.0, %v5091_v57  ;;  %5102 = vpow2.f32 %v4165_v34 }
 0x2a2   :  { %v2975_v44 = vmul.f32 %v5093_v63, %v6975_v1  ;;  %5104 = vpow2.f32 %v4166_v23  ;;  %v4167_v12 = vmul.f32 -1.442695, %v7015_v52  ;;  %v3076_v30 = vpack.c.bf16 %v2974_v40, %v2972_v0 }
 0x2a3   :  { %5106 = vrcp.f32 %v2595_v9 }
 0x2a4   :  { %5108 = vpow2.f32 %v4167_v12  ;;  %v3077_v38 = vpack.c.bf16 %v2975_v44, %v2973_v22 }
 0x2a6   :  { %3379 = vmatprep.mubr.bf16.mxu0 %v3077_v38 }
 0x2a7   :  { %v1987_v29 = vpop.f32.mrf.mxu1  ;;  %3380 = vmatmul.mubr.bf16.gmra.mxu0 %v3076_v30 }
 0x2a8   :  { %v7023_v5 = vadd.f32 %v1987_v29, %v6558_v53 }
 0x2a9   :  { %v1989_v32 = vpop.f32.mrf.mxu1  ;;  %v5095_v54 = vpop.eup %5094 }
 0x2aa   :  { %v4168_v45 = vmul.f32 -1.442695, %v7023_v5  ;;  %v7027_v1 = vadd.f32 %v1989_v32, %v6568_v41  ;;  %v2976_v10 = vmul.f32 %v5095_v54, %v6983_v46 }
 0x2ab   :  { %v5097_v20 = vpop.eup %5096  ;;  %v1991_v8 = vpop.f32.mrf.mxu1 }
 0x2ac   :  { %v5099_v42 = vpop.eup %5098  ;;  %v2596_v35 = vadd.f32 1.0, %v5097_v20  ;;  %5110 = vpow2.f32 %v4168_v45  ;;  %v4169_v28 = vmul.f32 -1.442695, %v7027_v1  ;;  %v7031_v62 = vadd.f32 %v1991_v8, %v6558_v53 }
 0x2ad   :  { %v5101_v51 = vpop.eup %5100  ;;  %v1993_v61 = vpop.f32.mrf.mxu1  ;;  %v2977_v18 = vmul.f32 %v5099_v42, %v6987_v43 }
 0x2ae   :  { %v5103_v33 = vpop.eup %5102  ;;  %5112 = vrcp.f32 %v2596_v35  ;;  %v4170_v21 = vmul.f32 -1.442695, %v7031_v62  ;;  %v7035_v50 = vadd.f32 %v1993_v61, %v6568_v41  ;;  %v2978_v4 = vmul.f32 %v5101_v51, %v6991_v25 }
 0x2af   :  { %v5105_v60 = vpop.eup %5104  ;;  %v2597_v6 = vadd.f32 1.0, %v5103_v33  ;;  %5114 = vpow2.f32 %v4169_v28  ;;  %v1997_v19 = vpop.f32.mrf.mxu1 }
 0x2b0   :  { %v5107_v55 = vpop.eup %5106  ;;  %v2598_v36 = vadd.f32 1.0, %v5105_v60  ;;  %5116 = vpow2.f32 %v4170_v21  ;;  %v4171_v3 = vmul.f32 -1.442695, %v7035_v50  ;;  %v7042_v17 = vadd.f32 %v1997_v19, %v6558_v53 }
 0x2b1   :  { %v5109_v37 = vpop.eup %5108  ;;  %v2979_v26 = vmul.f32 %v5107_v55, %v6995_v11  ;;  %5118 = vrcp.f32 %v2597_v6  ;;  %v1999_v15 = vpop.f32.mrf.mxu1  ;;  %v3078_v43 = vpack.c.bf16 %v2978_v4, %v2976_v10 }
 0x2b2   :  { %5120 = vrcp.f32 %v2598_v36  ;;  %v2599_v14 = vadd.f32 1.0, %v5109_v37  ;;  %v7046_v25 = vadd.f32 %v1999_v15, %v6568_v41  ;;  %v4172_v27 = vmul.f32 -1.442695, %v7042_v17 }
 0x2b3   :  { %5122 = vpow2.f32 %v4171_v3  ;;  %v2001_v58 = vpop.f32.mrf.mxu1  ;;  %v3079_v56 = vpack.c.bf16 %v2979_v26, %v2977_v18 }
 0x2b4   :  { %5124 = vrcp.f32 %v2599_v14  ;;  %v4173_v11 = vmul.f32 -1.442695, %v7046_v25  ;;  %v7051_v16 = vadd.f32 %v2001_v58, %v6558_v53 }
 0x2b5   :  { %5126 = vpow2.f32 %v4172_v27  ;;  %v2003_v49 = vpop.f32.mrf.mxu1  ;;  %3387 = vmatprep.mubr.bf16.mxu0 %v3079_v56 }
 0x2b6   :  { %5128 = vpow2.f32 %v4173_v11  ;;  %v4174_v46 = vmul.f32 -1.442695, %v7051_v16  ;;  %v7055_v31 = vadd.f32 %v2003_v49, %v6568_v41  ;;  %3388 = vmatmul.mubr.bf16.gmra.mxu0 %v3078_v43 }
 0x2b7   :  { %v2007_v59 = vpop.f32.mrf.mxu1 }
 0x2b8   :  { %5130 = vpow2.f32 %v4174_v46  ;;  %v4175_v47 = vmul.f32 -1.442695, %v7055_v31  ;;  %v7059_v7 = vadd.f32 %v2007_v59, %v6558_v53 }
 0x2b9   :  { %v5111_v34 = vpop.eup %5110  ;;  %v2009_v39 = vpop.f32.mrf.mxu1 }
 0x2ba   :  { %v2600_v13 = vadd.f32 1.0, %v5111_v34  ;;  %5132 = vpow2.f32 %v4175_v47  ;;  %v4176_v57 = vmul.f32 -1.442695, %v7059_v7  ;;  %v7063_v23 = vadd.f32 %v2009_v39, %v6568_v41 }
 0x2bb   :  { %v5113_v63 = vpop.eup %5112  ;;  %v2011_v40 = vpop.f32.mrf.mxu1 }
 0x2bc   :  { %v5115_v9 = vpop.eup %5114  ;;  %5134 = vrcp.f32 %v2600_v13  ;;  %v4177_v22 = vmul.f32 -1.442695, %v7063_v23  ;;  %v7067_v44 = vadd.f32 %v2011_v40, %v6558_v53  ;;  %v2980_v4 = vmul.f32 %v5113_v63, %v7003_v48 }
 0x2bd   :  { %v5117_v12 = vpop.eup %5116  ;;  %v2601_v0 = vadd.f32 1.0, %v5115_v9  ;;  %5136 = vpow2.f32 %v4176_v57  ;;  %v2013_v38 = vpop.f32.mrf.mxu1 }
 0x2be   :  { %v5119_v30 = vpop.eup %5118  ;;  %v2602_v29 = vadd.f32 1.0, %v5117_v12  ;;  %5138 = vpow2.f32 %v4177_v22  ;;  %v4178_v32 = vmul.f32 -1.442695, %v7067_v44  ;;  %v7071_v54 = vadd.f32 %v2013_v38, %v6568_v41 }
 0x2bf   :  { %v5121_v45 = vpop.eup %5120  ;;  %5140 = vrcp.f32 %v2601_v0  ;;  %v2017_v20 = vpop.f32.mrf.mxu1  ;;  %v2981_v60 = vmul.f32 %v5119_v30, %v7007_v2 }
 0x2c0   :  { %v5123_v8 = vpop.eup %5122  ;;  %5142 = vrcp.f32 %v2602_v29  ;;  %v4179_v42 = vmul.f32 -1.442695, %v7071_v54  ;;  %v7075_v35 = vadd.f32 %v2017_v20, %v6558_v53  ;;  %v2982_v51 = vmul.f32 %v5121_v45, %v7011_v24 }
 0x2c1   :  { %v5125_v28 = vpop.eup %5124  ;;  %v2603_v61 = vadd.f32 1.0, %v5123_v8  ;;  %5144 = vpow2.f32 %v4178_v32  ;;  %v2019_v33 = vpop.f32.mrf.mxu1 }
 0x2c2   :  { %v5127_v21 = vpop.eup %5126  ;;  %v2983_v6 = vmul.f32 %v5125_v28, %v7015_v52  ;;  %5146 = vpow2.f32 %v4179_v42  ;;  %v4180_v19 = vmul.f32 -1.442695, %v7075_v35  ;;  %v7083_v3 = vadd.f32 %v2019_v33, %v6568_v41 }
 0x2c3   :  { %v5129_v55 = vpop.eup %5128  ;;  %5148 = vrcp.f32 %v2603_v61  ;;  %v2604_v36 = vadd.f32 1.0, %v5127_v21  ;;  %v2021_v24 = vpop.f32.mrf.mxu1  ;;  %v3080_v52 = vpack.c.bf16 %v2982_v51, %v2980_v4 }
 0x2c4   :  { %v2605_v37 = vadd.f32 1.0, %v5129_v55  ;;  %5150 = vpow2.f32 %v4180_v19  ;;  %v7086_v18 = vadd.f32 %v2021_v24, %v6558_v53  ;;  %v3081_v2 = vpack.c.bf16 %v2983_v6, %v2981_v60 }
 0x2c5   :  { %v5131_v26 = vpop.eup %5130  ;;  %5152 = vrcp.f32 %v2604_v36  ;;  %v4181_v15 = vmul.f32 -1.442695, %v7083_v3  ;;  %v2023_v10 = vpop.f32.mrf.mxu1 }
 0x2c6   :  { %5154 = vrcp.f32 %v2605_v37  ;;  %v2606_v48 = vadd.f32 1.0, %v5131_v26  ;;  %v4182_v14 = vmul.f32 -1.442695, %v7086_v18  ;;  %v7091_v27 = vadd.f32 %v2023_v10, %v6568_v41  ;;  %3395 = vmatprep.mubr.bf16.mxu0 %v3081_v2 }
 0x2c7   :  { %v5133_v58 = vpop.eup %5132  ;;  %5156 = vpow2.f32 %v4181_v15  ;;  %v2027_v56 = vpop.f32.mrf.mxu1  ;;  %3396 = vmatmul.mubr.bf16.gmra.mxu0 %v3080_v52 }
 0x2c8   :  { %5158 = vrcp.f32 %v2606_v48  ;;  %v2607_v43 = vadd.f32 1.0, %v5133_v58  ;;  %v4183_v11 = vmul.f32 -1.442695, %v7091_v27  ;;  %v7095_v49 = vadd.f32 %v2027_v56, %v6558_v53 }
 0x2c9   :  { %v5135_v46 = vpop.eup %5134  ;;  %5160 = vpow2.f32 %v4182_v14  ;;  %v2029_v59 = vpop.f32.mrf.mxu1 }
 0x2ca   :  { %v5137_v47 = vpop.eup %5136  ;;  %5162 = vrcp.f32 %v2607_v43  ;;  %v4184_v34 = vmul.f32 -1.442695, %v7095_v49  ;;  %v7099_v39 = vadd.f32 %v2029_v59, %v6568_v41  ;;  %v2984_v4 = vmul.f32 %v5135_v46, %v7023_v5 }
 0x2cb   :  { %v5139_v13 = vpop.eup %5138  ;;  %v2608_v57 = vadd.f32 1.0, %v5137_v47  ;;  %5164 = vpow2.f32 %v4183_v11  ;;  %v2031_v63 = vpop.f32.mrf.mxu1 }
 0x2cc   :  { %v5141_v40 = vpop.eup %5140  ;;  %v2609_v9 = vadd.f32 1.0, %v5139_v13  ;;  %5166 = vpow2.f32 %v4184_v34  ;;  %v4185_v22 = vmul.f32 -1.442695, %v7099_v39  ;;  %v7103_v12 = vadd.f32 %v2031_v63, %v6558_v53 }
 0x2cd   :  { %v5143_v0 = vpop.eup %5142  ;;  %5168 = vrcp.f32 %v2608_v57  ;;  %v2033_v38 = vpop.f32.mrf.mxu1  ;;  %v2985_v21 = vmul.f32 %v5141_v40, %v7027_v1 }
 0x2ce   :  { %v5145_v30 = vpop.eup %5144  ;;  %5170 = vrcp.f32 %v2609_v9  ;;  %v4186_v29 = vmul.f32 -1.442695, %v7103_v12  ;;  %v7107_v32 = vadd.f32 %v2033_v38, %v6568_v41  ;;  %v2986_v28 = vmul.f32 %v5143_v0, %v7031_v62 }
 0x2cf   :  { %v5147_v45 = vpop.eup %5146  ;;  %v2610_v20 = vadd.f32 1.0, %v5145_v30  ;;  %5172 = vpow2.f32 %v4185_v22  ;;  %v2037_v8 = vpop.f32.mrf.mxu1 }
 0x2d0   :  { %v5149_v42 = vpop.eup %5148  ;;  %v2611_v51 = vadd.f32 1.0, %v5147_v45  ;;  %5174 = vpow2.f32 %v4186_v29  ;;  %v4187_v61 = vmul.f32 -1.442695, %v7107_v32  ;;  %v7114_v6 = vadd.f32 %v2037_v8, %v6558_v53 }
 0x2d1   :  { %v5151_v33 = vpop.eup %5150  ;;  %v2987_v60 = vmul.f32 %v5149_v42, %v7035_v50  ;;  %5176 = vrcp.f32 %v2610_v20  ;;  %v2039_v19 = vpop.f32.mrf.mxu1  ;;  %v3082_v26 = vpack.c.bf16 %v2986_v28, %v2984_v4 }
 0x2d2   :  { %v5153_v55 = vpop.eup %5152  ;;  %5178 = vrcp.f32 %v2611_v51  ;;  %v2612_v36 = vadd.f32 1.0, %v5151_v33  ;;  %v7118_v62 = vadd.f32 %v2039_v19, %v6568_v41  ;;  %v4188_v37 = vmul.f32 -1.442695, %v7114_v6 }
 0x2d3   :  { %v5155_v24 = vpop.eup %5154  ;;  %5180 = vpow2.f32 %v4187_v61  ;;  %v2041_v1 = vpop.f32.mrf.mxu1  ;;  %v3083_v2 = vpack.c.bf16 %v2987_v60, %v2985_v21  ;;  %v2988_v40 = vmul.f32 %v5153_v55, %v7042_v17 }
 0x2d4   :  { %v5157_v50 = vpop.eup %5156  ;;  %5182 = vrcp.f32 %v2612_v36  ;;  %v4189_v52 = vmul.f32 -1.442695, %v7118_v62  ;;  %v7123_v15 = vadd.f32 %v2041_v1, %v6558_v53  ;;  %v2989_v11 = vmul.f32 %v5155_v24, %v7046_v25 }
 0x2d5   :  { %v5159_v5 = vpop.eup %5158  ;;  %v2613_v10 = vadd.f32 1.0, %v5157_v50  ;;  %5184 = vpow2.f32 %v4188_v37  ;;  %3403 = vmatprep.mubr.bf16.mxu0 %v3083_v2  ;;  %v2043_v48 = vpop.f32.mrf.mxu1 }
 0x2d6   :  { %v5161_v14 = vpop.eup %5160  ;;  %5186 = vpow2.f32 %v4189_v52  ;;  %v4190_v58 = vmul.f32 -1.442695, %v7123_v15  ;;  %v7127_v56 = vadd.f32 %v2043_v48, %v6568_v41  ;;  %3404 = vmatmul.mubr.bf16.gmra.mxu0 %v3082_v26  ;;  %v2990_v34 = vmul.f32 %v5159_v5, %v7051_v16 }
 0x2d7   :  { %v5163_v43 = vpop.eup %5162  ;;  %5188 = vrcp.f32 %v2613_v10  ;;  %v2614_v46 = vadd.f32 1.0, %v5161_v14  ;;  %v2047_v59 = vpop.f32.mrf.mxu1 }
 0x2d8   :  { %v5165_v47 = vpop.eup %5164  ;;  %v2991_v13 = vmul.f32 %v5163_v43, %v7055_v31  ;;  %5190 = vpow2.f32 %v4190_v58  ;;  %v4191_v57 = vmul.f32 -1.442695, %v7127_v56  ;;  %v7135_v22 = vadd.f32 %v2047_v59, %v6558_v53 }
 0x2d9   :  { %v5167_v63 = vpop.eup %5166  ;;  %5192 = vrcp.f32 %v2614_v46  ;;  %v2615_v9 = vadd.f32 1.0, %v5165_v47  ;;  %v2049_v25 = vpop.f32.mrf.mxu1  ;;  %v3084_v17 = vpack.c.bf16 %v2990_v34, %v2988_v40 }
 0x2da   :  { %v5169_v0 = vpop.eup %5168  ;;  %v2616_v38 = vadd.f32 1.0, %v5167_v63  ;;  %5194 = vpow2.f32 %v4191_v57  ;;  %v7138_v30 = vadd.f32 %v2049_v25, %v6568_v41  ;;  %v3085_v16 = vpack.c.bf16 %v2991_v13, %v2989_v11 }
 0x2db   :  { %v5171_v31 = vpop.eup %5170  ;;  %5196 = vrcp.f32 %v2615_v9  ;;  %v4192_v29 = vmul.f32 -1.442695, %v7135_v22  ;;  %v2051_v45 = vpop.f32.mrf.mxu1  ;;  %v2992_v26 = vmul.f32 %v5169_v0, %v7059_v7 }
 0x2dc   :  { %v5173_v20 = vpop.eup %5172  ;;  %5198 = vrcp.f32 %v2616_v38  ;;  %v4193_v8 = vmul.f32 -1.442695, %v7138_v30  ;;  %v7143_v42 = vadd.f32 %v2051_v45, %v6558_v53  ;;  %3411 = vmatprep.mubr.bf16.mxu0 %v3085_v16  ;;  %v2993_v52 = vmul.f32 %v5171_v31, %v7063_v23 }
 0x2dd   :  { %v5175_v28 = vpop.eup %5174  ;;  %v2617_v51 = vadd.f32 1.0, %v5173_v20  ;;  %5200 = vpow2.f32 %v4192_v29  ;;  %v2053_v61 = vpop.f32.mrf.mxu1 }
 0x2de   :  { %v5177_v33 = vpop.eup %5176  ;;  %v2618_v21 = vadd.f32 1.0, %v5175_v28  ;;  %5202 = vpow2.f32 %v4193_v8  ;;  %v4194_v60 = vmul.f32 -1.442695, %v7143_v42  ;;  %v7147_v19 = vadd.f32 %v2053_v61, %v6568_v41  ;;  %3412 = vmatmul.mubr.bf16.gmra.mxu0 %v3084_v17 }
 0x2df   :  { %v5179_v55 = vpop.eup %5178  ;;  %v2994_v4 = vmul.f32 %v5177_v33, %v7067_v44  ;;  %5204 = vrcp.f32 %v2617_v51  ;;  %v2057_v36 = vpop.f32.mrf.mxu1 }
 0x2e0   :  { %v5181_v24 = vpop.eup %5180  ;;  %v2995_v37 = vmul.f32 %v5179_v55, %v7071_v54  ;;  %5206 = vrcp.f32 %v2618_v21  ;;  %v4195_v1 = vmul.f32 -1.442695, %v7147_v19  ;;  %v7153_v2 = vadd.f32 %v2057_v36, %v6558_v53 }
 0x2e1   :  { %v5183_v50 = vpop.eup %5182  ;;  %v2619_v5 = vadd.f32 1.0, %v5181_v24  ;;  %5208 = vpow2.f32 %v4194_v60  ;;  %v2059_v10 = vpop.f32.mrf.mxu1  ;;  %v3086_v58 = vpack.c.bf16 %v2994_v4, %v2992_v26 }
 0x2e2   :  { %v5185_v44 = vpop.eup %5184  ;;  %5210 = vpow2.f32 %v4195_v1  ;;  %v4196_v48 = vmul.f32 -1.442695, %v7153_v2  ;;  %v7159_v54 = vadd.f32 %v2059_v10, %v6568_v41  ;;  %v3087_v46 = vpack.c.bf16 %v2995_v37, %v2993_v52 }
 0x2e3   :  { %v5187_v14 = vpop.eup %5186  ;;  %5212 = vrcp.f32 %v2619_v5  ;;  %v2620_v43 = vadd.f32 1.0, %v5185_v44  ;;  %v2061_v11 = vpop.f32.mrf.mxu1  ;;  %v2996_v17 = vmul.f32 %v5183_v50, %v7075_v35 }
 0x2e4   :  { %v5189_v59 = vpop.eup %5188  ;;  %v2621_v7 = vadd.f32 1.0, %v5187_v14  ;;  %5214 = vpow2.f32 %v4196_v48  ;;  %v4197_v23 = vmul.f32 -1.442695, %v7159_v54  ;;  %v7163_v47 = vadd.f32 %v2061_v11, %v6558_v53  ;;  %3419 = vmatprep.mubr.bf16.mxu0 %v3087_v46 }
 0x2e5   :  { %v5191_v34 = vpop.eup %5190  ;;  %5216 = vrcp.f32 %v2620_v43  ;;  %v2063_v13 = vpop.f32.mrf.mxu1  ;;  %v2997_v8 = vmul.f32 %v5189_v59, %v7083_v3 }
 0x2e6   :  { %v5193_v57 = vpop.eup %5192  ;;  %5218 = vrcp.f32 %v2621_v7  ;;  %v2622_v63 = vadd.f32 1.0, %v5191_v34  ;;  %v4198_v40 = vmul.f32 -1.442695, %v7163_v47  ;;  %v7167_v9 = vadd.f32 %v2063_v13, %v6568_v41  ;;  %3420 = vmatmul.mubr.bf16.gmra.mxu0 %v3086_v58 }
 0x2e7   :  { %v5195_v25 = vpop.eup %5194  ;;  %v2998_v0 = vmul.f32 %v5193_v57, %v7086_v18  ;;  %5220 = vpow2.f32 %v4197_v23  ;;  %v2067_v38 = vpop.f32.mrf.mxu1 }
 0x2e8   :  { %v5197_v16 = vpop.eup %5196  ;;  %5222 = vrcp.f32 %v2622_v63  ;;  %v2623_v31 = vadd.f32 1.0, %v5195_v25  ;;  %v4199_v29 = vmul.f32 -1.442695, %v7167_v9  ;;  %v7172_v45 = vadd.f32 %v2067_v38, %v6558_v53 }
 0x2e9   :  { %v5199_v20 = vpop.eup %5198  ;;  %v2999_v28 = vmul.f32 %v5197_v16, %v7091_v27  ;;  %5224 = vpow2.f32 %v4198_v40  ;;  %v2069_v51 = vpop.f32.mrf.mxu1  ;;  %v3088_v60 = vpack.c.bf16 %v2998_v0, %v2996_v17 }
 0x2ea   :  { %v5201_v18 = vpop.eup %5200  ;;  %5226 = vrcp.f32 %v2623_v31  ;;  %v4200_v61 = vmul.f32 -1.442695, %v7172_v45  ;;  %v7179_v33 = vadd.f32 %v2069_v51, %v6568_v41  ;;  %v3000_v13 = vmul.f32 %v5199_v20, %v7095_v49 }
 0x2eb   :  { %v5203_v21 = vpop.eup %5202  ;;  %v2624_v55 = vadd.f32 1.0, %v5201_v18  ;;  %5228 = vpow2.f32 %v4199_v29  ;;  %v2071_v4 = vpop.f32.mrf.mxu1  ;;  %v3089_v36 = vpack.c.bf16 %v2999_v28, %v2997_v8 }
 0x2ec   :  { %v5205_v35 = vpop.eup %5204  ;;  %v2625_v24 = vadd.f32 1.0, %v5203_v21  ;;  %5230 = vpow2.f32 %v4200_v61  ;;  %v4201_v3 = vmul.f32 -1.442695, %v7179_v33  ;;  %v7183_v27 = vadd.f32 %v2071_v4, %v6558_v53 }
 0x2ed   :  { %v5207_v37 = vpop.eup %5206  ;;  %5232 = vrcp.f32 %v2624_v55  ;;  %3427 = vmatprep.mubr.bf16.mxu0 %v3089_v36  ;;  %v2073_v1 = vpop.f32.mrf.mxu1  ;;  %v3001_v46 = vmul.f32 %v5205_v35, %v7099_v39 }
 0x2ee   :  { %v5209_v50 = vpop.eup %5208  ;;  %5234 = vrcp.f32 %v2625_v24  ;;  %v4202_v26 = vmul.f32 -1.442695, %v7183_v27  ;;  %v7187_v52 = vadd.f32 %v2073_v1, %v6568_v41  ;;  %3428 = vmatmul.mubr.bf16.gmra.mxu0 %v3088_v60  ;;  %v3002_v14 = vmul.f32 %v5207_v37, %v7103_v12 }
 0x2ef   :  { %v5211_v5 = vpop.eup %5210  ;;  %v2626_v10 = vadd.f32 1.0, %v5209_v50  ;;  %5236 = vpow2.f32 %v4201_v3  ;;  %v2077_v44 = vpop.f32.mrf.mxu1 }
 0x2f0   :  { %v5213_v48 = vpop.eup %5212  ;;  %v2627_v58 = vadd.f32 1.0, %v5211_v5  ;;  %5238 = vpow2.f32 %v4202_v26  ;;  %v4203_v43 = vmul.f32 -1.442695, %v7187_v52  ;;  %v7194_v7 = vadd.f32 %v2077_v44, %v6558_v53 }
 0x2f1   :  { %v5215_v11 = vpop.eup %5214  ;;  %v3003_v59 = vmul.f32 %v5213_v48, %v7107_v32  ;;  %5240 = vrcp.f32 %v2626_v10  ;;  %v2079_v23 = vpop.f32.mrf.mxu1  ;;  %v3090_v0 = vpack.c.bf16 %v3002_v14, %v3000_v13 }
 0x2f2   :  { %v5217_v34 = vpop.eup %5216  ;;  %5242 = vrcp.f32 %v2627_v58  ;;  %v2628_v57 = vadd.f32 1.0, %v5215_v11  ;;  %v7198_v12 = vadd.f32 %v2079_v23, %v6568_v41  ;;  %v4204_v40 = vmul.f32 -1.442695, %v7194_v7 }
 0x2f3   :  { %v5219_v63 = vpop.eup %5218  ;;  %5244 = vpow2.f32 %v4203_v43  ;;  %v2081_v39 = vpop.f32.mrf.mxu1  ;;  %v3091_v25 = vpack.c.bf16 %v3003_v59, %v3001_v46  ;;  %v3004_v35 = vmul.f32 %v5217_v34, %v7114_v6 }
 0x2f4   :  { %v5221_v32 = vpop.eup %5220  ;;  %5246 = vrcp.f32 %v2628_v57  ;;  %v4205_v38 = vmul.f32 -1.442695, %v7198_v12  ;;  %v7203_v16 = vadd.f32 %v2081_v39, %v6558_v53  ;;  %v3005_v51 = vmul.f32 %v5219_v63, %v7118_v62 }
 0x2f5   :  { %v5223_v49 = vpop.eup %5222  ;;  %v2629_v31 = vadd.f32 1.0, %v5221_v32  ;;  %5248 = vpow2.f32 %v4204_v40  ;;  %3435 = vmatprep.mubr.bf16.mxu0 %v3091_v25  ;;  %v2083_v29 = vpop.f32.mrf.mxu1 }
 0x2f6   :  { %v5225_v20 = vpop.eup %5224  ;;  %5250 = vpow2.f32 %v4205_v38  ;;  %v4206_v17 = vmul.f32 -1.442695, %v7203_v16  ;;  %v7207_v8 = vadd.f32 %v2083_v29, %v6568_v41  ;;  %3436 = vmatmul.mubr.bf16.gmra.mxu0 %v3090_v0  ;;  %v3006_v60 = vmul.f32 %v5223_v49, %v7123_v15  ;;  %v5390_v38 = vld [vmem:[#allocation2] sm:$0xff] }
 0x2f7   :  { %v5227_v28 = vpop.eup %5226  ;;  %5252 = vrcp.f32 %v2629_v31  ;;  %v2630_v18 = vadd.f32 1.0, %v5225_v20  ;;  %v2087_v61 = vpop.f32.mrf.mxu1 }
 0x2f8   :  { %v5229_v21 = vpop.eup %5228  ;;  %v3007_v55 = vmul.f32 %v5227_v28, %v7127_v56  ;;  %5254 = vpow2.f32 %v4206_v17  ;;  %v4207_v4 = vmul.f32 -1.442695, %v7207_v8  ;;  %v7215_v3 = vadd.f32 %v2087_v61, %v6558_v53  ;;  %v7223_v56 = vld [vmem:[%s7721_s6] ss:$0 sm:$0xff] }
 0x2f9   :  { %v5231_v36 = vpop.eup %5230  ;;  %5256 = vrcp.f32 %v2630_v18  ;;  %v2631_v24 = vadd.f32 1.0, %v5229_v21  ;;  %v2089_v62 = vpop.f32.mrf.mxu1  ;;  %v3092_v48 = vpack.c.bf16 %v3006_v60, %v3004_v35 }
 0x2fa   :  { %v5233_v37 = vpop.eup %5232  ;;  %v2632_v1 = vadd.f32 1.0, %v5231_v36  ;;  %5258 = vpow2.f32 %v4207_v4  ;;  %v7218_v50 = vadd.f32 %v2089_v62, %v6568_v41  ;;  %v3093_v15 = vpack.c.bf16 %v3007_v55, %v3005_v51 }
 0x2fb   :  { %v5235_v26 = vpop.eup %5234  ;;  %5260 = vrcp.f32 %v2631_v24  ;;  %v4208_v6 = vmul.f32 -1.442695, %v7215_v3  ;;  %v2091_v5 = vpop.f32.mrf.mxu1  ;;  %v3008_v39 = vmul.f32 %v5233_v37, %v7135_v22 }
 0x2fc   :  { %v3285_v10 = vpop.f32.mrf.mxu0  ;;  %v5237_v44 = vpop.eup %5236  ;;  %5262 = vrcp.f32 %v2632_v1  ;;  %v4209_v14 = vmul.f32 -1.442695, %v7218_v50  ;;  %v7228_v58 = vadd.f32 %v2091_v5, %v6558_v53  ;;  %3443 = vmatprep.mubr.bf16.mxu0 %v3093_v15  ;;  %v3009_v51 = vmul.f32 %v5235_v26, %v7138_v30 }
 0x2fd   :  { %v5239_v43 = vpop.eup %5238  ;;  %v2633_v11 = vadd.f32 1.0, %v5237_v44  ;;  %5264 = vpow2.f32 %v4208_v6  ;;  %v2093_v46 = vpop.f32.mrf.mxu1  ;;  %v3286_v59 = vadd.f32 %v7223_v56, %v3285_v10 }
 0x2fe   :  { %v3287_v23 = vpop.f32.mrf.mxu0  ;;  %v5241_v34 = vpop.eup %5240  ;;  %v2634_v13 = vadd.f32 1.0, %v5239_v43  ;;  %5266 = vpow2.f32 %v4209_v14  ;;  %v4210_v57 = vmul.f32 -1.442695, %v7228_v58  ;;  %v7233_v63 = vadd.f32 %v2093_v46, %v6568_v41  ;;  %3444 = vmatmul.mubr.bf16.gmra.mxu0 %v3092_v48  ;;  %v5391_v14 = vld [vmem:[#allocation2 + $0x8] sm:$0xff] }
 0x2ff   :  { %v5243_v40 = vpop.eup %5242  ;;  %v3010_v25 = vmul.f32 %v5241_v34, %v7143_v42  ;;  %5268 = vrcp.f32 %v2633_v11  ;;  %v2097_v32 = vpop.f32.mrf.mxu1  ;;  %v3540_v49 = vsub.f32 %v3286_v59, %v5390_v38 }
 0x300   :  { %v3288_v0 = vpop.f32.mrf.mxu0  ;;  %v5245_v31 = vpop.eup %5244  ;;  %v3011_v29 = vmul.f32 %v5243_v40, %v7147_v19  ;;  %5270 = vrcp.f32 %v2634_v13  ;;  %v4211_v20 = vmul.f32 -1.442695, %v7233_v63  ;;  %v7240_v17 = vadd.f32 %v2097_v32, %v6558_v53 }
 0x301   :  { %v5247_v28 = vpop.eup %5246  ;;  %v2635_v22 = vadd.f32 1.0, %v5245_v31  ;;  %5272 = vpow2.f32 %v4210_v57  ;;  %v2099_v42 = vpop.f32.mrf.mxu1  ;;  %v3289_v18 = vadd.f32 %v7223_v56, %v3288_v0  ;;  %v3094_v60 = vpack.c.bf16 %v3010_v25, %v3008_v39  ;;  %v5392_v39 = vld [vmem:[#allocation2 + $0x10] sm:$0xff] }
 0x302   :  { %v3290_v61 = vpop.f32.mrf.mxu0  ;;  %v5249_v21 = vpop.eup %5248  ;;  %5274 = vpow2.f32 %v4211_v20  ;;  %v4212_v19 = vmul.f32 -1.442695, %v7240_v17  ;;  %v7246_v55 = vadd.f32 %v2099_v42, %v6568_v41  ;;  %v3095_v24 = vpack.c.bf16 %v3011_v29, %v3009_v51 }
 0x303   :  { %v5251_v4 = vpop.eup %5250  ;;  %5276 = vrcp.f32 %v2635_v22  ;;  %v2636_v36 = vadd.f32 1.0, %v5249_v21  ;;  %v2101_v35 = vpop.f32.mrf.mxu1  ;;  %v3604_v30 = vmul.f32 %v3540_v49, %v3540_v49  ;;  %v7253_v5 = vmul.f32 %v5247_v28, %v7153_v2 }
 0x304   :  { %v3293_v62 = vpop.f32.mrf.mxu0  ;;  %v5253_v37 = vpop.eup %5252  ;;  %v2637_v1 = vadd.f32 1.0, %v5251_v4  ;;  %5278 = vpow2.f32 %v4212_v19  ;;  %v4213_v15 = vmul.f32 -1.442695, %v7246_v55  ;;  %v7250_v26 = vadd.f32 %v2101_v35, %v6558_v53  ;;  %3451 = vmatprep.mubr.bf16.mxu0 %v3095_v24 }
 0x305   :  { %v5255_v6 = vpop.eup %5254  ;;  %5280 = vrcp.f32 %v2636_v36  ;;  %v2103_v10 = vpop.f32.mrf.mxu1  ;;  %3668 = vadd.xlane.f32.xlu0 %v3604_v30  ;;  %v3294_v44 = vadd.f32 %v7223_v56, %v3293_v62  ;;  %v3541_v43 = vsub.f32 %v3289_v18, %v5391_v14  ;;  %v3013_v29 = vmul.f32 %v5253_v37, %v7159_v54 }
 0x306   :  { %v3295_v48 = vpop.f32.mrf.mxu0  ;;  %v5257_v11 = vpop.eup %5256  ;;  %5282 = vrcp.f32 %v2637_v1  ;;  %v2638_v46 = vadd.f32 1.0, %v5255_v6  ;;  %v4214_v59 = vmul.f32 -1.442695, %v7250_v26  ;;  %v7258_v23 = vadd.f32 %v2103_v10, %v6568_v41  ;;  %3452 = vmatmul.mubr.bf16.gmra.mxu0 %v3094_v60 }
 0x307   :  { %v5259_v2 = vpop.eup %5258  ;;  %v3014_v34 = vmul.f32 %v5257_v11, %v7163_v47  ;;  %5284 = vpow2.f32 %v4213_v15  ;;  %v2107_v13 = vpop.f32.mrf.mxu1  ;;  %v3605_v57 = vmul.f32 %v3541_v43, %v3541_v43  ;;  %v3542_v25 = vsub.f32 %v3294_v44, %v5392_v39 }
 0x308   :  { %v3296_v40 = vpop.f32.mrf.mxu0  ;;  %v5261_v32 = vpop.eup %5260  ;;  %5286 = vrcp.f32 %v2638_v46  ;;  %v2639_v0 = vadd.f32 1.0, %v5259_v2  ;;  %v4215_v38 = vmul.f32 -1.442695, %v7258_v23  ;;  %v7263_v49 = vadd.f32 %v2107_v13, %v6558_v53 }
 0x309   :  { %v5263_v31 = vpop.eup %5262  ;;  %v3015_v20 = vmul.f32 %v5261_v32, %v7167_v9  ;;  %5288 = vpow2.f32 %v4214_v59  ;;  %v2109_v47 = vpop.f32.mrf.mxu1  ;;  %3670 = vadd.xlane.f32.xlu0 %v3605_v57  ;;  %v3297_v28 = vadd.f32 %v7223_v56, %v3296_v40  ;;  %v3096_v42 = vpack.c.bf16 %v3014_v34, %v7253_v5  ;;  %v5393_v5 = vld [vmem:[#allocation2 + $0x18] sm:$0xff]  ;;  %v5394_v34 = vld [vmem:[#allocation2 + $0x20] sm:$0xff] }
 0x30a   :  { %v3298_v51 = vpop.f32.mrf.mxu0  ;;  %v5265_v22 = vpop.eup %5264  ;;  %5290 = vrcp.f32 %v2639_v0  ;;  %v4216_v18 = vmul.f32 -1.442695, %v7263_v49  ;;  %v7271_v61 = vadd.f32 %v2109_v47, %v6568_v41  ;;  %v3606_v19 = vmul.f32 %v3542_v25, %v3542_v25 }
 0x30b   :  { %v5267_v21 = vpop.eup %5266  ;;  %v2640_v60 = vadd.f32 1.0, %v5265_v22  ;;  %5292 = vpow2.f32 %v4215_v38  ;;  %v2111_v54 = vpop.f32.mrf.mxu1  ;;  %v3097_v9 = vpack.c.bf16 %v3015_v20, %v3013_v29  ;;  %v7278_v37 = vmul.f32 %v5263_v31, %v7172_v45 }
 0x30c   :  { %v3301_v4 = vpop.f32.mrf.mxu0  ;;  %v5269_v36 = vpop.eup %5268  ;;  %v2641_v35 = vadd.f32 1.0, %v5267_v21  ;;  %5294 = vpow2.f32 %v4216_v18  ;;  %v4217_v24 = vmul.f32 -1.442695, %v7271_v61  ;;  %v7275_v30 = vadd.f32 %v2111_v54, %v6558_v53  ;;  %3672 = vadd.xlane.f32.xlu1 %v3606_v19 }
 0x30d   :  { %v5271_v62 = vpop.eup %5270  ;;  %5296 = vrcp.f32 %v2640_v60  ;;  %3459 = vmatprep.mubr.bf16.mxu0 %v3097_v9  ;;  %v2113_v1 = vpop.f32.mrf.mxu1  ;;  %v3302_v15 = vadd.f32 %v7223_v56, %v3301_v4  ;;  %v3543_v10 = vsub.f32 %v3297_v28, %v5393_v5  ;;  %v3017_v40 = vmul.f32 %v5269_v36, %v7179_v33 }
 0x30e   :  { %v3303_v6 = vpop.f32.mrf.mxu0  ;;  %v5273_v44 = vpop.eup %5272  ;;  %v3018_v48 = vmul.f32 %v5271_v62, %v7183_v27  ;;  %5298 = vrcp.f32 %v2641_v35  ;;  %v4218_v14 = vmul.f32 -1.442695, %v7275_v30  ;;  %v7284_v43 = vadd.f32 %v2113_v1, %v6568_v41  ;;  %3460 = vmatmul.mubr.bf16.gmra.mxu0 %v3096_v42 }
 0x30f   :  { %v5275_v45 = vpop.eup %5274  ;;  %v2642_v11 = vadd.f32 1.0, %v5273_v44  ;;  %5300 = vpow2.f32 %v4217_v24  ;;  %v2117_v46 = vpop.f32.mrf.mxu1  ;;  %v3607_v59 = vmul.f32 %v3543_v10, %v3543_v10  ;;  %v3544_v13 = vsub.f32 %v3302_v15, %v5394_v34 }
 0x310   :  { %v3304_v2 = vpop.f32.mrf.mxu0  ;;  %v5277_v57 = vpop.eup %5276  ;;  %v2643_v39 = vadd.f32 1.0, %v5275_v45  ;;  %5302 = vpow2.f32 %v4218_v14  ;;  %v4219_v27 = vmul.f32 -1.442695, %v7284_v43  ;;  %v7290_v0 = vadd.f32 %v2117_v46, %v6558_v53 }
 0x311   :  { %v5279_v25 = vpop.eup %5278  ;;  %v3019_v32 = vmul.f32 %v5277_v57, %v7187_v52  ;;  %5304 = vrcp.f32 %v2642_v11  ;;  %v2119_v38 = vpop.f32.mrf.mxu1  ;;  %3674 = vadd.xlane.f32.xlu1 %v3607_v59  ;;  %v3305_v31 = vadd.f32 %v7223_v56, %v3304_v2  ;;  %v3608_v28 = vmul.f32 %v3544_v13, %v3544_v13  ;;  %v5396_v11 = vld [vmem:[#allocation2 + $0x30] sm:$0xff] }
 0x312   :  { %v3306_v29 = vpop.f32.mrf.mxu0  ;;  %v5281_v20 = vpop.eup %5280  ;;  %5306 = vrcp.f32 %v2643_v39  ;;  %v2644_v47 = vadd.f32 1.0, %v5279_v25  ;;  %v7294_v33 = vadd.f32 %v2119_v38, %v6568_v41  ;;  %v3098_v22 = vpack.c.bf16 %v3018_v48, %v7278_v37  ;;  %v5395_v37 = vld [vmem:[#allocation2 + $0x28] sm:$0xff] }
 0x313   :  { %v5283_v51 = vpop.eup %5282  ;;  %5308 = vpow2.f32 %v4219_v27  ;;  %v4220_v52 = vmul.f32 -1.442695, %v7290_v0  ;;  %v2121_v42 = vpop.f32.mrf.mxu1  ;;  %v3099_v18 = vpack.c.bf16 %v3019_v32, %v3017_v40  ;;  %v7299_v54 = vmul.f32 %v5281_v20, %v7194_v7  ;;  %3676 = vadd.xlane.f32.xlu0 %v3608_v28 }
 0x314   :  { %v3309_v21 = vpop.f32.mrf.mxu0  ;;  %v5285_v60 = vpop.eup %5284  ;;  %5310 = vrcp.f32 %v2644_v47  ;;  %v4221_v9 = vmul.f32 -1.442695, %v7294_v33  ;;  %v7303_v19 = vadd.f32 %v2121_v42, %v6558_v53  ;;  %v3545_v1 = vsub.f32 %v3305_v31, %v5395_v37 }
 0x315   :  { %v5287_v4 = vpop.eup %5286  ;;  %v2645_v36 = vadd.f32 1.0, %v5285_v60  ;;  %5312 = vpow2.f32 %v4220_v52  ;;  %3467 = vmatprep.mubr.bf16.mxu0 %v3099_v18  ;;  %v2123_v35 = vpop.f32.mrf.mxu1  ;;  %v3310_v24 = vadd.f32 %v7223_v56, %v3309_v21  ;;  %v3021_v2 = vmul.f32 %v5283_v51, %v7198_v12 }
 0x316   :  { %v3311_v62 = vpop.f32.mrf.mxu0  ;;  %v5289_v15 = vpop.eup %5288  ;;  %v3022_v7 = vmul.f32 %v5287_v4, %v7203_v16  ;;  %5314 = vpow2.f32 %v4221_v9  ;;  %v4222_v6 = vmul.f32 -1.442695, %v7303_v19  ;;  %v7309_v5 = vadd.f32 %v2123_v35, %v6568_v41  ;;  %3468 = vmatmul.mubr.bf16.gmra.mxu0 %v3098_v22 }
 0x317   :  { %v5291_v10 = vpop.eup %5290  ;;  %5316 = vrcp.f32 %v2645_v36  ;;  %v2646_v44 = vadd.f32 1.0, %v5289_v15  ;;  %v2127_v48 = vpop.f32.mrf.mxu1  ;;  %v3609_v14 = vmul.f32 %v3545_v1, %v3545_v1  ;;  %v3546_v46 = vsub.f32 %v3310_v24, %v5396_v11  ;;  %v5397_v36 = vld [vmem:[#allocation2 + $0x38] sm:$0xff] }
 0x318   :  { %v3312_v45 = vpop.f32.mrf.mxu0  ;;  %v5293_v59 = vpop.eup %5292  ;;  %v3023_v16 = vmul.f32 %v5291_v10, %v7207_v8  ;;  %5318 = vpow2.f32 %v4222_v6  ;;  %v4223_v34 = vmul.f32 -1.442695, %v7309_v5  ;;  %v7315_v40 = vadd.f32 %v2127_v48, %v6558_v53 }
 0x319   :  { %v5295_v13 = vpop.eup %5294  ;;  %5320 = vrcp.f32 %v2646_v44  ;;  %v2647_v57 = vadd.f32 1.0, %v5293_v59  ;;  %v2129_v39 = vpop.f32.mrf.mxu1  ;;  %3678 = vadd.xlane.f32.xlu1 %v3609_v14  ;;  %v3313_v27 = vadd.f32 %v7223_v56, %v3312_v45  ;;  %v3100_v29 = vpack.c.bf16 %v3022_v7, %v7299_v54  ;;  %v5398_v44 = vld [vmem:[#allocation2 + $0x40] sm:$0xff] }
 0x31a   :  { %v3314_v25 = vpop.f32.mrf.mxu0  ;;  %v5297_v32 = vpop.eup %5296  ;;  %v2648_v38 = vadd.f32 1.0, %v5295_v13  ;;  %5322 = vpow2.f32 %v4223_v34  ;;  %v7319_v12 = vadd.f32 %v2129_v39, %v6568_v41  ;;  %v3101_v8 = vpack.c.bf16 %v3023_v16, %v3021_v2 }
 0x31b   :  { %v5299_v31 = vpop.eup %5298  ;;  %5324 = vrcp.f32 %v2647_v57  ;;  %v4224_v20 = vmul.f32 -1.442695, %v7315_v40  ;;  %v2131_v47 = vpop.f32.mrf.mxu1  ;;  %v3610_v28 = vmul.f32 %v3546_v46, %v3546_v46  ;;  %v7324_v52 = vmul.f32 %v5297_v32, %v7215_v3 }
 0x31c   :  { %v3317_v51 = vpop.f32.mrf.mxu0  ;;  %v5301_v22 = vpop.eup %5300  ;;  %5326 = vrcp.f32 %v2648_v38  ;;  %v4225_v42 = vmul.f32 -1.442695, %v7319_v12  ;;  %v7328_v18 = vadd.f32 %v2131_v47, %v6558_v53  ;;  %3475 = vmatprep.mubr.bf16.mxu0 %v3101_v8  ;;  %v3547_v35 = vsub.f32 %v3313_v27, %v5397_v36 }
 0x31d   :  { %v5303_v21 = vpop.eup %5302  ;;  %v2649_v60 = vadd.f32 1.0, %v5301_v22  ;;  %5328 = vpow2.f32 %v4224_v20  ;;  %v2133_v54 = vpop.f32.mrf.mxu1  ;;  %3680 = vadd.xlane.f32.xlu0 %v3610_v28  ;;  %v3318_v9 = vadd.f32 %v7223_v56, %v3317_v51  ;;  %v3025_v2 = vmul.f32 %v5299_v31, %v7218_v50 }
 0x31e   :  { %v3319_v4 = vpop.f32.mrf.mxu0  ;;  %v5305_v24 = vpop.eup %5304  ;;  %v2650_v3 = vadd.f32 1.0, %v5303_v21  ;;  %5330 = vpow2.f32 %v4225_v42  ;;  %v4226_v62 = vmul.f32 -1.442695, %v7328_v18  ;;  %v7333_v37 = vadd.f32 %v2133_v54, %v6568_v41  ;;  %3476 = vmatmul.mubr.bf16.gmra.mxu0 %v3100_v29 }
 0x31f   :  { %v5307_v1 = vpop.eup %5306  ;;  %v3026_v15 = vmul.f32 %v5305_v24, %v7228_v58  ;;  %5332 = vrcp.f32 %v2649_v60  ;;  %v2137_v7 = vpop.f32.mrf.mxu1  ;;  %v3611_v6 = vmul.f32 %v3547_v35, %v3547_v35  ;;  %v3548_v48 = vsub.f32 %v3318_v9, %v5398_v44  ;;  %v5399_v60 = vld [vmem:[#allocation2 + $0x48] sm:$0xff] }
 0x320   :  { %v3320_v10 = vpop.f32.mrf.mxu0  ;;  %v5309_v14 = vpop.eup %5308  ;;  %v3027_v45 = vmul.f32 %v5307_v1, %v7233_v63  ;;  %5334 = vrcp.f32 %v2650_v3  ;;  %v4227_v11 = vmul.f32 -1.442695, %v7333_v37  ;;  %v7339_v46 = vadd.f32 %v2137_v7, %v6558_v53 }
 0x321   :  { %v5311_v59 = vpop.eup %5310  ;;  %v2651_v16 = vadd.f32 1.0, %v5309_v14  ;;  %5336 = vpow2.f32 %v4226_v62  ;;  %v2139_v58 = vpop.f32.mrf.mxu1  ;;  %3682 = vadd.xlane.f32.xlu1 %v3611_v6  ;;  %v3321_v34 = vadd.f32 %v7223_v56, %v3320_v10  ;;  %v3102_v39 = vpack.c.bf16 %v3026_v15, %v7324_v52  ;;  %v5400_v15 = vld [vmem:[#allocation2 + $0x50] sm:$0xff] }
 0x322   :  { %v3322_v13 = vpop.f32.mrf.mxu0  ;;  %v5313_v57 = vpop.eup %5312  ;;  %5338 = vpow2.f32 %v4227_v11  ;;  %v4228_v63 = vmul.f32 -1.442695, %v7339_v46  ;;  %v7346_v27 = vadd.f32 %v2139_v58, %v6568_v41  ;;  %v3103_v38 = vpack.c.bf16 %v3027_v45, %v3025_v2 }
 0x323   :  { %v5315_v25 = vpop.eup %5314  ;;  %5340 = vrcp.f32 %v2651_v16  ;;  %v2652_v32 = vadd.f32 1.0, %v5313_v57  ;;  %v2141_v50 = vpop.f32.mrf.mxu1  ;;  %v3612_v8 = vmul.f32 %v3548_v48, %v3548_v48  ;;  %v7353_v22 = vmul.f32 %v5311_v59, %v7240_v17 }
 0x324   :  { %v3325_v31 = vpop.f32.mrf.mxu0  ;;  %v5317_v29 = vpop.eup %5316  ;;  %v2653_v20 = vadd.f32 1.0, %v5315_v25  ;;  %5342 = vpow2.f32 %v4228_v63  ;;  %v4229_v47 = vmul.f32 -1.442695, %v7346_v27  ;;  %v7350_v28 = vadd.f32 %v2141_v50, %v6558_v53  ;;  %3483 = vmatprep.mubr.bf16.mxu0 %v3103_v38 }
 0x325   :  { %v5319_v51 = vpop.eup %5318  ;;  %5344 = vrcp.f32 %v2652_v32  ;;  %v2143_v52 = vpop.f32.mrf.mxu1  ;;  %3684 = vadd.xlane.f32.xlu0 %v3612_v8  ;;  %v3326_v42 = vadd.f32 %v7223_v56, %v3325_v31  ;;  %v3549_v54 = vsub.f32 %v3321_v34, %v5399_v60  ;;  %v3029_v45 = vmul.f32 %v5317_v29, %v7246_v55 }
 0x326   :  { %v3327_v21 = vpop.f32.mrf.mxu0  ;;  %v5321_v9 = vpop.eup %5320  ;;  %5346 = vrcp.f32 %v2653_v20  ;;  %v2654_v4 = vadd.f32 1.0, %v5319_v51  ;;  %v4230_v36 = vmul.f32 -1.442695, %v7350_v28  ;;  %v7358_v35 = vadd.f32 %v2143_v52, %v6568_v41  ;;  %3484 = vmatmul.mubr.bf16.gmra.mxu0 %v3102_v39  ;;  %v5401_v51 = vld [vmem:[#allocation2 + $0x58] sm:$0xff] }
 0x327   :  { %v5323_v17 = vpop.eup %5322  ;;  %v3030_v24 = vmul.f32 %v5321_v9, %v7250_v26  ;;  %5348 = vpow2.f32 %v4229_v47  ;;  %v2147_v3 = vpop.f32.mrf.mxu1  ;;  %v3613_v62 = vmul.f32 %v3549_v54, %v3549_v54  ;;  %v3550_v7 = vsub.f32 %v3326_v42, %v5400_v15 }
 0x328   :  { %v3328_v1 = vpop.f32.mrf.mxu0  ;;  %v5325_v6 = vpop.eup %5324  ;;  %5350 = vrcp.f32 %v2654_v4  ;;  %v2655_v10 = vadd.f32 1.0, %v5323_v17  ;;  %v4231_v44 = vmul.f32 -1.442695, %v7358_v35  ;;  %v7363_v48 = vadd.f32 %v2147_v3, %v6558_v53 }
 0x329   :  { %v5327_v14 = vpop.eup %5326  ;;  %v3031_v11 = vmul.f32 %v5325_v6, %v7258_v23  ;;  %5352 = vpow2.f32 %v4230_v36  ;;  %v2149_v26 = vpop.f32.mrf.mxu1  ;;  %3686 = vadd.xlane.f32.xlu1 %v3613_v62  ;;  %v3329_v59 = vadd.f32 %v7223_v56, %v3328_v1  ;;  %v3104_v58 = vpack.c.bf16 %v3030_v24, %v7353_v22  ;;  %v5402_v36 = vld [vmem:[#allocation2 + $0x60] sm:$0xff] }
 0x32a   :  { %v3330_v2 = vpop.f32.mrf.mxu0  ;;  %v5329_v16 = vpop.eup %5328  ;;  %5354 = vrcp.f32 %v2655_v10  ;;  %v4232_v34 = vmul.f32 -1.442695, %v7363_v48  ;;  %v7371_v13 = vadd.f32 %v2149_v26, %v6568_v41  ;;  %v3614_v63 = vmul.f32 %v3550_v7, %v3550_v7  ;;  %v5403_v26 = vld [vmem:[#allocation2 + $0x68] sm:$0xff] }
 0x32b   :  { %v5331_v57 = vpop.eup %5330  ;;  %v2656_v39 = vadd.f32 1.0, %v5329_v16  ;;  %5356 = vpow2.f32 %v4231_v44  ;;  %v2151_v55 = vpop.f32.mrf.mxu1  ;;  %v3105_v23 = vpack.c.bf16 %v3031_v11, %v3029_v45  ;;  %v3551_v22 = vsub.f32 %v3329_v59, %v5401_v51 }
 0x32c   :  { %v3333_v25 = vpop.f32.mrf.mxu0  ;;  %v5333_v32 = vpop.eup %5332  ;;  %v2657_v50 = vadd.f32 1.0, %v5331_v57  ;;  %5358 = vpow2.f32 %v4232_v34  ;;  %v4233_v38 = vmul.f32 -1.442695, %v7371_v13  ;;  %v7375_v8 = vadd.f32 %v2151_v55, %v6558_v53  ;;  %3688 = vadd.xlane.f32.xlu0 %v3614_v63 }
 0x32d   :  { %v5335_v31 = vpop.eup %5334  ;;  %5360 = vrcp.f32 %v2656_v39  ;;  %3491 = vmatprep.mubr.bf16.mxu0 %v3105_v23  ;;  %v2153_v29 = vpop.f32.mrf.mxu1  ;;  %v3334_v20 = vadd.f32 %v7223_v56, %v3333_v25  ;;  %v3033_v42 = vmul.f32 %v5333_v32, %v7271_v61  ;;  %v3615_v9 = vmul.f32 %v3551_v22, %v3551_v22 }
 0x32e   :  { %v3335_v47 = vpop.f32.mrf.mxu0  ;;  %v5337_v52 = vpop.eup %5336  ;;  %5362 = vrcp.f32 %v2657_v50  ;;  %v4234_v21 = vmul.f32 -1.442695, %v7375_v8  ;;  %v7381_v60 = vadd.f32 %v2153_v29, %v6568_v41  ;;  %3492 = vmatmul.mubr.bf16.gmra.mxu0 %v3104_v58  ;;  %v3034_v3 = vmul.f32 %v5335_v31, %v7275_v30 }
 0x32f   :  { %v5339_v53 = vpop.eup %5338  ;;  %v2658_v54 = vadd.f32 1.0, %v5337_v52  ;;  %5364 = vpow2.f32 %v4233_v38  ;;  %v3552_v17 = vsub.f32 %v3334_v20, %v5402_v36  ;;  %3690 = vadd.xlane.f32.xlu1 %v3615_v9  ;;  %v3032_v44 = vmul.f32 %v5327_v14, %v7263_v49  ;;  %v5404_v49 = vld [vmem:[#allocation2 + $0x70] sm:$0xff] }
 0x330   :  { %v3336_v4 = vpop.f32.mrf.mxu0  ;;  %v5341_v24 = vpop.eup %5340  ;;  %v2659_v62 = vadd.f32 1.0, %v5339_v53  ;;  %5366 = vpow2.f32 %v4234_v21  ;;  %v4235_v61 = vmul.f32 -1.442695, %v7381_v60 }
 0x331   :  { %v5343_v1 = vpop.eup %5342  ;;  %v3035_v15 = vmul.f32 %v5341_v24, %v7284_v43  ;;  %5368 = vrcp.f32 %v2658_v54  ;;  %v3337_v41 = vadd.f32 %v7223_v56, %v3336_v4  ;;  %v3616_v6 = vmul.f32 %v3552_v17, %v3552_v17 }
 0x332   :  { %v3338_v7 = vpop.f32.mrf.mxu0  ;;  %v5345_v10 = vpop.eup %5344  ;;  %5370 = vrcp.f32 %v2659_v62  ;;  %v3106_v16 = vpack.c.bf16 %v3034_v3, %v3032_v44  ;;  %v2660_v23 = vadd.f32 1.0, %v5343_v1 }
 0x333   :  { %v5347_v45 = vpop.eup %5346  ;;  %5372 = vpow2.f32 %v4235_v61  ;;  %v3107_v30 = vpack.c.bf16 %v3035_v15, %v3033_v42  ;;  %3692 = vadd.xlane.f32.xlu0 %v3616_v6  ;;  %v3553_v59 = vsub.f32 %v3337_v41, %v5403_v26  ;;  %v3036_v21 = vmul.f32 %v5345_v10, %v7290_v0  ;;  %v5406_v15 = vld [vmem:[#allocation2 + $0x80] sm:$0xff] }
 0x334   :  { %v3341_v11 = vpop.f32.mrf.mxu0  ;;  %v5349_v2 = vpop.eup %5348  ;;  %v3037_v25 = vmul.f32 %v5347_v45, %v7294_v33 }
 0x335   :  { %v3342_v43 = vadd.f32 %v7223_v56, %v3341_v11  ;;  %v5351_v58 = vpop.eup %5350  ;;  %v2661_v34 = vadd.f32 1.0, %v5349_v2  ;;  %3499 = vmatprep.mubr.bf16.mxu0 %v3107_v30  ;;  %v3617_v39 = vmul.f32 %v3553_v59, %v3553_v59 }
 0x336   :  { %v3343_v57 = vpop.f32.mrf.mxu0  ;;  %v5353_v55 = vpop.eup %5352  ;;  %3500 = vmatmul.mubr.bf16.gmra.mxu0 %v3106_v16  ;;  %v3038_v32 = vmul.f32 %v5351_v58, %v7303_v19  ;;  %v5405_v19 = vld [vmem:[#allocation2 + $0x78] sm:$0xff]  ;;  %v5407_v58 = vld [vmem:[#allocation2 + $0x88] sm:$0xff] }
 0x337   :  { %v3554_v14 = vsub.f32 %v3342_v43, %v5404_v49  ;;  %v5355_v63 = vpop.eup %5354  ;;  %v2662_v50 = vadd.f32 1.0, %v5353_v55  ;;  %3694 = vadd.xlane.f32.xlu1 %v3617_v39  ;;  %5374 = vrcp.f32 %v2661_v34  ;;  %v5408_v49 = vld [vmem:[#allocation2 + $0x90] sm:$0xff] }
 0x338   :  { %v3344_v38 = vpop.f32.mrf.mxu0  ;;  %v5357_v31 = vpop.eup %5356  ;;  %v3039_v29 = vmul.f32 %v5355_v63, %v7309_v5  ;;  %v3108_v4 = vpack.c.bf16 %v3038_v32, %v3036_v21 }
 0x339   :  { %v3345_v20 = vadd.f32 %v7223_v56, %v3344_v38  ;;  %v3618_v47 = vmul.f32 %v3554_v14, %v3554_v14  ;;  %v5359_v51 = vpop.eup %5358  ;;  %5376 = vrcp.f32 %v2662_v50  ;;  %v2663_v22 = vadd.f32 1.0, %v5357_v31 }
 0x33a   :  { %v3346_v52 = vpop.f32.mrf.mxu0  ;;  %v5361_v42 = vpop.eup %5360  ;;  %5378 = vrcp.f32 %v2660_v23  ;;  %v3109_v33 = vpack.c.bf16 %v3039_v29, %v3037_v25  ;;  %v2664_v1 = vadd.f32 1.0, %v5359_v51  ;;  %v5409_v51 = vld [vmem:[#allocation2 + $0x98] sm:$0xff] }
 0x33b   :  { %3696 = vadd.xlane.f32.xlu0 %v3618_v47  ;;  %v3555_v53 = vsub.f32 %v3345_v20, %v5405_v19  ;;  %v5363_v54 = vpop.eup %5362  ;;  %5380 = vrcp.f32 %v2663_v22  ;;  %v3040_v16 = vmul.f32 %v5361_v42, %v7315_v40 }
 0x33c   :  { %v3349_v9 = vpop.f32.mrf.mxu0  ;;  %v5365_v5 = vpop.eup %5364  ;;  %3507 = vmatprep.mubr.bf16.mxu0 %v3109_v33  ;;  %v3041_v6 = vmul.f32 %v5363_v54, %v7319_v12 }
 0x33d   :  { %v3350_v36 = vadd.f32 %v7223_v56, %v3349_v9  ;;  %v3619_v17 = vmul.f32 %v3555_v53, %v3555_v53  ;;  %v5367_v24 = vpop.eup %5366  ;;  %v2665_v3 = vadd.f32 1.0, %v5365_v5 }
 0x33e   :  { %v3351_v62 = vpop.f32.mrf.mxu0  ;;  %v5369_v61 = vpop.eup %5368  ;;  %v2666_v0 = vadd.f32 1.0, %v5367_v24  ;;  %3508 = vmatmul.mubr.bf16.gmra.mxu0 %v3108_v4 }
 0x33f   :  { %3698 = vadd.xlane.f32.xlu1 %v3619_v17  ;;  %v3556_v41 = vsub.f32 %v3350_v36, %v5406_v15  ;;  %v5371_v7 = vpop.eup %5370  ;;  %v3042_v10 = vmul.f32 %v5369_v61, %v7328_v18 }
 0x340   :  { %v3352_v44 = vpop.f32.mrf.mxu0  ;;  %v5373_v45 = vpop.eup %5372  ;;  %v3043_v30 = vmul.f32 %v5371_v7, %v7333_v37  ;;  %5382 = vrcp.f32 %v2666_v0 }
 0x341   :  { %v3353_v11 = vadd.f32 %v7223_v56, %v3352_v44  ;;  %v3620_v26 = vmul.f32 %v3556_v41, %v3556_v41  ;;  %5384 = vrcp.f32 %v2665_v3  ;;  %v2667_v59 = vadd.f32 1.0, %v5373_v45  ;;  %v5412_v44 = vld [vmem:[#allocation2 + $0xb0] sm:$0xff] }
 0x342   :  { %v3354_v2 = vpop.f32.mrf.mxu0  ;;  %5386 = vrcp.f32 %v2664_v1  ;;  %v3111_v43 = vpack.c.bf16 %v3043_v30, %v3041_v6  ;;  %v3110_v34 = vpack.c.bf16 %v3042_v10, %v3040_v16  ;;  %v5411_v1 = vld [vmem:[#allocation2 + $0xa8] sm:$0xff] }
 0x343   :  { %3700 = vadd.xlane.f32.xlu0 %v3620_v26  ;;  %v3557_v12 = vsub.f32 %v3353_v11, %v5407_v58  ;;  %5388 = vrcp.f32 %v2667_v59  ;;  %v5413_v11 = vld [vmem:[#allocation2 + $0xb8] sm:$0xff]  ;;  %v5414_v58 = vld [vmem:[#allocation2 + $0xc0] sm:$0xff] }
 0x344   :  { %v3357_v18 = vpop.f32.mrf.mxu0  ;;  %3515 = vmatprep.mubr.bf16.mxu0 %v3111_v43  ;;  %v5375_v39 = vpop.eup %5374 }
 0x345   :  { %v3358_v37 = vadd.f32 %v7223_v56, %v3357_v18  ;;  %v3621_v57 = vmul.f32 %v3557_v12, %v3557_v12  ;;  %v3045_v31 = vmul.f32 %v5375_v39, %v7346_v27  ;;  %v5410_v27 = vld [vmem:[#allocation2 + $0xa0] sm:$0xff]  ;;  %v5415_v39 = vld [vmem:[#allocation2 + $0xc8] sm:$0xff] }
 0x346   :  { %v3359_v55 = vpop.f32.mrf.mxu0  ;;  %v5377_v23 = vpop.eup %5376  ;;  %3516 = vmatmul.mubr.bf16.gmra.mxu0 %v3110_v34 }
 0x347   :  { %3702 = vadd.xlane.f32.xlu1 %v3621_v57  ;;  %v3558_v14 = vsub.f32 %v3358_v37, %v5408_v49  ;;  %v5379_v40 = vpop.eup %5378  ;;  %v3046_v32 = vmul.f32 %v5377_v23, %v7350_v28 }
 0x348   :  { %v3360_v63 = vpop.f32.mrf.mxu0  ;;  %v5381_v25 = vpop.eup %5380  ;;  %v3044_v47 = vmul.f32 %v5379_v40, %v7339_v46 }
 0x349   :  { %v3361_v50 = vadd.f32 %v7223_v56, %v3360_v63  ;;  %v3622_v38 = vmul.f32 %v3558_v14, %v3558_v14  ;;  %v3047_v29 = vmul.f32 %v5381_v25, %v7358_v35  ;;  %v5416_v63 = vld [vmem:[#allocation2 + $0xd0] sm:$0xff] }
 0x34a   :  { %v3362_v20 = vpop.f32.mrf.mxu0  ;;  %v3112_v21 = vpack.c.bf16 %v3046_v32, %v3044_v47 }
 0x34b   :  { %3704 = vadd.xlane.f32.xlu0 %v3622_v38  ;;  %v3559_v22 = vsub.f32 %v3361_v50, %v5409_v51  ;;  %v3113_v52 = vpack.c.bf16 %v3047_v29, %v3045_v31  ;;  %v5417_v29 = vld [vmem:[#allocation2 + $0xd8] sm:$0xff] }
 0x34c   :  { %v3365_v42 = vpop.f32.mrf.mxu0 }
 0x34d   :  { %v3366_v33 = vadd.f32 %v7223_v56, %v3365_v42  ;;  %v3623_v19 = vmul.f32 %v3559_v22, %v3559_v22  ;;  %v5383_v28 = vpop.eup %5382  ;;  %3523 = vmatprep.mubr.bf16.mxu0 %v3113_v52  ;;  %v7421_v22 = vld [vmem:[%s7721_s6] ss:$0 sm:$0xff] }
 0x34e   :  { %v3367_v53 = vpop.f32.mrf.mxu0  ;;  %v5385_v54 = vpop.eup %5384  ;;  %3524 = vmatmul.mubr.bf16.gmra.mxu0 %v3112_v21  ;;  %v3050_v4 = vmul.f32 %v5383_v28, %v7375_v8  ;;  %v5419_v21 = vld [vmem:[#allocation2 + $0xe0] sm:$0xff] }
 0x34f   :  { %3706 = vadd.xlane.f32.xlu1 %v3623_v19  ;;  %v3560_v35 = vsub.f32 %v3366_v33, %v5410_v27  ;;  %v5387_v9 = vpop.eup %5386  ;;  %v3049_v24 = vmul.f32 %v5385_v54, %v7371_v13  ;;  %v5420_v54 = vld [vmem:[#allocation2 + $0xe8] sm:$0xff] }
 0x350   :  { %v3368_v5 = vpop.f32.mrf.mxu0  ;;  %v5389_v46 = vpop.eup %5388  ;;  %v3048_v61 = vmul.f32 %v5387_v9, %v7363_v48 }
 0x351   :  { %v3369_v36 = vadd.f32 %v7223_v56, %v3368_v5  ;;  %v3624_v17 = vmul.f32 %v3560_v35, %v3560_v35  ;;  %v3051_v3 = vmul.f32 %v5389_v46, %v7381_v60 }
 0x352   :  { %v3370_v62 = vpop.f32.mrf.mxu0  ;;  %v3114_v41 = vpack.c.bf16 %v3050_v4, %v3048_v61  ;;  %v5421_v61 = vld [vmem:[#allocation2 + $0xf0] sm:$0xff] }
 0x353   :  { %3708 = vadd.xlane.f32.xlu0 %v3624_v17  ;;  %v3561_v0 = vsub.f32 %v3369_v36, %v5411_v1  ;;  %v3115_v15 = vpack.c.bf16 %v3051_v3, %v3049_v24 }
 0x355   :  { %v3625_v7 = vmul.f32 %v3561_v0, %v3561_v0  ;;  %3531 = vmatprep.mubr.bf16.mxu0 %v3115_v15 }
 0x356   :  { %3532 = vmatmul.mubr.bf16.gmra.mxu0 %v3114_v41 }
 0x357   :  { %3710 = vadd.xlane.f32.xlu1 %v3625_v7 }
 0x358   :  { %v3373_v8 = vpop.f32.mrf.mxu0 }
 0x359   :  { %v3374_v6 = vadd.f32 %v7223_v56, %v3373_v8 }
 0x35a   :  { %v3375_v10 = vpop.f32.mrf.mxu0 }
 0x35b   :  { %v3562_v13 = vsub.f32 %v3374_v6, %v5412_v44  ;;  %v5422_v10 = vld [vmem:[#allocation2 + $0xf8] sm:$0xff] }
 0x35c   :  { %v3376_v45 = vpop.f32.mrf.mxu0 }
 0x35d   :  { %v3377_v60 = vadd.f32 %v7223_v56, %v3376_v45  ;;  %v3626_v30 = vmul.f32 %v3562_v13, %v3562_v13 }
 0x35e   :  { %v3378_v48 = vpop.f32.mrf.mxu0 }
 0x35f   :  { %3712 = vadd.xlane.f32.xlu0 %v3626_v30  ;;  %v3563_v26 = vsub.f32 %v3377_v60, %v5413_v11 }
 0x361   :  { %v3627_v59 = vmul.f32 %v3563_v26, %v3563_v26  ;;  %v5423_v26 = vld [vmem:[#allocation2 + $0x100] sm:$0xff] }
 0x363   :  { %3714 = vadd.xlane.f32.xlu1 %v3627_v59 }
 0x367   :  { %v3381_v2 = vpop.f32.mrf.mxu0 }
 0x368   :  { %v3382_v16 = vadd.f32 %v7223_v56, %v3381_v2 }
 0x369   :  { %v3383_v43 = vpop.f32.mrf.mxu0 }
 0x36a   :  { %v3564_v12 = vsub.f32 %v3382_v16, %v5414_v58 }
 0x36b   :  { %v3384_v18 = vpop.f32.mrf.mxu0 }
 0x36c   :  { %v3385_v34 = vadd.f32 %v7223_v56, %v3384_v18  ;;  %v3628_v37 = vmul.f32 %v3564_v12, %v3564_v12 }
 0x36d   :  { %v3386_v57 = vpop.f32.mrf.mxu0 }
 0x36e   :  { %3716 = vadd.xlane.f32.xlu0 %v3628_v37  ;;  %v3565_v55 = vsub.f32 %v3385_v34, %v5415_v39  ;;  %v5424_v34 = vld [vmem:[#allocation2 + $0x108] sm:$0xff] }
 0x370   :  { %v3629_v23 = vmul.f32 %v3565_v55, %v3565_v55 }
 0x372   :  { %3718 = vadd.xlane.f32.xlu1 %v3629_v23 }
 0x376   :  { %v3389_v49 = vpop.f32.mrf.mxu0 }
 0x377   :  { %v3390_v14 = vadd.f32 %v7223_v56, %v3389_v49 }
 0x378   :  { %v3391_v40 = vpop.f32.mrf.mxu0 }
 0x379   :  { %v3566_v25 = vsub.f32 %v3390_v14, %v5416_v63  ;;  %v5425_v40 = vld [vmem:[#allocation2 + $0x110] sm:$0xff] }
 0x37a   :  { %v3392_v32 = vpop.f32.mrf.mxu0 }
 0x37b   :  { %v3393_v50 = vadd.f32 %v7223_v56, %v3392_v32  ;;  %v3630_v38 = vmul.f32 %v3566_v25, %v3566_v25 }
 0x37c   :  { %v3394_v31 = vpop.f32.mrf.mxu0 }
 0x37d   :  { %3720 = vadd.xlane.f32.xlu0 %v3630_v38  ;;  %v3567_v20 = vsub.f32 %v3393_v50, %v5417_v29 }
 0x37f   :  { %v3631_v47 = vmul.f32 %v3567_v20, %v3567_v20  ;;  %v5426_v20 = vld [vmem:[#allocation2 + $0x118] sm:$0xff] }
 0x381   :  { %3722 = vadd.xlane.f32.xlu1 %v3631_v47 }
 0x387   :  { %v3397_v51 = vpop.f32.mrf.mxu0 }
 0x388   :  { %v3398_v52 = vadd.f32 %v7421_v22, %v3397_v51 }
 0x389   :  { %v3399_v42 = vpop.f32.mrf.mxu0 }
 0x38a   :  { %v3568_v33 = vsub.f32 %v3398_v52, %v5419_v21 }
 0x38b   :  { %v3400_v19 = vpop.f32.mrf.mxu0 }
 0x38c   :  { %v3401_v56 = vadd.f32 %v7421_v22, %v3400_v19  ;;  %v3632_v28 = vmul.f32 %v3568_v33, %v3568_v33 }
 0x38d   :  { %v3402_v53 = vpop.f32.mrf.mxu0 }
 0x38e   :  { %3724 = vadd.xlane.f32.xlu0 %v3632_v28  ;;  %v3569_v27 = vsub.f32 %v3401_v56, %v5420_v54  ;;  %v3669_v35 = vpop.xlane.xlu0 %3668  ;;  %v5427_v56 = vld [vmem:[#allocation2 + $0x120] sm:$0xff] }
 0x38f   :  { %v3796_v9 = vmul.f32 50.0, %v3669_v35 }
 0x390   :  { %v3633_v5 = vmul.f32 %v3569_v27, %v3569_v27 }
 0x391   :  { %3861 = vst.msk [vmem:[%s7722_s7] sm:$0xff] %vm3860_vm0, %v3796_v9 }
 0x392   :  { %3726 = vadd.xlane.f32.xlu1 %v3633_v5  ;;  %v3671_v46 = vpop.xlane.xlu0 %3670 }
 0x393   :  { %v3797_v4 = vmul.f32 50.0, %v3671_v46  ;;  %v5428_v46 = vld [vmem:[#allocation2 + $0x128] sm:$0xff] }
 0x395   :  { %3862 = vst.msk [vmem:[%s7722_s7 + $0x8] sm:$0xff] %vm3860_vm0, %v3797_v4  ;;  %v3673_v17 = vpop.xlane.xlu1 %3672 }
 0x396   :  { %v3405_v36 = vpop.f32.mrf.mxu0  ;;  %v3798_v3 = vmul.f32 50.0, %v3673_v17 }
 0x397   :  { %v3406_v24 = vadd.f32 %v7421_v22, %v3405_v36 }
 0x398   :  { %v3407_v62 = vpop.f32.mrf.mxu0  ;;  %3863 = vst.msk [vmem:[%s7722_s7 + $0x10] sm:$0xff] %vm3860_vm0, %v3798_v3 }
 0x399   :  { %v3570_v1 = vsub.f32 %v3406_v24, %v5421_v61 }
 0x39a   :  { %v3408_v0 = vpop.f32.mrf.mxu0  ;;  %v3675_v15 = vpop.xlane.xlu1 %3674 }
 0x39b   :  { %v3409_v41 = vadd.f32 %v7421_v22, %v3408_v0  ;;  %v3634_v7 = vmul.f32 %v3570_v1, %v3570_v1  ;;  %v3799_v8 = vmul.f32 50.0, %v3675_v15  ;;  %v5429_v1 = vld [vmem:[#allocation2 + $0x130] sm:$0xff] }
 0x39c   :  { %v3410_v6 = vpop.f32.mrf.mxu0  ;;  %v3677_v13 = vpop.xlane.xlu0 %3676 }
 0x39d   :  { %3728 = vadd.xlane.f32.xlu0 %v3634_v7  ;;  %v3571_v44 = vsub.f32 %v3409_v41, %v5422_v10  ;;  %3864 = vst.msk [vmem:[%s7722_s7 + $0x18] sm:$0xff] %vm3860_vm0, %v3799_v8  ;;  %v3800_v60 = vmul.f32 50.0, %v3677_v13  ;;  %v5430_v13 = vld [vmem:[#allocation2 + $0x138] sm:$0xff] }
 0x39e   :  { %v3413_v45 = vpop.f32.mrf.mxu0 }
 0x39f   :  { %v3414_v30 = vadd.f32 %v7421_v22, %v3413_v45  ;;  %v3635_v48 = vmul.f32 %v3571_v44, %v3571_v44  ;;  %3865 = vst.msk [vmem:[%s7722_s7 + $0x20] sm:$0xff] %vm3860_vm0, %v3800_v60 }
 0x3a0   :  { %v3415_v11 = vpop.f32.mrf.mxu0 }
 0x3a1   :  { %3730 = vadd.xlane.f32.xlu1 %v3635_v48  ;;  %v3572_v59 = vsub.f32 %v3414_v30, %v5423_v26 }
 0x3a2   :  { %v3416_v2 = vpop.f32.mrf.mxu0  ;;  %v3679_v16 = vpop.xlane.xlu1 %3678 }
 0x3a3   :  { %v3417_v43 = vadd.f32 %v7421_v22, %v3416_v2  ;;  %v3636_v58 = vmul.f32 %v3572_v59, %v3572_v59  ;;  %v3801_v12 = vmul.f32 50.0, %v3679_v16  ;;  %v5431_v2 = vld [vmem:[#allocation2 + $0x140] sm:$0xff] }
 0x3a4   :  { %v3418_v18 = vpop.f32.mrf.mxu0 }
 0x3a5   :  { %3732 = vadd.xlane.f32.xlu0 %v3636_v58  ;;  %v3573_v37 = vsub.f32 %v3417_v43, %v5424_v34  ;;  %3866 = vst.msk [vmem:[%s7722_s7 + $0x28] sm:$0xff] %vm3860_vm0, %v3801_v12 }
 0x3a6   :  { %v3421_v57 = vpop.f32.mrf.mxu0  ;;  %v3681_v39 = vpop.xlane.xlu0 %3680 }
 0x3a7   :  { %v3422_v55 = vadd.f32 %v7421_v22, %v3421_v57  ;;  %v3637_v23 = vmul.f32 %v3573_v37, %v3573_v37  ;;  %v3802_v49 = vmul.f32 50.0, %v3681_v39  ;;  %v5432_v39 = vld [vmem:[#allocation2 + $0x148] sm:$0xff] }
 0x3a8   :  { %v3423_v14 = vpop.f32.mrf.mxu0 }
 0x3a9   :  { %3734 = vadd.xlane.f32.xlu1 %v3637_v23  ;;  %v3574_v63 = vsub.f32 %v3422_v55, %v5425_v40  ;;  %3867 = vst.msk [vmem:[%s7722_s7 + $0x30] sm:$0xff] %vm3860_vm0, %v3802_v49 }
 0x3aa   :  { %v3424_v25 = vpop.f32.mrf.mxu0  ;;  %v3683_v32 = vpop.xlane.xlu1 %3682 }
 0x3ab   :  { %v3425_v50 = vadd.f32 %v7421_v22, %v3424_v25  ;;  %v3638_v38 = vmul.f32 %v3574_v63, %v3574_v63  ;;  %v3803_v31 = vmul.f32 50.0, %v3683_v32  ;;  %v5433_v32 = vld [vmem:[#allocation2 + $0x150] sm:$0xff] }
 0x3ac   :  { %v3426_v29 = vpop.f32.mrf.mxu0 }
 0x3ad   :  { %3736 = vadd.xlane.f32.xlu0 %v3638_v38  ;;  %v3575_v47 = vsub.f32 %v3425_v50, %v5426_v20  ;;  %3868 = vst.msk [vmem:[%s7722_s7 + $0x38] sm:$0xff] %vm3860_vm0, %v3803_v31 }
 0x3ae   :  { %v3429_v51 = vpop.f32.mrf.mxu0  ;;  %v3685_v52 = vpop.xlane.xlu0 %3684 }
 0x3af   :  { %v3430_v42 = vadd.f32 %v7421_v22, %v3429_v51  ;;  %v3639_v21 = vmul.f32 %v3575_v47, %v3575_v47  ;;  %v3804_v33 = vmul.f32 50.0, %v3685_v52  ;;  %v5434_v52 = vld [vmem:[#allocation2 + $0x158] sm:$0xff] }
 0x3b0   :  { %v3431_v19 = vpop.f32.mrf.mxu0 }
 0x3b1   :  { %3738 = vadd.xlane.f32.xlu1 %v3639_v21  ;;  %v3576_v28 = vsub.f32 %v3430_v42, %v5427_v56  ;;  %3869 = vst.msk [vmem:[%s7722_s7 + $0x40] sm:$0xff] %vm3860_vm0, %v3804_v33 }
 0x3b2   :  { %v3432_v53 = vpop.f32.mrf.mxu0  ;;  %v3687_v54 = vpop.xlane.xlu1 %3686 }
 0x3b3   :  { %v3433_v27 = vadd.f32 %v7421_v22, %v3432_v53  ;;  %v3640_v35 = vmul.f32 %v3576_v28, %v3576_v28  ;;  %v3805_v9 = vmul.f32 50.0, %v3687_v54  ;;  %v5435_v54 = vld [vmem:[#allocation2 + $0x160] sm:$0xff] }
 0x3b4   :  { %v3434_v5 = vpop.f32.mrf.mxu0 }
 0x3b5   :  { %3740 = vadd.xlane.f32.xlu0 %v3640_v35  ;;  %v3577_v4 = vsub.f32 %v3433_v27, %v5428_v46  ;;  %3870 = vst.msk [vmem:[%s7722_s7 + $0x48] sm:$0xff] %vm3860_vm0, %v3805_v9  ;;  %v3689_v17 = vpop.xlane.xlu0 %3688 }
 0x3b6   :  { %v3437_v36 = vpop.f32.mrf.mxu0  ;;  %v3806_v62 = vmul.f32 50.0, %v3689_v17  ;;  %v5436_v17 = vld [vmem:[#allocation2 + $0x168] sm:$0xff] }
 0x3b7   :  { %v3438_v24 = vadd.f32 %v7421_v22, %v3437_v36  ;;  %v3641_v3 = vmul.f32 %v3577_v4, %v3577_v4 }
 0x3b8   :  { %v3439_v61 = vpop.f32.mrf.mxu0  ;;  %3871 = vst.msk [vmem:[%s7722_s7 + $0x50] sm:$0xff] %vm3860_vm0, %v3806_v62  ;;  %v3691_v41 = vpop.xlane.xlu1 %3690 }
 0x3b9   :  { %3742 = vadd.xlane.f32.xlu1 %v3641_v3  ;;  %v3578_v0 = vsub.f32 %v3438_v24, %v5429_v1  ;;  %v3807_v6 = vmul.f32 50.0, %v3691_v41  ;;  %v5437_v41 = vld [vmem:[#allocation2 + $0x170] sm:$0xff] }
 0x3ba   :  { %v3440_v15 = vpop.f32.mrf.mxu0 }
 0x3bb   :  { %v3441_v7 = vadd.f32 %v7421_v22, %v3440_v15  ;;  %v3642_v8 = vmul.f32 %v3578_v0, %v3578_v0  ;;  %3872 = vst.msk [vmem:[%s7722_s7 + $0x58] sm:$0xff] %vm3860_vm0, %v3807_v6 }
 0x3bc   :  { %v3442_v10 = vpop.f32.mrf.mxu0  ;;  %v3693_v44 = vpop.xlane.xlu0 %3692 }
 0x3bd   :  { %3744 = vadd.xlane.f32.xlu0 %v3642_v8  ;;  %v3579_v45 = vsub.f32 %v3441_v7, %v5430_v13  ;;  %v3808_v60 = vmul.f32 50.0, %v3693_v44 }
 0x3be   :  { %v3445_v30 = vpop.f32.mrf.mxu0 }
 0x3bf   :  { %v3446_v48 = vadd.f32 %v7421_v22, %v3445_v30  ;;  %v3643_v11 = vmul.f32 %v3579_v45, %v3579_v45  ;;  %3873 = vst.msk [vmem:[%s7722_s7 + $0x60] sm:$0xff] %vm3860_vm0, %v3808_v60  ;;  %v5438_v60 = vld [vmem:[#allocation2 + $0x178] sm:$0xff] }
 0x3c0   :  { %v3447_v26 = vpop.f32.mrf.mxu0  ;;  %v3695_v59 = vpop.xlane.xlu1 %3694 }
 0x3c1   :  { %3746 = vadd.xlane.f32.xlu1 %v3643_v11  ;;  %v3580_v16 = vsub.f32 %v3446_v48, %v5431_v2  ;;  %v3809_v43 = vmul.f32 50.0, %v3695_v59 }
 0x3c2   :  { %v3448_v58 = vpop.f32.mrf.mxu0 }
 0x3c3   :  { %v3449_v12 = vadd.f32 %v7421_v22, %v3448_v58  ;;  %v3644_v18 = vmul.f32 %v3580_v16, %v3580_v16  ;;  %3874 = vst.msk [vmem:[%s7722_s7 + $0x68] sm:$0xff] %vm3860_vm0, %v3809_v43  ;;  %v5439_v43 = vld [vmem:[#allocation2 + $0x180] sm:$0xff] }
 0x3c4   :  { %v3697_v34 = vpop.xlane.xlu0 %3696  ;;  %v3450_v37 = vpop.f32.mrf.mxu0 }
 0x3c5   :  { %v3810_v57 = vmul.f32 50.0, %v3697_v34  ;;  %3748 = vadd.xlane.f32.xlu0 %v3644_v18  ;;  %v3581_v55 = vsub.f32 %v3449_v12, %v5432_v39 }
 0x3c6   :  { %v3453_v23 = vpop.f32.mrf.mxu0 }
 0x3c7   :  { %3875 = vst.msk [vmem:[%s7722_s7 + $0x70] sm:$0xff] %vm3860_vm0, %v3810_v57  ;;  %v3454_v49 = vadd.f32 %v7421_v22, %v3453_v23  ;;  %v3645_v14 = vmul.f32 %v3581_v55, %v3581_v55  ;;  %v5440_v57 = vld [vmem:[#allocation2 + $0x188] sm:$0xff] }
 0x3c8   :  { %v3699_v40 = vpop.xlane.xlu1 %3698  ;;  %v3455_v63 = vpop.f32.mrf.mxu0 }
 0x3c9   :  { %v3811_v25 = vmul.f32 50.0, %v3699_v40  ;;  %3750 = vadd.xlane.f32.xlu1 %v3645_v14  ;;  %v3582_v50 = vsub.f32 %v3454_v49, %v5433_v32  ;;  %v5441_v63 = vld [vmem:[#allocation2 + $0x190] sm:$0xff] }
 0x3ca   :  { %v3456_v38 = vpop.f32.mrf.mxu0 }
 0x3cb   :  { %3876 = vst.msk [vmem:[%s7722_s7 + $0x78] sm:$0xff] %vm3860_vm0, %v3811_v25  ;;  %v3457_v31 = vadd.f32 %v7421_v22, %v3456_v38  ;;  %v3646_v29 = vmul.f32 %v3582_v50, %v3582_v50 }
 0x3cc   :  { %v3701_v20 = vpop.xlane.xlu0 %3700  ;;  %v3458_v47 = vpop.f32.mrf.mxu0 }
 0x3cd   :  { %v3812_v51 = vmul.f32 50.0, %v3701_v20  ;;  %3752 = vadd.xlane.f32.xlu0 %v3646_v29  ;;  %v3583_v42 = vsub.f32 %v3457_v31, %v5434_v52  ;;  %v5442_v47 = vld [vmem:[#allocation2 + $0x198] sm:$0xff] }
 0x3ce   :  { %v3461_v21 = vpop.f32.mrf.mxu0 }
 0x3cf   :  { %3877 = vst.msk [vmem:[%s7722_s7 + $0x80] sm:$0xff] %vm3860_vm0, %v3812_v51  ;;  %v3462_v33 = vadd.f32 %v7421_v22, %v3461_v21  ;;  %v3647_v19 = vmul.f32 %v3583_v42, %v3583_v42 }
 0x3d0   :  { %v3703_v56 = vpop.xlane.xlu1 %3702  ;;  %v3463_v28 = vpop.f32.mrf.mxu0 }
 0x3d1   :  { %v3813_v53 = vmul.f32 50.0, %v3703_v56  ;;  %3754 = vadd.xlane.f32.xlu1 %v3647_v19  ;;  %v3584_v27 = vsub.f32 %v3462_v33, %v5435_v54  ;;  %v5443_v56 = vld [vmem:[#allocation2 + $0x1a0] sm:$0xff] }
 0x3d2   :  { %v3464_v35 = vpop.f32.mrf.mxu0 }
 0x3d3   :  { %3878 = vst.msk [vmem:[%s7722_s7 + $0x88] sm:$0xff] %vm3860_vm0, %v3813_v53  ;;  %v3465_v9 = vadd.f32 %v7421_v22, %v3464_v35  ;;  %v3648_v5 = vmul.f32 %v3584_v27, %v3584_v27 }
 0x3d4   :  { %v3705_v46 = vpop.xlane.xlu0 %3704  ;;  %v3466_v4 = vpop.f32.mrf.mxu0 }
 0x3d5   :  { %v3814_v36 = vmul.f32 50.0, %v3705_v46  ;;  %3756 = vadd.xlane.f32.xlu0 %v3648_v5  ;;  %v3585_v24 = vsub.f32 %v3465_v9, %v5436_v17  ;;  %v5444_v9 = vld [vmem:[#allocation2 + $0x1a8] sm:$0xff] }
 0x3d6   :  { %v3469_v3 = vpop.f32.mrf.mxu0 }
 0x3d7   :  { %3879 = vst.msk [vmem:[%s7722_s7 + $0x90] sm:$0xff] %vm3860_vm0, %v3814_v36  ;;  %v3470_v62 = vadd.f32 %v7421_v22, %v3469_v3  ;;  %v3649_v61 = vmul.f32 %v3585_v24, %v3585_v24 }
 0x3d8   :  { %v3707_v1 = vpop.xlane.xlu1 %3706  ;;  %v3471_v0 = vpop.f32.mrf.mxu0 }
 0x3d9   :  { %v3815_v15 = vmul.f32 50.0, %v3707_v1  ;;  %3758 = vadd.xlane.f32.xlu1 %v3649_v61  ;;  %v3586_v7 = vsub.f32 %v3470_v62, %v5437_v41  ;;  %v5445_v62 = vld [vmem:[#allocation2 + $0x1b0] sm:$0xff] }
 0x3da   :  { %v3472_v8 = vpop.f32.mrf.mxu0 }
 0x3db   :  { %3880 = vst.msk [vmem:[%s7722_s7 + $0x98] sm:$0xff] %vm3860_vm0, %v3815_v15  ;;  %v3473_v6 = vadd.f32 %v7421_v22, %v3472_v8  ;;  %v3650_v10 = vmul.f32 %v3586_v7, %v3586_v7 }
 0x3dc   :  { %v3709_v44 = vpop.xlane.xlu0 %3708  ;;  %v3474_v13 = vpop.f32.mrf.mxu0 }
 0x3dd   :  { %v3816_v45 = vmul.f32 50.0, %v3709_v44  ;;  %3760 = vadd.xlane.f32.xlu0 %v3650_v10  ;;  %v3587_v30 = vsub.f32 %v3473_v6, %v5438_v60  ;;  %v5446_v6 = vld [vmem:[#allocation2 + $0x1b8] sm:$0xff] }
 0x3de   :  { %v3477_v48 = vpop.f32.mrf.mxu0 }
 0x3df   :  { %3881 = vst.msk [vmem:[%s7722_s7 + $0xa0] sm:$0xff] %vm3860_vm0, %v3816_v45  ;;  %v3478_v11 = vadd.f32 %v7421_v22, %v3477_v48  ;;  %v3651_v26 = vmul.f32 %v3587_v30, %v3587_v30  ;;  %v5447_v30 = vld [vmem:[#allocation2 + $0x1c0] sm:$0xff] }
 0x3e0   :  { %v3711_v59 = vpop.xlane.xlu1 %3710  ;;  %v3479_v2 = vpop.f32.mrf.mxu0 }
 0x3e1   :  { %v3817_v16 = vmul.f32 50.0, %v3711_v59  ;;  %3762 = vadd.xlane.f32.xlu1 %v3651_v26  ;;  %v3588_v58 = vsub.f32 %v3478_v11, %v5439_v43 }
 0x3e2   :  { %v3480_v12 = vpop.f32.mrf.mxu0 }
 0x3e3   :  { %3882 = vst.msk [vmem:[%s7722_s7 + $0xa8] sm:$0xff] %vm3860_vm0, %v3817_v16  ;;  %v3481_v18 = vadd.f32 %v7421_v22, %v3480_v12  ;;  %v3652_v34 = vmul.f32 %v3588_v58, %v3588_v58  ;;  %v5448_v16 = vld [vmem:[#allocation2 + $0x1c8] sm:$0xff] }
 0x3e4   :  { %v3482_v37 = vpop.f32.mrf.mxu0 }
 0x3e5   :  { %3764 = vadd.xlane.f32.xlu0 %v3652_v34  ;;  %v3589_v39 = vsub.f32 %v3481_v18, %v5440_v57 }
 0x3e6   :  { %v3485_v55 = vpop.f32.mrf.mxu0 }
 0x3e7   :  { %v3486_v23 = vadd.f32 %v7421_v22, %v3485_v55  ;;  %v3653_v49 = vmul.f32 %v3589_v39, %v3589_v39  ;;  %v5449_v39 = vld [vmem:[#allocation2 + $0x1d0] sm:$0xff] }
 0x3e8   :  { %v3487_v14 = vpop.f32.mrf.mxu0  ;;  %v3713_v40 = vpop.xlane.xlu0 %3712 }
 0x3e9   :  { %3766 = vadd.xlane.f32.xlu1 %v3653_v49  ;;  %v3590_v25 = vsub.f32 %v3486_v23, %v5441_v63  ;;  %v3818_v32 = vmul.f32 50.0, %v3713_v40 }
 0x3ea   :  { %v3488_v50 = vpop.f32.mrf.mxu0 }
 0x3eb   :  { %v3489_v38 = vadd.f32 %v7421_v22, %v3488_v50  ;;  %v3654_v31 = vmul.f32 %v3590_v25, %v3590_v25  ;;  %3883 = vst.msk [vmem:[%s7722_s7 + $0xb0] sm:$0xff] %vm3860_vm0, %v3818_v32  ;;  %v5450_v32 = vld [vmem:[#allocation2 + $0x1d8] sm:$0xff] }
 0x3ec   :  { %v3490_v29 = vpop.f32.mrf.mxu0  ;;  %v3715_v20 = vpop.xlane.xlu1 %3714 }
 0x3ed   :  { %3768 = vadd.xlane.f32.xlu0 %v3654_v31  ;;  %v3591_v51 = vsub.f32 %v3489_v38, %v5442_v47  ;;  %v3819_v52 = vmul.f32 50.0, %v3715_v20  ;;  %v5451_v47 = vld [vmem:[#allocation2 + $0x1e0] sm:$0xff] }
 0x3ee   :  { %v3493_v42 = vpop.f32.mrf.mxu0 }
 0x3ef   :  { %v3494_v21 = vadd.f32 %v7421_v22, %v3493_v42  ;;  %v3655_v33 = vmul.f32 %v3591_v51, %v3591_v51  ;;  %3884 = vst.msk [vmem:[%s7722_s7 + $0xb8] sm:$0xff] %vm3860_vm0, %v3819_v52 }
 0x3f0   :  { %v3495_v19 = vpop.f32.mrf.mxu0 }
 0x3f1   :  { %3770 = vadd.xlane.f32.xlu1 %v3655_v33  ;;  %v3592_v28 = vsub.f32 %v3494_v21, %v5443_v56  ;;  %v5452_v19 = vld [vmem:[#allocation2 + $0x1e8] sm:$0xff] }
 0x3f2   :  { %v3496_v53 = vpop.f32.mrf.mxu0 }
 0x3f3   :  { %v3497_v54 = vadd.f32 %v7421_v22, %v3496_v53  ;;  %v3656_v27 = vmul.f32 %v3592_v28, %v3592_v28 }
 0x3f4   :  { %v3498_v35 = vpop.f32.mrf.mxu0 }
 0x3f5   :  { %3772 = vadd.xlane.f32.xlu0 %v3656_v27  ;;  %v3593_v5 = vsub.f32 %v3497_v54, %v5444_v9 }
 0x3f6   :  { %v3501_v46 = vpop.f32.mrf.mxu0 }
 0x3f7   :  { %v3502_v4 = vadd.f32 %v7421_v22, %v3501_v46  ;;  %v3657_v36 = vmul.f32 %v3593_v5, %v3593_v5  ;;  %v3717_v17 = vpop.xlane.xlu0 %3716  ;;  %v5453_v5 = vld [vmem:[#allocation2 + $0x1f0] sm:$0xff] }
 0x3f8   :  { %v3503_v24 = vpop.f32.mrf.mxu0  ;;  %v3820_v3 = vmul.f32 50.0, %v3717_v17 }
 0x3f9   :  { %3774 = vadd.xlane.f32.xlu1 %v3657_v36  ;;  %v3594_v61 = vsub.f32 %v3502_v4, %v5445_v62 }
 0x3fa   :  { %v3504_v1 = vpop.f32.mrf.mxu0  ;;  %3885 = vst.msk [vmem:[%s7722_s7 + $0xc0] sm:$0xff] %vm3860_vm0, %v3820_v3 }
 0x3fb   :  { %v3505_v0 = vadd.f32 %v7421_v22, %v3504_v1  ;;  %v3658_v15 = vmul.f32 %v3594_v61, %v3594_v61  ;;  %v3719_v41 = vpop.xlane.xlu1 %3718  ;;  %v5454_v61 = vld [vmem:[#allocation2 + $0x1f8] sm:$0xff] }
 0x3fc   :  { %v3506_v7 = vpop.f32.mrf.mxu0  ;;  %v3821_v8 = vmul.f32 50.0, %v3719_v41 }
 0x3fd   :  { %3776 = vadd.xlane.f32.xlu0 %v3658_v15  ;;  %v3595_v10 = vsub.f32 %v3505_v0, %v5446_v6 }
 0x3fe   :  { %v3509_v44 = vpop.f32.mrf.mxu0  ;;  %3886 = vst.msk [vmem:[%s7722_s7 + $0xc8] sm:$0xff] %vm3860_vm0, %v3821_v8 }
 0x3ff   :  { %v3510_v13 = vadd.f32 %v7421_v22, %v3509_v44  ;;  %v3659_v45 = vmul.f32 %v3595_v10, %v3595_v10 }
 0x400   :  { %v3511_v60 = vpop.f32.mrf.mxu0 }
 0x401   :  { %3778 = vadd.xlane.f32.xlu1 %v3659_v45  ;;  %v3596_v48 = vsub.f32 %v3510_v13, %v5447_v30 }
 0x402   :  { %v3512_v11 = vpop.f32.mrf.mxu0 }
 0x403   :  { %v3513_v26 = vadd.f32 %v7421_v22, %v3512_v11  ;;  %v3660_v59 = vmul.f32 %v3596_v48, %v3596_v48 }
 0x404   :  { %v3514_v2 = vpop.f32.mrf.mxu0 }
 0x405   :  { %3780 = vadd.xlane.f32.xlu0 %v3660_v59  ;;  %v3597_v43 = vsub.f32 %v3513_v26, %v5448_v16 }
 0x406   :  { %v3517_v58 = vpop.f32.mrf.mxu0  ;;  %v3721_v12 = vpop.xlane.xlu0 %3720 }
 0x407   :  { %v3518_v18 = vadd.f32 %v7421_v22, %v3517_v58  ;;  %v3661_v34 = vmul.f32 %v3597_v43, %v3597_v43  ;;  %v3822_v37 = vmul.f32 50.0, %v3721_v12 }
 0x408   :  { %v3519_v57 = vpop.f32.mrf.mxu0 }
 0x409   :  { %3782 = vadd.xlane.f32.xlu1 %v3661_v34  ;;  %v3598_v55 = vsub.f32 %v3518_v18, %v5449_v39  ;;  %3887 = vst.msk [vmem:[%s7722_s7 + $0xd0] sm:$0xff] %vm3860_vm0, %v3822_v37 }
 0x40a   :  { %v3520_v23 = vpop.f32.mrf.mxu0  ;;  %v3723_v49 = vpop.xlane.xlu1 %3722 }
 0x40b   :  { %v3521_v14 = vadd.f32 %v7421_v22, %v3520_v23  ;;  %v3662_v40 = vmul.f32 %v3598_v55, %v3598_v55  ;;  %v3823_v63 = vmul.f32 50.0, %v3723_v49 }
 0x40c   :  { %v3522_v25 = vpop.f32.mrf.mxu0 }
 0x40d   :  { %3784 = vadd.xlane.f32.xlu0 %v3662_v40  ;;  %v3599_v50 = vsub.f32 %v3521_v14, %v5450_v32  ;;  %3888 = vst.msk [vmem:[%s7722_s7 + $0xd8] sm:$0xff] %vm3860_vm0, %v3823_v63 }
 0x40e   :  { %v3525_v38 = vpop.f32.mrf.mxu0 }
 0x40f   :  { %v3526_v31 = vadd.f32 %v7421_v22, %v3525_v38  ;;  %v3663_v29 = vmul.f32 %v3599_v50, %v3599_v50 }
 0x410   :  { %v3527_v20 = vpop.f32.mrf.mxu0 }
 0x411   :  { %3786 = vadd.xlane.f32.xlu1 %v3663_v29  ;;  %v3600_v51 = vsub.f32 %v3526_v31, %v5451_v47 }
 0x412   :  { %v3528_v52 = vpop.f32.mrf.mxu0 }
 0x413   :  { %v3529_v42 = vadd.f32 %v7421_v22, %v3528_v52  ;;  %v3664_v21 = vmul.f32 %v3600_v51, %v3600_v51 }
 0x414   :  { %v3530_v33 = vpop.f32.mrf.mxu0 }
 0x415   :  { %3788 = vadd.xlane.f32.xlu0 %v3664_v21  ;;  %v3601_v56 = vsub.f32 %v3529_v42, %v5452_v19 }
 0x416   :  { %v3533_v28 = vpop.f32.mrf.mxu0 }
 0x417   :  { %v3534_v53 = vadd.f32 %v7421_v22, %v3533_v28  ;;  %v3665_v54 = vmul.f32 %v3601_v56, %v3601_v56  ;;  %v3725_v27 = vpop.xlane.xlu0 %3724 }
 0x418   :  { %v3535_v35 = vpop.f32.mrf.mxu0  ;;  %v3824_v9 = vmul.f32 50.0, %v3725_v27 }
 0x419   :  { %3790 = vadd.xlane.f32.xlu1 %v3665_v54  ;;  %v3602_v46 = vsub.f32 %v3534_v53, %v5453_v5 }
 0x41a   :  { %v3536_v4 = vpop.f32.mrf.mxu0  ;;  %3889 = vst.msk [vmem:[%s7722_s7 + $0xe0] sm:$0xff] %vm3860_vm0, %v3824_v9 }
 0x41b   :  { %v3537_v36 = vadd.f32 %v7421_v22, %v3536_v4  ;;  %v3666_v17 = vmul.f32 %v3602_v46, %v3602_v46  ;;  %v3727_v24 = vpop.xlane.xlu1 %3726 }
 0x41c   :  { %v3538_v3 = vpop.f32.mrf.mxu0  ;;  %v3825_v62 = vmul.f32 50.0, %v3727_v24 }
 0x41d   :  { %3792 = vadd.xlane.f32.xlu0 %v3666_v17  ;;  %v3603_v1 = vsub.f32 %v3537_v36, %v5454_v61 }
 0x41e   :  { %3890 = vst.msk [vmem:[%s7722_s7 + $0xe8] sm:$0xff] %vm3860_vm0, %v3825_v62 }
 0x41f   :  { %v3667_v0 = vmul.f32 %v3603_v1, %v3603_v1 }
 0x421   :  { %3794 = vadd.xlane.f32.xlu1 %v3667_v0 }
 0x426   :  { %v3729_v15 = vpop.xlane.xlu0 %3728 }
 0x427   :  { %v3826_v41 = vmul.f32 50.0, %v3729_v15 }
 0x429   :  { %3891 = vst.msk [vmem:[%s7722_s7 + $0xf0] sm:$0xff] %vm3860_vm0, %v3826_v41 }
 0x42a   :  { %v3731_v22 = vpop.xlane.xlu1 %3730 }
 0x42b   :  { %v3827_v7 = vmul.f32 50.0, %v3731_v22 }
 0x42d   :  { %3892 = vst.msk [vmem:[%s7722_s7 + $0xf8] sm:$0xff] %vm3860_vm0, %v3827_v7 }
 0x42e   :  { %v3733_v8 = vpop.xlane.xlu0 %3732 }
 0x42f   :  { %v3828_v6 = vmul.f32 50.0, %v3733_v8 }
 0x431   :  { %3893 = vst.msk [vmem:[%s7722_s7 + $0x100] sm:$0xff] %vm3860_vm0, %v3828_v6 }
 0x432   :  { %v3735_v10 = vpop.xlane.xlu1 %3734 }
 0x433   :  { %v3829_v44 = vmul.f32 50.0, %v3735_v10 }
 0x435   :  { %3894 = vst.msk [vmem:[%s7722_s7 + $0x108] sm:$0xff] %vm3860_vm0, %v3829_v44 }
 0x436   :  { %v3737_v13 = vpop.xlane.xlu0 %3736 }
 0x437   :  { %v3830_v45 = vmul.f32 50.0, %v3737_v13 }
 0x439   :  { %3895 = vst.msk [vmem:[%s7722_s7 + $0x110] sm:$0xff] %vm3860_vm0, %v3830_v45 }
 0x43a   :  { %v3739_v60 = vpop.xlane.xlu1 %3738 }
 0x43b   :  { %v3831_v30 = vmul.f32 50.0, %v3739_v60 }
 0x43d   :  { %3896 = vst.msk [vmem:[%s7722_s7 + $0x118] sm:$0xff] %vm3860_vm0, %v3831_v30 }
 0x43e   :  { %v3741_v48 = vpop.xlane.xlu0 %3740 }
 0x43f   :  { %v3832_v11 = vmul.f32 50.0, %v3741_v48 }
 0x441   :  { %3897 = vst.msk [vmem:[%s7722_s7 + $0x120] sm:$0xff] %vm3860_vm0, %v3832_v11 }
 0x442   :  { %v3743_v26 = vpop.xlane.xlu1 %3742 }
 0x443   :  { %v3833_v59 = vmul.f32 50.0, %v3743_v26 }
 0x445   :  { %3898 = vst.msk [vmem:[%s7722_s7 + $0x128] sm:$0xff] %vm3860_vm0, %v3833_v59 }
 0x446   :  { %v3745_v2 = vpop.xlane.xlu0 %3744 }
 0x447   :  { %v3834_v16 = vmul.f32 50.0, %v3745_v2 }
 0x449   :  { %3899 = vst.msk [vmem:[%s7722_s7 + $0x130] sm:$0xff] %vm3860_vm0, %v3834_v16 }
 0x44a   :  { %v3747_v43 = vpop.xlane.xlu1 %3746 }
 0x44b   :  { %v3835_v58 = vmul.f32 50.0, %v3747_v43 }
 0x44d   :  { %3900 = vst.msk [vmem:[%s7722_s7 + $0x138] sm:$0xff] %vm3860_vm0, %v3835_v58 }
 0x44e   :  { %v3749_v12 = vpop.xlane.xlu0 %3748 }
 0x44f   :  { %v3836_v18 = vmul.f32 50.0, %v3749_v12 }
 0x451   :  { %3901 = vst.msk [vmem:[%s7722_s7 + $0x140] sm:$0xff] %vm3860_vm0, %v3836_v18 }
 0x452   :  { %v3751_v34 = vpop.xlane.xlu1 %3750 }
 0x453   :  { %v3837_v37 = vmul.f32 50.0, %v3751_v34 }
 0x455   :  { %3902 = vst.msk [vmem:[%s7722_s7 + $0x148] sm:$0xff] %vm3860_vm0, %v3837_v37 }
 0x456   :  { %v3753_v57 = vpop.xlane.xlu0 %3752 }
 0x457   :  { %v3838_v39 = vmul.f32 50.0, %v3753_v57 }
 0x459   :  { %3903 = vst.msk [vmem:[%s7722_s7 + $0x150] sm:$0xff] %vm3860_vm0, %v3838_v39 }
 0x45a   :  { %v3755_v55 = vpop.xlane.xlu1 %3754 }
 0x45b   :  { %v3839_v23 = vmul.f32 50.0, %v3755_v55 }
 0x45d   :  { %3904 = vst.msk [vmem:[%s7722_s7 + $0x158] sm:$0xff] %vm3860_vm0, %v3839_v23 }
 0x45e   :  { %v3757_v49 = vpop.xlane.xlu0 %3756 }
 0x45f   :  { %v3840_v14 = vmul.f32 50.0, %v3757_v49 }
 0x461   :  { %3905 = vst.msk [vmem:[%s7722_s7 + $0x160] sm:$0xff] %vm3860_vm0, %v3840_v14 }
 0x462   :  { %v3759_v40 = vpop.xlane.xlu1 %3758 }
 0x463   :  { %v3841_v63 = vmul.f32 50.0, %v3759_v40 }
 0x465   :  { %3906 = vst.msk [vmem:[%s7722_s7 + $0x168] sm:$0xff] %vm3860_vm0, %v3841_v63 }
 0x466   :  { %v3761_v25 = vpop.xlane.xlu0 %3760 }
 0x467   :  { %v3842_v32 = vmul.f32 50.0, %v3761_v25 }
 0x469   :  { %3907 = vst.msk [vmem:[%s7722_s7 + $0x170] sm:$0xff] %vm3860_vm0, %v3842_v32 }
 0x46a   :  { %v3763_v50 = vpop.xlane.xlu1 %3762 }
 0x46b   :  { %v3843_v38 = vmul.f32 50.0, %v3763_v50 }
 0x46d   :  { %3908 = vst.msk [vmem:[%s7722_s7 + $0x178] sm:$0xff] %vm3860_vm0, %v3843_v38 }
 0x46e   :  { %v3765_v31 = vpop.xlane.xlu0 %3764 }
 0x46f   :  { %v3844_v29 = vmul.f32 50.0, %v3765_v31 }
 0x471   :  { %3909 = vst.msk [vmem:[%s7722_s7 + $0x180] sm:$0xff] %vm3860_vm0, %v3844_v29 }
 0x472   :  { %v3767_v20 = vpop.xlane.xlu1 %3766 }
 0x473   :  { %v3845_v47 = vmul.f32 50.0, %v3767_v20 }
 0x475   :  { %3910 = vst.msk [vmem:[%s7722_s7 + $0x188] sm:$0xff] %vm3860_vm0, %v3845_v47 }
 0x476   :  { %v3769_v51 = vpop.xlane.xlu0 %3768 }
 0x477   :  { %v3846_v52 = vmul.f32 50.0, %v3769_v51 }
 0x479   :  { %3911 = vst.msk [vmem:[%s7722_s7 + $0x190] sm:$0xff] %vm3860_vm0, %v3846_v52 }
 0x47a   :  { %v3771_v42 = vpop.xlane.xlu1 %3770 }
 0x47b   :  { %v3847_v21 = vmul.f32 50.0, %v3771_v42 }
 0x47d   :  { %3912 = vst.msk [vmem:[%s7722_s7 + $0x198] sm:$0xff] %vm3860_vm0, %v3847_v21 }
 0x47e   :  { %v3773_v33 = vpop.xlane.xlu0 %3772 }
 0x47f   :  { %v3848_v19 = vmul.f32 50.0, %v3773_v33 }
 0x481   :  { %3913 = vst.msk [vmem:[%s7722_s7 + $0x1a0] sm:$0xff] %vm3860_vm0, %v3848_v19 }
 0x482   :  { %v3775_v56 = vpop.xlane.xlu1 %3774 }
 0x483   :  { %v3849_v28 = vmul.f32 50.0, %v3775_v56 }
 0x485   :  { %3914 = vst.msk [vmem:[%s7722_s7 + $0x1a8] sm:$0xff] %vm3860_vm0, %v3849_v28 }
 0x486   :  { %v3777_v53 = vpop.xlane.xlu0 %3776 }
 0x487   :  { %v3850_v54 = vmul.f32 50.0, %v3777_v53 }
 0x489   :  { %3915 = vst.msk [vmem:[%s7722_s7 + $0x1b0] sm:$0xff] %vm3860_vm0, %v3850_v54 }
 0x48a   :  { %v3779_v27 = vpop.xlane.xlu1 %3778 }
 0x48b   :  { %v3851_v35 = vmul.f32 50.0, %v3779_v27 }
 0x48d   :  { %3916 = vst.msk [vmem:[%s7722_s7 + $0x1b8] sm:$0xff] %vm3860_vm0, %v3851_v35 }
 0x48e   :  { %v3781_v9 = vpop.xlane.xlu0 %3780 }
 0x48f   :  { %v3852_v5 = vmul.f32 50.0, %v3781_v9 }
 0x491   :  { %3917 = vst.msk [vmem:[%s7722_s7 + $0x1c0] sm:$0xff] %vm3860_vm0, %v3852_v5 }
 0x492   :  { %v3783_v46 = vpop.xlane.xlu1 %3782 }
 0x493   :  { %v3853_v4 = vmul.f32 50.0, %v3783_v46 }
 0x495   :  { %3918 = vst.msk [vmem:[%s7722_s7 + $0x1c8] sm:$0xff] %vm3860_vm0, %v3853_v4 }
 0x496   :  { %v3785_v36 = vpop.xlane.xlu0 %3784 }
 0x497   :  { %v3854_v17 = vmul.f32 50.0, %v3785_v36 }
 0x499   :  { %3919 = vst.msk [vmem:[%s7722_s7 + $0x1d0] sm:$0xff] %vm3860_vm0, %v3854_v17 }
 0x49a   :  { %v3787_v24 = vpop.xlane.xlu1 %3786 }
 0x49b   :  { %v3855_v3 = vmul.f32 50.0, %v3787_v24 }
 0x49d   :  { %3920 = vst.msk [vmem:[%s7722_s7 + $0x1d8] sm:$0xff] %vm3860_vm0, %v3855_v3 }
 0x49e   :  { %v3789_v62 = vpop.xlane.xlu0 %3788 }
 0x49f   :  { %v3856_v61 = vmul.f32 50.0, %v3789_v62 }
 0x4a1   :  { %3921 = vst.msk [vmem:[%s7722_s7 + $0x1e0] sm:$0xff] %vm3860_vm0, %v3856_v61 }
 0x4a2   :  { %v3791_v1 = vpop.xlane.xlu1 %3790 }
 0x4a3   :  { %v3857_v0 = vmul.f32 50.0, %v3791_v1 }
 0x4a5   :  { %3922 = vst.msk [vmem:[%s7722_s7 + $0x1e8] sm:$0xff] %vm3860_vm0, %v3857_v0 }
 0x4a6   :  { %v3793_v15 = vpop.xlane.xlu0 %3792 }
 0x4a7   :  { %v3858_v41 = vmul.f32 50.0, %v3793_v15 }
 0x4a9   :  { %3923 = vst.msk [vmem:[%s7722_s7 + $0x1f0] sm:$0xff] %vm3860_vm0, %v3858_v41 }
 0x4aa   :  { %v3795_v22 = vpop.xlane.xlu1 %3794 }
 0x4ab   :  { %v3859_v7 = vmul.f32 50.0, %v3795_v22 }
 0x4ad   :  { %3924 = vst.msk [vmem:[%s7722_s7 + $0x1f8] sm:$0xff] %vm3860_vm0, %v3859_v7 }
 0x4ae   :  { %3929 = vsyncpa [#allocation3], 1 }
 0x4af   :  { %3930 = vsyncpa [#allocation5], 1 }
 0x4b0   :  { %3931 = vsyncpa [#allocation8], 1 }

</bundles_post_ra>
